<compile_context>
chip_gen: v7x
topology: tpu7x:2x2x1
jax: 0.10.0
libtpu: 0.0.40
codegen_flags: <defaults>
</compile_context>

<pallas_src>
import jax
import jax.numpy as jnp
from jax.experimental import pallas as pl
from jax.experimental.pallas import tpu as pltpu


def _round_up(x, m):
    return ((x + m - 1) // m) * m


def _make_encoder_kernel(NP, G, Wp, CL, act_dtype):
    """One grid step = one lane-packed block of P images, all 4 conv+ReLU
    layers fused in VMEM.

    Activation layout: (rows, CL) with CL = P*32 lanes (P images interleaved);
    rows = guard(G) | NP flattened 'same'-padded pixels | guard(G).
    """
    L = 2 * G + NP
    # flat-row offset of 3x3 tap (dy, dx) relative to the output pixel row
    deltas = [(dy - 1) * Wp + (dx - 1) for dy in range(3) for dx in range(3)]

    def kernel(mask_ref, x_ref, w0_ref, b_ref, w_ref, o_ref, act_a, act_b):
        # Guard bands: zeroed every step (tiny aligned stores, ~1% of the
        # per-layer store traffic).  Not gated on program_id==0 on purpose:
        # under megacore ("parallel") sharding each core has private scratch
        # and only one core ever sees step 0.
        zg = jnp.zeros((G, CL), act_dtype)
        act_a[0:G, :] = zg
        act_a[G + NP:L, :] = zg
        act_b[0:G, :] = zg
        act_b[G + NP:L, :] = zg

        # Static interior mask (1 = real output pixel, 0 = padding border or
        # alignment filler), precomputed in the wrapper (grid-invariant).
        mask = mask_ref[...]                                     # (NP, 1) f32

        # ---- layer 0: single deep-K matmul over wrapper-built im2col rows.
        y = jnp.dot(x_ref[...], w0_ref[...],
                    preferred_element_type=jnp.float32)          # (NP, CL)
        y = jnp.maximum(y + b_ref[0], 0.0) * mask
        act_a[G:G + NP, :] = y.astype(act_dtype)

        # ---- layers 1..3: 9 sublane-shifted taps, (NP,CL)x(CL,CL) matmuls.
        # NOTE: tap starts are not 8/16-row aligned; if the bundle dump shows
        # per-tap relayout copies, realize the +/-1-row taps with pltpu.roll
        # (XLU slot has slack) instead of shifted slices.
        def conv_relu(src_ref, li):
            acc = jnp.dot(src_ref[G + deltas[0]:G + deltas[0] + NP, :],
                          w_ref[9 * li + 0],
                          preferred_element_type=jnp.float32)
            for t in range(1, 9):
                d = deltas[t]
                acc = acc + jnp.dot(src_ref[G + d:G + d + NP, :],
                                    w_ref[9 * li + t],
                                    preferred_element_type=jnp.float32)
            return jnp.maximum(acc + b_ref[li + 1], 0.0)

        act_b[G:G + NP, :] = (conv_relu(act_a, 0) * mask).astype(act_dtype)
        act_a[G:G + NP, :] = (conv_relu(act_b, 1) * mask).astype(act_dtype)
        # Last layer: straight into the output block (border / filler rows are
        # sliced away by the wrapper, so no masking needed here).
        o_ref[...] = conv_relu(act_a, 2).astype(o_ref.dtype)

    return kernel


def easy_encoder_forward(obs_nchw, params, *, lane_pack=None,
                         compute_dtype=jnp.bfloat16):
    """obs_nchw: (B, Cin, H, W) float32, raw pixel scale (PyTorch-style input).
    params: 4 tuples (w, b), w in HWIO layout (3, 3, Ci, 32), b (32,).
    Returns h: (B, 32, H, W) float32 NCHW (matches the nn.Sequential output)."""
    obs = jnp.asarray(obs_nchw, jnp.float32)
    B, Cin, H, W = obs.shape
    Cout = 32
    Hp, Wp = H + 2, W + 2

    # Lane-pack factor: P images share the 128-lane axis (CL = P*32 lanes).
    # On v7x prefer B >= 2*P so the "parallel" grid still has >= 2 steps.
    if lane_pack is None:
        P = 4 if B >= 4 else max(1, B)
    else:
        P = max(1, min(int(lane_pack), 4, B))
    B_pad = _round_up(B, P)
    NB = B_pad // P
    CL = P * Cout
    K0 = 9 * Cin
    K0L = P * K0

    ALIGN = 16                                   # bf16 sublane packing
    NP = _round_up(Hp * Wp, ALIGN)               # flat padded-pixel rows / block
    G = _round_up(Wp + 1, ALIGN)                 # guard rows >= max |tap offset|
    L = 2 * G + NP

    # ---- weights: fold (x/255 - 0.5) into layer 0; lane-pack block-diagonally.
    eye_p = jnp.eye(P, dtype=jnp.float32)
    w0, b0 = params[0]
    w0 = jnp.asarray(w0, jnp.float32)
    b0 = jnp.asarray(b0, jnp.float32)
    b0 = b0 - 0.5 * jnp.sum(w0, axis=(0, 1, 2))     # fold of the "-0.5" term
    w0 = w0 / 255.0                                 # fold of the "/255" term
    w0_bd = jnp.kron(eye_p, w0.reshape(K0, Cout)).astype(compute_dtype)  # (K0L, CL)

    tap_ws, biases = [], [jnp.tile(b0, P)]
    for (w, b) in params[1:]:
        w = jnp.asarray(w, jnp.float32).reshape(9, Cout, Cout)   # tap-major (dy, dx)
        for t in range(9):
            tap_ws.append(jnp.kron(eye_p, w[t]))
        biases.append(jnp.tile(jnp.asarray(b, jnp.float32), P))
    w_all = jnp.stack(tap_ws).astype(compute_dtype)              # (27, CL, CL)
    b_all = jnp.stack(biases).reshape(4, 1, CL).astype(jnp.float32)

    # ---- static interior mask (1 = real output pixel inside the 'same' grid).
    pos = jnp.arange(NP, dtype=jnp.int32)
    row = pos // Wp
    col = pos % Wp
    interior = (pos < Hp * Wp) & (row >= 1) & (row <= H) & (col >= 1) & (col <= W)
    mask = interior.astype(jnp.float32).reshape(NP, 1)

    # ---- input: raw pixels -> lane-packed im2col rows for layer 0.
    x = jnp.transpose(obs, (0, 2, 3, 1))                         # (B, H, W, Cin)
    if B_pad != B:
        x = jnp.pad(x, ((0, B_pad - B), (0, 0), (0, 0), (0, 0)))
    # raw-pixel pad value 127.5 == normalized 0 after the fold, i.e. exactly
    # PyTorch's zero padding of the *normalized* input (exact in f32).
    xp = jnp.pad(x, ((0, 0), (2, 2), (2, 2), (0, 0)), constant_values=127.5)
    cols = jnp.concatenate(
        [xp[:, dy:dy + Hp, dx:dx + Wp, :] for dy in range(3) for dx in range(3)],
        axis=-1)                                                 # (B_pad, Hp, Wp, 9*Cin)
    x0 = cols.reshape(B_pad, Hp * Wp, K0)
    x0 = x0.reshape(NB, P, Hp * Wp, K0).transpose(0, 2, 1, 3).reshape(NB, Hp * Wp, K0L)
    x0 = jnp.pad(x0, ((0, 0), (0, NP - Hp * Wp), (0, 0)))
    x0 = x0.astype(compute_dtype)                                # (NB, NP, K0L)

    kernel = _make_encoder_kernel(NP, G, Wp, CL, compute_dtype)

    def const_spec(arr):
        nd = arr.ndim
        return pl.BlockSpec(arr.shape, lambda i, _n=nd: (0,) * _n)

    itemsize = jnp.dtype(compute_dtype).itemsize
    cost = pl.CostEstimate(
        flops=2 * B_pad * Hp * Wp * Cout * (9 * Cin + 3 * 9 * Cout),
        transcendentals=0,
        bytes_accessed=int(x0.size * itemsize + NB * NP * CL * itemsize
                           + (w0_bd.size + w_all.size) * itemsize
                           + (b_all.size + mask.size) * 4))
    vmem_est = (2 * L * CL * itemsize                     # act ping/pong scratch
                + 2 * (NP * K0L + NP * CL) * itemsize     # double-buffered in/out
                + 2 * (w0_bd.size + w_all.size) * itemsize
                + 2 * (b_all.size + mask.size) * 4)
    vmem_limit = int(min(48 * 2 ** 20, max(32 * 2 ** 20, int(1.5 * vmem_est))))

    out = pl.pallas_call(
        kernel,
        out_shape=jax.ShapeDtypeStruct((NB, NP, CL), compute_dtype),
        grid_spec=pltpu.PrefetchScalarGridSpec(
            num_scalar_prefetch=0,
            grid=(NB,),
            in_specs=[
                const_spec(mask),                                    # (NP, 1)
                pl.BlockSpec((None, NP, K0L), lambda i: (i, 0, 0)),  # im2col input
                const_spec(w0_bd),                                   # (K0L, CL)
                const_spec(b_all),                                   # (4, 1, CL)
                const_spec(w_all),                                   # (27, CL, CL)
            ],
            out_specs=pl.BlockSpec((None, NP, CL), lambda i: (i, 0, 0)),
            scratch_shapes=[
                pltpu.VMEM((L, CL), compute_dtype),   # activation ping
                pltpu.VMEM((L, CL), compute_dtype),   # activation pong
            ],
        ),
        compiler_params=pltpu.CompilerParams(
            dimension_semantics=("parallel",),
            vmem_limit_bytes=vmem_limit),
        cost_estimate=cost,
    )(mask, x0, w0_bd, b_all, w_all)

    # ---- unpack: lane-packed flat rows -> (B, 32, H, W) f32 (module layout).
    h = out.reshape(NB, NP, P, Cout)[:, :Hp * Wp]                # (NB, Hp*Wp, P, 32)
    h = h.transpose(0, 2, 1, 3).reshape(B_pad, Hp, Wp, Cout)[:B, 1:H + 1, 1:W + 1, :]
    return jnp.transpose(h, (0, 3, 1, 2)).astype(jnp.float32)


def _init_params(key, cin, cout=32, n_layers=4):
    """Deterministic synthetic weights (shapes from EasyEncoder.__init__)."""
    params = []
    c_prev = cin
    for _ in range(n_layers):
        k_w, k_b, key = jax.random.split(key, 3)
        fan_in = 9 * c_prev
        w = jax.random.normal(k_w, (3, 3, c_prev, cout), jnp.float32) / jnp.sqrt(fan_in)
        b = jax.random.normal(k_b, (cout,), jnp.float32) * 0.01
        params.append((w, b))
        c_prev = cout
    return params


def _reference_forward(obs_nchw, params):
    """Pure-JAX reference (XLA conv, f32) for correctness checks."""
    x = obs_nchw.astype(jnp.float32) / 255.0 - 0.5
    h = jnp.transpose(x, (0, 2, 3, 1))  # NHWC
    for (w, b) in params:
        h = jax.lax.conv_general_dilated(
            h, w, window_strides=(1, 1), padding="SAME",
            dimension_numbers=("NHWC", "HWIO", "NHWC"))
        h = jnp.maximum(h + b, 0.0)
    return jnp.transpose(h, (0, 3, 1, 2))  # NCHW


if __name__ == "__main__":
    key = jax.random.PRNGKey(0)
    k_obs, k_params = jax.random.split(key)

    # Small shapes (the real encoder runs 84x84 frame stacks); B=4 exercises
    # the full 128-lane packing path (P=4).
    B, Cin, H, W = 4, 4, 16, 16
    obs = jax.random.uniform(k_obs, (B, Cin, H, W), jnp.float32,
                             minval=0.0, maxval=255.0)
    params = _init_params(k_params, Cin)

    ref = jax.block_until_ready(_reference_forward(obs, params))
    scale = float(jnp.max(jnp.abs(ref)))

    # f32 kernel path: pins the im2col / tap-offset / lane-packing indexing
    # (the normalization fold is exact in f32) at a tighter tolerance.
    out_f32 = jax.block_until_ready(
        easy_encoder_forward(obs, params, compute_dtype=jnp.float32))
    assert out_f32.shape == (B, 32, H, W)
    err_f32 = float(jnp.max(jnp.abs(out_f32 - ref)))
    assert err_f32 <= 1e-3 + 2e-2 * scale, ("f32 path", err_f32, scale)

    # bf16 MXU path (production path): relaxed tolerance for operand rounding.
    out_bf16 = jax.block_until_ready(easy_encoder_forward(obs, params))
    assert out_bf16.shape == (B, 32, H, W)
    err_bf16 = float(jnp.max(jnp.abs(out_bf16 - ref)))
    assert err_bf16 <= 1e-3 + 5e-2 * scale, ("bf16 path", err_bf16, scale)

    print("KERNEL_OK")
</pallas_src>

<mosaic_0001>
module attributes {stable_mosaic.version = 11 : i64} {
  func.func @kernel(%arg0: i32, %arg1: memref<336x1xf32, #tpu.memory_space<vmem>>, %arg2: memref<1x336x144xf32, #tpu.memory_space<vmem>>, %arg3: memref<144x128xf32, #tpu.memory_space<vmem>>, %arg4: memref<4x1x128xf32, #tpu.memory_space<vmem>>, %arg5: memref<27x128x128xf32, #tpu.memory_space<vmem>>, %arg6: memref<1x336x128xf32, #tpu.memory_space<vmem>>, %arg7: memref<400x128xf32, #tpu.memory_space<vmem>>, %arg8: memref<400x128xf32, #tpu.memory_space<vmem>>) attributes {dimension_semantics = [#tpu.dimension_semantics<parallel>], iteration_bounds = array<i64: 1>, scalar_prefetch = 0 : i64, scratch_operands = 2 : i64, tpu.core_type = #tpu.core_type<tc>, window_params = [{pipeline_mode = #tpu.pipeline_mode<synchronous>, transform_indices = @transform_0, window_bounds = array<i64: 336, 1>}, {transform_indices = @transform_1, window_bounds = array<i64: 1, 336, 144>}, {pipeline_mode = #tpu.pipeline_mode<synchronous>, transform_indices = @transform_2, window_bounds = array<i64: 144, 128>}, {pipeline_mode = #tpu.pipeline_mode<synchronous>, transform_indices = @transform_3, window_bounds = array<i64: 4, 1, 128>}, {pipeline_mode = #tpu.pipeline_mode<synchronous>, transform_indices = @transform_4, window_bounds = array<i64: 27, 128, 128>}, {transform_indices = @transform_5, window_bounds = array<i64: 1, 336, 128>}]} {
    %cst = arith.constant 0.000000e+00 : f32
    %0 = vector.broadcast %cst : f32 to vector<32x128xf32>
    %c0 = arith.constant 0 : index
    %c0_0 = arith.constant 0 : index
    %1 = vector.load %arg7[%c0, %c0_0] : memref<400x128xf32, #tpu.memory_space<vmem>>, vector<32x128xf32>
    tpu.vector_store %arg7[%c0, %c0_0], %0 {strides = array<i32>} : memref<400x128xf32, #tpu.memory_space<vmem>>, vector<32x128xf32>,
    %c368 = arith.constant 368 : index
    %c0_1 = arith.constant 0 : index
    %2 = vector.load %arg7[%c368, %c0_1] : memref<400x128xf32, #tpu.memory_space<vmem>>, vector<32x128xf32>
    tpu.vector_store %arg7[%c368, %c0_1], %0 {strides = array<i32>} : memref<400x128xf32, #tpu.memory_space<vmem>>, vector<32x128xf32>,
    %c0_2 = arith.constant 0 : index
    %c0_3 = arith.constant 0 : index
    %3 = vector.load %arg8[%c0_2, %c0_3] : memref<400x128xf32, #tpu.memory_space<vmem>>, vector<32x128xf32>
    tpu.vector_store %arg8[%c0_2, %c0_3], %0 {strides = array<i32>} : memref<400x128xf32, #tpu.memory_space<vmem>>, vector<32x128xf32>,
    %c368_4 = arith.constant 368 : index
    %c0_5 = arith.constant 0 : index
    %4 = vector.load %arg8[%c368_4, %c0_5] : memref<400x128xf32, #tpu.memory_space<vmem>>, vector<32x128xf32>
    tpu.vector_store %arg8[%c368_4, %c0_5], %0 {strides = array<i32>} : memref<400x128xf32, #tpu.memory_space<vmem>>, vector<32x128xf32>,
    %c0_6 = arith.constant 0 : index
    %c0_7 = arith.constant 0 : index
    %5 = vector.load %arg1[%c0_6, %c0_7] : memref<336x1xf32, #tpu.memory_space<vmem>>, vector<336x1xf32>
    %c0_8 = arith.constant 0 : index
    %c0_9 = arith.constant 0 : index
    %c0_10 = arith.constant 0 : index
    %6 = vector.load %arg2[%c0_8, %c0_9, %c0_10] : memref<1x336x144xf32, #tpu.memory_space<vmem>>, vector<1x336x144xf32>
    %7 = vector.shape_cast %6 : vector<1x336x144xf32> to vector<336x144xf32>
    %c0_11 = arith.constant 0 : index
    %c0_12 = arith.constant 0 : index
    %8 = vector.load %arg3[%c0_11, %c0_12] : memref<144x128xf32, #tpu.memory_space<vmem>>, vector<144x128xf32>
    %cst_13 = arith.constant dense<0.000000e+00> : vector<336x128xf32>
    %9 = tpu.matmul %7, %8, %cst_13 {dimension_numbers = #tpu.dot_dimension_numbers<[1], [0], [0], [1], [0, 0, 1, 1], [], []>} : vector<336x144xf32>, vector<144x128xf32>, vector<336x128xf32> -> vector<336x128xf32>
    %c0_14 = arith.constant 0 : index
    %c0_15 = arith.constant 0 : index
    %c0_16 = arith.constant 0 : index
    %10 = vector.load %arg4[%c0_14, %c0_15, %c0_16] : memref<4x1x128xf32, #tpu.memory_space<vmem>>, vector<1x1x128xf32>
    %11 = vector.shape_cast %10 : vector<1x1x128xf32> to vector<1x128xf32>
    %12 = vector.broadcast %11 : vector<1x128xf32> to vector<336x128xf32>
    %13 = arith.addf %9, %12 : vector<336x128xf32>
    %cst_17 = arith.constant 0.000000e+00 : f32
    %14 = vector.broadcast %cst_17 : f32 to vector<336x128xf32>
    %15 = arith.maximumf %13, %14 : vector<336x128xf32>
    %16 = vector.broadcast %5 : vector<336x1xf32> to vector<336x128xf32>
    %17 = arith.mulf %15, %16 : vector<336x128xf32>
    %c32 = arith.constant 32 : index
    %c0_18 = arith.constant 0 : index
    %18 = vector.load %arg7[%c32, %c0_18] : memref<400x128xf32, #tpu.memory_space<vmem>>, vector<336x128xf32>
    tpu.vector_store %arg7[%c32, %c0_18], %17 {strides = array<i32>} : memref<400x128xf32, #tpu.memory_space<vmem>>, vector<336x128xf32>,
    %c13 = arith.constant 13 : index
    %c0_19 = arith.constant 0 : index
    %19 = vector.load %arg7[%c13, %c0_19] : memref<400x128xf32, #tpu.memory_space<vmem>>, vector<336x128xf32>
    %c0_20 = arith.constant 0 : index
    %c0_21 = arith.constant 0 : index
    %c0_22 = arith.constant 0 : index
    %20 = vector.load %arg5[%c0_20, %c0_21, %c0_22] : memref<27x128x128xf32, #tpu.memory_space<vmem>>, vector<1x128x128xf32>
    %21 = vector.shape_cast %20 : vector<1x128x128xf32> to vector<128x128xf32>
    %cst_23 = arith.constant dense<0.000000e+00> : vector<336x128xf32>
    %22 = tpu.matmul %19, %21, %cst_23 {dimension_numbers = #tpu.dot_dimension_numbers<[1], [0], [0], [1], [0, 0, 1, 1], [], []>} : vector<336x128xf32>, vector<128x128xf32>, vector<336x128xf32> -> vector<336x128xf32>
    %c14 = arith.constant 14 : index
    %c0_24 = arith.constant 0 : index
    %23 = vector.load %arg7[%c14, %c0_24] : memref<400x128xf32, #tpu.memory_space<vmem>>, vector<336x128xf32>
    %c1 = arith.constant 1 : index
    %c0_25 = arith.constant 0 : index
    %c0_26 = arith.constant 0 : index
    %24 = vector.load %arg5[%c1, %c0_25, %c0_26] : memref<27x128x128xf32, #tpu.memory_space<vmem>>, vector<1x128x128xf32>
    %25 = vector.shape_cast %24 : vector<1x128x128xf32> to vector<128x128xf32>
    %cst_27 = arith.constant dense<0.000000e+00> : vector<336x128xf32>
    %26 = tpu.matmul %23, %25, %cst_27 {dimension_numbers = #tpu.dot_dimension_numbers<[1], [0], [0], [1], [0, 0, 1, 1], [], []>} : vector<336x128xf32>, vector<128x128xf32>, vector<336x128xf32> -> vector<336x128xf32>
    %27 = arith.addf %22, %26 : vector<336x128xf32>
    %c15 = arith.constant 15 : index
    %c0_28 = arith.constant 0 : index
    %28 = vector.load %arg7[%c15, %c0_28] : memref<400x128xf32, #tpu.memory_space<vmem>>, vector<336x128xf32>
    %c2 = arith.constant 2 : index
    %c0_29 = arith.constant 0 : index
    %c0_30 = arith.constant 0 : index
    %29 = vector.load %arg5[%c2, %c0_29, %c0_30] : memref<27x128x128xf32, #tpu.memory_space<vmem>>, vector<1x128x128xf32>
    %30 = vector.shape_cast %29 : vector<1x128x128xf32> to vector<128x128xf32>
    %cst_31 = arith.constant dense<0.000000e+00> : vector<336x128xf32>
    %31 = tpu.matmul %28, %30, %cst_31 {dimension_numbers = #tpu.dot_dimension_numbers<[1], [0], [0], [1], [0, 0, 1, 1], [], []>} : vector<336x128xf32>, vector<128x128xf32>, vector<336x128xf32> -> vector<336x128xf32>
    %32 = arith.addf %27, %31 : vector<336x128xf32>
    %c31 = arith.constant 31 : index
    %c0_32 = arith.constant 0 : index
    %33 = vector.load %arg7[%c31, %c0_32] : memref<400x128xf32, #tpu.memory_space<vmem>>, vector<336x128xf32>
    %c3 = arith.constant 3 : index
    %c0_33 = arith.constant 0 : index
    %c0_34 = arith.constant 0 : index
    %34 = vector.load %arg5[%c3, %c0_33, %c0_34] : memref<27x128x128xf32, #tpu.memory_space<vmem>>, vector<1x128x128xf32>
    %35 = vector.shape_cast %34 : vector<1x128x128xf32> to vector<128x128xf32>
    %cst_35 = arith.constant dense<0.000000e+00> : vector<336x128xf32>
    %36 = tpu.matmul %33, %35, %cst_35 {dimension_numbers = #tpu.dot_dimension_numbers<[1], [0], [0], [1], [0, 0, 1, 1], [], []>} : vector<336x128xf32>, vector<128x128xf32>, vector<336x128xf32> -> vector<336x128xf32>
    %37 = arith.addf %32, %36 : vector<336x128xf32>
    %c32_36 = arith.constant 32 : index
    %c0_37 = arith.constant 0 : index
    %38 = vector.load %arg7[%c32_36, %c0_37] : memref<400x128xf32, #tpu.memory_space<vmem>>, vector<336x128xf32>
    %c4 = arith.constant 4 : index
    %c0_38 = arith.constant 0 : index
    %c0_39 = arith.constant 0 : index
    %39 = vector.load %arg5[%c4, %c0_38, %c0_39] : memref<27x128x128xf32, #tpu.memory_space<vmem>>, vector<1x128x128xf32>
    %40 = vector.shape_cast %39 : vector<1x128x128xf32> to vector<128x128xf32>
    %cst_40 = arith.constant dense<0.000000e+00> : vector<336x128xf32>
    %41 = tpu.matmul %38, %40, %cst_40 {dimension_numbers = #tpu.dot_dimension_numbers<[1], [0], [0], [1], [0, 0, 1, 1], [], []>} : vector<336x128xf32>, vector<128x128xf32>, vector<336x128xf32> -> vector<336x128xf32>
    %42 = arith.addf %37, %41 : vector<336x128xf32>
    %c33 = arith.constant 33 : index
    %c0_41 = arith.constant 0 : index
    %43 = vector.load %arg7[%c33, %c0_41] : memref<400x128xf32, #tpu.memory_space<vmem>>, vector<336x128xf32>
    %c5 = arith.constant 5 : index
    %c0_42 = arith.constant 0 : index
    %c0_43 = arith.constant 0 : index
    %44 = vector.load %arg5[%c5, %c0_42, %c0_43] : memref<27x128x128xf32, #tpu.memory_space<vmem>>, vector<1x128x128xf32>
    %45 = vector.shape_cast %44 : vector<1x128x128xf32> to vector<128x128xf32>
    %cst_44 = arith.constant dense<0.000000e+00> : vector<336x128xf32>
    %46 = tpu.matmul %43, %45, %cst_44 {dimension_numbers = #tpu.dot_dimension_numbers<[1], [0], [0], [1], [0, 0, 1, 1], [], []>} : vector<336x128xf32>, vector<128x128xf32>, vector<336x128xf32> -> vector<336x128xf32>
    %47 = arith.addf %42, %46 : vector<336x128xf32>
    %c49 = arith.constant 49 : index
    %c0_45 = arith.constant 0 : index
    %48 = vector.load %arg7[%c49, %c0_45] : memref<400x128xf32, #tpu.memory_space<vmem>>, vector<336x128xf32>
    %c6 = arith.constant 6 : index
    %c0_46 = arith.constant 0 : index
    %c0_47 = arith.constant 0 : index
    %49 = vector.load %arg5[%c6, %c0_46, %c0_47] : memref<27x128x128xf32, #tpu.memory_space<vmem>>, vector<1x128x128xf32>
    %50 = vector.shape_cast %49 : vector<1x128x128xf32> to vector<128x128xf32>
    %cst_48 = arith.constant dense<0.000000e+00> : vector<336x128xf32>
    %51 = tpu.matmul %48, %50, %cst_48 {dimension_numbers = #tpu.dot_dimension_numbers<[1], [0], [0], [1], [0, 0, 1, 1], [], []>} : vector<336x128xf32>, vector<128x128xf32>, vector<336x128xf32> -> vector<336x128xf32>
    %52 = arith.addf %47, %51 : vector<336x128xf32>
    %c50 = arith.constant 50 : index
    %c0_49 = arith.constant 0 : index
    %53 = vector.load %arg7[%c50, %c0_49] : memref<400x128xf32, #tpu.memory_space<vmem>>, vector<336x128xf32>
    %c7 = arith.constant 7 : index
    %c0_50 = arith.constant 0 : index
    %c0_51 = arith.constant 0 : index
    %54 = vector.load %arg5[%c7, %c0_50, %c0_51] : memref<27x128x128xf32, #tpu.memory_space<vmem>>, vector<1x128x128xf32>
    %55 = vector.shape_cast %54 : vector<1x128x128xf32> to vector<128x128xf32>
    %cst_52 = arith.constant dense<0.000000e+00> : vector<336x128xf32>
    %56 = tpu.matmul %53, %55, %cst_52 {dimension_numbers = #tpu.dot_dimension_numbers<[1], [0], [0], [1], [0, 0, 1, 1], [], []>} : vector<336x128xf32>, vector<128x128xf32>, vector<336x128xf32> -> vector<336x128xf32>
    %57 = arith.addf %52, %56 : vector<336x128xf32>
    %c51 = arith.constant 51 : index
    %c0_53 = arith.constant 0 : index
    %58 = vector.load %arg7[%c51, %c0_53] : memref<400x128xf32, #tpu.memory_space<vmem>>, vector<336x128xf32>
    %c8 = arith.constant 8 : index
    %c0_54 = arith.constant 0 : index
    %c0_55 = arith.constant 0 : index
    %59 = vector.load %arg5[%c8, %c0_54, %c0_55] : memref<27x128x128xf32, #tpu.memory_space<vmem>>, vector<1x128x128xf32>
    %60 = vector.shape_cast %59 : vector<1x128x128xf32> to vector<128x128xf32>
    %cst_56 = arith.constant dense<0.000000e+00> : vector<336x128xf32>
    %61 = tpu.matmul %58, %60, %cst_56 {dimension_numbers = #tpu.dot_dimension_numbers<[1], [0], [0], [1], [0, 0, 1, 1], [], []>} : vector<336x128xf32>, vector<128x128xf32>, vector<336x128xf32> -> vector<336x128xf32>
    %62 = arith.addf %57, %61 : vector<336x128xf32>
    %c1_57 = arith.constant 1 : index
    %c0_58 = arith.constant 0 : index
    %c0_59 = arith.constant 0 : index
    %63 = vector.load %arg4[%c1_57, %c0_58, %c0_59] : memref<4x1x128xf32, #tpu.memory_space<vmem>>, vector<1x1x128xf32>
    %64 = vector.shape_cast %63 : vector<1x1x128xf32> to vector<1x128xf32>
    %65 = vector.broadcast %64 : vector<1x128xf32> to vector<336x128xf32>
    %66 = arith.addf %62, %65 : vector<336x128xf32>
    %cst_60 = arith.constant 0.000000e+00 : f32
    %67 = vector.broadcast %cst_60 : f32 to vector<336x128xf32>
    %68 = arith.maximumf %66, %67 : vector<336x128xf32>
    %69 = vector.broadcast %5 : vector<336x1xf32> to vector<336x128xf32>
    %70 = arith.mulf %68, %69 : vector<336x128xf32>
    %c32_61 = arith.constant 32 : index
    %c0_62 = arith.constant 0 : index
    %71 = vector.load %arg8[%c32_61, %c0_62] : memref<400x128xf32, #tpu.memory_space<vmem>>, vector<336x128xf32>
    tpu.vector_store %arg8[%c32_61, %c0_62], %70 {strides = array<i32>} : memref<400x128xf32, #tpu.memory_space<vmem>>, vector<336x128xf32>,
    %c13_63 = arith.constant 13 : index
    %c0_64 = arith.constant 0 : index
    %72 = vector.load %arg8[%c13_63, %c0_64] : memref<400x128xf32, #tpu.memory_space<vmem>>, vector<336x128xf32>
    %c9 = arith.constant 9 : index
    %c0_65 = arith.constant 0 : index
    %c0_66 = arith.constant 0 : index
    %73 = vector.load %arg5[%c9, %c0_65, %c0_66] : memref<27x128x128xf32, #tpu.memory_space<vmem>>, vector<1x128x128xf32>
    %74 = vector.shape_cast %73 : vector<1x128x128xf32> to vector<128x128xf32>
    %cst_67 = arith.constant dense<0.000000e+00> : vector<336x128xf32>
    %75 = tpu.matmul %72, %74, %cst_67 {dimension_numbers = #tpu.dot_dimension_numbers<[1], [0], [0], [1], [0, 0, 1, 1], [], []>} : vector<336x128xf32>, vector<128x128xf32>, vector<336x128xf32> -> vector<336x128xf32>
    %c14_68 = arith.constant 14 : index
    %c0_69 = arith.constant 0 : index
    %76 = vector.load %arg8[%c14_68, %c0_69] : memref<400x128xf32, #tpu.memory_space<vmem>>, vector<336x128xf32>
    %c10 = arith.constant 10 : index
    %c0_70 = arith.constant 0 : index
    %c0_71 = arith.constant 0 : index
    %77 = vector.load %arg5[%c10, %c0_70, %c0_71] : memref<27x128x128xf32, #tpu.memory_space<vmem>>, vector<1x128x128xf32>
    %78 = vector.shape_cast %77 : vector<1x128x128xf32> to vector<128x128xf32>
    %cst_72 = arith.constant dense<0.000000e+00> : vector<336x128xf32>
    %79 = tpu.matmul %76, %78, %cst_72 {dimension_numbers = #tpu.dot_dimension_numbers<[1], [0], [0], [1], [0, 0, 1, 1], [], []>} : vector<336x128xf32>, vector<128x128xf32>, vector<336x128xf32> -> vector<336x128xf32>
    %80 = arith.addf %75, %79 : vector<336x128xf32>
    %c15_73 = arith.constant 15 : index
    %c0_74 = arith.constant 0 : index
    %81 = vector.load %arg8[%c15_73, %c0_74] : memref<400x128xf32, #tpu.memory_space<vmem>>, vector<336x128xf32>
    %c11 = arith.constant 11 : index
    %c0_75 = arith.constant 0 : index
    %c0_76 = arith.constant 0 : index
    %82 = vector.load %arg5[%c11, %c0_75, %c0_76] : memref<27x128x128xf32, #tpu.memory_space<vmem>>, vector<1x128x128xf32>
    %83 = vector.shape_cast %82 : vector<1x128x128xf32> to vector<128x128xf32>
    %cst_77 = arith.constant dense<0.000000e+00> : vector<336x128xf32>
    %84 = tpu.matmul %81, %83, %cst_77 {dimension_numbers = #tpu.dot_dimension_numbers<[1], [0], [0], [1], [0, 0, 1, 1], [], []>} : vector<336x128xf32>, vector<128x128xf32>, vector<336x128xf32> -> vector<336x128xf32>
    %85 = arith.addf %80, %84 : vector<336x128xf32>
    %c31_78 = arith.constant 31 : index
    %c0_79 = arith.constant 0 : index
    %86 = vector.load %arg8[%c31_78, %c0_79] : memref<400x128xf32, #tpu.memory_space<vmem>>, vector<336x128xf32>
    %c12 = arith.constant 12 : index
    %c0_80 = arith.constant 0 : index
    %c0_81 = arith.constant 0 : index
    %87 = vector.load %arg5[%c12, %c0_80, %c0_81] : memref<27x128x128xf32, #tpu.memory_space<vmem>>, vector<1x128x128xf32>
    %88 = vector.shape_cast %87 : vector<1x128x128xf32> to vector<128x128xf32>
    %cst_82 = arith.constant dense<0.000000e+00> : vector<336x128xf32>
    %89 = tpu.matmul %86, %88, %cst_82 {dimension_numbers = #tpu.dot_dimension_numbers<[1], [0], [0], [1], [0, 0, 1, 1], [], []>} : vector<336x128xf32>, vector<128x128xf32>, vector<336x128xf32> -> vector<336x128xf32>
    %90 = arith.addf %85, %89 : vector<336x128xf32>
    %c32_83 = arith.constant 32 : index
    %c0_84 = arith.constant 0 : index
    %91 = vector.load %arg8[%c32_83, %c0_84] : memref<400x128xf32, #tpu.memory_space<vmem>>, vector<336x128xf32>
    %c13_85 = arith.constant 13 : index
    %c0_86 = arith.constant 0 : index
    %c0_87 = arith.constant 0 : index
    %92 = vector.load %arg5[%c13_85, %c0_86, %c0_87] : memref<27x128x128xf32, #tpu.memory_space<vmem>>, vector<1x128x128xf32>
    %93 = vector.shape_cast %92 : vector<1x128x128xf32> to vector<128x128xf32>
    %cst_88 = arith.constant dense<0.000000e+00> : vector<336x128xf32>
    %94 = tpu.matmul %91, %93, %cst_88 {dimension_numbers = #tpu.dot_dimension_numbers<[1], [0], [0], [1], [0, 0, 1, 1], [], []>} : vector<336x128xf32>, vector<128x128xf32>, vector<336x128xf32> -> vector<336x128xf32>
    %95 = arith.addf %90, %94 : vector<336x128xf32>
    %c33_89 = arith.constant 33 : index
    %c0_90 = arith.constant 0 : index
    %96 = vector.load %arg8[%c33_89, %c0_90] : memref<400x128xf32, #tpu.memory_space<vmem>>, vector<336x128xf32>
    %c14_91 = arith.constant 14 : index
    %c0_92 = arith.constant 0 : index
    %c0_93 = arith.constant 0 : index
    %97 = vector.load %arg5[%c14_91, %c0_92, %c0_93] : memref<27x128x128xf32, #tpu.memory_space<vmem>>, vector<1x128x128xf32>
    %98 = vector.shape_cast %97 : vector<1x128x128xf32> to vector<128x128xf32>
    %cst_94 = arith.constant dense<0.000000e+00> : vector<336x128xf32>
    %99 = tpu.matmul %96, %98, %cst_94 {dimension_numbers = #tpu.dot_dimension_numbers<[1], [0], [0], [1], [0, 0, 1, 1], [], []>} : vector<336x128xf32>, vector<128x128xf32>, vector<336x128xf32> -> vector<336x128xf32>
    %100 = arith.addf %95, %99 : vector<336x128xf32>
    %c49_95 = arith.constant 49 : index
    %c0_96 = arith.constant 0 : index
    %101 = vector.load %arg8[%c49_95, %c0_96] : memref<400x128xf32, #tpu.memory_space<vmem>>, vector<336x128xf32>
    %c15_97 = arith.constant 15 : index
    %c0_98 = arith.constant 0 : index
    %c0_99 = arith.constant 0 : index
    %102 = vector.load %arg5[%c15_97, %c0_98, %c0_99] : memref<27x128x128xf32, #tpu.memory_space<vmem>>, vector<1x128x128xf32>
    %103 = vector.shape_cast %102 : vector<1x128x128xf32> to vector<128x128xf32>
    %cst_100 = arith.constant dense<0.000000e+00> : vector<336x128xf32>
    %104 = tpu.matmul %101, %103, %cst_100 {dimension_numbers = #tpu.dot_dimension_numbers<[1], [0], [0], [1], [0, 0, 1, 1], [], []>} : vector<336x128xf32>, vector<128x128xf32>, vector<336x128xf32> -> vector<336x128xf32>
    %105 = arith.addf %100, %104 : vector<336x128xf32>
    %c50_101 = arith.constant 50 : index
    %c0_102 = arith.constant 0 : index
    %106 = vector.load %arg8[%c50_101, %c0_102] : memref<400x128xf32, #tpu.memory_space<vmem>>, vector<336x128xf32>
    %c16 = arith.constant 16 : index
    %c0_103 = arith.constant 0 : index
    %c0_104 = arith.constant 0 : index
    %107 = vector.load %arg5[%c16, %c0_103, %c0_104] : memref<27x128x128xf32, #tpu.memory_space<vmem>>, vector<1x128x128xf32>
    %108 = vector.shape_cast %107 : vector<1x128x128xf32> to vector<128x128xf32>
    %cst_105 = arith.constant dense<0.000000e+00> : vector<336x128xf32>
    %109 = tpu.matmul %106, %108, %cst_105 {dimension_numbers = #tpu.dot_dimension_numbers<[1], [0], [0], [1], [0, 0, 1, 1], [], []>} : vector<336x128xf32>, vector<128x128xf32>, vector<336x128xf32> -> vector<336x128xf32>
    %110 = arith.addf %105, %109 : vector<336x128xf32>
    %c51_106 = arith.constant 51 : index
    %c0_107 = arith.constant 0 : index
    %111 = vector.load %arg8[%c51_106, %c0_107] : memref<400x128xf32, #tpu.memory_space<vmem>>, vector<336x128xf32>
    %c17 = arith.constant 17 : index
    %c0_108 = arith.constant 0 : index
    %c0_109 = arith.constant 0 : index
    %112 = vector.load %arg5[%c17, %c0_108, %c0_109] : memref<27x128x128xf32, #tpu.memory_space<vmem>>, vector<1x128x128xf32>
    %113 = vector.shape_cast %112 : vector<1x128x128xf32> to vector<128x128xf32>
    %cst_110 = arith.constant dense<0.000000e+00> : vector<336x128xf32>
    %114 = tpu.matmul %111, %113, %cst_110 {dimension_numbers = #tpu.dot_dimension_numbers<[1], [0], [0], [1], [0, 0, 1, 1], [], []>} : vector<336x128xf32>, vector<128x128xf32>, vector<336x128xf32> -> vector<336x128xf32>
    %115 = arith.addf %110, %114 : vector<336x128xf32>
    %c2_111 = arith.constant 2 : index
    %c0_112 = arith.constant 0 : index
    %c0_113 = arith.constant 0 : index
    %116 = vector.load %arg4[%c2_111, %c0_112, %c0_113] : memref<4x1x128xf32, #tpu.memory_space<vmem>>, vector<1x1x128xf32>
    %117 = vector.shape_cast %116 : vector<1x1x128xf32> to vector<1x128xf32>
    %118 = vector.broadcast %117 : vector<1x128xf32> to vector<336x128xf32>
    %119 = arith.addf %115, %118 : vector<336x128xf32>
    %cst_114 = arith.constant 0.000000e+00 : f32
    %120 = vector.broadcast %cst_114 : f32 to vector<336x128xf32>
    %121 = arith.maximumf %119, %120 : vector<336x128xf32>
    %122 = vector.broadcast %5 : vector<336x1xf32> to vector<336x128xf32>
    %123 = arith.mulf %121, %122 : vector<336x128xf32>
    %c32_115 = arith.constant 32 : index
    %c0_116 = arith.constant 0 : index
    %124 = vector.load %arg7[%c32_115, %c0_116] : memref<400x128xf32, #tpu.memory_space<vmem>>, vector<336x128xf32>
    tpu.vector_store %arg7[%c32_115, %c0_116], %123 {strides = array<i32>} : memref<400x128xf32, #tpu.memory_space<vmem>>, vector<336x128xf32>,
    %c13_117 = arith.constant 13 : index
    %c0_118 = arith.constant 0 : index
    %125 = vector.load %arg7[%c13_117, %c0_118] : memref<400x128xf32, #tpu.memory_space<vmem>>, vector<336x128xf32>
    %c18 = arith.constant 18 : index
    %c0_119 = arith.constant 0 : index
    %c0_120 = arith.constant 0 : index
    %126 = vector.load %arg5[%c18, %c0_119, %c0_120] : memref<27x128x128xf32, #tpu.memory_space<vmem>>, vector<1x128x128xf32>
    %127 = vector.shape_cast %126 : vector<1x128x128xf32> to vector<128x128xf32>
    %cst_121 = arith.constant dense<0.000000e+00> : vector<336x128xf32>
    %128 = tpu.matmul %125, %127, %cst_121 {dimension_numbers = #tpu.dot_dimension_numbers<[1], [0], [0], [1], [0, 0, 1, 1], [], []>} : vector<336x128xf32>, vector<128x128xf32>, vector<336x128xf32> -> vector<336x128xf32>
    %c14_122 = arith.constant 14 : index
    %c0_123 = arith.constant 0 : index
    %129 = vector.load %arg7[%c14_122, %c0_123] : memref<400x128xf32, #tpu.memory_space<vmem>>, vector<336x128xf32>
    %c19 = arith.constant 19 : index
    %c0_124 = arith.constant 0 : index
    %c0_125 = arith.constant 0 : index
    %130 = vector.load %arg5[%c19, %c0_124, %c0_125] : memref<27x128x128xf32, #tpu.memory_space<vmem>>, vector<1x128x128xf32>
    %131 = vector.shape_cast %130 : vector<1x128x128xf32> to vector<128x128xf32>
    %cst_126 = arith.constant dense<0.000000e+00> : vector<336x128xf32>
    %132 = tpu.matmul %129, %131, %cst_126 {dimension_numbers = #tpu.dot_dimension_numbers<[1], [0], [0], [1], [0, 0, 1, 1], [], []>} : vector<336x128xf32>, vector<128x128xf32>, vector<336x128xf32> -> vector<336x128xf32>
    %133 = arith.addf %128, %132 : vector<336x128xf32>
    %c15_127 = arith.constant 15 : index
    %c0_128 = arith.constant 0 : index
    %134 = vector.load %arg7[%c15_127, %c0_128] : memref<400x128xf32, #tpu.memory_space<vmem>>, vector<336x128xf32>
    %c20 = arith.constant 20 : index
    %c0_129 = arith.constant 0 : index
    %c0_130 = arith.constant 0 : index
    %135 = vector.load %arg5[%c20, %c0_129, %c0_130] : memref<27x128x128xf32, #tpu.memory_space<vmem>>, vector<1x128x128xf32>
    %136 = vector.shape_cast %135 : vector<1x128x128xf32> to vector<128x128xf32>
    %cst_131 = arith.constant dense<0.000000e+00> : vector<336x128xf32>
    %137 = tpu.matmul %134, %136, %cst_131 {dimension_numbers = #tpu.dot_dimension_numbers<[1], [0], [0], [1], [0, 0, 1, 1], [], []>} : vector<336x128xf32>, vector<128x128xf32>, vector<336x128xf32> -> vector<336x128xf32>
    %138 = arith.addf %133, %137 : vector<336x128xf32>
    %c31_132 = arith.constant 31 : index
    %c0_133 = arith.constant 0 : index
    %139 = vector.load %arg7[%c31_132, %c0_133] : memref<400x128xf32, #tpu.memory_space<vmem>>, vector<336x128xf32>
    %c21 = arith.constant 21 : index
    %c0_134 = arith.constant 0 : index
    %c0_135 = arith.constant 0 : index
    %140 = vector.load %arg5[%c21, %c0_134, %c0_135] : memref<27x128x128xf32, #tpu.memory_space<vmem>>, vector<1x128x128xf32>
    %141 = vector.shape_cast %140 : vector<1x128x128xf32> to vector<128x128xf32>
    %cst_136 = arith.constant dense<0.000000e+00> : vector<336x128xf32>
    %142 = tpu.matmul %139, %141, %cst_136 {dimension_numbers = #tpu.dot_dimension_numbers<[1], [0], [0], [1], [0, 0, 1, 1], [], []>} : vector<336x128xf32>, vector<128x128xf32>, vector<336x128xf32> -> vector<336x128xf32>
    %143 = arith.addf %138, %142 : vector<336x128xf32>
    %c32_137 = arith.constant 32 : index
    %c0_138 = arith.constant 0 : index
    %144 = vector.load %arg7[%c32_137, %c0_138] : memref<400x128xf32, #tpu.memory_space<vmem>>, vector<336x128xf32>
    %c22 = arith.constant 22 : index
    %c0_139 = arith.constant 0 : index
    %c0_140 = arith.constant 0 : index
    %145 = vector.load %arg5[%c22, %c0_139, %c0_140] : memref<27x128x128xf32, #tpu.memory_space<vmem>>, vector<1x128x128xf32>
    %146 = vector.shape_cast %145 : vector<1x128x128xf32> to vector<128x128xf32>
    %cst_141 = arith.constant dense<0.000000e+00> : vector<336x128xf32>
    %147 = tpu.matmul %144, %146, %cst_141 {dimension_numbers = #tpu.dot_dimension_numbers<[1], [0], [0], [1], [0, 0, 1, 1], [], []>} : vector<336x128xf32>, vector<128x128xf32>, vector<336x128xf32> -> vector<336x128xf32>
    %148 = arith.addf %143, %147 : vector<336x128xf32>
    %c33_142 = arith.constant 33 : index
    %c0_143 = arith.constant 0 : index
    %149 = vector.load %arg7[%c33_142, %c0_143] : memref<400x128xf32, #tpu.memory_space<vmem>>, vector<336x128xf32>
    %c23 = arith.constant 23 : index
    %c0_144 = arith.constant 0 : index
    %c0_145 = arith.constant 0 : index
    %150 = vector.load %arg5[%c23, %c0_144, %c0_145] : memref<27x128x128xf32, #tpu.memory_space<vmem>>, vector<1x128x128xf32>
    %151 = vector.shape_cast %150 : vector<1x128x128xf32> to vector<128x128xf32>
    %cst_146 = arith.constant dense<0.000000e+00> : vector<336x128xf32>
    %152 = tpu.matmul %149, %151, %cst_146 {dimension_numbers = #tpu.dot_dimension_numbers<[1], [0], [0], [1], [0, 0, 1, 1], [], []>} : vector<336x128xf32>, vector<128x128xf32>, vector<336x128xf32> -> vector<336x128xf32>
    %153 = arith.addf %148, %152 : vector<336x128xf32>
    %c49_147 = arith.constant 49 : index
    %c0_148 = arith.constant 0 : index
    %154 = vector.load %arg7[%c49_147, %c0_148] : memref<400x128xf32, #tpu.memory_space<vmem>>, vector<336x128xf32>
    %c24 = arith.constant 24 : index
    %c0_149 = arith.constant 0 : index
    %c0_150 = arith.constant 0 : index
    %155 = vector.load %arg5[%c24, %c0_149, %c0_150] : memref<27x128x128xf32, #tpu.memory_space<vmem>>, vector<1x128x128xf32>
    %156 = vector.shape_cast %155 : vector<1x128x128xf32> to vector<128x128xf32>
    %cst_151 = arith.constant dense<0.000000e+00> : vector<336x128xf32>
    %157 = tpu.matmul %154, %156, %cst_151 {dimension_numbers = #tpu.dot_dimension_numbers<[1], [0], [0], [1], [0, 0, 1, 1], [], []>} : vector<336x128xf32>, vector<128x128xf32>, vector<336x128xf32> -> vector<336x128xf32>
    %158 = arith.addf %153, %157 : vector<336x128xf32>
    %c50_152 = arith.constant 50 : index
    %c0_153 = arith.constant 0 : index
    %159 = vector.load %arg7[%c50_152, %c0_153] : memref<400x128xf32, #tpu.memory_space<vmem>>, vector<336x128xf32>
    %c25 = arith.constant 25 : index
    %c0_154 = arith.constant 0 : index
    %c0_155 = arith.constant 0 : index
    %160 = vector.load %arg5[%c25, %c0_154, %c0_155] : memref<27x128x128xf32, #tpu.memory_space<vmem>>, vector<1x128x128xf32>
    %161 = vector.shape_cast %160 : vector<1x128x128xf32> to vector<128x128xf32>
    %cst_156 = arith.constant dense<0.000000e+00> : vector<336x128xf32>
    %162 = tpu.matmul %159, %161, %cst_156 {dimension_numbers = #tpu.dot_dimension_numbers<[1], [0], [0], [1], [0, 0, 1, 1], [], []>} : vector<336x128xf32>, vector<128x128xf32>, vector<336x128xf32> -> vector<336x128xf32>
    %163 = arith.addf %158, %162 : vector<336x128xf32>
    %c51_157 = arith.constant 51 : index
    %c0_158 = arith.constant 0 : index
    %164 = vector.load %arg7[%c51_157, %c0_158] : memref<400x128xf32, #tpu.memory_space<vmem>>, vector<336x128xf32>
    %c26 = arith.constant 26 : index
    %c0_159 = arith.constant 0 : index
    %c0_160 = arith.constant 0 : index
    %165 = vector.load %arg5[%c26, %c0_159, %c0_160] : memref<27x128x128xf32, #tpu.memory_space<vmem>>, vector<1x128x128xf32>
    %166 = vector.shape_cast %165 : vector<1x128x128xf32> to vector<128x128xf32>
    %cst_161 = arith.constant dense<0.000000e+00> : vector<336x128xf32>
    %167 = tpu.matmul %164, %166, %cst_161 {dimension_numbers = #tpu.dot_dimension_numbers<[1], [0], [0], [1], [0, 0, 1, 1], [], []>} : vector<336x128xf32>, vector<128x128xf32>, vector<336x128xf32> -> vector<336x128xf32>
    %168 = arith.addf %163, %167 : vector<336x128xf32>
    %c3_162 = arith.constant 3 : index
    %c0_163 = arith.constant 0 : index
    %c0_164 = arith.constant 0 : index
    %169 = vector.load %arg4[%c3_162, %c0_163, %c0_164] : memref<4x1x128xf32, #tpu.memory_space<vmem>>, vector<1x1x128xf32>
    %170 = vector.shape_cast %169 : vector<1x1x128xf32> to vector<1x128xf32>
    %171 = vector.broadcast %170 : vector<1x128xf32> to vector<336x128xf32>
    %172 = arith.addf %168, %171 : vector<336x128xf32>
    %cst_165 = arith.constant 0.000000e+00 : f32
    %173 = vector.broadcast %cst_165 : f32 to vector<336x128xf32>
    %174 = arith.maximumf %172, %173 : vector<336x128xf32>
    %c0_166 = arith.constant 0 : index
    %c0_167 = arith.constant 0 : index
    %c0_168 = arith.constant 0 : index
    %175 = vector.load %arg6[%c0_166, %c0_167, %c0_168] : memref<1x336x128xf32, #tpu.memory_space<vmem>>, vector<1x336x128xf32>
    %176 = vector.shape_cast %175 : vector<1x336x128xf32> to vector<336x128xf32>
    %177 = vector.shape_cast %174 : vector<336x128xf32> to vector<1x336x128xf32>
    tpu.vector_store %arg6[%c0_166, %c0_167, %c0_168], %177 {strides = array<i32>} : memref<1x336x128xf32, #tpu.memory_space<vmem>>, vector<1x336x128xf32>,
    return
  }
  func.func @transform_0(%arg0: i32) -> (i32, i32) {
    %c0_i32 = arith.constant 0 : i32
    %c0_i32_0 = arith.constant 0 : i32
    %c0_i32_1 = arith.constant 0 : i32
    return %c0_i32, %c0_i32_0 : i32, i32
  }
  func.func @transform_1(%arg0: i32) -> (i32, i32, i32) {
    %c0_i32 = arith.constant 0 : i32
    %c0_i32_0 = arith.constant 0 : i32
    %c0_i32_1 = arith.constant 0 : i32
    return %arg0, %c0_i32, %c0_i32_0 : i32, i32, i32
  }
  func.func @transform_2(%arg0: i32) -> (i32, i32) {
    %c0_i32 = arith.constant 0 : i32
    %c0_i32_0 = arith.constant 0 : i32
    %c0_i32_1 = arith.constant 0 : i32
    return %c0_i32, %c0_i32_0 : i32, i32
  }
  func.func @transform_3(%arg0: i32) -> (i32, i32, i32) {
    %c0_i32 = arith.constant 0 : i32
    %c0_i32_0 = arith.constant 0 : i32
    %c0_i32_1 = arith.constant 0 : i32
    %c0_i32_2 = arith.constant 0 : i32
    return %c0_i32, %c0_i32_0, %c0_i32_1 : i32, i32, i32
  }
  func.func @transform_4(%arg0: i32) -> (i32, i32, i32) {
    %c0_i32 = arith.constant 0 : i32
    %c0_i32_0 = arith.constant 0 : i32
    %c0_i32_1 = arith.constant 0 : i32
    %c0_i32_2 = arith.constant 0 : i32
    return %c0_i32, %c0_i32_0, %c0_i32_1 : i32, i32, i32
  }
  func.func @transform_5(%arg0: i32) -> (i32, i32, i32) {
    %c0_i32 = arith.constant 0 : i32
    %c0_i32_0 = arith.constant 0 : i32
    %c0_i32_1 = arith.constant 0 : i32
    return %arg0, %c0_i32, %c0_i32_0 : i32, i32, i32
  }
}

</mosaic_0001>

<bundles_post_ra>
// kernel: tpu_custom_call.1
= control target key start
LH: loop header
LB: loop body
LE: loop exit
PB: predicated region body
PF: predicated region fallthrough
CT: control target
= control target key end

     0   :  { %10 = vsyncpa [#allocation5], 0  ;;  %s19772_s0 = inlined_call_operand.vmem [shape: f32[336,1], index: 0, kind: input, shape index: {}]   ;;  %s19773_s1 = inlined_call_operand.vmem [shape: f32[1,336,144], index: 1, kind: input, shape index: {}]   ;;  %s19774_s2 = inlined_call_operand.hbm [shape: f32[144,128], index: 2, kind: input, shape index: {}]   ;;  %s19775_s3 = inlined_call_operand.hbm [shape: f32[4,1,128], index: 3, kind: input, shape index: {}]   ;;  %s19776_s4 = inlined_call_operand.hbm [shape: f32[27,128,128], index: 4, kind: input, shape index: {}]   ;;  %s19777_s5 = inlined_call_operand.hbm [shape: f32[1,336,128], index: 5, kind: output, shape index: {}]  }
   0x1   :  { %11 = vsyncpa [#allocation8], 0 }
   0x2   :  { %12 = vsyncpa [#allocation6], 0  ;;  %s17569_s18 = smov [#allocation7]   ;;  %s17475_s22 = scalar_lea.hbm %s19775_s3, 64 }
   0x3   :  { %s34_s19 = sshll.u32 %s17569_s18, 4  ;;  %p17476_p0 = scmp.ne.s32.totalorder %s19775_s3, %s17475_s22  ;;  %s35_s19 = int_to_ptr.vmem [resolvable:$true] %s34_s19 }
   0x4   :  { %p17479_p1 = scmp.lt.u32.totalorder %s17475_s22, %s19775_s3 }
   0x6   :  { %p17481_p2 = pnand %p17479_p1, %p17476_p0 }
   0x8   :  { %17484 = shalt.err (!%p17481_p2)
}
   0x9   :  { %s17485_s27 = scalar_lea.vmem %s35_s19, 64  ;;  %p17490_p4 = scmp.lt.s32.totalorder %s35_s19, %s35_s19 }
   0xa   :  { %p17486_p3 = scmp.ne.s32.totalorder %s35_s19, %s17485_s27  ;;  %p17491_p5 = scmp.lt.s32.totalorder %s17485_s27, %s17485_s27 }
   0xc   :  { %p17492_p6 = por %p17491_p5, %p17490_p4 }
   0xe   :  { %p17493_p7 = pnand %p17492_p6, %p17486_p3 }
  0x10   :  { %17496 = shalt.err (!%p17493_p7)
}
  0x11   :  { %s17570_s28 = smov 16   ;;  %s17571_s29 = smov 1  }
  0x12   :  { %40 = dma.hbm_to_vmem [thread:$0]  %s19775_s3, 64, %s35_s19, [#allocation8], %s17570_s28, %s17570_s28, %s17571_s29  }
  0x13   :  { %s17572_s7 = smov [#allocation4]   ;;  %s17497_s11 = scalar_lea.hbm %s19774_s2, 2304 }
  0x14   :  { %s22_s8 = sshll.u32 %s17572_s7, 4  ;;  %p17498_p8 = scmp.ne.s32.totalorder %s19774_s2, %s17497_s11  ;;  %s23_s8 = int_to_ptr.vmem [resolvable:$true] %s22_s8 }
  0x15   :  { %p17501_p9 = scmp.lt.u32.totalorder %s17497_s11, %s19774_s2 }
  0x17   :  { %p17503_p10 = pnand %p17501_p9, %p17498_p8 }
  0x19   :  { %17506 = shalt.err (!%p17503_p10)
}
  0x1a   :  { %s17507_s16 = scalar_lea.vmem %s23_s8, 2304  ;;  %p17512_p12 = scmp.lt.s32.totalorder %s23_s8, %s23_s8 }
  0x1b   :  { %p17508_p11 = scmp.ne.s32.totalorder %s23_s8, %s17507_s16  ;;  %p17513_p13 = scmp.lt.s32.totalorder %s17507_s16, %s17507_s16 }
  0x1d   :  { %p17514_p0 = por %p17513_p13, %p17512_p12 }
  0x1f   :  { %p17515_p1 = pnand %p17514_p0, %p17508_p11 }
  0x21   :  { %17518 = shalt.err (!%p17515_p1)
}
  0x22   :  { %s17573_s3 = smov 128   ;;  %s17574_s17 = smov 8  }
  0x23   :  { %28 = dma.hbm_to_vmem [thread:$0]  %s19774_s2, 2304, %s23_s8, [#allocation5], %s17573_s3, %s17573_s3, %s17574_s17  }
  0x24   :  { %s17575_s20 = smov [#allocation9]   ;;  %s17519_s24 = scalar_lea.hbm %s19776_s4, 55296 }
  0x25   :  { %s46_s21 = sshll.u32 %s17575_s20, 4  ;;  %p17520_p2 = scmp.ne.s32.totalorder %s19776_s4, %s17519_s24  ;;  %s47_s21 = int_to_ptr.vmem [resolvable:$true] %s46_s21 }
  0x26   :  { %p17523_p3 = scmp.lt.u32.totalorder %s17519_s24, %s19776_s4 }
  0x28   :  { %p17525_p4 = pnand %p17523_p3, %p17520_p2 }
  0x2a   :  { %17528 = shalt.err (!%p17525_p4)
}
  0x2b   :  { %s17529_s29 = scalar_lea.vmem %s47_s21, 55296  ;;  %p17534_p6 = scmp.lt.s32.totalorder %s47_s21, %s47_s21 }
  0x2c   :  { %p17530_p5 = scmp.ne.s32.totalorder %s47_s21, %s17529_s29  ;;  %p17535_p7 = scmp.lt.s32.totalorder %s17529_s29, %s17529_s29 }
  0x2e   :  { %p17536_p8 = por %p17535_p7, %p17534_p6 }
  0x30   :  { %p17537_p9 = pnand %p17536_p8, %p17530_p5 }
  0x32   :  { %17540 = shalt.err (!%p17537_p9)
}
  0x33   :  { %52 = dma.hbm_to_vmem [thread:$0]  %s19776_s4, 55296, %s47_s21, [#allocation8], %s17573_s3, %s17573_s3, %s17574_s17  }
  0x34   :  { %17563 = dma.done.wait [#allocation5], 2304  }
  0x35   :  { %17564 = vsyncadd [#allocation5], 4294964992 }
  0x36   :  { %17565 = dma.done.wait [#allocation8], 55360  }
  0x37   :  { %17566 = vsyncadd [#allocation8], 4294911936  ;;  %v17576_v0 = vmov 0.0|0.0   ;;  %v17577_v1 = vmov 0   ;;  %v204_v2 = vld [vmem:[#allocation4] sm:$0xff]  ;;  %v205_v3 = vld [vmem:[#allocation4 + $0x8] sm:$0xff] }
  0x38   :  { %15547 = vmatprep.subr.bf16.mxu0 %v17576_v0  ;;  %17474 = vset.pattern.permute.xlu1 %v17577_v1  ;;  %v206_v4 = vld [vmem:[#allocation4 + $0x10] sm:$0xff]  ;;  %v15548_v5 = vpack.c.bf16 %v205_v3, %v204_v2  ;;  %v207_v6 = vld [vmem:[#allocation4 + $0x18] sm:$0xff]  ;;  %v208_v8 = vld [vmem:[#allocation4 + $0x20] sm:$0xff]  ;;  %vm229_vm0 = vcmask 130048  }
  0x39   :  { %17473 = vset.pattern.permute.xlu0 %v17577_v1  ;;  %v15551_v7 = vpack.c.bf16 %v207_v6, %v206_v4  ;;  %v209_v9 = vld [vmem:[#allocation4 + $0x28] sm:$0xff]  ;;  %v121_v10 = vld [vmem:[%s19773_s1 + $0x8] sm:$0xff]  ;;  %v210_v12 = vld [vmem:[#allocation4 + $0x30] sm:$0xff] }
  0x3a   :  { %15549 = vmatpush1.bf16.msra.mxu0 %v15548_v5  ;;  %v15554_v11 = vpack.c.bf16 %v209_v9, %v208_v8  ;;  %11371 = vmatprep.mubr.msk.f32.mxu0 %vm229_vm0, %v121_v10  ;;  %v211_v13 = vld [vmem:[#allocation4 + $0x38] sm:$0xff]  ;;  %v212_v15 = vld [vmem:[#allocation4 + $0x40] sm:$0xff]  ;;  %v213_v16 = vld [vmem:[#allocation4 + $0x48] sm:$0xff] }
  0x3b   :  { %15550 = vmatprep.subr.bf16.mxu0 %v17576_v0  ;;  %v15557_v14 = vpack.c.bf16 %v211_v13, %v210_v12  ;;  %v99_v17 = vld [vmem:[%s19772_s0 + $0xa8] sm:$0xff]  ;;  %v97_v18 = vld [vmem:[%s19772_s0 + $0x98] sm:$0xff]  ;;  %v15560_v19 = vpack.c.bf16 %v213_v16, %v212_v15  ;;  %v214_v20 = vld [vmem:[#allocation4 + $0x50] sm:$0xff] }
  0x3c   :  { %780 = vperm.xlu1 %17474, %v99_v17   ;;  %v215_v21 = vld [vmem:[#allocation4 + $0x58] sm:$0xff]  ;;  %770 = vperm.xlu0 %17473, %v97_v18   ;;  %v100_v22 = vld [vmem:[%s19772_s0 + $0xb0] sm:$0xff]  ;;  %v98_v23 = vld [vmem:[%s19772_s0 + $0xa0] sm:$0xff] }
  0x3d   :  { %v15563_v24 = vpack.c.bf16 %v215_v21, %v214_v20  ;;  %v216_v25 = vld [vmem:[#allocation4 + $0x60] sm:$0xff]  ;;  %v217_v26 = vld [vmem:[#allocation4 + $0x68] sm:$0xff]  ;;  %v102_v27 = vld [vmem:[%s19772_s0 + $0xc0] sm:$0xff] }
  0x3e   :  { %15552 = vmatpush1.bf16.msra.mxu0 %v15551_v7  ;;  %v101_v28 = vld [vmem:[%s19772_s0 + $0xb8] sm:$0xff]  ;;  %v15566_v29 = vpack.c.bf16 %v217_v26, %v216_v25  ;;  %v218_v30 = vld [vmem:[#allocation4 + $0x70] sm:$0xff]  ;;  %v219_v31 = vld [vmem:[#allocation4 + $0x78] sm:$0xff] }
  0x3f   :  { %15553 = vmatprep.subr.bf16.mxu0 %v17576_v0  ;;  %v104_v32 = vld [vmem:[%s19772_s0 + $0xd0] sm:$0xff]  ;;  %v103_v33 = vld [vmem:[%s19772_s0 + $0xc8] sm:$0xff]  ;;  %v15569_v34 = vpack.c.bf16 %v219_v31, %v218_v30  ;;  %v221_v36 = vld [vmem:[#allocation4 + $0x88] sm:$0xff] }
  0x40   :  { %785 = vperm.xlu1 %17474, %v100_v22   ;;  %775 = vperm.xlu0 %17473, %v98_v23   ;;  %v220_v35 = vld [vmem:[#allocation4 + $0x80] sm:$0xff]  ;;  %v106_v37 = vld [vmem:[%s19772_s0 + $0xe0] sm:$0xff]  ;;  %v105_v38 = vld [vmem:[%s19772_s0 + $0xd8] sm:$0xff] }
  0x41   :  { %v15572_v39 = vpack.c.bf16 %v221_v36, %v220_v35  ;;  %v108_v40 = vld [vmem:[%s19772_s0 + $0xf0] sm:$0xff]  ;;  %v107_v41 = vld [vmem:[%s19772_s0 + $0xe8] sm:$0xff]  ;;  %v120_v42 = vld [vmem:[%s19773_s1] sm:$0xff] }
  0x42   :  { %15555 = vmatpush1.bf16.msra.mxu0 %v15554_v11  ;;  %v123_v43 = vld [vmem:[%s19773_s1 + $0x18] sm:$0xff]  ;;  %v110_v44 = vld [vmem:[%s19772_s0 + $0x100] sm:$0xff]  ;;  %v122_v46 = vld [vmem:[%s19773_s1 + $0x10] sm:$0xff] }
  0x43   :  { %15556 = vmatprep.subr.bf16.mxu0 %v17576_v0  ;;  %v109_v45 = vld [vmem:[%s19772_s0 + $0xf8] sm:$0xff]  ;;  %v125_v47 = vld [vmem:[%s19773_s1 + $0x28] sm:$0xff]  ;;  %v112_v48 = vld [vmem:[%s19772_s0 + $0x110] sm:$0xff] }
  0x44   :  { %795 = vperm.xlu1 %17474, %v102_v27   ;;  %790 = vperm.xlu0 %17473, %v101_v28   ;;  %v111_v49 = vld [vmem:[%s19772_s0 + $0x108] sm:$0xff]  ;;  %v124_v50 = vld [vmem:[%s19773_s1 + $0x20] sm:$0xff]  ;;  %v127_v51 = vld [vmem:[%s19773_s1 + $0x38] sm:$0xff] }
  0x45   :  { %v114_v52 = vld [vmem:[%s19772_s0 + $0x120] sm:$0xff]  ;;  %v113_v53 = vld [vmem:[%s19772_s0 + $0x118] sm:$0xff]  ;;  %v126_v54 = vld [vmem:[%s19773_s1 + $0x30] sm:$0xff] }
  0x46   :  { %15558 = vmatpush1.bf16.msra.mxu0 %v15557_v14  ;;  %v129_v55 = vld [vmem:[%s19773_s1 + $0x48] sm:$0xff]  ;;  %v116_v56 = vld [vmem:[%s19772_s0 + $0x130] sm:$0xff]  ;;  %v128_v58 = vld [vmem:[%s19773_s1 + $0x40] sm:$0xff] }
  0x47   :  { %15559 = vmatprep.subr.bf16.mxu0 %v17576_v0  ;;  %v115_v57 = vld [vmem:[%s19772_s0 + $0x128] sm:$0xff]  ;;  %v131_v59 = vld [vmem:[%s19773_s1 + $0x58] sm:$0xff]  ;;  %v118_v60 = vld [vmem:[%s19772_s0 + $0x140] sm:$0xff] }
  0x48   :  { %805 = vperm.xlu1 %17474, %v104_v32   ;;  %800 = vperm.xlu0 %17473, %v103_v33   ;;  %v117_v61 = vld [vmem:[%s19772_s0 + $0x138] sm:$0xff]  ;;  %v130_v62 = vld [vmem:[%s19773_s1 + $0x50] sm:$0xff]  ;;  %v133_v63 = vld [vmem:[%s19773_s1 + $0x68] sm:$0xff] }
  0x49   :  { %v119_v1 = vld [vmem:[%s19772_s0 + $0x148] sm:$0xff]  ;;  %v132_v2 = vld [vmem:[%s19773_s1 + $0x60] sm:$0xff]  ;;  %v135_v3 = vld [vmem:[%s19773_s1 + $0x78] sm:$0xff] }
  0x4a   :  { %15561 = vmatpush1.bf16.msra.mxu0 %v15560_v19  ;;  %v80_v4 = vld [vmem:[%s19772_s0 + $0x10] sm:$0xff]  ;;  %v79_v5 = vld [vmem:[%s19772_s0 + $0x8] sm:$0xff]  ;;  %v82_v8 = vld [vmem:[%s19772_s0 + $0x20] sm:$0xff] }
  0x4b   :  { %15562 = vmatprep.subr.bf16.mxu0 %v17576_v0  ;;  %v134_v6 = vld [vmem:[%s19773_s1 + $0x70] sm:$0xff]  ;;  %v137_v7 = vld [vmem:[%s19773_s1 + $0x88] sm:$0xff]  ;;  %v81_v9 = vld [vmem:[%s19772_s0 + $0x18] sm:$0xff] }
  0x4c   :  { %815 = vperm.xlu1 %17474, %v106_v37   ;;  %810 = vperm.xlu0 %17473, %v105_v38   ;;  %v136_v10 = vld [vmem:[%s19773_s1 + $0x80] sm:$0xff]  ;;  %v139_v11 = vld [vmem:[%s19773_s1 + $0x98] sm:$0xff]  ;;  %v84_v12 = vld [vmem:[%s19772_s0 + $0x30] sm:$0xff] }
  0x4d   :  { %v83_v13 = vld [vmem:[%s19772_s0 + $0x28] sm:$0xff]  ;;  %v138_v14 = vld [vmem:[%s19773_s1 + $0x90] sm:$0xff]  ;;  %v86_v16 = vld [vmem:[%s19772_s0 + $0x40] sm:$0xff] }
  0x4e   :  { %15564 = vmatpush1.bf16.msra.mxu0 %v15563_v24  ;;  %v141_v15 = vld [vmem:[%s19773_s1 + $0xa8] sm:$0xff]  ;;  %v85_v17 = vld [vmem:[%s19772_s0 + $0x38] sm:$0xff]  ;;  %v140_v21 = vld [vmem:[%s19773_s1 + $0xa0] sm:$0xff] }
  0x4f   :  { %15565 = vmatprep.subr.bf16.mxu0 %v17576_v0  ;;  %v1068_v18 = vld [vmem:[#allocation9 + $0x80] sm:$0xff]  ;;  %v1069_v19 = vld [vmem:[#allocation9 + $0x88] sm:$0xff]  ;;  %v1070_v20 = vld [vmem:[#allocation9 + $0x90] sm:$0xff] }
  0x50   :  { %825 = vperm.xlu1 %17474, %v108_v40   ;;  %820 = vperm.xlu0 %17473, %v107_v41   ;;  %v15574_v22 = vpack.c.bf16 %v1069_v19, %v1068_v18  ;;  %v1071_v23 = vld [vmem:[#allocation9 + $0x98] sm:$0xff]  ;;  %v88_v25 = vld [vmem:[%s19772_s0 + $0x50] sm:$0xff]  ;;  %v87_v26 = vld [vmem:[%s19772_s0 + $0x48] sm:$0xff] }
  0x51   :  { %v143_v24 = vld [vmem:[%s19773_s1 + $0xb8] sm:$0xff]  ;;  %v15578_v27 = vpack.c.bf16 %v1071_v23, %v1070_v20  ;;  %v1072_v28 = vld [vmem:[#allocation9 + $0xa0] sm:$0xff]  ;;  %v142_v30 = vld [vmem:[%s19773_s1 + $0xb0] sm:$0xff] }
  0x52   :  { %15567 = vmatpush1.bf16.msra.mxu0 %v15566_v29  ;;  %v1073_v29 = vld [vmem:[#allocation9 + $0xa8] sm:$0xff]  ;;  %v90_v32 = vld [vmem:[%s19772_s0 + $0x60] sm:$0xff]  ;;  %v89_v33 = vld [vmem:[%s19772_s0 + $0x58] sm:$0xff] }
  0x53   :  { %15568 = vmatprep.subr.bf16.mxu0 %v17576_v0  ;;  %v145_v31 = vld [vmem:[%s19773_s1 + $0xc8] sm:$0xff]  ;;  %v1074_v35 = vld [vmem:[#allocation9 + $0xb0] sm:$0xff]  ;;  %v1075_v36 = vld [vmem:[#allocation9 + $0xb8] sm:$0xff] }
  0x54   :  { %835 = vperm.xlu1 %17474, %v110_v44   ;;  %830 = vperm.xlu0 %17473, %v109_v45   ;;  %v144_v37 = vld [vmem:[%s19773_s1 + $0xc0] sm:$0xff]  ;;  %v147_v38 = vld [vmem:[%s19773_s1 + $0xd8] sm:$0xff]  ;;  %v91_v40 = vld [vmem:[%s19772_s0 + $0x68] sm:$0xff]  ;;  %v15586_v41 = vpack.c.bf16 %v1075_v36, %v1074_v35 }
  0x55   :  { %v146_v44 = vld [vmem:[%s19773_s1 + $0xd0] sm:$0xff]  ;;  %v149_v45 = vld [vmem:[%s19773_s1 + $0xe8] sm:$0xff]  ;;  %v171_v18 = vld [vmem:[%s19773_s1 + $0x198] sm:$0xff] }
  0x56   :  { %15570 = vmatpush1.bf16.msra.mxu0 %v15569_v34  ;;  %v15582_v34 = vpack.c.bf16 %v1073_v29, %v1072_v28  ;;  %v170_v19 = vld [vmem:[%s19773_s1 + $0x190] sm:$0xff]  ;;  %v173_v20 = vld [vmem:[%s19773_s1 + $0x1a8] sm:$0xff]  ;;  %v180_v29 = vld [vmem:[%s19773_s1 + $0x1e0] sm:$0xff] }
  0x57   :  { %15571 = vmatprep.subr.bf16.mxu0 %v17576_v0  ;;  %v78_v0 = vld [vmem:[%s19772_s0] sm:$0xff]  ;;  %v174_v23 = vld [vmem:[%s19773_s1 + $0x1b0] sm:$0xff]  ;;  %v181_v28 = vld [vmem:[%s19773_s1 + $0x1e8] sm:$0xff] }
  0x58   :  { %845 = vperm.xlu1 %17474, %v112_v48   ;;  %840 = vperm.xlu0 %17473, %v111_v49   ;;  %v148_v49 = vld [vmem:[%s19773_s1 + $0xe0] sm:$0xff]  ;;  %v186_v35 = vld [vmem:[%s19773_s1 + $0x210] sm:$0xff]  ;;  %v189_v36 = vld [vmem:[%s19773_s1 + $0x228] sm:$0xff] }
  0x5a   :  { %15573 = vmatpush1.bf16.msra.mxu0 %v15572_v39  ;;  %v92_v39 = vld [vmem:[%s19772_s0 + $0x70] sm:$0xff] }
  0x5b   :  { %15575 = vmatprep.subr.bf16.mxu0 %v15574_v22 }
  0x5c   :  { %855 = vperm.xlu1 %17474, %v114_v52   ;;  %850 = vperm.xlu0 %17473, %v113_v53   ;;  %v95_v52 = vld [vmem:[%s19772_s0 + $0x88] sm:$0xff]  ;;  %v150_v53 = vld [vmem:[%s19773_s1 + $0xf0] sm:$0xff] }
  0x5d   :  { %421 = vmatmul.mubr.f32.vlgmr.msra.gmra.mrb[0].mxu0 %v120_v42  ;;  %v1076_v42 = vld [vmem:[#allocation9 + $0xc0] sm:$0xff] }
  0x5e   :  { %11372 = vmatprep.mubr.msk.f32.mxu0 %vm229_vm0, %v123_v43  ;;  %15577 = vmatpush3.bf16.msra.mxu0 %v15574_v22  ;;  %v1077_v43 = vld [vmem:[#allocation9 + $0xc8] sm:$0xff]  ;;  %v175_v22 = vld [vmem:[%s19773_s1 + $0x1b8] sm:$0xff] }
  0x5f   :  { %15579 = vmatprep.subr.bf16.mxu0 %v15578_v27  ;;  %v15590_v48 = vpack.c.bf16 %v1077_v43, %v1076_v42  ;;  %v195_v42 = vld [vmem:[%s19773_s1 + $0x258] sm:$0xff]  ;;  %v194_v43 = vld [vmem:[%s19773_s1 + $0x250] sm:$0xff] }
  0x60   :  { %865 = vperm.xlu1 %17474, %v116_v56   ;;  %860 = vperm.xlu0 %17473, %v115_v57   ;;  %v155_v56 = vld [vmem:[%s19773_s1 + $0x118] sm:$0xff]  ;;  %v154_v57 = vld [vmem:[%s19773_s1 + $0x110] sm:$0xff] }
  0x61   :  { %426 = vmatmul.mubr.f32.gmra.mrb[2].mxu0 %v122_v46  ;;  %v94_v46 = vld [vmem:[%s19772_s0 + $0x80] sm:$0xff] }
  0x62   :  { %11373 = vmatprep.mubr.msk.f32.mxu0 %vm229_vm0, %v125_v47  ;;  %15581 = vmatpush3.bf16.msra.mxu0 %v15578_v27  ;;  %v93_v47 = vld [vmem:[%s19772_s0 + $0x78] sm:$0xff]  ;;  %v178_v27 = vld [vmem:[%s19773_s1 + $0x1d0] sm:$0xff] }
  0x63   :  { %15583 = vmatprep.subr.bf16.mxu0 %v15582_v34 }
  0x64   :  { %875 = vperm.xlu1 %17474, %v118_v60   ;;  %870 = vperm.xlu0 %17473, %v117_v61   ;;  %v159_v60 = vld [vmem:[%s19773_s1 + $0x138] sm:$0xff]  ;;  %v158_v61 = vld [vmem:[%s19773_s1 + $0x130] sm:$0xff] }
  0x65   :  { %431 = vmatmul.mubr.f32.gmra.mrb[4].mxu0 %v124_v50  ;;  %v151_v50 = vld [vmem:[%s19773_s1 + $0xf8] sm:$0xff] }
  0x66   :  { %11374 = vmatprep.mubr.msk.f32.mxu0 %vm229_vm0, %v127_v51  ;;  %15585 = vmatpush3.bf16.msra.mxu0 %v15582_v34  ;;  %v96_v51 = vld [vmem:[%s19772_s0 + $0x90] sm:$0xff]  ;;  %v187_v34 = vld [vmem:[%s19773_s1 + $0x218] sm:$0xff] }
  0x67   :  { %15587 = vmatprep.subr.bf16.mxu0 %v15586_v41 }
  0x68   :  { %675 = vperm.xlu1 %17474, %v78_v0   ;;  %880 = vperm.xlu0 %17473, %v119_v1   ;;  %v163_v0 = vld [vmem:[%s19773_s1 + $0x158] sm:$0xff]  ;;  %v162_v1 = vld [vmem:[%s19773_s1 + $0x150] sm:$0xff] }
  0x69   :  { %436 = vmatmul.mubr.f32.gmra.mrb[6].mxu0 %v126_v54  ;;  %v153_v54 = vld [vmem:[%s19773_s1 + $0x108] sm:$0xff] }
  0x6a   :  { %11375 = vmatprep.mubr.msk.f32.mxu0 %vm229_vm0, %v129_v55  ;;  %15589 = vmatpush3.bf16.msra.mxu0 %v15586_v41  ;;  %v152_v55 = vld [vmem:[%s19773_s1 + $0x100] sm:$0xff] }
  0x6b   :  { %15591 = vmatprep.subr.bf16.mxu0 %v15590_v48  ;;  %v192_v41 = vld [vmem:[%s19773_s1 + $0x240] sm:$0xff] }
  0x6c   :  { %685 = vperm.xlu1 %17474, %v80_v4   ;;  %680 = vperm.xlu0 %17473, %v79_v5   ;;  %v1079_v4 = vld [vmem:[#allocation9 + $0xd8] sm:$0xff] }
  0x6d   :  { %441 = vmatmul.mubr.f32.gmra.mrb[8].mxu0 %v128_v58  ;;  %v157_v58 = vld [vmem:[%s19773_s1 + $0x128] sm:$0xff] }
  0x6e   :  { %11376 = vmatprep.mubr.msk.f32.mxu0 %vm229_vm0, %v131_v59  ;;  %15593 = vmatpush3.bf16.msra.mxu0 %v15590_v48  ;;  %v156_v59 = vld [vmem:[%s19773_s1 + $0x120] sm:$0xff]  ;;  %v2054_v48 = vld [vmem:[#allocation9 + $0x188] sm:$0xff] }
  0x70   :  { %695 = vperm.xlu1 %17474, %v82_v8   ;;  %690 = vperm.xlu0 %17473, %v81_v9   ;;  %v1080_v8 = vld [vmem:[#allocation9 + $0xe0] sm:$0xff]  ;;  %v1081_v9 = vld [vmem:[#allocation9 + $0xe8] sm:$0xff] }
  0x71   :  { %446 = vmatmul.mubr.f32.gmra.mrb[10].mxu0 %v130_v62  ;;  %v161_v62 = vld [vmem:[%s19773_s1 + $0x148] sm:$0xff] }
  0x72   :  { %11377 = vmatprep.mubr.msk.f32.mxu0 %vm229_vm0, %v133_v63  ;;  %v160_v63 = vld [vmem:[%s19773_s1 + $0x140] sm:$0xff] }
  0x74   :  { %705 = vperm.xlu1 %17474, %v84_v12   ;;  %700 = vperm.xlu0 %17473, %v83_v13   ;;  %v166_v12 = vld [vmem:[%s19773_s1 + $0x170] sm:$0xff]  ;;  %v169_v13 = vld [vmem:[%s19773_s1 + $0x188] sm:$0xff] }
  0x75   :  { %451 = vmatmul.mubr.f32.gmra.mrb[12].mxu0 %v132_v2  ;;  %v165_v2 = vld [vmem:[%s19773_s1 + $0x168] sm:$0xff] }
  0x76   :  { %11378 = vmatprep.mubr.msk.f32.mxu0 %vm229_vm0, %v135_v3  ;;  %v1078_v3 = vld [vmem:[#allocation9 + $0xd0] sm:$0xff] }
  0x77   :  { %v15594_v5 = vpack.c.bf16 %v1079_v4, %v1078_v3  ;;  %v2060_v3 = vld [vmem:[#allocation9 + $0x1b8] sm:$0xff] }
  0x78   :  { %715 = vperm.xlu1 %17474, %v86_v16   ;;  %710 = vperm.xlu0 %17473, %v85_v17   ;;  %v168_v17 = vld [vmem:[%s19773_s1 + $0x180] sm:$0xff] }
  0x79   :  { %456 = vmatmul.mubr.f32.gmra.mrb[14].mxu0 %v134_v6  ;;  %v164_v6 = vld [vmem:[%s19773_s1 + $0x160] sm:$0xff]  ;;  %15595 = vmatprep.subr.bf16.mxu0 %v15594_v5 }
  0x7a   :  { %11379 = vmatprep.mubr.msk.f32.mxu0 %vm229_vm0, %v137_v7  ;;  %v167_v7 = vld [vmem:[%s19773_s1 + $0x178] sm:$0xff]  ;;  %15597 = vmatpush3.bf16.msra.mxu0 %v15594_v5  ;;  %v202_v5 = vld [vmem:[%s19773_s1 + $0x290] sm:$0xff] }
  0x7c   :  { %725 = vperm.xlu1 %17474, %v88_v25   ;;  %720 = vperm.xlu0 %17473, %v87_v26   ;;  %v176_v25 = vld [vmem:[%s19773_s1 + $0x1c0] sm:$0xff]  ;;  %v179_v26 = vld [vmem:[%s19773_s1 + $0x1d8] sm:$0xff] }
  0x7d   :  { %461 = vmatmul.mubr.f32.gmra.mrb[16].mxu0 %v136_v10  ;;  %v15598_v10 = vpack.c.bf16 %v1081_v9, %v1080_v8  ;;  %v2061_v8 = vld [vmem:[#allocation9 + $0x1c0] sm:$0xff]  ;;  %v2062_v9 = vld [vmem:[#allocation9 + $0x1c8] sm:$0xff] }
  0x7e   :  { %11380 = vmatprep.mubr.msk.f32.mxu0 %vm229_vm0, %v139_v11  ;;  %v17578_v11 = vmov 0.0  }
  0x7f   :  { %63 = vst [vmem:[#allocation2 + $0x8] sm:$0xff] %v17578_v11  ;;  %64 = vst [vmem:[#allocation2 + $0x10] sm:$0xff] %v17578_v11  ;;  %15599 = vmatprep.subr.bf16.mxu0 %v15598_v10 }
  0x80   :  { %735 = vperm.xlu1 %17474, %v90_v32   ;;  %730 = vperm.xlu0 %17473, %v89_v33   ;;  %65 = vst [vmem:[#allocation2 + $0x18] sm:$0xff] %v17578_v11  ;;  %66 = vst [vmem:[#allocation2 + $0x170] sm:$0xff] %v17578_v11  ;;  %v185_v32 = vld [vmem:[%s19773_s1 + $0x208] sm:$0xff]  ;;  %v184_v33 = vld [vmem:[%s19773_s1 + $0x200] sm:$0xff] }
  0x81   :  { %466 = vmatmul.mubr.f32.gmra.mrb[18].mxu0 %v138_v14  ;;  %67 = vst [vmem:[#allocation2 + $0x178] sm:$0xff] %v17578_v11  ;;  %68 = vst [vmem:[#allocation2 + $0x180] sm:$0xff] %v17578_v11  ;;  %v1082_v14 = vld [vmem:[#allocation9 + $0xf0] sm:$0xff] }
  0x82   :  { %11381 = vmatprep.mubr.msk.f32.mxu0 %vm229_vm0, %v141_v15  ;;  %71 = vst [vmem:[#allocation3 + $0x8] sm:$0xff] %v17578_v11  ;;  %72 = vst [vmem:[#allocation3 + $0x10] sm:$0xff] %v17578_v11  ;;  %15601 = vmatpush3.bf16.msra.mxu0 %v15598_v10  ;;  %v1083_v15 = vld [vmem:[#allocation9 + $0xf8] sm:$0xff]  ;;  %v18111_v10 = vpack.c.bf16 %v2062_v9, %v2061_v8 }
  0x83   :  { %73 = vst [vmem:[#allocation3 + $0x18] sm:$0xff] %v17578_v11  ;;  %74 = vst [vmem:[#allocation3 + $0x170] sm:$0xff] %v17578_v11  ;;  %v15602_v16 = vpack.c.bf16 %v1083_v15, %v1082_v14  ;;  %v2064_v14 = vld [vmem:[#allocation9 + $0x1d8] sm:$0xff] }
  0x84   :  { %745 = vperm.xlu1 %17474, %v92_v39   ;;  %740 = vperm.xlu0 %17473, %v91_v40   ;;  %75 = vst [vmem:[#allocation3 + $0x178] sm:$0xff] %v17578_v11  ;;  %76 = vst [vmem:[#allocation3 + $0x180] sm:$0xff] %v17578_v11  ;;  %v190_v39 = vld [vmem:[%s19773_s1 + $0x230] sm:$0xff]  ;;  %v193_v40 = vld [vmem:[%s19773_s1 + $0x248] sm:$0xff] }
  0x85   :  { %471 = vmatmul.mubr.f32.gmra.mrb[20].mxu0 %v140_v21  ;;  %15603 = vmatprep.subr.bf16.mxu0 %v15602_v16  ;;  %v172_v21 = vld [vmem:[%s19773_s1 + $0x1a0] sm:$0xff] }
  0x86   :  { %11382 = vmatprep.mubr.msk.f32.mxu0 %vm229_vm0, %v143_v24  ;;  %15605 = vmatpush3.bf16.msra.mxu0 %v15602_v16  ;;  %v177_v24 = vld [vmem:[%s19773_s1 + $0x1c8] sm:$0xff] }
  0x88   :  { %755 = vperm.xlu1 %17474, %v94_v46   ;;  %750 = vperm.xlu0 %17473, %v93_v47   ;;  %v2053_v47 = vld [vmem:[#allocation9 + $0x180] sm:$0xff] }
  0x89   :  { %476 = vmatmul.mubr.f32.gmra.mrb[22].mxu0 %v142_v30  ;;  %v183_v30 = vld [vmem:[%s19773_s1 + $0x1f8] sm:$0xff] }
  0x8a   :  { %11383 = vmatprep.mubr.msk.f32.mxu0 %vm229_vm0, %v145_v31  ;;  %v182_v31 = vld [vmem:[%s19773_s1 + $0x1f0] sm:$0xff] }
  0x8c   :  { %765 = vperm.xlu1 %17474, %v96_v51   ;;  %760 = vperm.xlu0 %17473, %v95_v52   ;;  %v199_v51 = vld [vmem:[%s19773_s1 + $0x278] sm:$0xff] }
  0x8d   :  { %481 = vmatmul.mubr.f32.gmra.mrb[24].mxu0 %v144_v37  ;;  %v188_v37 = vld [vmem:[%s19773_s1 + $0x220] sm:$0xff] }
  0x8e   :  { %11384 = vmatprep.mubr.msk.f32.mxu0 %vm229_vm0, %v147_v38  ;;  %v191_v38 = vld [vmem:[%s19773_s1 + $0x238] sm:$0xff] }
  0x91   :  { %486 = vmatmul.mubr.f32.gmra.mrb[26].mxu0 %v146_v44 }
  0x92   :  { %11385 = vmatprep.mubr.msk.f32.mxu0 %vm229_vm0, %v149_v45  ;;  %v197_v45 = vld [vmem:[%s19773_s1 + $0x268] sm:$0xff] }
  0x95   :  { %491 = vmatmul.mubr.f32.gmra.mrb[28].mxu0 %v148_v49  ;;  %v18060_v49 = vpack.c.bf16 %v2054_v48, %v2053_v47 }
  0x96   :  { %11386 = vmatprep.mubr.msk.f32.mxu0 %vm229_vm0, %v151_v50  ;;  %v196_v50 = vld [vmem:[%s19773_s1 + $0x260] sm:$0xff] }
  0x97   :  { %16438 = vmatprep.subr.bf16.mxu1 %v18060_v49 }
  0x98   :  { %16446 = vmatpush3.bf16.msra.mxu1 %v18060_v49 }
  0x99   :  { %496 = vmatmul.mubr.f32.gmra.mrb[30].mxu0 %v150_v53  ;;  %v2055_v53 = vld [vmem:[#allocation9 + $0x190] sm:$0xff] }
  0x9a   :  { %11387 = vmatprep.mubr.msk.f32.mxu0 %vm229_vm0, %v153_v54  ;;  %v2056_v54 = vld [vmem:[#allocation9 + $0x198] sm:$0xff] }
  0x9d   :  { %501 = vmatmul.mubr.f32.gmra.mrb[32].mxu0 %v152_v55  ;;  %v18073_v55 = vpack.c.bf16 %v2056_v54, %v2055_v53 }
  0x9e   :  { %11388 = vmatprep.mubr.msk.f32.mxu0 %vm229_vm0, %v155_v56  ;;  %v198_v56 = vld [vmem:[%s19773_s1 + $0x270] sm:$0xff] }
  0x9f   :  { %16439 = vmatprep.subr.bf16.mxu1 %v18073_v55 }
  0xa0   :  { %16447 = vmatpush3.bf16.msra.mxu1 %v18073_v55 }
  0xa1   :  { %506 = vmatmul.mubr.f32.gmra.mrb[34].mxu0 %v154_v57 }
  0xa2   :  { %11389 = vmatprep.mubr.msk.f32.mxu0 %vm229_vm0, %v157_v58  ;;  %v201_v58 = vld [vmem:[%s19773_s1 + $0x288] sm:$0xff] }
  0xa5   :  { %511 = vmatmul.mubr.f32.gmra.mrb[36].mxu0 %v156_v59  ;;  %v2057_v59 = vld [vmem:[#allocation9 + $0x1a0] sm:$0xff] }
  0xa6   :  { %11390 = vmatprep.mubr.msk.f32.mxu0 %vm229_vm0, %v159_v60  ;;  %v2058_v60 = vld [vmem:[#allocation9 + $0x1a8] sm:$0xff] }
  0xa9   :  { %516 = vmatmul.mubr.f32.gmra.mrb[38].mxu0 %v158_v61  ;;  %v18086_v61 = vpack.c.bf16 %v2058_v60, %v2057_v59 }
  0xaa   :  { %11391 = vmatprep.mubr.msk.f32.mxu0 %vm229_vm0, %v161_v62  ;;  %v200_v62 = vld [vmem:[%s19773_s1 + $0x280] sm:$0xff] }
  0xab   :  { %16440 = vmatprep.subr.bf16.mxu1 %v18086_v61 }
  0xac   :  { %16448 = vmatpush3.bf16.msra.mxu1 %v18086_v61 }
  0xad   :  { %521 = vmatmul.mubr.f32.gmra.mrb[40].mxu0 %v160_v63 }
  0xae   :  { %11392 = vmatprep.mubr.msk.f32.mxu0 %vm229_vm0, %v163_v0  ;;  %v203_v0 = vld [vmem:[%s19773_s1 + $0x298] sm:$0xff]  ;;  %s17579_s1 = smov [#allocation10]  }
  0xaf   :  { %s11357_s20 = sshll.u32 %s17579_s1, 4  ;;  %s11358_s20 = int_to_ptr.vmem [resolvable:$true] %s11357_s20 }
  0xb0   :  { %s17541_s21 = scalar_lea.vmem %s11358_s20, 5376  ;;  %p17546_p11 = scmp.lt.s32.totalorder %s11358_s20, %s11358_s20 }
  0xb1   :  { %526 = vmatmul.mubr.f32.gmra.mrb[42].mxu0 %v162_v1  ;;  %p17542_p10 = scmp.ne.s32.totalorder %s11358_s20, %s17541_s21  ;;  %p17547_p12 = scmp.lt.s32.totalorder %s17541_s21, %s17541_s21 }
  0xb2   :  { %11393 = vmatprep.mubr.msk.f32.mxu0 %vm229_vm0, %v165_v2  ;;  %v2059_v2 = vld [vmem:[#allocation9 + $0x1b0] sm:$0xff] }
  0xb3   :  { %v18101_v4 = vpack.c.bf16 %v2060_v3, %v2059_v2  ;;  %v1010_v2 = vld [vmem:[#allocation9 + $0x8] sm:$0xff]  ;;  %p17548_p13 = por %p17547_p12, %p17546_p11 }
  0xb5   :  { %531 = vmatmul.mubr.f32.gmra.mrb[44].mxu0 %v164_v6  ;;  %v1025_v6 = vld [vmem:[#allocation2 + $0xe] sm:$0xff]  ;;  %16441 = vmatprep.subr.bf16.mxu1 %v18101_v4  ;;  %p17549_p0 = pnand %p17548_p13, %p17542_p10 }
  0xb6   :  { %11394 = vmatprep.mubr.msk.f32.mxu0 %vm229_vm0, %v167_v7  ;;  %16449 = vmatpush3.bf16.msra.mxu1 %v18101_v4 }
  0xb7   :  { %16442 = vmatprep.subr.bf16.mxu1 %v18111_v10 }
  0xb9   :  { %536 = vmatmul.mubr.f32.gmra.mrb[46].mxu0 %v166_v12  ;;  %v1026_v12 = vld [vmem:[#allocation2 + $0x16] sm:$0xff] }
  0xba   :  { %11395 = vmatprep.mubr.msk.f32.mxu0 %vm229_vm0, %v169_v13  ;;  %16450 = vmatpush3.bf16.msra.mxu1 %v18111_v10  ;;  %v2063_v13 = vld [vmem:[#allocation9 + $0x1d0] sm:$0xff] }
  0xbb   :  { %v18053_v44 = vpop.permute.xlu0 %770  ;;  %v18058_v46 = vpop.permute.xlu1 %780  ;;  %v18117_v15 = vpack.c.bf16 %v2064_v14, %v2063_v13  ;;  %v2429_v14 = vld [vmem:[#allocation9 + $0x200] sm:$0xff] }
  0xbc   :  { %19871 = vst [vmem:[#allocation14_spill] sm:$0xff] %v18053_v44  ;;  %19872 = vst [vmem:[#allocation15_spill] sm:$0xff] %v18058_v46 }
  0xbd   :  { %541 = vmatmul.mubr.f32.gmra.mrb[48].mxu0 %v168_v17  ;;  %19879 = vst [vmem:[#allocation22_spill] sm:$0xff] %v18117_v15  ;;  %16443 = vmatprep.subr.bf16.mxu1 %v18117_v15 }
  0xbe   :  { %11396 = vmatprep.mubr.msk.f32.mxu0 %vm229_vm0, %v171_v18  ;;  %16451 = vmatpush3.bf16.msra.mxu1 %v18117_v15  ;;  %v2065_v18 = vld [vmem:[#allocation9 + $0x1e0] sm:$0xff] }
  0xbf   :  { %v18070_v52 = vpop.permute.xlu0 %775  ;;  %v18079_v57 = vpop.permute.xlu1 %785 }
  0xc0   :  { %19873 = vst [vmem:[#allocation16_spill] sm:$0xff] %v18070_v52  ;;  %19874 = vst [vmem:[#allocation17_spill] sm:$0xff] %v18079_v57 }
  0xc1   :  { %546 = vmatmul.mubr.f32.gmra.mrb[50].mxu0 %v170_v19  ;;  %v2066_v19 = vld [vmem:[#allocation9 + $0x1e8] sm:$0xff] }
  0xc2   :  { %11397 = vmatprep.mubr.msk.f32.mxu0 %vm229_vm0, %v173_v20  ;;  %v18125_v20 = vpack.c.bf16 %v2066_v19, %v2065_v18  ;;  %v2430_v18 = vld [vmem:[#allocation9 + $0x208] sm:$0xff] }
  0xc3   :  { %v18092_v63 = vpop.permute.xlu0 %790  ;;  %v18098_v1 = vpop.permute.xlu1 %795 }
  0xc4   :  { %19875 = vst [vmem:[#allocation18_spill] sm:$0xff] %v18092_v63  ;;  %19876 = vst [vmem:[#allocation19_spill] sm:$0xff] %v18098_v1  ;;  %16444 = vmatprep.subr.bf16.mxu1 %v18125_v20 }
  0xc5   :  { %551 = vmatmul.mubr.f32.gmra.mrb[52].mxu0 %v172_v21  ;;  %19882 = vst [vmem:[#allocation25_spill] sm:$0xff] %v18125_v20  ;;  %16452 = vmatpush3.bf16.msra.mxu1 %v18125_v20  ;;  %v2434_v20 = vld [vmem:[#allocation9 + $0x228] sm:$0xff] }
  0xc6   :  { %11398 = vmatprep.mubr.msk.f32.mxu0 %vm229_vm0, %v175_v22  ;;  %v2067_v22 = vld [vmem:[#allocation9 + $0x1f0] sm:$0xff] }
  0xc7   :  { %v18108_v7 = vpop.permute.xlu0 %800  ;;  %v18113_v11 = vpop.permute.xlu1 %805 }
  0xc8   :  { %19877 = vst [vmem:[#allocation20_spill] sm:$0xff] %v18108_v7  ;;  %19878 = vst [vmem:[#allocation21_spill] sm:$0xff] %v18113_v11 }
  0xc9   :  { %556 = vmatmul.mubr.f32.gmra.mrb[54].mxu0 %v174_v23  ;;  %v2068_v23 = vld [vmem:[#allocation9 + $0x1f8] sm:$0xff] }
  0xca   :  { %11399 = vmatprep.mubr.msk.f32.mxu0 %vm229_vm0, %v177_v24  ;;  %v18131_v24 = vpack.c.bf16 %v2068_v23, %v2067_v22  ;;  %v18176_v22 = vpack.c.bf16 %v2430_v18, %v2429_v14  ;;  %v1011_v23 = vld [vmem:[#allocation9 + $0x10] sm:$0xff] }
  0xcb   :  { %v18119_v16 = vpop.permute.xlu0 %810  ;;  %v18122_v17 = vpop.permute.xlu1 %815 }
  0xcc   :  { %19880 = vst [vmem:[#allocation23_spill] sm:$0xff] %v18119_v16  ;;  %19881 = vst [vmem:[#allocation24_spill] sm:$0xff] %v18122_v17  ;;  %16445 = vmatprep.subr.bf16.mxu1 %v18131_v24 }
  0xcd   :  { %561 = vmatmul.mubr.f32.gmra.mrb[56].mxu0 %v176_v25  ;;  %19884 = vst [vmem:[#allocation27_spill] sm:$0xff] %v18131_v24  ;;  %16453 = vmatpush3.bf16.msra.mxu1 %v18131_v24 }
  0xce   :  { %11400 = vmatprep.mubr.msk.f32.mxu0 %vm229_vm0, %v179_v26  ;;  %15703 = vmatprep.subr.bf16.mxu1 %v18176_v22 }
  0xcf   :  { %v18128_v21 = vpop.permute.xlu0 %820  ;;  %v18133_v25 = vpop.permute.xlu1 %825 }
  0xd0   :  { %19883 = vst [vmem:[#allocation26_spill] sm:$0xff] %v18128_v21  ;;  %19885 = vst [vmem:[#allocation28_spill] sm:$0xff] %v18133_v25 }
  0xd1   :  { %566 = vmatmul.mubr.f32.gmra.mrb[58].mxu0 %v178_v27 }
  0xd2   :  { %11401 = vmatprep.mubr.msk.f32.mxu0 %vm229_vm0, %v181_v28 }
  0xd3   :  { %v18137_v26 = vpop.permute.xlu0 %830  ;;  %v18139_v27 = vpop.permute.xlu1 %835 }
  0xd4   :  { %19886 = vst [vmem:[#allocation29_spill] sm:$0xff] %v18137_v26  ;;  %19887 = vst [vmem:[#allocation30_spill] sm:$0xff] %v18139_v27 }
  0xd5   :  { %571 = vmatmul.mubr.f32.gmra.mrb[60].mxu0 %v180_v29 }
  0xd6   :  { %11402 = vmatprep.mubr.msk.f32.mxu0 %vm229_vm0, %v183_v30 }
  0xd7   :  { %v18141_v28 = vpop.permute.xlu0 %840  ;;  %v18143_v29 = vpop.permute.xlu1 %845 }
  0xd8   :  { %19888 = vst [vmem:[#allocation31_spill] sm:$0xff] %v18141_v28  ;;  %19889 = vst [vmem:[#allocation32_spill] sm:$0xff] %v18143_v29 }
  0xd9   :  { %576 = vmatmul.mubr.f32.gmra.mrb[62].mxu0 %v182_v31 }
  0xda   :  { %11403 = vmatprep.mubr.msk.f32.mxu0 %vm229_vm0, %v185_v32 }
  0xdb   :  { %v18145_v30 = vpop.permute.xlu0 %850  ;;  %v18147_v31 = vpop.permute.xlu1 %855 }
  0xdc   :  { %19890 = vst [vmem:[#allocation33_spill] sm:$0xff] %v18145_v30  ;;  %19891 = vst [vmem:[#allocation34_spill] sm:$0xff] %v18147_v31 }
  0xdd   :  { %581 = vmatmul.mubr.f32.gmra.mrb[64].mxu0 %v184_v33 }
  0xde   :  { %11404 = vmatprep.mubr.msk.f32.mxu0 %vm229_vm0, %v187_v34 }
  0xdf   :  { %v18149_v32 = vpop.permute.xlu0 %860  ;;  %v18151_v33 = vpop.permute.xlu1 %865 }
  0xe0   :  { %19892 = vst [vmem:[#allocation35_spill] sm:$0xff] %v18149_v32  ;;  %19893 = vst [vmem:[#allocation36_spill] sm:$0xff] %v18151_v33 }
  0xe1   :  { %586 = vmatmul.mubr.f32.gmra.mrb[66].mxu0 %v186_v35 }
  0xe2   :  { %11405 = vmatprep.mubr.msk.f32.mxu0 %vm229_vm0, %v189_v36  ;;  %v18157_v36 = vld [vmem:[#allocation7] ss:$0 sm:$0xff] }
  0xe3   :  { %v18153_v34 = vpop.permute.xlu0 %870  ;;  %v18155_v35 = vpop.permute.xlu1 %875 }
  0xe4   :  { %19894 = vst [vmem:[#allocation37_spill] sm:$0xff] %v18153_v34  ;;  %19895 = vst [vmem:[#allocation38_spill] sm:$0xff] %v18155_v35 }
  0xe5   :  { %591 = vmatmul.mubr.f32.gmra.mrb[68].mxu0 %v188_v37 }
  0xe6   :  { %11406 = vmatprep.mubr.msk.f32.mxu0 %vm229_vm0, %v191_v38 }
  0xe7   :  { %v18159_v38 = vpop.permute.xlu0 %880 }
  0xe8   :  { %19896 = vst [vmem:[#allocation39_spill] sm:$0xff] %v18159_v38 }
  0xe9   :  { %596 = vmatmul.mubr.f32.gmra.mrb[70].mxu0 %v190_v39 }
  0xea   :  { %11407 = vmatprep.mubr.msk.f32.mxu0 %vm229_vm0, %v193_v40 }
  0xed   :  { %601 = vmatmul.mubr.f32.gmra.mrb[72].mxu0 %v192_v41  ;;  %v18162_v41 = vpop.permute.xlu1 %675 }
  0xee   :  { %11408 = vmatprep.mubr.msk.f32.mxu0 %vm229_vm0, %v195_v42  ;;  %19897 = vst [vmem:[#allocation40_spill] sm:$0xff] %v18162_v41 }
  0xf1   :  { %606 = vmatmul.mubr.f32.gmra.mrb[74].mxu0 %v194_v43  ;;  %v18170_v59 = vpop.permute.xlu1 %685 }
  0xf2   :  { %11409 = vmatprep.mubr.msk.f32.mxu0 %vm229_vm0, %v197_v45  ;;  %19899 = vst [vmem:[#allocation42_spill] sm:$0xff] %v18170_v59 }
  0xf5   :  { %611 = vmatmul.mubr.f32.gmra.mrb[76].mxu0 %v196_v50  ;;  %v18166_v50 = vpop.permute.xlu0 %680 }
  0xf6   :  { %11410 = vmatprep.mubr.msk.f32.mxu0 %vm229_vm0, %v199_v51  ;;  %19898 = vst [vmem:[#allocation41_spill] sm:$0xff] %v18166_v50 }
  0xf9   :  { %616 = vmatmul.mubr.f32.gmra.mrb[78].mxu0 %v198_v56 }
  0xfa   :  { %11411 = vmatprep.mubr.msk.f32.mxu0 %vm229_vm0, %v201_v58 }
  0xfd   :  { %621 = vmatmul.mubr.f32.gmra.mrb[80].mxu0 %v200_v62 }
  0xfe   :  { %11412 = vmatprep.mubr.msk.f32.mxu0 %vm229_vm0, %v203_v0  ;;  %v1009_v0 = vld [vmem:[#allocation9] sm:$0xff] }
  0xff   :  { %v15606_v8 = vpack.c.bf16 %v1010_v2, %v1009_v0 }
 0x101   :  { %626 = vmatmul.mubr.f32.gmra.mrb[82].mxu0 %v202_v5  ;;  %15607 = vmatprep.subr.bf16.mxu0 %v15606_v8 }
 0x102   :  { %13014 = vmatprep.mubr.f32.mxu0 %v1025_v6 }
 0x105   :  { %13015 = vmatmul.mubr.f32.vlgmr.msra.gmra.mrb[84].mxu0 %v1026_v12  ;;  %v18174_v12 = vpop.permute.xlu0 %690 }
 0x106   :  { %19900 = vst [vmem:[#allocation43_spill] sm:$0xff] %v18174_v12  ;;  %15609 = vmatpush3.bf16.msra.mxu0 %v15606_v8  ;;  %v1016_v8 = vld [vmem:[#allocation9 + $0x38] sm:$0xff] }
 0x109   :  { %v18190_v2 = vpop.permute.xlu0 %700 }
 0x10a   :  { %19902 = vst [vmem:[#allocation45_spill] sm:$0xff] %v18190_v2 }
 0x130   :  { %v422_v37 = vpop.f32.mrb[0].mxu0 }
 0x131   :  { %v423_v39 = vadd.f32 %v18157_v36, %v422_v37  ;;  %v424_v40 = vpop.f32.mrb[1].mxu0  ;;  %v1012_v37 = vld [vmem:[#allocation9 + $0x18] sm:$0xff] }
 0x133   :  { %v631_v42 = vmax.f32 %v423_v39, 0.0 }
 0x134   :  { %v427_v43 = vpop.f32.mrb[2].mxu0 }
 0x135   :  { %v428_v45 = vadd.f32 %v18157_v36, %v427_v43  ;;  %v883_v47 = vmul.f32 %v18162_v41, %v631_v42  ;;  %v429_v48 = vpop.f32.mrb[3].mxu0  ;;  %v15610_v43 = vpack.c.bf16 %v1012_v37, %v1011_v23 }
 0x137   :  { %v632_v51 = vmax.f32 %v428_v45, 0.0  ;;  %925 = vst [vmem:[#allocation2 + $0x20] sm:$0xff] %v883_v47  ;;  %v18182_v47 = vpop.permute.xlu1 %695  ;;  %15611 = vmatprep.subr.bf16.mxu0 %v15610_v43 }
 0x138   :  { %v432_v53 = vpop.f32.mrb[4].mxu0  ;;  %19901 = vst [vmem:[#allocation44_spill] sm:$0xff] %v18182_v47  ;;  %15613 = vmatpush3.bf16.msra.mxu0 %v15610_v43  ;;  %v1018_v43 = vld [vmem:[#allocation9 + $0x48] sm:$0xff] }
 0x139   :  { %v433_v54 = vadd.f32 %v18157_v36, %v432_v53  ;;  %v884_v56 = vmul.f32 %v18166_v50, %v632_v51  ;;  %v434_v58 = vpop.f32.mrb[5].mxu0  ;;  %v1013_v53 = vld [vmem:[#allocation9 + $0x20] sm:$0xff] }
 0x13b   :  { %v633_v60 = vmax.f32 %v433_v54, 0.0  ;;  %926 = vst [vmem:[#allocation2 + $0x28] sm:$0xff] %v884_v56  ;;  %v1014_v54 = vld [vmem:[#allocation9 + $0x28] sm:$0xff]  ;;  %v18197_v23 = vpop.permute.xlu1 %705 }
 0x13c   :  { %v437_v62 = vpop.f32.mrb[6].mxu0  ;;  %19903 = vst [vmem:[#allocation46_spill] sm:$0xff] %v18197_v23 }
 0x13d   :  { %v438_v3 = vadd.f32 %v18157_v36, %v437_v62  ;;  %v885_v5 = vmul.f32 %v18170_v59, %v633_v60  ;;  %v439_v6 = vpop.f32.mrb[7].mxu0  ;;  %v15614_v62 = vpack.c.bf16 %v1014_v54, %v1013_v53 }
 0x13e   :  { %v1027_v9 = vld [vmem:[#allocation2 + $0x1e] sm:$0xff] }
 0x13f   :  { %v634_v13 = vmax.f32 %v438_v3, 0.0  ;;  %927 = vst [vmem:[#allocation2 + $0x30] sm:$0xff] %v885_v5  ;;  %13017 = vmatprep.mubr.f32.mxu0 %v1027_v9  ;;  %15615 = vmatprep.subr.bf16.mxu0 %v15614_v62  ;;  %v1015_v6 = vld [vmem:[#allocation9 + $0x30] sm:$0xff] }
 0x140   :  { %v442_v19 = vpop.f32.mrb[8].mxu0  ;;  %15617 = vmatpush3.bf16.msra.mxu0 %v15614_v62  ;;  %v15618_v18 = vpack.c.bf16 %v1016_v8, %v1015_v6 }
 0x141   :  { %v443_v39 = vadd.f32 %v18157_v36, %v442_v19  ;;  %v18180_v40 = vmul.f32 %v18174_v12, %v634_v13  ;;  %v444_v42 = vpop.f32.mrb[9].mxu0 }
 0x142   :  { %v1028_v45 = vld [vmem:[#allocation2 + $0x26] sm:$0xff]  ;;  %15619 = vmatprep.subr.bf16.mxu0 %v15618_v18  ;;  %v1017_v42 = vld [vmem:[#allocation9 + $0x40] sm:$0xff] }
 0x143   :  { %v635_v48 = vmax.f32 %v443_v39, 0.0  ;;  %928 = vst [vmem:[#allocation2 + $0x38] sm:$0xff] %v18180_v40  ;;  %13018 = vmatmul.mubr.f32.gmra.mrb[86].mxu0 %v1028_v45  ;;  %v15622_v53 = vpack.c.bf16 %v1018_v43, %v1017_v42 }
 0x144   :  { %v447_v51 = vpop.f32.mrb[10].mxu0  ;;  %15621 = vmatpush3.bf16.msra.mxu0 %v15618_v18  ;;  %v18211_v18 = vpop.permute.xlu1 %715 }
 0x145   :  { %v448_v56 = vadd.f32 %v18157_v36, %v447_v51  ;;  %v18188_v58 = vmul.f32 %v18182_v47, %v635_v48  ;;  %v449_v60 = vpop.f32.mrb[11].mxu0  ;;  %15623 = vmatprep.subr.bf16.mxu0 %v15622_v53  ;;  %19905 = vst [vmem:[#allocation48_spill] sm:$0xff] %v18211_v18 }
 0x146   :  { %v1029_v0 = vld [vmem:[#allocation2 + $0x2e] sm:$0xff] }
 0x147   :  { %v636_v3 = vmax.f32 %v448_v56, 0.0  ;;  %929 = vst [vmem:[#allocation2 + $0x40] sm:$0xff] %v18188_v58  ;;  %13020 = vmatprep.mubr.f32.mxu0 %v1029_v0  ;;  %v18204_v56 = vpop.permute.xlu0 %710  ;;  %v1019_v0 = vld [vmem:[#allocation9 + $0x50] sm:$0xff] }
 0x148   :  { %v452_v5 = vpop.f32.mrb[12].mxu0  ;;  %19904 = vst [vmem:[#allocation47_spill] sm:$0xff] %v18204_v56  ;;  %15625 = vmatpush3.bf16.msra.mxu0 %v15622_v53 }
 0x149   :  { %v453_v9 = vadd.f32 %v18157_v36, %v452_v5  ;;  %v18195_v13 = vmul.f32 %v18190_v2, %v636_v3  ;;  %v454_v14 = vpop.f32.mrb[13].mxu0  ;;  %v1020_v3 = vld [vmem:[#allocation9 + $0x58] sm:$0xff] }
 0x14a   :  { %v1030_v19 = vld [vmem:[#allocation2 + $0x36] sm:$0xff] }
 0x14b   :  { %v637_v37 = vmax.f32 %v453_v9, 0.0  ;;  %930 = vst [vmem:[#allocation2 + $0x48] sm:$0xff] %v18195_v13  ;;  %13021 = vmatmul.mubr.f32.gmra.mrb[88].mxu0 %v1030_v19  ;;  %v15626_v9 = vpack.c.bf16 %v1020_v3, %v1019_v0  ;;  %v1023_v3 = vld [vmem:[#allocation9 + $0x70] sm:$0xff] }
 0x14c   :  { %v457_v39 = vpop.f32.mrb[14].mxu0 }
 0x14d   :  { %v458_v45 = vadd.f32 %v18157_v36, %v457_v39  ;;  %v18202_v48 = vmul.f32 %v18197_v23, %v637_v37  ;;  %v459_v51 = vpop.f32.mrb[15].mxu0  ;;  %15627 = vmatprep.subr.bf16.mxu0 %v15626_v9  ;;  %v1021_v39 = vld [vmem:[#allocation9 + $0x60] sm:$0xff] }
 0x14e   :  { %v1031_v54 = vld [vmem:[#allocation2 + $0x3e] sm:$0xff]  ;;  %15629 = vmatpush3.bf16.msra.mxu0 %v15626_v9 }
 0x14f   :  { %v638_v60 = vmax.f32 %v458_v45, 0.0  ;;  %931 = vst [vmem:[#allocation2 + $0x50] sm:$0xff] %v18202_v48  ;;  %13023 = vmatprep.mubr.f32.mxu0 %v1031_v54  ;;  %v1022_v51 = vld [vmem:[#allocation9 + $0x68] sm:$0xff]  ;;  %v18218_v54 = vpop.permute.xlu0 %720 }
 0x150   :  { %v462_v62 = vpop.f32.mrb[16].mxu0  ;;  %19906 = vst [vmem:[#allocation49_spill] sm:$0xff] %v18218_v54 }
 0x151   :  { %v463_v5 = vadd.f32 %v18157_v36, %v462_v62  ;;  %v18209_v6 = vmul.f32 %v18204_v56, %v638_v60  ;;  %v464_v8 = vpop.f32.mrb[17].mxu0  ;;  %v15630_v60 = vpack.c.bf16 %v1022_v51, %v1021_v39 }
 0x152   :  { %v1032_v14 = vld [vmem:[#allocation2 + $0x46] sm:$0xff] }
 0x153   :  { %v639_v19 = vmax.f32 %v463_v5, 0.0  ;;  %932 = vst [vmem:[#allocation2 + $0x58] sm:$0xff] %v18209_v6  ;;  %13024 = vmatmul.mubr.f32.gmra.mrb[90].mxu0 %v1032_v14  ;;  %15631 = vmatprep.subr.bf16.mxu0 %v15630_v60  ;;  %v1024_v14 = vld [vmem:[#allocation9 + $0x78] sm:$0xff] }
 0x154   :  { %v467_v37 = vpop.f32.mrb[18].mxu0  ;;  %15633 = vmatpush3.bf16.msra.mxu0 %v15630_v60  ;;  %v18232_v60 = vpop.permute.xlu0 %730 }
 0x155   :  { %v468_v42 = vadd.f32 %v18157_v36, %v467_v37  ;;  %v18216_v43 = vmul.f32 %v18211_v18, %v639_v19  ;;  %v469_v45 = vpop.f32.mrb[19].mxu0  ;;  %v18225_v37 = vpop.permute.xlu1 %725  ;;  %19908 = vst [vmem:[#allocation51_spill] sm:$0xff] %v18232_v60 }
 0x156   :  { %v1033_v53 = vld [vmem:[#allocation2 + $0x4e] sm:$0xff]  ;;  %19907 = vst [vmem:[#allocation50_spill] sm:$0xff] %v18225_v37  ;;  %v15634_v45 = vpack.c.bf16 %v1024_v14, %v1023_v3 }
 0x157   :  { %v640_v62 = vmax.f32 %v468_v42, 0.0  ;;  %933 = vst [vmem:[#allocation2 + $0x60] sm:$0xff] %v18216_v43  ;;  %13026 = vmatprep.mubr.f32.mxu0 %v1033_v53 }
 0x158   :  { %v472_v0 = vpop.f32.mrb[20].mxu0  ;;  %15635 = vmatprep.subr.bf16.mxu0 %v15634_v45 }
 0x159   :  { %v473_v5 = vadd.f32 %v18157_v36, %v472_v0  ;;  %v18223_v8 = vmul.f32 %v18218_v54, %v640_v62  ;;  %v474_v9 = vpop.f32.mrb[21].mxu0  ;;  %15637 = vmatpush3.bf16.msra.mxu0 %v15634_v45  ;;  %v18239_v18 = vpop.permute.xlu1 %735 }
 0x15a   :  { %v1034_v19 = vld [vmem:[#allocation2 + $0x56] sm:$0xff]  ;;  %19909 = vst [vmem:[#allocation52_spill] sm:$0xff] %v18239_v18 }
 0x15b   :  { %v641_v39 = vmax.f32 %v473_v5, 0.0  ;;  %934 = vst [vmem:[#allocation2 + $0x68] sm:$0xff] %v18223_v8  ;;  %13027 = vmatmul.mubr.f32.gmra.mrb[92].mxu0 %v1034_v19 }
 0x15c   :  { %v477_v42 = vpop.f32.mrb[22].mxu0 }
 0x15d   :  { %v478_v51 = vadd.f32 %v18157_v36, %v477_v42  ;;  %v18230_v53 = vmul.f32 %v18225_v37, %v641_v39  ;;  %v479_v62 = vpop.f32.mrb[23].mxu0 }
 0x15e   :  { %v1035_v0 = vld [vmem:[#allocation2 + $0x5e] sm:$0xff] }
 0x15f   :  { %v642_v9 = vmax.f32 %v478_v51, 0.0  ;;  %935 = vst [vmem:[#allocation2 + $0x70] sm:$0xff] %v18230_v53  ;;  %13029 = vmatprep.mubr.f32.mxu0 %v1035_v0 }
 0x160   :  { %v482_v3 = vpop.f32.mrb[24].mxu0 }
 0x161   :  { %v483_v5 = vadd.f32 %v18157_v36, %v482_v3  ;;  %v18237_v14 = vmul.f32 %v18232_v60, %v642_v9  ;;  %v484_v19 = vpop.f32.mrb[25].mxu0  ;;  %v18246_v3 = vpop.permute.xlu0 %740 }
 0x162   :  { %v1036_v42 = vld [vmem:[#allocation2 + $0x66] sm:$0xff]  ;;  %19910 = vst [vmem:[#allocation53_spill] sm:$0xff] %v18246_v3 }
 0x163   :  { %v643_v39 = vmax.f32 %v483_v5, 0.0  ;;  %936 = vst [vmem:[#allocation2 + $0x78] sm:$0xff] %v18237_v14  ;;  %13030 = vmatmul.mubr.f32.gmra.mrb[94].mxu0 %v1036_v42 }
 0x164   :  { %v487_v45 = vpop.f32.mrb[26].mxu0 }
 0x165   :  { %v488_v51 = vadd.f32 %v18157_v36, %v487_v45  ;;  %v18244_v62 = vmul.f32 %v18239_v18, %v643_v39  ;;  %v489_v0 = vpop.f32.mrb[27].mxu0  ;;  %v18253_v45 = vpop.permute.xlu1 %745 }
 0x166   :  { %v1037_v37 = vld [vmem:[#allocation2 + $0x6e] sm:$0xff]  ;;  %19911 = vst [vmem:[#allocation54_spill] sm:$0xff] %v18253_v45 }
 0x167   :  { %v644_v9 = vmax.f32 %v488_v51, 0.0  ;;  %937 = vst [vmem:[#allocation2 + $0x80] sm:$0xff] %v18244_v62  ;;  %13032 = vmatprep.mubr.f32.mxu0 %v1037_v37 }
 0x168   :  { %v492_v19 = vpop.f32.mrb[28].mxu0 }
 0x169   :  { %v493_v5 = vadd.f32 %v18157_v36, %v492_v19  ;;  %v18251_v60 = vmul.f32 %v18246_v3, %v644_v9  ;;  %v494_v42 = vpop.f32.mrb[29].mxu0  ;;  %v18260_v19 = vpop.permute.xlu0 %750 }
 0x16a   :  { %v1038_v54 = vld [vmem:[#allocation2 + $0x76] sm:$0xff]  ;;  %19912 = vst [vmem:[#allocation55_spill] sm:$0xff] %v18260_v19 }
 0x16b   :  { %v645_v39 = vmax.f32 %v493_v5, 0.0  ;;  %938 = vst [vmem:[#allocation2 + $0x88] sm:$0xff] %v18251_v60  ;;  %13033 = vmatmul.mubr.f32.gmra.mrb[96].mxu0 %v1038_v54 }
 0x16c   :  { %v497_v0 = vpop.f32.mrb[30].mxu0 }
 0x16d   :  { %v498_v51 = vadd.f32 %v18157_v36, %v497_v0  ;;  %v18258_v18 = vmul.f32 %v18253_v45, %v645_v39  ;;  %v499_v37 = vpop.f32.mrb[31].mxu0  ;;  %v18267_v0 = vpop.permute.xlu1 %755 }
 0x16e   :  { %v1039_v23 = vld [vmem:[#allocation2 + $0x7e] sm:$0xff]  ;;  %19913 = vst [vmem:[#allocation56_spill] sm:$0xff] %v18267_v0 }
 0x16f   :  { %v646_v9 = vmax.f32 %v498_v51, 0.0  ;;  %939 = vst [vmem:[#allocation2 + $0x90] sm:$0xff] %v18258_v18  ;;  %13035 = vmatprep.mubr.f32.mxu0 %v1039_v23 }
 0x170   :  { %v502_v42 = vpop.f32.mrb[32].mxu0 }
 0x171   :  { %v503_v5 = vadd.f32 %v18157_v36, %v502_v42  ;;  %v18265_v3 = vmul.f32 %v18260_v19, %v646_v9  ;;  %v504_v54 = vpop.f32.mrb[33].mxu0  ;;  %v18274_v42 = vpop.permute.xlu0 %760 }
 0x172   :  { %v1040_v56 = vld [vmem:[#allocation2 + $0x86] sm:$0xff]  ;;  %19914 = vst [vmem:[#allocation57_spill] sm:$0xff] %v18274_v42 }
 0x173   :  { %v647_v39 = vmax.f32 %v503_v5, 0.0  ;;  %940 = vst [vmem:[#allocation2 + $0x98] sm:$0xff] %v18265_v3  ;;  %13036 = vmatmul.mubr.f32.gmra.mrb[98].mxu0 %v1040_v56 }
 0x174   :  { %v507_v37 = vpop.f32.mrb[34].mxu0 }
 0x175   :  { %v508_v51 = vadd.f32 %v18157_v36, %v507_v37  ;;  %v18272_v45 = vmul.f32 %v18267_v0, %v647_v39  ;;  %v509_v23 = vpop.f32.mrb[35].mxu0  ;;  %v18281_v37 = vpop.permute.xlu1 %765 }
 0x176   :  { %v1041_v47 = vld [vmem:[#allocation2 + $0x8e] sm:$0xff]  ;;  %19915 = vst [vmem:[#allocation58_spill] sm:$0xff] %v18281_v37 }
 0x177   :  { %v648_v9 = vmax.f32 %v508_v51, 0.0  ;;  %941 = vst [vmem:[#allocation2 + $0xa0] sm:$0xff] %v18272_v45  ;;  %13038 = vmatprep.mubr.f32.mxu0 %v1041_v47 }
 0x178   :  { %v512_v54 = vpop.f32.mrb[36].mxu0 }
 0x179   :  { %v513_v5 = vadd.f32 %v18157_v36, %v512_v54  ;;  %v18279_v19 = vmul.f32 %v18274_v42, %v648_v9  ;;  %v514_v56 = vpop.f32.mrb[37].mxu0 }
 0x17a   :  { %v1042_v2 = vld [vmem:[#allocation2 + $0x96] sm:$0xff] }
 0x17b   :  { %v649_v39 = vmax.f32 %v513_v5, 0.0  ;;  %942 = vst [vmem:[#allocation2 + $0xa8] sm:$0xff] %v18279_v19  ;;  %13039 = vmatmul.mubr.f32.gmra.mrb[100].mxu0 %v1042_v2 }
 0x17c   :  { %v517_v23 = vpop.f32.mrb[38].mxu0 }
 0x17d   :  { %v518_v51 = vadd.f32 %v18157_v36, %v517_v23  ;;  %v18286_v0 = vmul.f32 %v18281_v37, %v649_v39  ;;  %v519_v47 = vpop.f32.mrb[39].mxu0 }
 0x17e   :  { %v1043_v59 = vld [vmem:[#allocation2 + $0x9e] sm:$0xff] }
 0x17f   :  { %v650_v54 = vmax.f32 %v518_v51, 0.0  ;;  %943 = vst [vmem:[#allocation2 + $0xb0] sm:$0xff] %v18286_v0  ;;  %13041 = vmatprep.mubr.f32.mxu0 %v1043_v59 }
 0x180   :  { %v522_v9 = vpop.f32.mrb[40].mxu0 }
 0x181   :  { %v18290_v56 = vmul.f32 %v18053_v44, %v650_v54  ;;  %v523_v5 = vadd.f32 %v18157_v36, %v522_v9  ;;  %v524_v42 = vpop.f32.mrb[41].mxu0 }
 0x182   :  { %v1044_v2 = vld [vmem:[#allocation2 + $0xa6] sm:$0xff] }
 0x183   :  { %944 = vst [vmem:[#allocation2 + $0xb8] sm:$0xff] %v18290_v56  ;;  %v651_v23 = vmax.f32 %v523_v5, 0.0  ;;  %13042 = vmatmul.mubr.f32.gmra.mrb[102].mxu0 %v1044_v2 }
 0x184   :  { %v527_v39 = vpop.f32.mrb[42].mxu0 }
 0x185   :  { %v18295_v47 = vmul.f32 %v18070_v52, %v651_v23  ;;  %v528_v51 = vadd.f32 %v18157_v36, %v527_v39  ;;  %v529_v37 = vpop.f32.mrb[43].mxu0 }
 0x186   :  { %v1045_v59 = vld [vmem:[#allocation2 + $0xae] sm:$0xff] }
 0x187   :  { %945 = vst [vmem:[#allocation2 + $0xc0] sm:$0xff] %v18295_v47  ;;  %v652_v54 = vmax.f32 %v528_v51, 0.0  ;;  %13044 = vmatprep.mubr.f32.mxu0 %v1045_v59  ;;  %v2431_v59 = vld [vmem:[#allocation9 + $0x210] sm:$0xff] }
 0x188   :  { %v532_v44 = vpop.f32.mrb[44].mxu0 }
 0x189   :  { %v18300_v42 = vmul.f32 %v18058_v46, %v652_v54  ;;  %v533_v9 = vadd.f32 %v18157_v36, %v532_v44  ;;  %v534_v5 = vpop.f32.mrb[45].mxu0  ;;  %v2432_v54 = vld [vmem:[#allocation9 + $0x218] sm:$0xff]  ;;  %v2433_v46 = vld [vmem:[#allocation9 + $0x220] sm:$0xff] }
 0x18a   :  { %v1046_v2 = vld [vmem:[#allocation2 + $0xb6] sm:$0xff] }
 0x18b   :  { %946 = vst [vmem:[#allocation2 + $0xc8] sm:$0xff] %v18300_v42  ;;  %v653_v23 = vmax.f32 %v533_v9, 0.0  ;;  %13045 = vmatmul.mubr.f32.gmra.mrb[104].mxu0 %v1046_v2 }
 0x18c   :  { %v537_v52 = vpop.f32.mrb[46].mxu0 }
 0x18d   :  { %v18305_v37 = vmul.f32 %v18079_v57, %v653_v23  ;;  %v538_v39 = vadd.f32 %v18157_v36, %v537_v52  ;;  %v539_v51 = vpop.f32.mrb[47].mxu0  ;;  %v15706_v57 = vpack.c.bf16 %v2432_v54, %v2431_v59  ;;  %v1677_v52 = vld [vmem:[#allocation9 + $0x100] sm:$0xff] }
 0x18e   :  { %v1047_v12 = vld [vmem:[#allocation2 + $0xbe] sm:$0xff] }
 0x18f   :  { %v2030_v41 = vld [vmem:[#allocation2 + $0xbf] sm:$0xff]  ;;  %947 = vst [vmem:[#allocation2 + $0xd0] sm:$0xff] %v18305_v37  ;;  %v654_v44 = vmax.f32 %v538_v39, 0.0  ;;  %13047 = vmatprep.mubr.f32.mxu0 %v1047_v12 }
 0x190   :  { %13329 = vmatprep.mubr.f32.mxu1 %v2030_v41  ;;  %v542_v5 = vpop.f32.mrb[48].mxu0  ;;  %v1678_v51 = vld [vmem:[#allocation9 + $0x108] sm:$0xff] }
 0x191   :  { %v18310_v9 = vmul.f32 %v18092_v63, %v654_v44  ;;  %v543_v2 = vadd.f32 %v18157_v36, %v542_v5  ;;  %v544_v23 = vpop.f32.mrb[49].mxu0  ;;  %v18313_v15 = vpack.c.bf16 %v1678_v51, %v1677_v52  ;;  %v15710_v44 = vpack.c.bf16 %v2434_v20, %v2433_v46  ;;  %v2435_v5 = vld [vmem:[#allocation9 + $0x230] sm:$0xff]  ;;  %v2436_v51 = vld [vmem:[#allocation9 + $0x238] sm:$0xff]  ;;  %v2437_v46 = vld [vmem:[#allocation9 + $0x240] sm:$0xff] }
 0x192   :  { %v1048_v50 = vld [vmem:[#allocation2 + $0xc6] sm:$0xff] }
 0x193   :  { %v2031_v24 = vld [vmem:[#allocation2 + $0xc7] sm:$0xff]  ;;  %948 = vst [vmem:[#allocation2 + $0xd8] sm:$0xff] %v18310_v9  ;;  %v655_v12 = vmax.f32 %v543_v2, 0.0  ;;  %13048 = vmatmul.mubr.f32.gmra.mrb[106].mxu0 %v1048_v50  ;;  %15639 = vmatprep.subr.bf16.mxu0 %v18313_v15 }
 0x194   :  { %13330 = vmatmul.mubr.f32.vlgmr.msra.gmra.mrb[0].mxu1 %v2031_v24  ;;  %v547_v41 = vpop.f32.mrb[50].mxu0 }
 0x195   :  { %15705 = vmatpush3.bf16.msra.mxu1 %v18176_v22  ;;  %v18319_v39 = vmul.f32 %v18098_v1, %v655_v12  ;;  %v548_v59 = vadd.f32 %v18157_v36, %v547_v41  ;;  %v549_v54 = vpop.f32.mrb[51].mxu0  ;;  %v15714_v41 = vpack.c.bf16 %v2436_v51, %v2435_v5  ;;  %v2438_v1 = vld [vmem:[#allocation9 + $0x248] sm:$0xff]  ;;  %v2439_v5 = vld [vmem:[#allocation9 + $0x250] sm:$0xff] }
 0x196   :  { %15707 = vmatprep.subr.bf16.mxu1 %v15706_v57  ;;  %v1049_v23 = vld [vmem:[#allocation2 + $0xce] sm:$0xff] }
 0x197   :  { %v2032_v52 = vld [vmem:[#allocation2 + $0xcf] sm:$0xff]  ;;  %949 = vst [vmem:[#allocation2 + $0xe0] sm:$0xff] %v18319_v39  ;;  %v656_v24 = vmax.f32 %v548_v59, 0.0  ;;  %13050 = vmatprep.mubr.f32.mxu0 %v1049_v23 }
 0x198   :  { %13332 = vmatprep.mubr.f32.mxu1 %v2032_v52  ;;  %v552_v50 = vpop.f32.mrb[52].mxu0 }
 0x199   :  { %15709 = vmatpush3.bf16.msra.mxu1 %v15706_v57  ;;  %v18324_v22 = vmul.f32 %v18108_v7, %v656_v24  ;;  %v553_v2 = vadd.f32 %v18157_v36, %v552_v50  ;;  %v554_v12 = vpop.f32.mrb[53].mxu0  ;;  %v15718_v24 = vpack.c.bf16 %v2438_v1, %v2437_v46  ;;  %v2441_v1 = vld [vmem:[#allocation9 + $0x260] sm:$0xff] }
 0x19a   :  { %15711 = vmatprep.subr.bf16.mxu1 %v15710_v44  ;;  %v1050_v20 = vld [vmem:[#allocation2 + $0xd6] sm:$0xff]  ;;  %v2440_v12 = vld [vmem:[#allocation9 + $0x258] sm:$0xff] }
 0x19b   :  { %v2033_v54 = vld [vmem:[#allocation2 + $0xd7] sm:$0xff]  ;;  %950 = vst [vmem:[#allocation2 + $0xe8] sm:$0xff] %v18324_v22  ;;  %v657_v63 = vmax.f32 %v553_v2, 0.0  ;;  %13051 = vmatmul.mubr.f32.gmra.mrb[108].mxu0 %v1050_v20 }
 0x19c   :  { %13333 = vmatmul.mubr.f32.gmra.mrb[2].mxu1 %v2033_v54  ;;  %v557_v59 = vpop.f32.mrb[54].mxu0  ;;  %v15722_v54 = vpack.c.bf16 %v2440_v12, %v2439_v5  ;;  %v2443_v5 = vld [vmem:[#allocation9 + $0x270] sm:$0xff] }
 0x19d   :  { %15713 = vmatpush3.bf16.msra.mxu1 %v15710_v44  ;;  %v18329_v57 = vmul.f32 %v18113_v11, %v657_v63  ;;  %v558_v23 = vadd.f32 %v18157_v36, %v557_v59  ;;  %v559_v52 = vpop.f32.mrb[55].mxu0 }
 0x19e   :  { %15715 = vmatprep.subr.bf16.mxu1 %v15714_v41  ;;  %v1051_v51 = vld [vmem:[#allocation2 + $0xde] sm:$0xff] }
 0x19f   :  { %v2034_v50 = vld [vmem:[#allocation2 + $0xdf] sm:$0xff]  ;;  %951 = vst [vmem:[#allocation2 + $0xf0] sm:$0xff] %v18329_v57  ;;  %v658_v7 = vmax.f32 %v558_v23, 0.0  ;;  %13053 = vmatprep.mubr.f32.mxu0 %v1051_v51 }
 0x1a0   :  { %13335 = vmatprep.mubr.f32.mxu1 %v2034_v50  ;;  %v562_v2 = vpop.f32.mrb[56].mxu0  ;;  %v2442_v52 = vld [vmem:[#allocation9 + $0x268] sm:$0xff] }
 0x1a1   :  { %15717 = vmatpush3.bf16.msra.mxu1 %v15714_v41  ;;  %v18334_v44 = vmul.f32 %v18119_v16, %v658_v7  ;;  %v563_v63 = vadd.f32 %v18157_v36, %v562_v2  ;;  %v564_v20 = vpop.f32.mrb[57].mxu0  ;;  %v15726_v50 = vpack.c.bf16 %v2442_v52, %v2441_v1  ;;  %v2805_v1 = vld [vmem:[#allocation9 + $0x280] sm:$0xff] }
 0x1a2   :  { %15719 = vmatprep.subr.bf16.mxu1 %v15718_v24  ;;  %v1052_v46 = vld [vmem:[#allocation2 + $0xe6] sm:$0xff] }
 0x1a3   :  { %v2035_v59 = vld [vmem:[#allocation2 + $0xe7] sm:$0xff]  ;;  %952 = vst [vmem:[#allocation2 + $0xf8] sm:$0xff] %v18334_v44  ;;  %v659_v11 = vmax.f32 %v563_v63, 0.0  ;;  %13054 = vmatmul.mubr.f32.gmra.mrb[110].mxu0 %v1052_v46 }
 0x1a4   :  { %13336 = vmatmul.mubr.f32.gmra.mrb[4].mxu1 %v2035_v59  ;;  %v567_v23 = vpop.f32.mrb[58].mxu0  ;;  %v2444_v20 = vld [vmem:[#allocation9 + $0x278] sm:$0xff] }
 0x1a5   :  { %15721 = vmatpush3.bf16.msra.mxu1 %v15718_v24  ;;  %v18339_v41 = vmul.f32 %v18122_v17, %v659_v11  ;;  %v568_v7 = vadd.f32 %v18157_v36, %v567_v23  ;;  %v569_v51 = vpop.f32.mrb[59].mxu0  ;;  %v15730_v59 = vpack.c.bf16 %v2444_v20, %v2443_v5 }
 0x1a6   :  { %15723 = vmatprep.subr.bf16.mxu1 %v15722_v54  ;;  %v1053_v12 = vld [vmem:[#allocation2 + $0xee] sm:$0xff]  ;;  %v2806_v51 = vld [vmem:[#allocation9 + $0x288] sm:$0xff] }
 0x1a7   :  { %v2036_v2 = vld [vmem:[#allocation2 + $0xef] sm:$0xff]  ;;  %953 = vst [vmem:[#allocation2 + $0x100] sm:$0xff] %v18339_v41  ;;  %v660_v16 = vmax.f32 %v568_v7, 0.0  ;;  %13056 = vmatprep.mubr.f32.mxu0 %v1053_v12 }
 0x1a8   :  { %13338 = vmatprep.mubr.f32.mxu1 %v2036_v2  ;;  %v572_v63 = vpop.f32.mrb[60].mxu0  ;;  %v18352_v2 = vpack.c.bf16 %v2806_v51, %v2805_v1 }
 0x1a9   :  { %15725 = vmatpush3.bf16.msra.mxu1 %v15722_v54  ;;  %v18344_v24 = vmul.f32 %v18128_v21, %v660_v16  ;;  %v573_v11 = vadd.f32 %v18157_v36, %v572_v63  ;;  %v574_v46 = vpop.f32.mrb[61].mxu0  ;;  %v2808_v21 = vld [vmem:[#allocation9 + $0x298] sm:$0xff] }
 0x1aa   :  { %15727 = vmatprep.subr.bf16.mxu1 %v15726_v50  ;;  %v1054_v52 = vld [vmem:[#allocation2 + $0xf6] sm:$0xff] }
 0x1ab   :  { %v2037_v23 = vld [vmem:[#allocation2 + $0xf7] sm:$0xff]  ;;  %954 = vst [vmem:[#allocation2 + $0x108] sm:$0xff] %v18344_v24  ;;  %v661_v17 = vmax.f32 %v573_v11, 0.0  ;;  %13057 = vmatmul.mubr.f32.gmra.mrb[112].mxu0 %v1054_v52 }
 0x1ac   :  { %13339 = vmatmul.mubr.f32.gmra.mrb[6].mxu1 %v2037_v23  ;;  %v577_v7 = vpop.f32.mrb[62].mxu0 }
 0x1ad   :  { %15729 = vmatpush3.bf16.msra.mxu1 %v15726_v50  ;;  %v18349_v54 = vmul.f32 %v18133_v25, %v661_v17  ;;  %v578_v16 = vadd.f32 %v18157_v36, %v577_v7  ;;  %v579_v12 = vpop.f32.mrb[63].mxu0 }
 0x1ae   :  { %15731 = vmatprep.subr.bf16.mxu1 %v15730_v59  ;;  %v1055_v5 = vld [vmem:[#allocation2 + $0xfe] sm:$0xff] }
 0x1af   :  { %v2038_v20 = vld [vmem:[#allocation2 + $0xff] sm:$0xff]  ;;  %955 = vst [vmem:[#allocation2 + $0x110] sm:$0xff] %v18349_v54  ;;  %v662_v63 = vmax.f32 %v578_v16, 0.0  ;;  %13059 = vmatprep.mubr.f32.mxu0 %v1055_v5 }
 0x1b0   :  { %13341 = vmatprep.mubr.f32.mxu1 %v2038_v20  ;;  %v582_v11 = vpop.f32.mrb[64].mxu0 }
 0x1b1   :  { %15733 = vmatpush3.bf16.msra.mxu1 %v15730_v59  ;;  %v18356_v50 = vmul.f32 %v18137_v26, %v662_v63  ;;  %v583_v17 = vadd.f32 %v18157_v36, %v582_v11  ;;  %v584_v46 = vpop.f32.mrb[65].mxu0  ;;  %v2807_v26 = vld [vmem:[#allocation9 + $0x290] sm:$0xff] }
 0x1b2   :  { %15735 = vmatprep.subr.bf16.mxu1 %v18352_v2  ;;  %v1056_v52 = vld [vmem:[#allocation2 + $0x106] sm:$0xff] }
 0x1b3   :  { %v2039_v1 = vld [vmem:[#allocation2 + $0x107] sm:$0xff]  ;;  %956 = vst [vmem:[#allocation2 + $0x118] sm:$0xff] %v18356_v50  ;;  %v663_v23 = vmax.f32 %v583_v17, 0.0  ;;  %13060 = vmatmul.mubr.f32.gmra.mrb[114].mxu0 %v1056_v52 }
 0x1b4   :  { %13342 = vmatmul.mubr.f32.gmra.mrb[8].mxu1 %v2039_v1  ;;  %v587_v51 = vpop.f32.mrb[66].mxu0 }
 0x1b5   :  { %v18362_v7 = vmul.f32 %v18139_v27, %v663_v23  ;;  %v588_v59 = vadd.f32 %v18157_v36, %v587_v51  ;;  %v589_v16 = vpop.f32.mrb[67].mxu0 }
 0x1b6   :  { %v1057_v12 = vld [vmem:[#allocation2 + $0x10e] sm:$0xff] }
 0x1b7   :  { %v2040_v5 = vld [vmem:[#allocation2 + $0x10f] sm:$0xff]  ;;  %957 = vst [vmem:[#allocation2 + $0x120] sm:$0xff] %v18362_v7  ;;  %v664_v20 = vmax.f32 %v588_v59, 0.0  ;;  %13062 = vmatprep.mubr.f32.mxu0 %v1057_v12 }
 0x1b8   :  { %13344 = vmatprep.mubr.f32.mxu1 %v2040_v5  ;;  %v592_v63 = vpop.f32.mrb[68].mxu0 }
 0x1b9   :  { %v18367_v11 = vmul.f32 %v18141_v28, %v664_v20  ;;  %v593_v17 = vadd.f32 %v18157_v36, %v592_v63  ;;  %v594_v46 = vpop.f32.mrb[69].mxu0 }
 0x1ba   :  { %v1058_v52 = vld [vmem:[#allocation2 + $0x116] sm:$0xff] }
 0x1bb   :  { %v2041_v1 = vld [vmem:[#allocation2 + $0x117] sm:$0xff]  ;;  %958 = vst [vmem:[#allocation2 + $0x128] sm:$0xff] %v18367_v11  ;;  %v665_v23 = vmax.f32 %v593_v17, 0.0  ;;  %13063 = vmatmul.mubr.f32.gmra.mrb[116].mxu0 %v1058_v52 }
 0x1bc   :  { %13345 = vmatmul.mubr.f32.gmra.mrb[10].mxu1 %v2041_v1  ;;  %v597_v51 = vpop.f32.mrb[70].mxu0 }
 0x1bd   :  { %v18372_v16 = vmul.f32 %v18143_v29, %v665_v23  ;;  %v598_v59 = vadd.f32 %v18157_v36, %v597_v51  ;;  %v599_v12 = vpop.f32.mrb[71].mxu0 }
 0x1be   :  { %v1059_v5 = vld [vmem:[#allocation2 + $0x11e] sm:$0xff] }
 0x1bf   :  { %v2042_v20 = vld [vmem:[#allocation2 + $0x11f] sm:$0xff]  ;;  %959 = vst [vmem:[#allocation2 + $0x130] sm:$0xff] %v18372_v16  ;;  %v666_v63 = vmax.f32 %v598_v59, 0.0  ;;  %13065 = vmatprep.mubr.f32.mxu0 %v1059_v5 }
 0x1c0   :  { %13347 = vmatprep.mubr.f32.mxu1 %v2042_v20  ;;  %v602_v46 = vpop.f32.mrb[72].mxu0 }
 0x1c1   :  { %v18377_v27 = vmul.f32 %v18145_v30, %v666_v63  ;;  %v603_v17 = vadd.f32 %v18157_v36, %v602_v46  ;;  %v604_v52 = vpop.f32.mrb[73].mxu0 }
 0x1c2   :  { %v1060_v1 = vld [vmem:[#allocation2 + $0x126] sm:$0xff] }
 0x1c3   :  { %v2043_v23 = vld [vmem:[#allocation2 + $0x127] sm:$0xff]  ;;  %960 = vst [vmem:[#allocation2 + $0x138] sm:$0xff] %v18377_v27  ;;  %v667_v51 = vmax.f32 %v603_v17, 0.0  ;;  %13066 = vmatmul.mubr.f32.gmra.mrb[118].mxu0 %v1060_v1 }
 0x1c4   :  { %13348 = vmatmul.mubr.f32.gmra.mrb[12].mxu1 %v2043_v23  ;;  %v607_v12 = vpop.f32.mrb[74].mxu0 }
 0x1c5   :  { %v18382_v29 = vmul.f32 %v18147_v31, %v667_v51  ;;  %v608_v59 = vadd.f32 %v18157_v36, %v607_v12  ;;  %v609_v5 = vpop.f32.mrb[75].mxu0 }
 0x1c6   :  { %v1061_v20 = vld [vmem:[#allocation2 + $0x12e] sm:$0xff] }
 0x1c7   :  { %v2044_v63 = vld [vmem:[#allocation2 + $0x12f] sm:$0xff]  ;;  %961 = vst [vmem:[#allocation2 + $0x140] sm:$0xff] %v18382_v29  ;;  %v668_v46 = vmax.f32 %v608_v59, 0.0  ;;  %13068 = vmatprep.mubr.f32.mxu0 %v1061_v20 }
 0x1c8   :  { %13350 = vmatprep.mubr.f32.mxu1 %v2044_v63  ;;  %v612_v52 = vpop.f32.mrb[76].mxu0 }
 0x1c9   :  { %v18387_v30 = vmul.f32 %v18149_v32, %v668_v46  ;;  %v613_v17 = vadd.f32 %v18157_v36, %v612_v52  ;;  %v614_v1 = vpop.f32.mrb[77].mxu0 }
 0x1ca   :  { %v1062_v23 = vld [vmem:[#allocation2 + $0x136] sm:$0xff] }
 0x1cb   :  { %v2045_v51 = vld [vmem:[#allocation2 + $0x137] sm:$0xff]  ;;  %962 = vst [vmem:[#allocation2 + $0x148] sm:$0xff] %v18387_v30  ;;  %v669_v12 = vmax.f32 %v613_v17, 0.0  ;;  %13069 = vmatmul.mubr.f32.gmra.mrb[120].mxu0 %v1062_v23 }
 0x1cc   :  { %13351 = vmatmul.mubr.f32.gmra.mrb[14].mxu1 %v2045_v51  ;;  %v617_v5 = vpop.f32.mrb[78].mxu0 }
 0x1cd   :  { %v18392_v31 = vmul.f32 %v18151_v33, %v669_v12  ;;  %v618_v59 = vadd.f32 %v18157_v36, %v617_v5  ;;  %v619_v20 = vpop.f32.mrb[79].mxu0 }
 0x1ce   :  { %v1063_v63 = vld [vmem:[#allocation2 + $0x13e] sm:$0xff] }
 0x1cf   :  { %v18395_v46 = vld [vmem:[#allocation2 + $0x13f] sm:$0xff]  ;;  %963 = vst [vmem:[#allocation2 + $0x150] sm:$0xff] %v18392_v31  ;;  %v670_v52 = vmax.f32 %v618_v59, 0.0  ;;  %13071 = vmatprep.mubr.f32.mxu0 %v1063_v63 }
 0x1d0   :  { %13353 = vmatprep.mubr.f32.mxu1 %v18395_v46  ;;  %v622_v1 = vpop.f32.mrb[80].mxu0 }
 0x1d1   :  { %v18400_v17 = vmul.f32 %v18153_v34, %v670_v52  ;;  %v623_v23 = vadd.f32 %v18157_v36, %v622_v1  ;;  %v624_v51 = vpop.f32.mrb[81].mxu0 }
 0x1d2   :  { %v1064_v12 = vld [vmem:[#allocation2 + $0x146] sm:$0xff] }
 0x1d3   :  { %v18403_v33 = vld [vmem:[#allocation2 + $0x147] sm:$0xff]  ;;  %964 = vst [vmem:[#allocation2 + $0x158] sm:$0xff] %v18400_v17  ;;  %v671_v5 = vmax.f32 %v623_v23, 0.0  ;;  %13072 = vmatmul.mubr.f32.gmra.mrb[122].mxu0 %v1064_v12 }
 0x1d4   :  { %19916 = vst [vmem:[#allocation59_spill] sm:$0xff] %v18403_v33  ;;  %13354 = vmatmul.mubr.f32.gmra.mrb[16].mxu1 %v18403_v33  ;;  %v627_v59 = vpop.f32.mrb[82].mxu0  ;;  %v967_v51 = vld [vmem:[#allocation2 + $0xd] sm:$0xff]  ;;  %v1679_v12 = vld [vmem:[#allocation9 + $0x110] sm:$0xff]  ;;  %v2810_v33 = vld [vmem:[#allocation9 + $0x2a8] sm:$0xff] }
 0x1d5   :  { %v18408_v20 = vmul.f32 %v18155_v35, %v671_v5  ;;  %v628_v63 = vadd.f32 %v18157_v36, %v627_v59  ;;  %v629_v52 = vpop.f32.mrb[83].mxu0  ;;  %v1680_v35 = vld [vmem:[#allocation9 + $0x118] sm:$0xff]  ;;  %v968_v36 = vld [vmem:[#allocation2 + $0x15] sm:$0xff] }
 0x1d6   :  { %v1065_v34 = vld [vmem:[#allocation2 + $0x14e] sm:$0xff]  ;;  %v15642_v59 = vpack.c.bf16 %v1680_v35, %v1679_v12  ;;  %v15738_v12 = vpack.c.bf16 %v2808_v21, %v2807_v26  ;;  %v1686_v26 = vld [vmem:[#allocation9 + $0x148] sm:$0xff] }
 0x1d7   :  { %v18411_v32 = vld [vmem:[#allocation2 + $0x14f] sm:$0xff]  ;;  %965 = vst [vmem:[#allocation2 + $0x160] sm:$0xff] %v18408_v20  ;;  %v672_v1 = vmax.f32 %v628_v63, 0.0  ;;  %13074 = vmatprep.mubr.f32.mxu0 %v1065_v34  ;;  %v969_v63 = vld [vmem:[#allocation2 + $0x1d] sm:$0xff] }
 0x1d8   :  { %19917 = vst [vmem:[#allocation60_spill] sm:$0xff] %v18411_v32  ;;  %13356 = vmatprep.mubr.f32.mxu1 %v18411_v32  ;;  %v1681_v52 = vld [vmem:[#allocation9 + $0x120] sm:$0xff]  ;;  %v2387_v35 = vld [vmem:[#allocation2 + $0x28] sm:$0xff] }
 0x1d9   :  { %v18416_v23 = vmul.f32 %v18159_v38, %v672_v1  ;;  %v1682_v1 = vld [vmem:[#allocation9 + $0x128] sm:$0xff]  ;;  %v970_v38 = vld [vmem:[#allocation2 + $0x25] sm:$0xff]  ;;  %v2809_v32 = vld [vmem:[#allocation9 + $0x2a0] sm:$0xff] }
 0x1da   :  { %v1066_v28 = vld [vmem:[#allocation2 + $0x156] sm:$0xff] }
 0x1db   :  { %v18418_v5 = vld [vmem:[#allocation2 + $0x157] sm:$0xff]  ;;  %966 = vst [vmem:[#allocation2 + $0x168] sm:$0xff] %v18416_v23  ;;  %13075 = vmatmul.mubr.f32.gmra.mrb[124].mxu0 %v1066_v28  ;;  %v15646_v28 = vpack.c.bf16 %v1682_v1, %v1681_v52  ;;  %v15742_v52 = vpack.c.bf16 %v2810_v33, %v2809_v32  ;;  %v2811_v1 = vld [vmem:[#allocation9 + $0x2b0] sm:$0xff]  ;;  %v1688_v33 = vld [vmem:[#allocation9 + $0x158] sm:$0xff] }
 0x1dc   :  { %19918 = vst [vmem:[#allocation61_spill] sm:$0xff] %v18418_v5  ;;  %13357 = vmatmul.mubr.f32.gmra.mrb[18].mxu1 %v18418_v5  ;;  %13109 = vmatprep.mubr.f32.mxu0 %v967_v51  ;;  %v971_v51 = vld [vmem:[#allocation2 + $0x2d] sm:$0xff]  ;;  %v2386_v5 = vld [vmem:[#allocation2 + $0x20] sm:$0xff] }
 0x1dd   :  { %v1685_v21 = vld [vmem:[#allocation9 + $0x140] sm:$0xff]  ;;  %v1687_v32 = vld [vmem:[#allocation9 + $0x150] sm:$0xff] }
 0x1de   :  { %v2050_v34 = vld [vmem:[#allocation2 + $0x15f] sm:$0xff] }
 0x1df   :  { %13110 = vmatmul.mubr.f32.vlgmr.msra.gmra.mrb[84].mxu0 %v968_v36  ;;  %13359 = vmatprep.mubr.f32.mxu1 %v2050_v34  ;;  %v972_v36 = vld [vmem:[#allocation2 + $0x35] sm:$0xff]  ;;  %v1683_v34 = vld [vmem:[#allocation9 + $0x130] sm:$0xff] }
 0x1e0   :  { %13112 = vmatprep.mubr.f32.mxu0 %v969_v63  ;;  %15641 = vmatpush3.bf16.msra.mxu0 %v18313_v15  ;;  %v1684_v63 = vld [vmem:[#allocation9 + $0x138] sm:$0xff]  ;;  %v973_v15 = vld [vmem:[#allocation2 + $0x3d] sm:$0xff] }
 0x1e1   :  { %15643 = vmatprep.subr.bf16.mxu0 %v15642_v59 }
 0x1e2   :  { %v2051_v25 = vld [vmem:[#allocation2 + $0x167] sm:$0xff] }
 0x1e3   :  { %13113 = vmatmul.mubr.f32.gmra.mrb[86].mxu0 %v970_v38  ;;  %13360 = vmatmul.mubr.f32.gmra.mrb[20].mxu1 %v2051_v25  ;;  %v2388_v25 = vld [vmem:[#allocation2 + $0x30] sm:$0xff]  ;;  %v15650_v38 = vpack.c.bf16 %v1684_v63, %v1683_v34  ;;  %v2814_v34 = vld [vmem:[#allocation9 + $0x2c8] sm:$0xff] }
 0x1e4   :  { %13115 = vmatprep.mubr.f32.mxu0 %v971_v51  ;;  %13394 = vmatprep.mubr.f32.mxu1 %v2386_v5  ;;  %v974_v5 = vld [vmem:[#allocation2 + $0x45] sm:$0xff] }
 0x1e5   :  { %15645 = vmatpush3.bf16.msra.mxu0 %v15642_v59  ;;  %v975_v59 = vld [vmem:[#allocation2 + $0x4d] sm:$0xff] }
 0x1e6   :  { %15647 = vmatprep.subr.bf16.mxu0 %v15646_v28  ;;  %v2812_v51 = vld [vmem:[#allocation9 + $0x2b8] sm:$0xff] }
 0x1e7   :  { %13116 = vmatmul.mubr.f32.gmra.mrb[88].mxu0 %v972_v36  ;;  %13395 = vmatmul.mubr.f32.vlgmr.msra.gmra.mrb[22].mxu1 %v2387_v35  ;;  %v976_v35 = vld [vmem:[#allocation2 + $0x55] sm:$0xff]  ;;  %v15746_v36 = vpack.c.bf16 %v2812_v51, %v2811_v1  ;;  %v981_v1 = vld [vmem:[#allocation2 + $0x7d] sm:$0xff] }
 0x1e8   :  { %15737 = vmatpush3.bf16.msra.mxu1 %v18352_v2  ;;  %13118 = vmatprep.mubr.f32.mxu0 %v973_v15  ;;  %v15654_v2 = vpack.c.bf16 %v1686_v26, %v1685_v21  ;;  %v1689_v15 = vld [vmem:[#allocation9 + $0x160] sm:$0xff]  ;;  %v1691_v26 = vld [vmem:[#allocation9 + $0x170] sm:$0xff]  ;;  %v2818_v51 = vld [vmem:[#allocation9 + $0x2e8] sm:$0xff] }
 0x1e9   :  { %13397 = vmatprep.mubr.f32.mxu1 %v2388_v25  ;;  %15739 = vmatprep.subr.bf16.mxu1 %v15738_v12  ;;  %v1690_v25 = vld [vmem:[#allocation9 + $0x168] sm:$0xff] }
 0x1ea   :  { %15649 = vmatpush3.bf16.msra.mxu0 %v15646_v28  ;;  %v977_v28 = vld [vmem:[#allocation2 + $0x5d] sm:$0xff] }
 0x1eb   :  { %13119 = vmatmul.mubr.f32.gmra.mrb[90].mxu0 %v974_v5  ;;  %13398 = vmatmul.mubr.f32.gmra.mrb[24].mxu1 %v18180_v40  ;;  %v2813_v40 = vld [vmem:[#allocation9 + $0x2c0] sm:$0xff]  ;;  %v2816_v5 = vld [vmem:[#allocation9 + $0x2d8] sm:$0xff] }
 0x1ec   :  { %13121 = vmatprep.mubr.f32.mxu0 %v975_v59  ;;  %13400 = vmatprep.mubr.f32.mxu1 %v18188_v58  ;;  %v15658_v58 = vpack.c.bf16 %v1688_v33, %v1687_v32  ;;  %v15750_v63 = vpack.c.bf16 %v2814_v34, %v2813_v40  ;;  %v1692_v59 = vld [vmem:[#allocation9 + $0x178] sm:$0xff]  ;;  %v2819_v32 = vld [vmem:[#allocation9 + $0x2f0] sm:$0xff]  ;;  %v3181_v40 = vld [vmem:[#allocation9 + $0x300] sm:$0xff] }
 0x1ed   :  { %15741 = vmatpush3.bf16.msra.mxu1 %v15738_v12  ;;  %15651 = vmatprep.subr.bf16.mxu0 %v15650_v38  ;;  %v978_v12 = vld [vmem:[#allocation2 + $0x65] sm:$0xff]  ;;  %v3182_v34 = vld [vmem:[#allocation9 + $0x308] sm:$0xff] }
 0x1ee   :  { %15743 = vmatprep.subr.bf16.mxu1 %v15742_v52  ;;  %15653 = vmatpush3.bf16.msra.mxu0 %v15650_v38  ;;  %v979_v38 = vld [vmem:[#allocation2 + $0x6d] sm:$0xff] }
 0x1ef   :  { %13122 = vmatmul.mubr.f32.gmra.mrb[92].mxu0 %v976_v35  ;;  %13401 = vmatmul.mubr.f32.gmra.mrb[26].mxu1 %v18195_v13  ;;  %v2815_v13 = vld [vmem:[#allocation9 + $0x2d0] sm:$0xff]  ;;  %v2820_v33 = vld [vmem:[#allocation9 + $0x2f8] sm:$0xff] }
 0x1f0   :  { %13124 = vmatprep.mubr.f32.mxu0 %v977_v28  ;;  %13403 = vmatprep.mubr.f32.mxu1 %v18202_v48  ;;  %v15662_v48 = vpack.c.bf16 %v1690_v25, %v1689_v15  ;;  %v15754_v21 = vpack.c.bf16 %v2816_v5, %v2815_v13  ;;  %v985_v28 = vld [vmem:[#allocation2 + $0x9d] sm:$0xff]  ;;  %v1008_v15 = vld [vmem:[#allocation2 + $0x155] sm:$0xff] }
 0x1f1   :  { %15745 = vmatpush3.bf16.msra.mxu1 %v15742_v52  ;;  %15655 = vmatprep.subr.bf16.mxu0 %v15654_v2  ;;  %v980_v52 = vld [vmem:[#allocation2 + $0x75] sm:$0xff]  ;;  %v18483_v25 = vld [vmem:[#allocation2 + $0x3f] sm:$0xff] }
 0x1f2   :  { %15747 = vmatprep.subr.bf16.mxu1 %v15746_v36  ;;  %15657 = vmatpush3.bf16.msra.mxu0 %v15654_v2  ;;  %v982_v2 = vld [vmem:[#allocation2 + $0x85] sm:$0xff]  ;;  %v18487_v13 = vld [vmem:[#allocation2 + $0x31] sm:$0xff]  ;;  %v18492_v5 = vld [vmem:[#allocation2 + $0x39] sm:$0xff] }
 0x1f3   :  { %13125 = vmatmul.mubr.f32.gmra.mrb[94].mxu0 %v978_v12  ;;  %13404 = vmatmul.mubr.f32.gmra.mrb[28].mxu1 %v18209_v6  ;;  %v2817_v6 = vld [vmem:[#allocation9 + $0x2e0] sm:$0xff]  ;;  %v990_v12 = vld [vmem:[#allocation2 + $0xc5] sm:$0xff] }
 0x1f4   :  { %13127 = vmatprep.mubr.f32.mxu0 %v979_v38  ;;  %13406 = vmatprep.mubr.f32.mxu1 %v18216_v43  ;;  %v15666_v43 = vpack.c.bf16 %v1692_v59, %v1691_v26  ;;  %v15758_v35 = vpack.c.bf16 %v2818_v51, %v2817_v6  ;;  %v3186_v38 = vld [vmem:[#allocation9 + $0x328] sm:$0xff]  ;;  %v3187_v26 = vld [vmem:[#allocation9 + $0x330] sm:$0xff]  ;;  %v3188_v59 = vld [vmem:[#allocation9 + $0x338] sm:$0xff] }
 0x1f5   :  { %15749 = vmatpush3.bf16.msra.mxu1 %v15746_v36  ;;  %15659 = vmatprep.subr.bf16.mxu0 %v15658_v58  ;;  %v983_v36 = vld [vmem:[#allocation2 + $0x8d] sm:$0xff]  ;;  %v15778_v51 = vpack.c.bf16 %v3188_v59, %v3187_v26  ;;  %v1659_v26 = vld [vmem:[#allocation2 + $0xd7] sm:$0xff] }
 0x1f6   :  { %15751 = vmatprep.subr.bf16.mxu1 %v15750_v63  ;;  %15661 = vmatpush3.bf16.msra.mxu0 %v15658_v58  ;;  %v987_v58 = vld [vmem:[#allocation2 + $0xad] sm:$0xff] }
 0x1f7   :  { %13128 = vmatmul.mubr.f32.gmra.mrb[96].mxu0 %v980_v52  ;;  %13407 = vmatmul.mubr.f32.gmra.mrb[30].mxu1 %v18223_v8  ;;  %v984_v8 = vld [vmem:[#allocation2 + $0x95] sm:$0xff]  ;;  %v18506_v6 = vld [vmem:[#allocation2 + $0x49] sm:$0xff] }
 0x1f8   :  { %13130 = vmatprep.mubr.f32.mxu0 %v981_v1  ;;  %13409 = vmatprep.mubr.f32.mxu1 %v18230_v53  ;;  %v15762_v53 = vpack.c.bf16 %v2820_v33, %v2819_v32  ;;  %v18504_v1 = vld [vmem:[#allocation2 + $0x57] sm:$0xff]  ;;  %v18603_v59 = vld [vmem:[#allocation2 + $0xc9] sm:$0xff] }
 0x1f9   :  { %15753 = vmatpush3.bf16.msra.mxu1 %v15750_v63  ;;  %15663 = vmatprep.subr.bf16.mxu0 %v15662_v48  ;;  %v993_v63 = vld [vmem:[#allocation2 + $0xdd] sm:$0xff] }
 0x1fa   :  { %15755 = vmatprep.subr.bf16.mxu1 %v15754_v21  ;;  %15665 = vmatpush3.bf16.msra.mxu0 %v15662_v48  ;;  %v18494_v48 = vld [vmem:[#allocation2 + $0x41] sm:$0xff]  ;;  %v18520_v32 = vld [vmem:[#allocation2 + $0x59] sm:$0xff] }
 0x1fb   :  { %13131 = vmatmul.mubr.f32.gmra.mrb[98].mxu0 %v982_v2  ;;  %13410 = vmatmul.mubr.f32.gmra.mrb[32].mxu1 %v18237_v14  ;;  %v986_v14 = vld [vmem:[#allocation2 + $0xa5] sm:$0xff]  ;;  %v3189_v2 = vld [vmem:[#allocation9 + $0x340] sm:$0xff] }
 0x1fc   :  { %13133 = vmatprep.mubr.f32.mxu0 %v983_v36  ;;  %13412 = vmatprep.mubr.f32.mxu1 %v18244_v62  ;;  %v18437_v62 = vpack.c.bf16 %v3182_v34, %v3181_v40  ;;  %v18518_v36 = vld [vmem:[#allocation2 + $0x67] sm:$0xff]  ;;  %v18532_v34 = vld [vmem:[#allocation2 + $0x77] sm:$0xff] }
 0x1fd   :  { %15757 = vmatpush3.bf16.msra.mxu1 %v15754_v21  ;;  %15667 = vmatprep.subr.bf16.mxu0 %v15666_v43  ;;  %v18499_v21 = vld [vmem:[#allocation2 + $0x4f] sm:$0xff]  ;;  %v19919_v40 = vld [vmem:[#allocation22_spill] sm:$0xff] }
 0x1fe   :  { %15759 = vmatprep.subr.bf16.mxu1 %v15758_v35  ;;  %15669 = vmatpush3.bf16.msra.mxu0 %v15666_v43  ;;  %v18513_v43 = vld [vmem:[#allocation2 + $0x5f] sm:$0xff] }
 0x1ff   :  { %13134 = vmatmul.mubr.f32.gmra.mrb[100].mxu0 %v984_v8  ;;  %13413 = vmatmul.mubr.f32.gmra.mrb[34].mxu1 %v18251_v60  ;;  %v988_v60 = vld [vmem:[#allocation2 + $0xb5] sm:$0xff] }
 0x200   :  { %13136 = vmatprep.mubr.f32.mxu0 %v985_v28  ;;  %13415 = vmatprep.mubr.f32.mxu1 %v18258_v18  ;;  %v989_v18 = vld [vmem:[#allocation2 + $0xbd] sm:$0xff]  ;;  %v18527_v8 = vld [vmem:[#allocation2 + $0x6f] sm:$0xff] }
 0x201   :  { %15761 = vmatpush3.bf16.msra.mxu1 %v15758_v35  ;;  %15671 = vmatprep.subr.bf16.mxu0 %v18060_v49  ;;  %v3190_v35 = vld [vmem:[#allocation9 + $0x348] sm:$0xff]  ;;  %v3192_v28 = vld [vmem:[#allocation9 + $0x358] sm:$0xff] }
 0x202   :  { %15763 = vmatprep.subr.bf16.mxu1 %v15762_v53  ;;  %v15782_v33 = vpack.c.bf16 %v3190_v35, %v3189_v2  ;;  %v18606_v2 = vld [vmem:[#allocation2 + $0xd1] sm:$0xff]  ;;  %v1661_v35 = vld [vmem:[#allocation2 + $0xe7] sm:$0xff] }
 0x203   :  { %13137 = vmatmul.mubr.f32.gmra.mrb[102].mxu0 %v986_v14  ;;  %13416 = vmatmul.mubr.f32.gmra.mrb[36].mxu1 %v18265_v3  ;;  %v991_v3 = vld [vmem:[#allocation2 + $0xcd] sm:$0xff] }
 0x204   :  { %13139 = vmatprep.mubr.f32.mxu0 %v987_v58  ;;  %13418 = vmatprep.mubr.f32.mxu1 %v18272_v45  ;;  %v992_v45 = vld [vmem:[#allocation2 + $0xd5] sm:$0xff]  ;;  %v18534_v14 = vld [vmem:[#allocation2 + $0x69] sm:$0xff]  ;;  %v18541_v58 = vld [vmem:[#allocation2 + $0x7f] sm:$0xff] }
 0x205   :  { %15765 = vmatpush3.bf16.msra.mxu1 %v15762_v53  ;;  %v3191_v53 = vld [vmem:[#allocation9 + $0x350] sm:$0xff] }
 0x206   :  { %15767 = vmatprep.subr.bf16.mxu1 %v18437_v62 }
 0x207   :  { %13140 = vmatmul.mubr.f32.gmra.mrb[104].mxu0 %v988_v60  ;;  %13419 = vmatmul.mubr.f32.gmra.mrb[38].mxu1 %v18279_v19  ;;  %v994_v19 = vld [vmem:[#allocation2 + $0xe5] sm:$0xff]  ;;  %v3193_v60 = vld [vmem:[#allocation9 + $0x360] sm:$0xff] }
 0x208   :  { %13142 = vmatprep.mubr.f32.mxu0 %v989_v18  ;;  %13421 = vmatprep.mubr.f32.mxu1 %v18286_v0  ;;  %v995_v0 = vld [vmem:[#allocation2 + $0xed] sm:$0xff]  ;;  %v3194_v18 = vld [vmem:[#allocation9 + $0x368] sm:$0xff] }
 0x20b   :  { %13143 = vmatmul.mubr.f32.gmra.mrb[106].mxu0 %v990_v12  ;;  %13422 = vmatmul.mubr.f32.gmra.mrb[40].mxu1 %v18290_v56  ;;  %v996_v56 = vld [vmem:[#allocation2 + $0xf5] sm:$0xff] }
 0x20c   :  { %13145 = vmatprep.mubr.f32.mxu0 %v991_v3  ;;  %13424 = vmatprep.mubr.f32.mxu1 %v18295_v47  ;;  %v997_v47 = vld [vmem:[#allocation2 + $0xfd] sm:$0xff]  ;;  %v18546_v3 = vld [vmem:[#allocation2 + $0x87] sm:$0xff] }
 0x20d   :  { %v19920_v12 = vld [vmem:[#allocation25_spill] sm:$0xff] }
 0x20f   :  { %13146 = vmatmul.mubr.f32.gmra.mrb[108].mxu0 %v992_v45  ;;  %13425 = vmatmul.mubr.f32.gmra.mrb[0].mxu1 %v18300_v42  ;;  %v998_v42 = vld [vmem:[#allocation2 + $0x105] sm:$0xff]  ;;  %v18548_v45 = vld [vmem:[#allocation2 + $0x79] sm:$0xff] }
 0x210   :  { %13148 = vmatprep.mubr.f32.mxu0 %v993_v63  ;;  %13427 = vmatprep.mubr.f32.mxu1 %v18305_v37  ;;  %v999_v37 = vld [vmem:[#allocation2 + $0x10d] sm:$0xff]  ;;  %v18550_v63 = vld [vmem:[#allocation2 + $0x81] sm:$0xff] }
 0x213   :  { %13149 = vmatmul.mubr.f32.gmra.mrb[110].mxu0 %v994_v19  ;;  %13428 = vmatmul.mubr.f32.gmra.mrb[2].mxu1 %v18310_v9  ;;  %v1000_v9 = vld [vmem:[#allocation2 + $0x115] sm:$0xff]  ;;  %v15790_v19 = vpack.c.bf16 %v3194_v18, %v3193_v60  ;;  %v1664_v60 = vld [vmem:[#allocation2 + $0xff] sm:$0xff] }
 0x214   :  { %13151 = vmatprep.mubr.f32.mxu0 %v995_v0  ;;  %13430 = vmatprep.mubr.f32.mxu1 %v18319_v39  ;;  %v1001_v39 = vld [vmem:[#allocation2 + $0x11d] sm:$0xff]  ;;  %v18555_v0 = vld [vmem:[#allocation2 + $0x8f] sm:$0xff] }
 0x215   :  { %v18618_v18 = vld [vmem:[#allocation2 + $0xf1] sm:$0xff] }
 0x217   :  { %13152 = vmatmul.mubr.f32.gmra.mrb[112].mxu0 %v996_v56  ;;  %13431 = vmatmul.mubr.f32.gmra.mrb[4].mxu1 %v18324_v22  ;;  %v1002_v22 = vld [vmem:[#allocation2 + $0x125] sm:$0xff] }
 0x218   :  { %13154 = vmatprep.mubr.f32.mxu0 %v997_v47  ;;  %13433 = vmatprep.mubr.f32.mxu1 %v18329_v57  ;;  %v1003_v57 = vld [vmem:[#allocation2 + $0x12d] sm:$0xff]  ;;  %v3195_v56 = vld [vmem:[#allocation9 + $0x370] sm:$0xff] }
 0x219   :  { %v3196_v47 = vld [vmem:[#allocation9 + $0x378] sm:$0xff] }
 0x21b   :  { %13155 = vmatmul.mubr.f32.gmra.mrb[114].mxu0 %v998_v42  ;;  %13434 = vmatmul.mubr.f32.gmra.mrb[6].mxu1 %v18334_v44  ;;  %v1004_v44 = vld [vmem:[#allocation2 + $0x135] sm:$0xff]  ;;  %v19921_v42 = vld [vmem:[#allocation27_spill] sm:$0xff] }
 0x21c   :  { %13157 = vmatprep.mubr.f32.mxu0 %v999_v37  ;;  %13436 = vmatprep.mubr.f32.mxu1 %v18339_v41  ;;  %v1005_v41 = vld [vmem:[#allocation2 + $0x13d] sm:$0xff] }
 0x21d   :  { %v18560_v37 = vld [vmem:[#allocation2 + $0x97] sm:$0xff] }
 0x21f   :  { %13158 = vmatmul.mubr.f32.gmra.mrb[116].mxu0 %v1000_v9  ;;  %13437 = vmatmul.mubr.f32.gmra.mrb[8].mxu1 %v18344_v24  ;;  %v1006_v24 = vld [vmem:[#allocation2 + $0x145] sm:$0xff] }
 0x220   :  { %13160 = vmatprep.mubr.f32.mxu0 %v1001_v39  ;;  %13439 = vmatprep.mubr.f32.mxu1 %v18349_v54  ;;  %v1007_v54 = vld [vmem:[#allocation2 + $0x14d] sm:$0xff] }
 0x221   :  { %v18562_v9 = vld [vmem:[#allocation2 + $0x89] sm:$0xff]  ;;  %v18564_v39 = vld [vmem:[#allocation2 + $0x91] sm:$0xff] }
 0x223   :  { %13161 = vmatmul.mubr.f32.gmra.mrb[118].mxu0 %v1002_v22  ;;  %13440 = vmatmul.mubr.f32.gmra.mrb[10].mxu1 %v18356_v50  ;;  %v1634_v50 = vld [vmem:[#allocation2 + $0xf] sm:$0xff]  ;;  %v15794_v22 = vpack.c.bf16 %v3196_v47, %v3195_v56  ;;  %v18624_v47 = vld [vmem:[#allocation2 + $0x101] sm:$0xff] }
 0x224   :  { %13163 = vmatprep.mubr.f32.mxu0 %v1003_v57  ;;  %13442 = vmatprep.mubr.f32.mxu1 %v18362_v7  ;;  %v1635_v7 = vld [vmem:[#allocation2 + $0x17] sm:$0xff]  ;;  %v18569_v57 = vld [vmem:[#allocation2 + $0x9f] sm:$0xff]  ;;  %v1666_v56 = vld [vmem:[#allocation2 + $0x10f] sm:$0xff] }
 0x227   :  { %13164 = vmatmul.mubr.f32.gmra.mrb[120].mxu0 %v1004_v44  ;;  %13443 = vmatmul.mubr.f32.gmra.mrb[12].mxu1 %v18367_v11  ;;  %v18465_v11 = vld [vmem:[#allocation2 + $0x1f] sm:$0xff]  ;;  %v3557_v44 = vld [vmem:[#allocation9 + $0x380] sm:$0xff] }
 0x228   :  { %13166 = vmatprep.mubr.f32.mxu0 %v1005_v41  ;;  %13445 = vmatprep.mubr.f32.mxu1 %v18372_v16  ;;  %v3184_v16 = vld [vmem:[#allocation9 + $0x318] sm:$0xff]  ;;  %v3558_v41 = vld [vmem:[#allocation9 + $0x388] sm:$0xff] }
 0x22b   :  { %13167 = vmatmul.mubr.f32.gmra.mrb[122].mxu0 %v1006_v24  ;;  %13446 = vmatmul.mubr.f32.gmra.mrb[14].mxu1 %v18377_v27  ;;  %v18470_v27 = vld [vmem:[#allocation2 + $0x27] sm:$0xff] }
 0x22c   :  { %13169 = vmatprep.mubr.f32.mxu0 %v1007_v54  ;;  %13448 = vmatprep.mubr.f32.mxu1 %v18382_v29  ;;  %v3183_v29 = vld [vmem:[#allocation9 + $0x310] sm:$0xff]  ;;  %v18575_v54 = vld [vmem:[#allocation2 + $0x99] sm:$0xff] }
 0x22d   :  { %v18573_v24 = vld [vmem:[#allocation2 + $0xa7] sm:$0xff] }
 0x22f   :  { %13170 = vmatmul.mubr.f32.gmra.mrb[124].mxu0 %v1008_v15  ;;  %13449 = vmatmul.mubr.f32.gmra.mrb[16].mxu1 %v18387_v30  ;;  %v18475_v30 = vld [vmem:[#allocation2 + $0x2f] sm:$0xff] }
 0x230   :  { %13451 = vmatprep.mubr.f32.mxu1 %v18392_v31  ;;  %13204 = vmatprep.mubr.f32.mxu0 %v1634_v50  ;;  %v2762_v31 = vld [vmem:[#allocation2 + $0x21] sm:$0xff]  ;;  %v18577_v50 = vpack.c.bf16 %v3558_v41, %v3557_v44  ;;  %v18581_v15 = vld [vmem:[#allocation2 + $0xaf] sm:$0xff] }
 0x231   :  { %v1668_v44 = vld [vmem:[#allocation2 + $0x11f] sm:$0xff]  ;;  %v18630_v41 = vld [vmem:[#allocation2 + $0x111] sm:$0xff] }
 0x233   :  { %13205 = vmatmul.mubr.f32.vlgmr.msra.gmra.mrb[84].mxu0 %v1635_v7  ;;  %13452 = vmatmul.mubr.f32.gmra.mrb[18].mxu1 %v18400_v17  ;;  %v15770_v17 = vpack.c.bf16 %v3184_v16, %v3183_v29  ;;  %v18583_v7 = vld [vmem:[#allocation2 + $0xa1] sm:$0xff]  ;;  %v18587_v29 = vld [vmem:[#allocation2 + $0xb7] sm:$0xff]  ;;  %v18589_v16 = vld [vmem:[#allocation2 + $0xa9] sm:$0xff] }
 0x234   :  { %13207 = vmatprep.mubr.f32.mxu0 %v18465_v11  ;;  %13454 = vmatprep.mubr.f32.mxu1 %v18408_v20  ;;  %v2763_v20 = vld [vmem:[#allocation2 + $0x29] sm:$0xff] }
 0x235   :  { %15673 = vmatpush3.bf16.msra.mxu0 %v18060_v49  ;;  %v18479_v49 = vld [vmem:[#allocation2 + $0x37] sm:$0xff] }
 0x236   :  { %15675 = vmatprep.subr.bf16.mxu0 %v18073_v55 }
 0x237   :  { %13208 = vmatmul.mubr.f32.gmra.mrb[86].mxu0 %v18470_v27  ;;  %13455 = vmatmul.mubr.f32.gmra.mrb[20].mxu1 %v18416_v23  ;;  %v3185_v23 = vld [vmem:[#allocation9 + $0x320] sm:$0xff] }
 0x238   :  { %13210 = vmatprep.mubr.f32.mxu0 %v18475_v30  ;;  %13489 = vmatprep.mubr.f32.mxu1 %v2762_v31  ;;  %v15774_v52 = vpack.c.bf16 %v3186_v38, %v3185_v23  ;;  %v1656_v31 = vld [vmem:[#allocation2 + $0xbf] sm:$0xff]  ;;  %v1658_v38 = vld [vmem:[#allocation2 + $0xcf] sm:$0xff] }
 0x239   :  { %15677 = vmatpush3.bf16.msra.mxu0 %v18073_v55  ;;  %v18490_v55 = vld [vmem:[#allocation2 + $0x47] sm:$0xff]  ;;  %v18597_v23 = vld [vmem:[#allocation2 + $0xb9] sm:$0xff] }
 0x23a   :  { %15679 = vmatprep.subr.bf16.mxu0 %v18086_v61 }
 0x23b   :  { %13211 = vmatmul.mubr.f32.gmra.mrb[88].mxu0 %v18479_v49  ;;  %13490 = vmatmul.mubr.f32.vlgmr.msra.gmra.mrb[22].mxu1 %v2763_v20  ;;  %v1657_v20 = vld [vmem:[#allocation2 + $0xc7] sm:$0xff] }
 0x23c   :  { %15769 = vmatpush3.bf16.msra.mxu1 %v18437_v62  ;;  %13213 = vmatprep.mubr.f32.mxu0 %v18483_v25  ;;  %v15786_v62 = vpack.c.bf16 %v3192_v28, %v3191_v53  ;;  %v1662_v53 = vld [vmem:[#allocation2 + $0xef] sm:$0xff]  ;;  %v18612_v28 = vld [vmem:[#allocation2 + $0xe1] sm:$0xff] }
 0x23d   :  { %13492 = vmatprep.mubr.f32.mxu1 %v18487_v13  ;;  %15771 = vmatprep.subr.bf16.mxu1 %v15770_v17 }
 0x23e   :  { %15681 = vmatpush3.bf16.msra.mxu0 %v18086_v61  ;;  %v18508_v61 = vld [vmem:[#allocation2 + $0x51] sm:$0xff] }
 0x23f   :  { %13214 = vmatmul.mubr.f32.gmra.mrb[90].mxu0 %v18490_v55  ;;  %13493 = vmatmul.mubr.f32.gmra.mrb[24].mxu1 %v18492_v5 }
 0x240   :  { %13216 = vmatprep.mubr.f32.mxu0 %v18499_v21  ;;  %13495 = vmatprep.mubr.f32.mxu1 %v18494_v48 }
 0x241   :  { %15773 = vmatpush3.bf16.msra.mxu1 %v15770_v17  ;;  %15683 = vmatprep.subr.bf16.mxu0 %v18101_v4  ;;  %v18594_v17 = vld [vmem:[#allocation2 + $0xb1] sm:$0xff] }
 0x242   :  { %15775 = vmatprep.subr.bf16.mxu1 %v15774_v52  ;;  %15685 = vmatpush3.bf16.msra.mxu0 %v18101_v4  ;;  %v18522_v4 = vld [vmem:[#allocation2 + $0x61] sm:$0xff] }
 0x243   :  { %13217 = vmatmul.mubr.f32.gmra.mrb[92].mxu0 %v18504_v1  ;;  %13496 = vmatmul.mubr.f32.gmra.mrb[26].mxu1 %v18506_v6 }
 0x244   :  { %13219 = vmatprep.mubr.f32.mxu0 %v18513_v43  ;;  %13498 = vmatprep.mubr.f32.mxu1 %v18508_v61 }
 0x245   :  { %15777 = vmatpush3.bf16.msra.mxu1 %v15774_v52  ;;  %15687 = vmatprep.subr.bf16.mxu0 %v18111_v10  ;;  %v18600_v52 = vld [vmem:[#allocation2 + $0xc1] sm:$0xff] }
 0x246   :  { %15779 = vmatprep.subr.bf16.mxu1 %v15778_v51  ;;  %15689 = vmatpush3.bf16.msra.mxu0 %v18111_v10  ;;  %v18536_v10 = vld [vmem:[#allocation2 + $0x71] sm:$0xff] }
 0x247   :  { %13220 = vmatmul.mubr.f32.gmra.mrb[94].mxu0 %v18518_v36  ;;  %13499 = vmatmul.mubr.f32.gmra.mrb[28].mxu1 %v18520_v32 }
 0x248   :  { %13222 = vmatprep.mubr.f32.mxu0 %v18527_v8  ;;  %13501 = vmatprep.mubr.f32.mxu1 %v18522_v4 }
 0x249   :  { %15781 = vmatpush3.bf16.msra.mxu1 %v15778_v51  ;;  %15691 = vmatprep.subr.bf16.mxu0 %v19919_v40  ;;  %v1660_v51 = vld [vmem:[#allocation2 + $0xdf] sm:$0xff] }
 0x24a   :  { %15783 = vmatprep.subr.bf16.mxu1 %v15782_v33  ;;  %15693 = vmatpush3.bf16.msra.mxu0 %v19919_v40  ;;  %v1663_v40 = vld [vmem:[#allocation2 + $0xf7] sm:$0xff] }
 0x24b   :  { %13223 = vmatmul.mubr.f32.gmra.mrb[96].mxu0 %v18532_v34  ;;  %13502 = vmatmul.mubr.f32.gmra.mrb[30].mxu1 %v18534_v14 }
 0x24c   :  { %13225 = vmatprep.mubr.f32.mxu0 %v18541_v58  ;;  %13504 = vmatprep.mubr.f32.mxu1 %v18536_v10 }
 0x24d   :  { %15785 = vmatpush3.bf16.msra.mxu1 %v15782_v33  ;;  %15695 = vmatprep.subr.bf16.mxu0 %v19920_v12  ;;  %v18609_v33 = vld [vmem:[#allocation2 + $0xd9] sm:$0xff] }
 0x24e   :  { %15787 = vmatprep.subr.bf16.mxu1 %v15786_v62  ;;  %15697 = vmatpush3.bf16.msra.mxu0 %v19920_v12  ;;  %v1665_v12 = vld [vmem:[#allocation2 + $0x107] sm:$0xff] }
 0x24f   :  { %13226 = vmatmul.mubr.f32.gmra.mrb[98].mxu0 %v18546_v3  ;;  %13505 = vmatmul.mubr.f32.gmra.mrb[32].mxu1 %v18548_v45 }
 0x250   :  { %13228 = vmatprep.mubr.f32.mxu0 %v18555_v0  ;;  %13507 = vmatprep.mubr.f32.mxu1 %v18550_v63 }
 0x251   :  { %15789 = vmatpush3.bf16.msra.mxu1 %v15786_v62  ;;  %15699 = vmatprep.subr.bf16.mxu0 %v19921_v42  ;;  %v18615_v62 = vld [vmem:[#allocation2 + $0xe9] sm:$0xff] }
 0x252   :  { %15791 = vmatprep.subr.bf16.mxu1 %v15790_v19  ;;  %15701 = vmatpush3.bf16.msra.mxu0 %v19921_v42  ;;  %v1667_v42 = vld [vmem:[#allocation2 + $0x117] sm:$0xff] }
 0x253   :  { %13229 = vmatmul.mubr.f32.gmra.mrb[100].mxu0 %v18560_v37  ;;  %13508 = vmatmul.mubr.f32.gmra.mrb[34].mxu1 %v18562_v9 }
 0x254   :  { %13231 = vmatprep.mubr.f32.mxu0 %v18569_v57  ;;  %13510 = vmatprep.mubr.f32.mxu1 %v18564_v39 }
 0x255   :  { %15793 = vmatpush3.bf16.msra.mxu1 %v15790_v19  ;;  %v18621_v19 = vld [vmem:[#allocation2 + $0xf9] sm:$0xff] }
 0x256   :  { %15795 = vmatprep.subr.bf16.mxu1 %v15794_v22 }
 0x257   :  { %13232 = vmatmul.mubr.f32.gmra.mrb[102].mxu0 %v18573_v24  ;;  %13511 = vmatmul.mubr.f32.gmra.mrb[36].mxu1 %v18575_v54 }
 0x258   :  { %13234 = vmatprep.mubr.f32.mxu0 %v18581_v15  ;;  %13513 = vmatprep.mubr.f32.mxu1 %v18583_v7 }
 0x259   :  { %15797 = vmatpush3.bf16.msra.mxu1 %v15794_v22  ;;  %v18627_v22 = vld [vmem:[#allocation2 + $0x109] sm:$0xff] }
 0x25a   :  { %15799 = vmatprep.subr.bf16.mxu1 %v18577_v50 }
 0x25b   :  { %13235 = vmatmul.mubr.f32.gmra.mrb[104].mxu0 %v18587_v29  ;;  %13514 = vmatmul.mubr.f32.gmra.mrb[38].mxu1 %v18589_v16 }
 0x25c   :  { %13237 = vmatprep.mubr.f32.mxu0 %v1656_v31  ;;  %13516 = vmatprep.mubr.f32.mxu1 %v18594_v17  ;;  %v1669_v31 = vld [vmem:[#allocation2 + $0x127] sm:$0xff] }
 0x25f   :  { %13238 = vmatmul.mubr.f32.gmra.mrb[106].mxu0 %v1657_v20  ;;  %13517 = vmatmul.mubr.f32.gmra.mrb[40].mxu1 %v18597_v23  ;;  %v18633_v20 = vld [vmem:[#allocation2 + $0x119] sm:$0xff] }
 0x260   :  { %13240 = vmatprep.mubr.f32.mxu0 %v1658_v38  ;;  %13519 = vmatprep.mubr.f32.mxu1 %v18600_v52  ;;  %v1670_v38 = vld [vmem:[#allocation2 + $0x12f] sm:$0xff] }
 0x263   :  { %13241 = vmatmul.mubr.f32.gmra.mrb[108].mxu0 %v1659_v26  ;;  %13520 = vmatmul.mubr.f32.gmra.mrb[0].mxu1 %v18603_v59  ;;  %v18636_v26 = vld [vmem:[#allocation2 + $0x121] sm:$0xff] }
 0x264   :  { %13243 = vmatprep.mubr.f32.mxu0 %v1660_v51  ;;  %13522 = vmatprep.mubr.f32.mxu1 %v18606_v2  ;;  %v1671_v51 = vld [vmem:[#allocation2 + $0x137] sm:$0xff] }
 0x267   :  { %13244 = vmatmul.mubr.f32.gmra.mrb[110].mxu0 %v1661_v35  ;;  %13523 = vmatmul.mubr.f32.gmra.mrb[2].mxu1 %v18609_v33  ;;  %v18639_v35 = vld [vmem:[#allocation2 + $0x129] sm:$0xff] }
 0x268   :  { %13246 = vmatprep.mubr.f32.mxu0 %v1662_v53  ;;  %13525 = vmatprep.mubr.f32.mxu1 %v18612_v28  ;;  %v18642_v53 = vld [vmem:[#allocation2 + $0x131] sm:$0xff] }
 0x26b   :  { %13247 = vmatmul.mubr.f32.gmra.mrb[112].mxu0 %v1663_v40  ;;  %13526 = vmatmul.mubr.f32.gmra.mrb[4].mxu1 %v18615_v62  ;;  %v18646_v40 = vld [vmem:[#allocation2 + $0x139] sm:$0xff] }
 0x26c   :  { %13249 = vmatprep.mubr.f32.mxu0 %v1664_v60  ;;  %13528 = vmatprep.mubr.f32.mxu1 %v18618_v18  ;;  %v19922_v60 = vld [vmem:[#allocation59_spill] sm:$0xff] }
 0x26f   :  { %13250 = vmatmul.mubr.f32.gmra.mrb[114].mxu0 %v1665_v12  ;;  %13529 = vmatmul.mubr.f32.gmra.mrb[6].mxu1 %v18621_v19  ;;  %v18650_v12 = vld [vmem:[#allocation2 + $0x141] sm:$0xff] }
 0x270   :  { %13252 = vmatprep.mubr.f32.mxu0 %v1666_v56  ;;  %13531 = vmatprep.mubr.f32.mxu1 %v18624_v47  ;;  %v19923_v56 = vld [vmem:[#allocation60_spill] sm:$0xff] }
 0x273   :  { %13253 = vmatmul.mubr.f32.gmra.mrb[116].mxu0 %v1667_v42  ;;  %13532 = vmatmul.mubr.f32.gmra.mrb[8].mxu1 %v18627_v22  ;;  %v18654_v42 = vld [vmem:[#allocation2 + $0x149] sm:$0xff] }
 0x274   :  { %13255 = vmatprep.mubr.f32.mxu0 %v1668_v44  ;;  %13534 = vmatprep.mubr.f32.mxu1 %v18630_v41  ;;  %v19924_v44 = vld [vmem:[#allocation61_spill] sm:$0xff] }
 0x277   :  { %13256 = vmatmul.mubr.f32.gmra.mrb[118].mxu0 %v1669_v31  ;;  %13535 = vmatmul.mubr.f32.gmra.mrb[10].mxu1 %v18633_v20  ;;  %v18662_v31 = vld [vmem:[#allocation2 + $0x159] sm:$0xff] }
 0x278   :  { %13258 = vmatprep.mubr.f32.mxu0 %v1670_v38  ;;  %13537 = vmatprep.mubr.f32.mxu1 %v18636_v26  ;;  %v18666_v38 = vld [vmem:[#allocation2 + $0x161] sm:$0xff] }
 0x27b   :  { %13259 = vmatmul.mubr.f32.gmra.mrb[120].mxu0 %v1671_v51  ;;  %13538 = vmatmul.mubr.f32.gmra.mrb[12].mxu1 %v18639_v35  ;;  %v18670_v51 = vld [vmem:[#allocation2 + $0x169] sm:$0xff] }
 0x27c   :  { %13261 = vmatprep.mubr.f32.mxu0 %v18395_v46  ;;  %13540 = vmatprep.mubr.f32.mxu1 %v18642_v53  ;;  %v18658_v46 = vld [vmem:[#allocation2 + $0x151] sm:$0xff] }
 0x27f   :  { %13262 = vmatmul.mubr.f32.gmra.mrb[122].mxu0 %v19922_v60  ;;  %13541 = vmatmul.mubr.f32.gmra.mrb[14].mxu1 %v18646_v40  ;;  %v3559_v60 = vld [vmem:[#allocation9 + $0x390] sm:$0xff] }
 0x280   :  { %13264 = vmatprep.mubr.f32.mxu0 %v19923_v56  ;;  %13543 = vmatprep.mubr.f32.mxu1 %v18650_v12  ;;  %v3560_v56 = vld [vmem:[#allocation9 + $0x398] sm:$0xff] }
 0x283   :  { %13265 = vmatmul.mubr.f32.gmra.mrb[124].mxu0 %v19924_v44  ;;  %13544 = vmatmul.mubr.f32.gmra.mrb[16].mxu1 %v18654_v42 }
 0x284   :  { %13299 = vmatprep.mubr.f32.mxu0 %v18465_v11  ;;  %13546 = vmatprep.mubr.f32.mxu1 %v18658_v46  ;;  %v15802_v11 = vpack.c.bf16 %v3560_v56, %v3559_v60  ;;  %v3531_v60 = vld [vmem:[#allocation2 + $0xba] sm:$0xff]  ;;  %v3532_v56 = vld [vmem:[#allocation2 + $0xc2] sm:$0xff] }
 0x287   :  { %13300 = vmatmul.mubr.f32.vlgmr.msra.gmra.mrb[84].mxu0 %v18470_v27  ;;  %13547 = vmatmul.mubr.f32.gmra.mrb[18].mxu1 %v18662_v31  ;;  %v3561_v27 = vld [vmem:[#allocation9 + $0x3a0] sm:$0xff] }
 0x288   :  { %13302 = vmatprep.mubr.f32.mxu0 %v18475_v30  ;;  %13549 = vmatprep.mubr.f32.mxu1 %v18666_v38  ;;  %v3562_v30 = vld [vmem:[#allocation9 + $0x3a8] sm:$0xff] }
 0x28b   :  { %13303 = vmatmul.mubr.f32.gmra.mrb[86].mxu0 %v18479_v49  ;;  %13550 = vmatmul.mubr.f32.gmra.mrb[20].mxu1 %v18670_v51  ;;  %v15806_v49 = vpack.c.bf16 %v3562_v30, %v3561_v27  ;;  %v3534_v27 = vld [vmem:[#allocation2 + $0xd2] sm:$0xff] }
 0x28c   :  { %13305 = vmatprep.mubr.f32.mxu0 %v18483_v25  ;;  %13584 = vmatprep.mubr.f32.mxu1 %v18487_v13  ;;  %v3563_v25 = vld [vmem:[#allocation9 + $0x3b0] sm:$0xff]  ;;  %v3564_v13 = vld [vmem:[#allocation9 + $0x3b8] sm:$0xff]  ;;  %v4544_v30 = vld [vmem:[#allocation9 + $0x500] sm:$0xff] }
 0x28f   :  { %13306 = vmatmul.mubr.f32.gmra.mrb[88].mxu0 %v18490_v55  ;;  %13585 = vmatmul.mubr.f32.vlgmr.msra.gmra.mrb[22].mxu1 %v18492_v5  ;;  %v15810_v55 = vpack.c.bf16 %v3564_v13, %v3563_v25  ;;  %v3565_v5 = vld [vmem:[#allocation9 + $0x3c0] sm:$0xff]  ;;  %v4546_v25 = vld [vmem:[#allocation9 + $0x510] sm:$0xff] }
 0x290   :  { %15801 = vmatpush3.bf16.msra.mxu1 %v18577_v50  ;;  %13308 = vmatprep.mubr.f32.mxu0 %v18499_v21 }
 0x291   :  { %13587 = vmatprep.mubr.f32.mxu1 %v18494_v48  ;;  %15803 = vmatprep.subr.bf16.mxu1 %v15802_v11  ;;  %v3566_v48 = vld [vmem:[#allocation9 + $0x3c8] sm:$0xff] }
 0x292   :  { %v15814_v21 = vpack.c.bf16 %v3566_v48, %v3565_v5  ;;  %v4548_v48 = vld [vmem:[#allocation9 + $0x520] sm:$0xff] }
 0x293   :  { %13309 = vmatmul.mubr.f32.gmra.mrb[90].mxu0 %v18504_v1  ;;  %13588 = vmatmul.mubr.f32.gmra.mrb[24].mxu1 %v18506_v6  ;;  %v3567_v1 = vld [vmem:[#allocation9 + $0x3d0] sm:$0xff]  ;;  %v3568_v6 = vld [vmem:[#allocation9 + $0x3d8] sm:$0xff] }
 0x294   :  { %13311 = vmatprep.mubr.f32.mxu0 %v18513_v43  ;;  %13590 = vmatprep.mubr.f32.mxu1 %v18508_v61  ;;  %v15818_v61 = vpack.c.bf16 %v3568_v6, %v3567_v1  ;;  %v3569_v43 = vld [vmem:[#allocation9 + $0x3e0] sm:$0xff]  ;;  %v3536_v6 = vld [vmem:[#allocation2 + $0xe2] sm:$0xff] }
 0x295   :  { %15805 = vmatpush3.bf16.msra.mxu1 %v15802_v11  ;;  %v3533_v11 = vld [vmem:[#allocation2 + $0xca] sm:$0xff]  ;;  %v3535_v1 = vld [vmem:[#allocation2 + $0xda] sm:$0xff] }
 0x296   :  { %15807 = vmatprep.subr.bf16.mxu1 %v15806_v49 }
 0x297   :  { %13312 = vmatmul.mubr.f32.gmra.mrb[92].mxu0 %v18518_v36  ;;  %13591 = vmatmul.mubr.f32.gmra.mrb[26].mxu1 %v18520_v32  ;;  %v3570_v36 = vld [vmem:[#allocation9 + $0x3e8] sm:$0xff] }
 0x298   :  { %13314 = vmatprep.mubr.f32.mxu0 %v18527_v8  ;;  %13593 = vmatprep.mubr.f32.mxu1 %v18522_v4  ;;  %v15822_v32 = vpack.c.bf16 %v3570_v36, %v3569_v43  ;;  %v3571_v4 = vld [vmem:[#allocation9 + $0x3f0] sm:$0xff]  ;;  %v3572_v8 = vld [vmem:[#allocation9 + $0x3f8] sm:$0xff] }
 0x299   :  { %15809 = vmatpush3.bf16.msra.mxu1 %v15806_v49  ;;  %v4545_v49 = vld [vmem:[#allocation9 + $0x508] sm:$0xff]  ;;  %v4550_v43 = vld [vmem:[#allocation9 + $0x530] sm:$0xff]  ;;  %v4551_v36 = vld [vmem:[#allocation9 + $0x538] sm:$0xff] }
 0x29a   :  { %15811 = vmatprep.subr.bf16.mxu1 %v15810_v55  ;;  %v15862_v13 = vpack.c.bf16 %v4545_v49, %v4544_v30  ;;  %v3901_v49 = vld [vmem:[#allocation2 + $0x8b] sm:$0xff] }
 0x29b   :  { %13315 = vmatmul.mubr.f32.gmra.mrb[94].mxu0 %v18532_v34  ;;  %13594 = vmatmul.mubr.f32.gmra.mrb[28].mxu1 %v18534_v14  ;;  %v15826_v34 = vpack.c.bf16 %v3572_v8, %v3571_v4  ;;  %v3933_v14 = vld [vmem:[#allocation9 + $0x400] sm:$0xff]  ;;  %v15874_v8 = vpack.c.bf16 %v4551_v36, %v4550_v43 }
 0x29c   :  { %13317 = vmatprep.mubr.f32.mxu0 %v18541_v58  ;;  %13596 = vmatprep.mubr.f32.mxu1 %v18536_v10  ;;  %v3934_v10 = vld [vmem:[#allocation9 + $0x408] sm:$0xff]  ;;  %v3538_v4 = vld [vmem:[#allocation2 + $0xf2] sm:$0xff] }
 0x29d   :  { %15813 = vmatpush3.bf16.msra.mxu1 %v15810_v55  ;;  %v15830_v58 = vpack.c.bf16 %v3934_v10, %v3933_v14  ;;  %v4547_v55 = vld [vmem:[#allocation9 + $0x518] sm:$0xff]  ;;  %15863 = vmatprep.subr.bf16.mxu0 %v15862_v13  ;;  %v4553_v14 = vld [vmem:[#allocation9 + $0x548] sm:$0xff] }
 0x29e   :  { %15815 = vmatprep.subr.bf16.mxu1 %v15814_v21  ;;  %v15866_v5 = vpack.c.bf16 %v4547_v55, %v4546_v25  ;;  %15865 = vmatpush3.bf16.msra.mxu0 %v15862_v13  ;;  %v3539_v10 = vld [vmem:[#allocation2 + $0xfa] sm:$0xff] }
 0x29f   :  { %13318 = vmatmul.mubr.f32.gmra.mrb[96].mxu0 %v18546_v3  ;;  %13597 = vmatmul.mubr.f32.gmra.mrb[30].mxu1 %v18548_v45  ;;  %v3178_v3 = vld [vmem:[#allocation2 + $0x171] sm:$0xff]  ;;  %v3179_v45 = vld [vmem:[#allocation2 + $0x179] sm:$0xff] }
 0x2a0   :  { %13320 = vmatprep.mubr.f32.mxu0 %v18555_v0  ;;  %13599 = vmatprep.mubr.f32.mxu1 %v18550_v63  ;;  %v3935_v63 = vld [vmem:[#allocation9 + $0x410] sm:$0xff]  ;;  %v3936_v0 = vld [vmem:[#allocation9 + $0x418] sm:$0xff] }
 0x2a1   :  { %15817 = vmatpush3.bf16.msra.mxu1 %v15814_v21  ;;  %v4549_v21 = vld [vmem:[#allocation9 + $0x528] sm:$0xff]  ;;  %15867 = vmatprep.subr.bf16.mxu0 %v15866_v5  ;;  %v3902_v13 = vld [vmem:[#allocation2 + $0x93] sm:$0xff] }
 0x2a2   :  { %15819 = vmatprep.subr.bf16.mxu1 %v15818_v61  ;;  %15869 = vmatpush3.bf16.msra.mxu0 %v15866_v5  ;;  %v3903_v5 = vld [vmem:[#allocation2 + $0x9b] sm:$0xff]  ;;  %v3906_v43 = vld [vmem:[#allocation2 + $0xb3] sm:$0xff] }
 0x2a3   :  { %13321 = vmatmul.mubr.f32.gmra.mrb[98].mxu0 %v18560_v37  ;;  %13600 = vmatmul.mubr.f32.gmra.mrb[32].mxu1 %v18562_v9  ;;  %v3514_v37 = vld [vmem:[#allocation2 + $0x32] sm:$0xff]  ;;  %v15834_v9 = vpack.c.bf16 %v3936_v0, %v3935_v63  ;;  %v3541_v0 = vld [vmem:[#allocation2 + $0x10a] sm:$0xff] }
 0x2a4   :  { %13323 = vmatprep.mubr.f32.mxu0 %v18569_v57  ;;  %13602 = vmatprep.mubr.f32.mxu1 %v18564_v39  ;;  %v3515_v39 = vld [vmem:[#allocation2 + $0x3a] sm:$0xff]  ;;  %v4555_v63 = vld [vmem:[#allocation9 + $0x558] sm:$0xff] }
 0x2a5   :  { %15821 = vmatpush3.bf16.msra.mxu1 %v15818_v61  ;;  %v3937_v57 = vld [vmem:[#allocation9 + $0x420] sm:$0xff]  ;;  %v15870_v61 = vpack.c.bf16 %v4549_v21, %v4548_v48  ;;  %v3904_v21 = vld [vmem:[#allocation2 + $0xa3] sm:$0xff] }
 0x2a6   :  { %15823 = vmatprep.subr.bf16.mxu1 %v15822_v32 }
 0x2a7   :  { %13324 = vmatmul.mubr.f32.gmra.mrb[100].mxu0 %v18573_v24  ;;  %13603 = vmatmul.mubr.f32.gmra.mrb[34].mxu1 %v18575_v54  ;;  %v3938_v24 = vld [vmem:[#allocation9 + $0x428] sm:$0xff] }
 0x2a8   :  { %13326 = vmatprep.mubr.f32.mxu0 %v18581_v15  ;;  %13605 = vmatprep.mubr.f32.mxu1 %v18583_v7  ;;  %v3516_v54 = vld [vmem:[#allocation2 + $0x42] sm:$0xff]  ;;  %v15838_v50 = vpack.c.bf16 %v3938_v24, %v3937_v57  ;;  %v3517_v15 = vld [vmem:[#allocation2 + $0x4a] sm:$0xff] }
 0x2a9   :  { %15825 = vmatpush3.bf16.msra.mxu1 %v15822_v32  ;;  %v3939_v7 = vld [vmem:[#allocation9 + $0x430] sm:$0xff]  ;;  %15871 = vmatprep.subr.bf16.mxu0 %v15870_v61 }
 0x2aa   :  { %15827 = vmatprep.subr.bf16.mxu1 %v15826_v34  ;;  %v3537_v32 = vld [vmem:[#allocation2 + $0xea] sm:$0xff]  ;;  %15873 = vmatpush3.bf16.msra.mxu0 %v15870_v61  ;;  %v3544_v57 = vld [vmem:[#allocation2 + $0x122] sm:$0xff] }
 0x2ab   :  { %13327 = vmatmul.mubr.f32.gmra.mrb[102].mxu0 %v18587_v29  ;;  %13606 = vmatmul.mubr.f32.gmra.mrb[36].mxu1 %v18589_v16  ;;  %v3940_v29 = vld [vmem:[#allocation9 + $0x438] sm:$0xff] }
 0x2ac   :  { %13608 = vmatprep.mubr.f32.mxu1 %v18594_v17  ;;  %v3518_v16 = vld [vmem:[#allocation2 + $0x52] sm:$0xff]  ;;  %v15842_v17 = vpack.c.bf16 %v3940_v29, %v3939_v7  ;;  %15875 = vmatprep.subr.bf16.mxu0 %v15874_v8  ;;  %v3545_v24 = vld [vmem:[#allocation2 + $0x12a] sm:$0xff] }
 0x2ad   :  { %15829 = vmatpush3.bf16.msra.mxu1 %v15826_v34  ;;  %v4552_v34 = vld [vmem:[#allocation9 + $0x540] sm:$0xff]  ;;  %v3549_v7 = vld [vmem:[#allocation2 + $0x14a] sm:$0xff] }
 0x2ae   :  { %15831 = vmatprep.subr.bf16.mxu1 %v15830_v58  ;;  %15877 = vmatpush3.bf16.msra.mxu0 %v15874_v8  ;;  %v3550_v29 = vld [vmem:[#allocation2 + $0x152] sm:$0xff]  ;;  %v3908_v8 = vld [vmem:[#allocation2 + $0xc3] sm:$0xff] }
 0x2af   :  { %13609 = vmatmul.mubr.f32.gmra.mrb[38].mxu1 %v18597_v23  ;;  %v3519_v23 = vld [vmem:[#allocation2 + $0x5a] sm:$0xff] }
 0x2b0   :  { %13611 = vmatprep.mubr.f32.mxu1 %v18600_v52  ;;  %v3941_v52 = vld [vmem:[#allocation9 + $0x440] sm:$0xff] }
 0x2b3   :  { %13612 = vmatmul.mubr.f32.gmra.mrb[40].mxu1 %v18603_v59  ;;  %v3942_v59 = vld [vmem:[#allocation9 + $0x448] sm:$0xff] }
 0x2b4   :  { %13614 = vmatprep.mubr.f32.mxu1 %v18606_v2  ;;  %v3520_v2 = vld [vmem:[#allocation2 + $0x62] sm:$0xff] }
 0x2b7   :  { %13615 = vmatmul.mubr.f32.gmra.mrb[0].mxu1 %v18609_v33  ;;  %v15846_v33 = vpack.c.bf16 %v3942_v59, %v3941_v52  ;;  %v3553_v59 = vld [vmem:[#allocation2 + $0x16a] sm:$0xff] }
 0x2b8   :  { %13617 = vmatprep.mubr.f32.mxu1 %v18612_v28  ;;  %v3521_v28 = vld [vmem:[#allocation2 + $0x6a] sm:$0xff] }
 0x2bb   :  { %13618 = vmatmul.mubr.f32.gmra.mrb[2].mxu1 %v18615_v62  ;;  %v3943_v62 = vld [vmem:[#allocation9 + $0x450] sm:$0xff] }
 0x2bc   :  { %13620 = vmatprep.mubr.f32.mxu1 %v18618_v18  ;;  %v3944_v18 = vld [vmem:[#allocation9 + $0x458] sm:$0xff] }
 0x2bf   :  { %13621 = vmatmul.mubr.f32.gmra.mrb[4].mxu1 %v18621_v19  ;;  %v3522_v19 = vld [vmem:[#allocation2 + $0x72] sm:$0xff] }
 0x2c0   :  { %13623 = vmatprep.mubr.f32.mxu1 %v18624_v47  ;;  %v15850_v47 = vpack.c.bf16 %v3944_v18, %v3943_v62  ;;  %v3890_v18 = vld [vmem:[#allocation2 + $0x33] sm:$0xff] }
 0x2c3   :  { %13624 = vmatmul.mubr.f32.gmra.mrb[6].mxu1 %v18627_v22  ;;  %v3523_v22 = vld [vmem:[#allocation2 + $0x7a] sm:$0xff] }
 0x2c4   :  { %13626 = vmatprep.mubr.f32.mxu1 %v18630_v41  ;;  %v3945_v41 = vld [vmem:[#allocation9 + $0x460] sm:$0xff] }
 0x2c7   :  { %13627 = vmatmul.mubr.f32.gmra.mrb[8].mxu1 %v18633_v20  ;;  %v3946_v20 = vld [vmem:[#allocation9 + $0x468] sm:$0xff] }
 0x2c8   :  { %13629 = vmatprep.mubr.f32.mxu1 %v18636_v26  ;;  %v3524_v26 = vld [vmem:[#allocation2 + $0x82] sm:$0xff] }
 0x2cb   :  { %13630 = vmatmul.mubr.f32.gmra.mrb[10].mxu1 %v18639_v35  ;;  %v15854_v35 = vpack.c.bf16 %v3946_v20, %v3945_v41  ;;  %v3892_v41 = vld [vmem:[#allocation2 + $0x43] sm:$0xff] }
 0x2cc   :  { %13632 = vmatprep.mubr.f32.mxu1 %v18642_v53  ;;  %v3525_v53 = vld [vmem:[#allocation2 + $0x8a] sm:$0xff] }
 0x2cf   :  { %13633 = vmatmul.mubr.f32.gmra.mrb[12].mxu1 %v18646_v40  ;;  %v3947_v40 = vld [vmem:[#allocation9 + $0x470] sm:$0xff] }
 0x2d0   :  { %13635 = vmatprep.mubr.f32.mxu1 %v18650_v12  ;;  %v3948_v12 = vld [vmem:[#allocation9 + $0x478] sm:$0xff] }
 0x2d1   :  { %v15858_v44 = vpack.c.bf16 %v3948_v12, %v3947_v40  ;;  %v3895_v12 = vld [vmem:[#allocation2 + $0x5b] sm:$0xff] }
 0x2d3   :  { %13636 = vmatmul.mubr.f32.gmra.mrb[14].mxu1 %v18654_v42  ;;  %v3526_v42 = vld [vmem:[#allocation2 + $0x92] sm:$0xff] }
 0x2d4   :  { %13638 = vmatprep.mubr.f32.mxu1 %v18658_v46  ;;  %v3527_v46 = vld [vmem:[#allocation2 + $0x9a] sm:$0xff] }
 0x2d7   :  { %13639 = vmatmul.mubr.f32.gmra.mrb[16].mxu1 %v18662_v31  ;;  %v3528_v31 = vld [vmem:[#allocation2 + $0xa2] sm:$0xff] }
 0x2d8   :  { %13641 = vmatprep.mubr.f32.mxu1 %v18666_v38  ;;  %v3529_v38 = vld [vmem:[#allocation2 + $0xaa] sm:$0xff] }
 0x2db   :  { %13642 = vmatmul.mubr.f32.gmra.mrb[18].mxu1 %v18670_v51  ;;  %v3530_v51 = vld [vmem:[#allocation2 + $0xb2] sm:$0xff] }
 0x2dc   :  { %13644 = vmatprep.mubr.f32.mxu1 %v3178_v3  ;;  %v15878_v3 = vpack.c.bf16 %v4553_v14, %v4552_v34  ;;  %v3909_v14 = vld [vmem:[#allocation2 + $0xcb] sm:$0xff] }
 0x2de   :  { %15879 = vmatprep.subr.bf16.mxu0 %v15878_v3 }
 0x2df   :  { %13645 = vmatmul.mubr.f32.gmra.mrb[20].mxu1 %v3179_v45  ;;  %v4554_v45 = vld [vmem:[#allocation9 + $0x550] sm:$0xff]  ;;  %15881 = vmatpush3.bf16.msra.mxu0 %v15878_v3 }
 0x2e0   :  { %13679 = vmatprep.mubr.f32.mxu1 %v3514_v37  ;;  %v3542_v37 = vld [vmem:[#allocation2 + $0x112] sm:$0xff] }
 0x2e3   :  { %13680 = vmatmul.mubr.f32.vlgmr.msra.gmra.mrb[22].mxu1 %v3515_v39  ;;  %v3543_v39 = vld [vmem:[#allocation2 + $0x11a] sm:$0xff] }
 0x2e4   :  { %15833 = vmatpush3.bf16.msra.mxu1 %v15830_v58  ;;  %13682 = vmatprep.mubr.f32.mxu1 %v3516_v54  ;;  %v3540_v58 = vld [vmem:[#allocation2 + $0x102] sm:$0xff]  ;;  %v3546_v54 = vld [vmem:[#allocation2 + $0x132] sm:$0xff] }
 0x2e5   :  { %15835 = vmatprep.subr.bf16.mxu1 %v15834_v9 }
 0x2e7   :  { %13683 = vmatmul.mubr.f32.gmra.mrb[24].mxu1 %v3517_v15  ;;  %v3548_v15 = vld [vmem:[#allocation2 + $0x142] sm:$0xff] }
 0x2e8   :  { %13685 = vmatprep.mubr.f32.mxu1 %v3518_v16  ;;  %15837 = vmatpush3.bf16.msra.mxu1 %v15834_v9  ;;  %v15882_v9 = vpack.c.bf16 %v4555_v63, %v4554_v45  ;;  %v3551_v16 = vld [vmem:[#allocation2 + $0x15a] sm:$0xff] }
 0x2e9   :  { %15839 = vmatprep.subr.bf16.mxu1 %v15838_v50  ;;  %v3911_v45 = vld [vmem:[#allocation2 + $0xdb] sm:$0xff] }
 0x2ea   :  { %15883 = vmatprep.subr.bf16.mxu0 %v15882_v9 }
 0x2eb   :  { %13686 = vmatmul.mubr.f32.gmra.mrb[26].mxu1 %v3519_v23  ;;  %15885 = vmatpush3.bf16.msra.mxu0 %v15882_v9  ;;  %v3554_v23 = vld [vmem:[#allocation2 + $0x172] sm:$0xff] }
 0x2ec   :  { %13688 = vmatprep.mubr.f32.mxu1 %v3520_v2  ;;  %15841 = vmatpush3.bf16.msra.mxu1 %v15838_v50  ;;  %v3547_v50 = vld [vmem:[#allocation2 + $0x13a] sm:$0xff]  ;;  %v3913_v9 = vld [vmem:[#allocation2 + $0xeb] sm:$0xff] }
 0x2ed   :  { %15843 = vmatprep.subr.bf16.mxu1 %v15842_v17 }
 0x2ef   :  { %13689 = vmatmul.mubr.f32.gmra.mrb[28].mxu1 %v3521_v28 }
 0x2f0   :  { %13691 = vmatprep.mubr.f32.mxu1 %v3522_v19  ;;  %15845 = vmatpush3.bf16.msra.mxu1 %v15842_v17  ;;  %v3552_v17 = vld [vmem:[#allocation2 + $0x162] sm:$0xff] }
 0x2f1   :  { %15847 = vmatprep.subr.bf16.mxu1 %v15846_v33 }
 0x2f3   :  { %13692 = vmatmul.mubr.f32.gmra.mrb[30].mxu1 %v3523_v22 }
 0x2f4   :  { %13694 = vmatprep.mubr.f32.mxu1 %v3524_v26  ;;  %15849 = vmatpush3.bf16.msra.mxu1 %v15846_v33  ;;  %v3555_v33 = vld [vmem:[#allocation2 + $0x17a] sm:$0xff]  ;;  %v3893_v26 = vld [vmem:[#allocation2 + $0x4b] sm:$0xff] }
 0x2f5   :  { %15851 = vmatprep.subr.bf16.mxu1 %v15850_v47 }
 0x2f7   :  { %13695 = vmatmul.mubr.f32.gmra.mrb[32].mxu1 %v3525_v53  ;;  %v3894_v53 = vld [vmem:[#allocation2 + $0x53] sm:$0xff] }
 0x2f8   :  { %13697 = vmatprep.mubr.f32.mxu1 %v3526_v42  ;;  %15853 = vmatpush3.bf16.msra.mxu1 %v15850_v47  ;;  %v3891_v47 = vld [vmem:[#allocation2 + $0x3b] sm:$0xff] }
 0x2f9   :  { %15855 = vmatprep.subr.bf16.mxu1 %v15854_v35 }
 0x2fb   :  { %13698 = vmatmul.mubr.f32.gmra.mrb[34].mxu1 %v3527_v46 }
 0x2fc   :  { %13700 = vmatprep.mubr.f32.mxu1 %v3528_v31  ;;  %15857 = vmatpush3.bf16.msra.mxu1 %v15854_v35  ;;  %v3897_v31 = vld [vmem:[#allocation2 + $0x6b] sm:$0xff] }
 0x2fd   :  { %15859 = vmatprep.subr.bf16.mxu1 %v15858_v44 }
 0x2ff   :  { %13701 = vmatmul.mubr.f32.gmra.mrb[36].mxu1 %v3529_v38 }
 0x300   :  { %13703 = vmatprep.mubr.f32.mxu1 %v3530_v51  ;;  %15861 = vmatpush3.bf16.msra.mxu1 %v15858_v44  ;;  %v3896_v44 = vld [vmem:[#allocation2 + $0x63] sm:$0xff]  ;;  %v3898_v51 = vld [vmem:[#allocation2 + $0x73] sm:$0xff] }
 0x303   :  { %13704 = vmatmul.mubr.f32.gmra.mrb[38].mxu1 %v3531_v60 }
 0x304   :  { %13706 = vmatprep.mubr.f32.mxu1 %v3532_v56  ;;  %v3899_v56 = vld [vmem:[#allocation2 + $0x7b] sm:$0xff] }
 0x307   :  { %13707 = vmatmul.mubr.f32.gmra.mrb[40].mxu1 %v3533_v11 }
 0x308   :  { %13709 = vmatprep.mubr.f32.mxu1 %v3534_v27  ;;  %v3900_v27 = vld [vmem:[#allocation2 + $0x83] sm:$0xff] }
 0x30b   :  { %13710 = vmatmul.mubr.f32.gmra.mrb[0].mxu1 %v3535_v1 }
 0x30c   :  { %13712 = vmatprep.mubr.f32.mxu1 %v3536_v6  ;;  %v3905_v6 = vld [vmem:[#allocation2 + $0xab] sm:$0xff] }
 0x30f   :  { %13713 = vmatmul.mubr.f32.gmra.mrb[2].mxu1 %v3537_v32  ;;  %v3907_v32 = vld [vmem:[#allocation2 + $0xbb] sm:$0xff] }
 0x310   :  { %13715 = vmatprep.mubr.f32.mxu1 %v3538_v4 }
 0x313   :  { %13716 = vmatmul.mubr.f32.gmra.mrb[4].mxu1 %v3539_v10 }
 0x314   :  { %13718 = vmatprep.mubr.f32.mxu1 %v3540_v58  ;;  %v3910_v58 = vld [vmem:[#allocation2 + $0xd3] sm:$0xff] }
 0x317   :  { %13719 = vmatmul.mubr.f32.gmra.mrb[6].mxu1 %v3541_v0  ;;  %v3912_v0 = vld [vmem:[#allocation2 + $0xe3] sm:$0xff] }
 0x318   :  { %13721 = vmatprep.mubr.f32.mxu1 %v3542_v37 }
 0x31b   :  { %13722 = vmatmul.mubr.f32.gmra.mrb[8].mxu1 %v3543_v39 }
 0x31c   :  { %13724 = vmatprep.mubr.f32.mxu1 %v3544_v57  ;;  %v3914_v57 = vld [vmem:[#allocation2 + $0xf3] sm:$0xff] }
 0x31f   :  { %13725 = vmatmul.mubr.f32.gmra.mrb[10].mxu1 %v3545_v24 }
 0x320   :  { %13727 = vmatprep.mubr.f32.mxu1 %v3546_v54  ;;  %v3915_v54 = vld [vmem:[#allocation2 + $0xfb] sm:$0xff] }
 0x323   :  { %13728 = vmatmul.mubr.f32.gmra.mrb[12].mxu1 %v3547_v50 }
 0x324   :  { %13730 = vmatprep.mubr.f32.mxu1 %v3548_v15  ;;  %v3916_v15 = vld [vmem:[#allocation2 + $0x103] sm:$0xff] }
 0x327   :  { %13731 = vmatmul.mubr.f32.gmra.mrb[14].mxu1 %v3549_v7 }
 0x328   :  { %13733 = vmatprep.mubr.f32.mxu1 %v3550_v29  ;;  %v3917_v29 = vld [vmem:[#allocation2 + $0x10b] sm:$0xff] }
 0x32b   :  { %13734 = vmatmul.mubr.f32.gmra.mrb[16].mxu1 %v3551_v16 }
 0x32c   :  { %13736 = vmatprep.mubr.f32.mxu1 %v3552_v17  ;;  %v3918_v17 = vld [vmem:[#allocation2 + $0x113] sm:$0xff] }
 0x32e   :  { %v18731_v52 = vpop.f32.mrb[104].mxu0 }
 0x32f   :  { %v18733_v2 = vpop.f32.mrb[105].mxu0  ;;  %13737 = vmatmul.mubr.f32.gmra.mrb[18].mxu1 %v3553_v59  ;;  %v3919_v59 = vld [vmem:[#allocation2 + $0x11b] sm:$0xff] }
 0x330   :  { %13739 = vmatprep.mubr.f32.mxu1 %v3554_v23 }
 0x332   :  { %v18735_v28 = vpop.f32.mrb[106].mxu0 }
 0x333   :  { %v18737_v62 = vpop.f32.mrb[107].mxu0  ;;  %13740 = vmatmul.mubr.f32.gmra.mrb[20].mxu1 %v3555_v33 }
 0x334   :  { %13774 = vmatprep.mubr.f32.mxu1 %v3890_v18  ;;  %v3920_v18 = vld [vmem:[#allocation2 + $0x123] sm:$0xff] }
 0x336   :  { %v18739_v19 = vpop.f32.mrb[108].mxu0 }
 0x337   :  { %v18741_v22 = vpop.f32.mrb[109].mxu0  ;;  %13775 = vmatmul.mubr.f32.vlgmr.msra.gmra.mrb[22].mxu1 %v3891_v47 }
 0x338   :  { %13777 = vmatprep.mubr.f32.mxu1 %v3892_v41  ;;  %v3921_v41 = vld [vmem:[#allocation2 + $0x12b] sm:$0xff] }
 0x33a   :  { %v18743_v20 = vpop.f32.mrb[110].mxu0 }
 0x33b   :  { %v18745_v35 = vpop.f32.mrb[111].mxu0  ;;  %13778 = vmatmul.mubr.f32.gmra.mrb[24].mxu1 %v3893_v26 }
 0x33c   :  { %13780 = vmatprep.mubr.f32.mxu1 %v3894_v53  ;;  %v3922_v53 = vld [vmem:[#allocation2 + $0x133] sm:$0xff] }
 0x33e   :  { %v18747_v40 = vpop.f32.mrb[112].mxu0 }
 0x33f   :  { %v18749_v42 = vpop.f32.mrb[113].mxu0  ;;  %13781 = vmatmul.mubr.f32.gmra.mrb[26].mxu1 %v3895_v12 }
 0x340   :  { %13783 = vmatprep.mubr.f32.mxu1 %v3896_v44  ;;  %v3923_v44 = vld [vmem:[#allocation2 + $0x13b] sm:$0xff] }
 0x342   :  { %v18751_v46 = vpop.f32.mrb[114].mxu0 }
 0x343   :  { %v18753_v38 = vpop.f32.mrb[115].mxu0  ;;  %13784 = vmatmul.mubr.f32.gmra.mrb[28].mxu1 %v3897_v31 }
 0x344   :  { %13786 = vmatprep.mubr.f32.mxu1 %v3898_v51  ;;  %v3924_v51 = vld [vmem:[#allocation2 + $0x143] sm:$0xff] }
 0x346   :  { %v18755_v60 = vpop.f32.mrb[116].mxu0 }
 0x347   :  { %v18757_v11 = vpop.f32.mrb[117].mxu0  ;;  %13787 = vmatmul.mubr.f32.gmra.mrb[30].mxu1 %v3899_v56 }
 0x348   :  { %13789 = vmatprep.mubr.f32.mxu1 %v3900_v27  ;;  %v3925_v27 = vld [vmem:[#allocation2 + $0x14b] sm:$0xff] }
 0x34a   :  { %v18759_v30 = vpop.f32.mrb[118].mxu0 }
 0x34b   :  { %v18761_v25 = vpop.f32.mrb[119].mxu0  ;;  %13790 = vmatmul.mubr.f32.gmra.mrb[32].mxu1 %v3901_v49 }
 0x34c   :  { %13792 = vmatprep.mubr.f32.mxu1 %v3902_v13  ;;  %v3926_v13 = vld [vmem:[#allocation2 + $0x153] sm:$0xff] }
 0x34e   :  { %v18763_v55 = vpop.f32.mrb[120].mxu0 }
 0x34f   :  { %v18765_v48 = vpop.f32.mrb[121].mxu0  ;;  %13793 = vmatmul.mubr.f32.gmra.mrb[34].mxu1 %v3903_v5 }
 0x350   :  { %13795 = vmatprep.mubr.f32.mxu1 %v3904_v21  ;;  %v3927_v21 = vld [vmem:[#allocation2 + $0x15b] sm:$0xff] }
 0x352   :  { %v18767_v1 = vpop.f32.mrb[122].mxu0 }
 0x353   :  { %v18769_v61 = vpop.f32.mrb[123].mxu0  ;;  %13796 = vmatmul.mubr.f32.gmra.mrb[36].mxu1 %v3905_v6 }
 0x354   :  { %13798 = vmatprep.mubr.f32.mxu1 %v3906_v43  ;;  %v3928_v43 = vld [vmem:[#allocation2 + $0x163] sm:$0xff] }
 0x356   :  { %v18771_v36 = vpop.f32.mrb[124].mxu0 }
 0x357   :  { %v18773_v4 = vpop.f32.mrb[125].mxu0  ;;  %13799 = vmatmul.mubr.f32.gmra.mrb[38].mxu1 %v3907_v32  ;;  %v3930_v32 = vld [vmem:[#allocation2 + $0x173] sm:$0xff] }
 0x358   :  { %13801 = vmatprep.mubr.f32.mxu1 %v3908_v8  ;;  %v3929_v8 = vld [vmem:[#allocation2 + $0x16b] sm:$0xff] }
 0x35a   :  { %v18775_v34 = vpop.f32.mrb[84].mxu0 }
 0x35b   :  { %v18777_v10 = vpop.f32.mrb[85].mxu0  ;;  %13802 = vmatmul.mubr.f32.gmra.mrb[40].mxu1 %v3909_v14  ;;  %v3931_v14 = vld [vmem:[#allocation2 + $0x17b] sm:$0xff] }
 0x35c   :  { %13804 = vmatprep.mubr.f32.mxu1 %v3910_v58  ;;  %v4556_v58 = vld [vmem:[#allocation9 + $0x560] sm:$0xff] }
 0x35e   :  { %v18779_v3 = vpop.f32.mrb[86].mxu0 }
 0x35f   :  { %v18781_v63 = vpop.f32.mrb[87].mxu0  ;;  %13805 = vmatmul.mubr.f32.gmra.mrb[0].mxu1 %v3911_v45  ;;  %v4557_v45 = vld [vmem:[#allocation9 + $0x568] sm:$0xff] }
 0x360   :  { %13807 = vmatprep.mubr.f32.mxu1 %v3912_v0  ;;  %v15886_v0 = vpack.c.bf16 %v4557_v45, %v4556_v58  ;;  %v4495_v45 = vld [vmem:[#allocation9 + $0x4d0] sm:$0xff] }
 0x362   :  { %v18783_v37 = vpop.f32.mrb[88].mxu0  ;;  %15887 = vmatprep.subr.bf16.mxu0 %v15886_v0 }
 0x363   :  { %v18785_v39 = vpop.f32.mrb[89].mxu0  ;;  %13808 = vmatmul.mubr.f32.gmra.mrb[2].mxu1 %v3913_v9  ;;  %15889 = vmatpush3.bf16.msra.mxu0 %v15886_v0  ;;  %v4558_v9 = vld [vmem:[#allocation9 + $0x570] sm:$0xff]  ;;  %v4496_v0 = vld [vmem:[#allocation9 + $0x4d8] sm:$0xff] }
 0x364   :  { %13810 = vmatprep.mubr.f32.mxu1 %v3914_v57  ;;  %v4559_v57 = vld [vmem:[#allocation9 + $0x578] sm:$0xff] }
 0x366   :  { %v18787_v24 = vpop.f32.mrb[90].mxu0 }
 0x367   :  { %v18789_v50 = vpop.f32.mrb[91].mxu0  ;;  %13811 = vmatmul.mubr.f32.gmra.mrb[4].mxu1 %v3915_v54  ;;  %v15890_v54 = vpack.c.bf16 %v4559_v57, %v4558_v9  ;;  %v15914_v9 = vpack.c.bf16 %v4496_v0, %v4495_v45  ;;  %v4497_v57 = vld [vmem:[#allocation9 + $0x4e0] sm:$0xff] }
 0x368   :  { %13813 = vmatprep.mubr.f32.mxu1 %v3916_v15  ;;  %v4501_v15 = vld [vmem:[#allocation3 + $0xe] sm:$0xff] }
 0x369   :  { %15891 = vmatprep.subr.bf16.mxu0 %v15890_v54  ;;  %13869 = vmatprep.mubr.f32.mxu0 %v4501_v15 }
 0x36a   :  { %v18791_v7 = vpop.f32.mrb[92].mxu0  ;;  %15893 = vmatpush3.bf16.msra.mxu0 %v15890_v54  ;;  %v4498_v54 = vld [vmem:[#allocation9 + $0x4e8] sm:$0xff] }
 0x36b   :  { %v18793_v16 = vpop.f32.mrb[93].mxu0  ;;  %13814 = vmatmul.mubr.f32.gmra.mrb[6].mxu1 %v3917_v29  ;;  %v4502_v29 = vld [vmem:[#allocation3 + $0x16] sm:$0xff]  ;;  %v15918_v15 = vpack.c.bf16 %v4498_v54, %v4497_v57  ;;  %v19925_v57 = vld [vmem:[#allocation41_spill] sm:$0xff] }
 0x36c   :  { %13816 = vmatprep.mubr.f32.mxu1 %v3918_v17  ;;  %v4485_v17 = vld [vmem:[#allocation9 + $0x480] sm:$0xff] }
 0x36d   :  { %13870 = vmatmul.mubr.f32.vlgmr.msra.gmra.mrb[126].mxu0 %v4502_v29  ;;  %v4499_v29 = vld [vmem:[#allocation9 + $0x4f0] sm:$0xff] }
 0x36e   :  { %v18795_v23 = vpop.f32.mrb[94].mxu0 }
 0x36f   :  { %v18797_v33 = vpop.f32.mrb[95].mxu0  ;;  %13817 = vmatmul.mubr.f32.gmra.mrb[8].mxu1 %v3919_v59  ;;  %v4486_v59 = vld [vmem:[#allocation9 + $0x488] sm:$0xff] }
 0x370   :  { %13819 = vmatprep.mubr.f32.mxu1 %v3920_v18  ;;  %v15894_v18 = vpack.c.bf16 %v4486_v59, %v4485_v17  ;;  %v4500_v17 = vld [vmem:[#allocation9 + $0x4f8] sm:$0xff] }
 0x371   :  { %v15922_v59 = vpack.c.bf16 %v4500_v17, %v4499_v29 }
 0x372   :  { %v18799_v47 = vpop.f32.mrb[96].mxu0  ;;  %15895 = vmatprep.subr.bf16.mxu0 %v15894_v18 }
 0x373   :  { %v18801_v26 = vpop.f32.mrb[97].mxu0  ;;  %13820 = vmatmul.mubr.f32.gmra.mrb[10].mxu1 %v3921_v41  ;;  %15897 = vmatpush3.bf16.msra.mxu0 %v15894_v18  ;;  %v4487_v41 = vld [vmem:[#allocation9 + $0x490] sm:$0xff]  ;;  %v5153_v18 = vld [vmem:[#allocation9 + $0x580] sm:$0xff] }
 0x374   :  { %13822 = vmatprep.mubr.f32.mxu1 %v3922_v53  ;;  %v4488_v53 = vld [vmem:[#allocation9 + $0x498] sm:$0xff] }
 0x376   :  { %v18803_v12 = vpop.f32.mrb[98].mxu0 }
 0x377   :  { %v18805_v31 = vpop.f32.mrb[99].mxu0  ;;  %13823 = vmatmul.mubr.f32.gmra.mrb[12].mxu1 %v3923_v44  ;;  %v15898_v44 = vpack.c.bf16 %v4488_v53, %v4487_v41  ;;  %v5154_v41 = vld [vmem:[#allocation9 + $0x588] sm:$0xff] }
 0x378   :  { %13825 = vmatprep.mubr.f32.mxu1 %v3924_v51  ;;  %v4489_v51 = vld [vmem:[#allocation9 + $0x4a0] sm:$0xff]  ;;  %v18815_v53 = vpack.c.bf16 %v5154_v41, %v5153_v18 }
 0x379   :  { %15899 = vmatprep.subr.bf16.mxu0 %v15898_v44 }
 0x37a   :  { %v18807_v56 = vpop.f32.mrb[100].mxu0  ;;  %15901 = vmatpush3.bf16.msra.mxu0 %v15898_v44 }
 0x37b   :  { %v18809_v49 = vpop.f32.mrb[101].mxu0  ;;  %13826 = vmatmul.mubr.f32.gmra.mrb[14].mxu1 %v3925_v27  ;;  %v4490_v27 = vld [vmem:[#allocation9 + $0x4a8] sm:$0xff] }
 0x37c   :  { %13828 = vmatprep.mubr.f32.mxu1 %v3926_v13  ;;  %v15902_v13 = vpack.c.bf16 %v4490_v27, %v4489_v51  ;;  %v18818_v51 = vld [vmem:[#allocation7 + $0x1] ss:$0 sm:$0xff] }
 0x37e   :  { %v18811_v5 = vpop.f32.mrb[102].mxu0  ;;  %15903 = vmatprep.subr.bf16.mxu0 %v15902_v13 }
 0x37f   :  { %v18813_v6 = vpop.f32.mrb[103].mxu0  ;;  %13829 = vmatmul.mubr.f32.gmra.mrb[16].mxu1 %v3927_v21  ;;  %15905 = vmatpush3.bf16.msra.mxu0 %v15902_v13  ;;  %v4491_v21 = vld [vmem:[#allocation9 + $0x4b0] sm:$0xff] }
 0x380   :  { %13831 = vmatprep.mubr.f32.mxu1 %v3928_v43  ;;  %v4492_v43 = vld [vmem:[#allocation9 + $0x4b8] sm:$0xff] }
 0x383   :  { %13832 = vmatmul.mubr.f32.gmra.mrb[18].mxu1 %v3929_v8  ;;  %v4493_v8 = vld [vmem:[#allocation9 + $0x4c0] sm:$0xff] }
 0x384   :  { %13834 = vmatprep.mubr.f32.mxu1 %v3930_v32  ;;  %v15906_v32 = vpack.c.bf16 %v4492_v43, %v4491_v21 }
 0x386   :  { %15907 = vmatprep.subr.bf16.mxu0 %v15906_v32 }
 0x387   :  { %13835 = vmatmul.mubr.f32.gmra.mrb[20].mxu1 %v3931_v14  ;;  %15909 = vmatpush3.bf16.msra.mxu0 %v15906_v32  ;;  %v4494_v14 = vld [vmem:[#allocation9 + $0x4c8] sm:$0xff] }
 0x388   :  { %v15910_v58 = vpack.c.bf16 %v4494_v14, %v4493_v8 }
 0x38a   :  { %15911 = vmatprep.subr.bf16.mxu0 %v15910_v58 }
 0x38b   :  { %15913 = vmatpush3.bf16.msra.mxu0 %v15910_v58 }
 0x38c   :  { %15915 = vmatprep.subr.bf16.mxu0 %v15914_v9 }
 0x38f   :  { %15917 = vmatpush3.bf16.msra.mxu0 %v15914_v9 }
 0x390   :  { %15919 = vmatprep.subr.bf16.mxu0 %v15918_v15 }
 0x393   :  { %15921 = vmatpush3.bf16.msra.mxu0 %v15918_v15 }
 0x394   :  { %15923 = vmatprep.subr.bf16.mxu0 %v15922_v59 }
 0x397   :  { %15925 = vmatpush3.bf16.msra.mxu0 %v15922_v59 }
 0x398   :  { %15927 = vmatprep.subr.bf16.mxu0 %v18815_v53 }
 0x40a   :  { %v13776_v44 = vpop.f32.mrb[22].mxu1 }
 0x40b   :  { %v16454_v27 = vadd.f32 %v13776_v44, %v18775_v34  ;;  %v4015_v13 = vpop.f32.mrb[23].mxu1  ;;  %v19926_v34 = vld [vmem:[#allocation40_spill] sm:$0xff] }
 0x40c   :  { %v16455_v21 = vadd.f32 %v4015_v13, %v18777_v10 }
 0x40d   :  { %v4275_v43 = vadd.f32 %v16454_v27, %v18818_v51  ;;  %v19927_v27 = vld [vmem:[#allocation43_spill] sm:$0xff] }
 0x40e   :  { %v4274_v32 = vadd.f32 %v16455_v21, %v18818_v51  ;;  %v13779_v8 = vpop.f32.mrb[24].mxu1  ;;  %v19928_v21 = vld [vmem:[#allocation42_spill] sm:$0xff] }
 0x40f   :  { %v4317_v14 = vmax.f32 %v4275_v43, 0.0  ;;  %v16456_v58 = vadd.f32 %v13779_v8, %v18779_v3  ;;  %v4025_v45 = vpop.f32.mrb[25].mxu1 }
 0x410   :  { %v4316_v0 = vmax.f32 %v4274_v32, 0.0  ;;  %v16457_v9 = vadd.f32 %v4025_v45, %v18781_v63 }
 0x411   :  { %v4359_v54 = vmul.f32 %v4317_v14, %v19925_v57  ;;  %v4277_v15 = vadd.f32 %v16456_v58, %v18818_v51 }
 0x412   :  { %v4358_v29 = vmul.f32 %v4316_v0, %v19926_v34  ;;  %v4276_v10 = vadd.f32 %v16457_v9, %v18818_v51  ;;  %v13782_v17 = vpop.f32.mrb[26].mxu1  ;;  %v19929_v9 = vld [vmem:[#allocation45_spill] sm:$0xff] }
 0x413   :  { %4401 = vst [vmem:[#allocation3 + $0x28] sm:$0xff] %v4359_v54  ;;  %v4319_v59 = vmax.f32 %v4277_v15, 0.0  ;;  %v16458_v18 = vadd.f32 %v13782_v17, %v18783_v37  ;;  %v4035_v41 = vpop.f32.mrb[27].mxu1  ;;  %v19930_v15 = vld [vmem:[#allocation44_spill] sm:$0xff] }
 0x414   :  { %4400 = vst [vmem:[#allocation3 + $0x20] sm:$0xff] %v4358_v29  ;;  %v4318_v3 = vmax.f32 %v4276_v10, 0.0  ;;  %v16459_v44 = vadd.f32 %v4035_v41, %v18785_v39 }
 0x415   :  { %v4361_v63 = vmul.f32 %v4319_v59, %v19927_v27  ;;  %v4279_v13 = vadd.f32 %v16458_v18, %v18818_v51 }
 0x416   :  { %v4360_v43 = vmul.f32 %v4318_v3, %v19928_v21  ;;  %v4278_v32 = vadd.f32 %v16459_v44, %v18818_v51  ;;  %v13785_v8 = vpop.f32.mrb[28].mxu1 }
 0x417   :  { %4403 = vst [vmem:[#allocation3 + $0x38] sm:$0xff] %v4361_v63  ;;  %v4321_v14 = vmax.f32 %v4279_v13, 0.0  ;;  %v16460_v58 = vadd.f32 %v13785_v8, %v18787_v24  ;;  %v4045_v45 = vpop.f32.mrb[29].mxu1  ;;  %v19931_v63 = vld [vmem:[#allocation47_spill] sm:$0xff] }
 0x418   :  { %4402 = vst [vmem:[#allocation3 + $0x30] sm:$0xff] %v4360_v43  ;;  %v4320_v37 = vmax.f32 %v4278_v32, 0.0  ;;  %v16461_v0 = vadd.f32 %v4045_v45, %v18789_v50  ;;  %v19932_v32 = vld [vmem:[#allocation46_spill] sm:$0xff] }
 0x419   :  { %v4363_v39 = vmul.f32 %v4321_v14, %v19929_v9  ;;  %v4281_v54 = vadd.f32 %v16460_v58, %v18818_v51 }
 0x41a   :  { %v4362_v29 = vmul.f32 %v4320_v37, %v19930_v15  ;;  %v4280_v10 = vadd.f32 %v16461_v0, %v18818_v51  ;;  %v13788_v17 = vpop.f32.mrb[30].mxu1 }
 0x41b   :  { %4405 = vst [vmem:[#allocation3 + $0x48] sm:$0xff] %v4363_v39  ;;  %v4323_v59 = vmax.f32 %v4281_v54, 0.0  ;;  %v16462_v18 = vadd.f32 %v13788_v17, %v18791_v7  ;;  %v4055_v41 = vpop.f32.mrb[31].mxu1  ;;  %v4503_v24 = vld [vmem:[#allocation3 + $0x1e] sm:$0xff]  ;;  %v4504_v3 = vld [vmem:[#allocation3 + $0x26] sm:$0xff] }
 0x41c   :  { %4404 = vst [vmem:[#allocation3 + $0x40] sm:$0xff] %v4362_v29  ;;  %v4322_v44 = vmax.f32 %v4280_v10, 0.0  ;;  %v16463_v50 = vadd.f32 %v4055_v41, %v18793_v16  ;;  %13872 = vmatprep.mubr.f32.mxu0 %v4503_v24  ;;  %v19933_v29 = vld [vmem:[#allocation49_spill] sm:$0xff] }
 0x41d   :  { %v4365_v13 = vmul.f32 %v4323_v59, %v19931_v63  ;;  %v4283_v43 = vadd.f32 %v16462_v18, %v18818_v51  ;;  %13873 = vmatmul.mubr.f32.gmra.mrb[128].mxu0 %v4504_v3  ;;  %v19934_v59 = vld [vmem:[#allocation48_spill] sm:$0xff] }
 0x41e   :  { %v4364_v8 = vmul.f32 %v4322_v44, %v19932_v32  ;;  %v4282_v14 = vadd.f32 %v16463_v50, %v18818_v51  ;;  %v13791_v58 = vpop.f32.mrb[32].mxu1 }
 0x41f   :  { %4407 = vst [vmem:[#allocation3 + $0x58] sm:$0xff] %v4365_v13  ;;  %v4325_v7 = vmax.f32 %v4283_v43, 0.0  ;;  %v16464_v45 = vadd.f32 %v13791_v58, %v18795_v23  ;;  %v4065_v37 = vpop.f32.mrb[33].mxu1  ;;  %v4505_v0 = vld [vmem:[#allocation3 + $0x2e] sm:$0xff]  ;;  %v4506_v39 = vld [vmem:[#allocation3 + $0x36] sm:$0xff] }
 0x420   :  { %4406 = vst [vmem:[#allocation3 + $0x50] sm:$0xff] %v4364_v8  ;;  %v4324_v16 = vmax.f32 %v4282_v14, 0.0  ;;  %v16465_v54 = vadd.f32 %v4065_v37, %v18797_v33  ;;  %13875 = vmatprep.mubr.f32.mxu0 %v4505_v0  ;;  %v19935_v8 = vld [vmem:[#allocation51_spill] sm:$0xff] }
 0x421   :  { %v4367_v10 = vmul.f32 %v4325_v7, %v19933_v29  ;;  %v4285_v17 = vadd.f32 %v16464_v45, %v18818_v51  ;;  %13876 = vmatmul.mubr.f32.gmra.mrb[130].mxu0 %v4506_v39  ;;  %v19936_v7 = vld [vmem:[#allocation50_spill] sm:$0xff] }
 0x422   :  { %v4366_v18 = vmul.f32 %v4324_v16, %v19934_v59  ;;  %v4284_v41 = vadd.f32 %v16465_v54, %v18818_v51  ;;  %v13794_v24 = vpop.f32.mrb[34].mxu1 }
 0x423   :  { %4409 = vst [vmem:[#allocation3 + $0x68] sm:$0xff] %v4367_v10  ;;  %v4327_v23 = vmax.f32 %v4285_v17, 0.0  ;;  %v16466_v3 = vadd.f32 %v13794_v24, %v18799_v47  ;;  %v4075_v44 = vpop.f32.mrb[35].mxu1  ;;  %v4507_v50 = vld [vmem:[#allocation3 + $0x3e] sm:$0xff]  ;;  %v4508_v13 = vld [vmem:[#allocation3 + $0x46] sm:$0xff] }
 0x424   :  { %4408 = vst [vmem:[#allocation3 + $0x60] sm:$0xff] %v4366_v18  ;;  %v4326_v33 = vmax.f32 %v4284_v41, 0.0  ;;  %v16467_v43 = vadd.f32 %v4075_v44, %v18801_v26  ;;  %13878 = vmatprep.mubr.f32.mxu0 %v4507_v50  ;;  %v19937_v18 = vld [vmem:[#allocation53_spill] sm:$0xff] }
 0x425   :  { %v4369_v14 = vmul.f32 %v4327_v23, %v19935_v8  ;;  %v4287_v58 = vadd.f32 %v16466_v3, %v18818_v51  ;;  %13879 = vmatmul.mubr.f32.gmra.mrb[132].mxu0 %v4508_v13  ;;  %v19938_v23 = vld [vmem:[#allocation52_spill] sm:$0xff] }
 0x426   :  { %v4368_v45 = vmul.f32 %v4326_v33, %v19936_v7  ;;  %v4286_v37 = vadd.f32 %v16467_v43, %v18818_v51  ;;  %v13797_v0 = vpop.f32.mrb[36].mxu1 }
 0x427   :  { %4411 = vst [vmem:[#allocation3 + $0x78] sm:$0xff] %v4369_v14  ;;  %v4329_v47 = vmax.f32 %v4287_v58, 0.0  ;;  %v16468_v39 = vadd.f32 %v13797_v0, %v18803_v12  ;;  %v4085_v16 = vpop.f32.mrb[37].mxu1  ;;  %v4509_v54 = vld [vmem:[#allocation3 + $0x4e] sm:$0xff]  ;;  %v4510_v10 = vld [vmem:[#allocation3 + $0x56] sm:$0xff] }
 0x428   :  { %4410 = vst [vmem:[#allocation3 + $0x70] sm:$0xff] %v4368_v45  ;;  %v4328_v26 = vmax.f32 %v4286_v37, 0.0  ;;  %v16469_v17 = vadd.f32 %v4085_v16, %v18805_v31  ;;  %13881 = vmatprep.mubr.f32.mxu0 %v4509_v54  ;;  %v19939_v45 = vld [vmem:[#allocation55_spill] sm:$0xff] }
 0x429   :  { %v4371_v41 = vmul.f32 %v4329_v47, %v19937_v18  ;;  %v4289_v24 = vadd.f32 %v16468_v39, %v18818_v51  ;;  %13882 = vmatmul.mubr.f32.gmra.mrb[134].mxu0 %v4510_v10  ;;  %v19940_v47 = vld [vmem:[#allocation54_spill] sm:$0xff] }
 0x42a   :  { %v4370_v3 = vmul.f32 %v4328_v26, %v19938_v23  ;;  %v4288_v44 = vadd.f32 %v16469_v17, %v18818_v51  ;;  %v13800_v50 = vpop.f32.mrb[38].mxu1 }
 0x42b   :  { %4413 = vst [vmem:[#allocation3 + $0x88] sm:$0xff] %v4371_v41  ;;  %v4331_v12 = vmax.f32 %v4289_v24, 0.0  ;;  %v16470_v13 = vadd.f32 %v13800_v50, %v18807_v56  ;;  %v4095_v33 = vpop.f32.mrb[39].mxu1  ;;  %v4511_v43 = vld [vmem:[#allocation3 + $0x5e] sm:$0xff]  ;;  %v4512_v14 = vld [vmem:[#allocation3 + $0x66] sm:$0xff] }
 0x42c   :  { %4412 = vst [vmem:[#allocation3 + $0x80] sm:$0xff] %v4370_v3  ;;  %v4330_v31 = vmax.f32 %v4288_v44, 0.0  ;;  %v16471_v58 = vadd.f32 %v4095_v33, %v18809_v49  ;;  %13884 = vmatprep.mubr.f32.mxu0 %v4511_v43  ;;  %v19941_v3 = vld [vmem:[#allocation57_spill] sm:$0xff] }
 0x42d   :  { %v4373_v37 = vmul.f32 %v4331_v12, %v19939_v45  ;;  %v4291_v0 = vadd.f32 %v16470_v13, %v18818_v51  ;;  %13885 = vmatmul.mubr.f32.gmra.mrb[136].mxu0 %v4512_v14  ;;  %v19942_v12 = vld [vmem:[#allocation56_spill] sm:$0xff] }
 0x42e   :  { %v4372_v39 = vmul.f32 %v4330_v31, %v19940_v47  ;;  %v4290_v16 = vadd.f32 %v16471_v58, %v18818_v51  ;;  %v13803_v54 = vpop.f32.mrb[40].mxu1  ;;  %v5912_v47 = vld [vmem:[#allocation9 + $0x6b8] sm:$0xff] }
 0x42f   :  { %4415 = vst [vmem:[#allocation3 + $0x98] sm:$0xff] %v4373_v37  ;;  %v4333_v56 = vmax.f32 %v4291_v0, 0.0  ;;  %v16472_v10 = vadd.f32 %v13803_v54, %v18811_v5  ;;  %v4105_v26 = vpop.f32.mrb[41].mxu1  ;;  %v4513_v17 = vld [vmem:[#allocation3 + $0x6e] sm:$0xff]  ;;  %v4514_v41 = vld [vmem:[#allocation3 + $0x76] sm:$0xff] }
 0x430   :  { %4414 = vst [vmem:[#allocation3 + $0x90] sm:$0xff] %v4372_v39  ;;  %v4332_v49 = vmax.f32 %v4290_v16, 0.0  ;;  %v16473_v24 = vadd.f32 %v4105_v26, %v18813_v6  ;;  %13887 = vmatprep.mubr.f32.mxu0 %v4513_v17  ;;  %v19943_v39 = vld [vmem:[#allocation14_spill] sm:$0xff] }
 0x431   :  { %v4375_v44 = vmul.f32 %v4333_v56, %v19941_v3  ;;  %v4293_v50 = vadd.f32 %v16472_v10, %v18818_v51  ;;  %13888 = vmatmul.mubr.f32.gmra.mrb[138].mxu0 %v4514_v41  ;;  %v19944_v56 = vld [vmem:[#allocation58_spill] sm:$0xff] }
 0x432   :  { %v4374_v13 = vmul.f32 %v4332_v49, %v19942_v12  ;;  %v4292_v33 = vadd.f32 %v16473_v24, %v18818_v51  ;;  %v13806_v43 = vpop.f32.mrb[0].mxu1  ;;  %v5911_v3 = vld [vmem:[#allocation9 + $0x6b0] sm:$0xff] }
 0x433   :  { %4417 = vst [vmem:[#allocation3 + $0xa8] sm:$0xff] %v4375_v44  ;;  %v4335_v5 = vmax.f32 %v4293_v50, 0.0  ;;  %v16474_v14 = vadd.f32 %v13806_v43, %v18731_v52  ;;  %v4115_v31 = vpop.f32.mrb[1].mxu1  ;;  %v4515_v58 = vld [vmem:[#allocation3 + $0x7e] sm:$0xff]  ;;  %v4516_v37 = vld [vmem:[#allocation3 + $0x86] sm:$0xff] }
 0x434   :  { %4416 = vst [vmem:[#allocation3 + $0xa0] sm:$0xff] %v4374_v13  ;;  %v4334_v6 = vmax.f32 %v4292_v33, 0.0  ;;  %v16475_v0 = vadd.f32 %v4115_v31, %v18733_v2  ;;  %13890 = vmatprep.mubr.f32.mxu0 %v4515_v58  ;;  %v19945_v13 = vld [vmem:[#allocation15_spill] sm:$0xff] }
 0x435   :  { %v4377_v16 = vmul.f32 %v4335_v5, %v19943_v39  ;;  %v4295_v54 = vadd.f32 %v16474_v14, %v18818_v51  ;;  %13891 = vmatmul.mubr.f32.gmra.mrb[140].mxu0 %v4516_v37  ;;  %v19946_v5 = vld [vmem:[#allocation16_spill] sm:$0xff]  ;;  %v5910_v39 = vld [vmem:[#allocation9 + $0x6a8] sm:$0xff] }
 0x436   :  { %v4376_v10 = vmul.f32 %v4334_v6, %v19944_v56  ;;  %v4294_v26 = vadd.f32 %v16475_v0, %v18818_v51  ;;  %v13809_v17 = vpop.f32.mrb[2].mxu1  ;;  %v5909_v56 = vld [vmem:[#allocation9 + $0x6a0] sm:$0xff] }
 0x437   :  { %4419 = vst [vmem:[#allocation3 + $0xb8] sm:$0xff] %v4377_v16  ;;  %v4337_v52 = vmax.f32 %v4295_v54, 0.0  ;;  %v16476_v41 = vadd.f32 %v13809_v17, %v18735_v28  ;;  %v4125_v49 = vpop.f32.mrb[3].mxu1  ;;  %v4517_v24 = vld [vmem:[#allocation3 + $0x8e] sm:$0xff]  ;;  %v4518_v44 = vld [vmem:[#allocation3 + $0x96] sm:$0xff]  ;;  %v15998_v12 = vpack.c.bf16 %v5910_v39, %v5909_v56 }
 0x438   :  { %4418 = vst [vmem:[#allocation3 + $0xb0] sm:$0xff] %v4376_v10  ;;  %v4336_v2 = vmax.f32 %v4294_v26, 0.0  ;;  %v16477_v50 = vadd.f32 %v4125_v49, %v18737_v62  ;;  %13893 = vmatprep.mubr.f32.mxu0 %v4517_v24  ;;  %v19947_v10 = vld [vmem:[#allocation18_spill] sm:$0xff]  ;;  %v5916_v39 = vld [vmem:[#allocation9 + $0x6d8] sm:$0xff] }
 0x439   :  { %v4379_v33 = vmul.f32 %v4337_v52, %v19945_v13  ;;  %v4297_v43 = vadd.f32 %v16476_v41, %v18818_v51  ;;  %13894 = vmatmul.mubr.f32.gmra.mrb[142].mxu0 %v4518_v44  ;;  %v19948_v52 = vld [vmem:[#allocation17_spill] sm:$0xff] }
 0x43a   :  { %v4378_v14 = vmul.f32 %v4336_v2, %v19946_v5  ;;  %v4296_v31 = vadd.f32 %v16477_v50, %v18818_v51  ;;  %v13812_v58 = vpop.f32.mrb[4].mxu1  ;;  %v5908_v5 = vld [vmem:[#allocation9 + $0x698] sm:$0xff] }
 0x43b   :  { %4421 = vst [vmem:[#allocation3 + $0xc8] sm:$0xff] %v4379_v33  ;;  %v4339_v28 = vmax.f32 %v4297_v43, 0.0  ;;  %v16478_v37 = vadd.f32 %v13812_v58, %v18739_v19  ;;  %v4135_v6 = vpop.f32.mrb[5].mxu1  ;;  %v4519_v0 = vld [vmem:[#allocation3 + $0x9e] sm:$0xff]  ;;  %v4520_v16 = vld [vmem:[#allocation3 + $0xa6] sm:$0xff] }
 0x43c   :  { %4420 = vst [vmem:[#allocation3 + $0xc0] sm:$0xff] %v4378_v14  ;;  %v4338_v62 = vmax.f32 %v4296_v31, 0.0  ;;  %v16479_v54 = vadd.f32 %v4135_v6, %v18741_v22  ;;  %13896 = vmatprep.mubr.f32.mxu0 %v4519_v0  ;;  %v19949_v14 = vld [vmem:[#allocation20_spill] sm:$0xff] }
 0x43d   :  { %v4381_v26 = vmul.f32 %v4339_v28, %v19947_v10  ;;  %v4299_v17 = vadd.f32 %v16478_v37, %v18818_v51  ;;  %13897 = vmatmul.mubr.f32.gmra.mrb[144].mxu0 %v4520_v16  ;;  %v19950_v28 = vld [vmem:[#allocation19_spill] sm:$0xff]  ;;  %v5907_v10 = vld [vmem:[#allocation9 + $0x690] sm:$0xff] }
 0x43e   :  { %v4380_v41 = vmul.f32 %v4338_v62, %v19948_v52  ;;  %v4298_v49 = vadd.f32 %v16479_v54, %v18818_v51  ;;  %v13815_v24 = vpop.f32.mrb[6].mxu1  ;;  %v15994_v13 = vpack.c.bf16 %v5908_v5, %v5907_v10  ;;  %v5913_v5 = vld [vmem:[#allocation9 + $0x6c0] sm:$0xff]  ;;  %v5914_v10 = vld [vmem:[#allocation9 + $0x6c8] sm:$0xff] }
 0x43f   :  { %4423 = vst [vmem:[#allocation3 + $0xd8] sm:$0xff] %v4381_v26  ;;  %v4341_v19 = vmax.f32 %v4299_v17, 0.0  ;;  %v16480_v44 = vadd.f32 %v13815_v24, %v18743_v20  ;;  %v4145_v2 = vpop.f32.mrb[7].mxu1  ;;  %v4521_v50 = vld [vmem:[#allocation3 + $0xae] sm:$0xff]  ;;  %v4522_v33 = vld [vmem:[#allocation3 + $0xb6] sm:$0xff] }
 0x440   :  { %4422 = vst [vmem:[#allocation3 + $0xd0] sm:$0xff] %v4380_v41  ;;  %v4340_v22 = vmax.f32 %v4298_v49, 0.0  ;;  %v16481_v43 = vadd.f32 %v4145_v2, %v18745_v35  ;;  %13899 = vmatprep.mubr.f32.mxu0 %v4521_v50  ;;  %v19951_v41 = vld [vmem:[#allocation23_spill] sm:$0xff] }
 0x441   :  { %v4383_v31 = vmul.f32 %v4341_v19, %v19949_v14  ;;  %v4301_v58 = vadd.f32 %v16480_v44, %v18818_v51  ;;  %13900 = vmatmul.mubr.f32.gmra.mrb[146].mxu0 %v4522_v33  ;;  %v19952_v19 = vld [vmem:[#allocation21_spill] sm:$0xff] }
 0x442   :  { %v4382_v37 = vmul.f32 %v4340_v22, %v19950_v28  ;;  %v4300_v6 = vadd.f32 %v16481_v43, %v18818_v51  ;;  %v13818_v0 = vpop.f32.mrb[8].mxu1 }
 0x443   :  { %4425 = vst [vmem:[#allocation3 + $0xe8] sm:$0xff] %v4383_v31  ;;  %v4343_v20 = vmax.f32 %v4301_v58, 0.0  ;;  %v16482_v16 = vadd.f32 %v13818_v0, %v18747_v40  ;;  %v4155_v62 = vpop.f32.mrb[9].mxu1  ;;  %v4523_v54 = vld [vmem:[#allocation3 + $0xbe] sm:$0xff]  ;;  %v4524_v26 = vld [vmem:[#allocation3 + $0xc6] sm:$0xff] }
 0x444   :  { %4424 = vst [vmem:[#allocation3 + $0xe0] sm:$0xff] %v4382_v37  ;;  %v4342_v35 = vmax.f32 %v4300_v6, 0.0  ;;  %v16483_v17 = vadd.f32 %v4155_v62, %v18749_v42  ;;  %13902 = vmatprep.mubr.f32.mxu0 %v4523_v54  ;;  %v19953_v37 = vld [vmem:[#allocation26_spill] sm:$0xff] }
 0x445   :  { %v4385_v49 = vmul.f32 %v4343_v20, %v19951_v41  ;;  %v4303_v24 = vadd.f32 %v16482_v16, %v18818_v51  ;;  %13903 = vmatmul.mubr.f32.gmra.mrb[148].mxu0 %v4524_v26  ;;  %v19954_v20 = vld [vmem:[#allocation24_spill] sm:$0xff] }
 0x446   :  { %v4384_v44 = vmul.f32 %v4342_v35, %v19952_v19  ;;  %v4302_v2 = vadd.f32 %v16483_v17, %v18818_v51  ;;  %v13821_v50 = vpop.f32.mrb[10].mxu1 }
 0x447   :  { %4427 = vst [vmem:[#allocation3 + $0xf8] sm:$0xff] %v4385_v49  ;;  %v4345_v40 = vmax.f32 %v4303_v24, 0.0  ;;  %v16484_v33 = vadd.f32 %v13821_v50, %v18751_v46  ;;  %v4165_v22 = vpop.f32.mrb[11].mxu1  ;;  %v4525_v43 = vld [vmem:[#allocation3 + $0xce] sm:$0xff]  ;;  %v4526_v31 = vld [vmem:[#allocation3 + $0xd6] sm:$0xff] }
 0x448   :  { %4426 = vst [vmem:[#allocation3 + $0xf0] sm:$0xff] %v4384_v44  ;;  %v4344_v42 = vmax.f32 %v4302_v2, 0.0  ;;  %v16485_v58 = vadd.f32 %v4165_v22, %v18753_v38  ;;  %13905 = vmatprep.mubr.f32.mxu0 %v4525_v43  ;;  %v19955_v44 = vld [vmem:[#allocation29_spill] sm:$0xff] }
 0x449   :  { %v4387_v6 = vmul.f32 %v4345_v40, %v19953_v37  ;;  %v4305_v0 = vadd.f32 %v16484_v33, %v18818_v51  ;;  %13906 = vmatmul.mubr.f32.gmra.mrb[150].mxu0 %v4526_v31  ;;  %v19956_v40 = vld [vmem:[#allocation28_spill] sm:$0xff] }
 0x44a   :  { %v4386_v16 = vmul.f32 %v4344_v42, %v19954_v20  ;;  %v4304_v62 = vadd.f32 %v16485_v58, %v18818_v51  ;;  %v13824_v54 = vpop.f32.mrb[12].mxu1 }
 0x44b   :  { %4429 = vst [vmem:[#allocation3 + $0x108] sm:$0xff] %v4387_v6  ;;  %v4347_v46 = vmax.f32 %v4305_v0, 0.0  ;;  %v16486_v26 = vadd.f32 %v13824_v54, %v18755_v60  ;;  %v4175_v35 = vpop.f32.mrb[13].mxu1  ;;  %v4527_v17 = vld [vmem:[#allocation3 + $0xde] sm:$0xff]  ;;  %v4528_v49 = vld [vmem:[#allocation3 + $0xe6] sm:$0xff] }
 0x44c   :  { %4428 = vst [vmem:[#allocation3 + $0x100] sm:$0xff] %v4386_v16  ;;  %v4346_v38 = vmax.f32 %v4304_v62, 0.0  ;;  %v16487_v24 = vadd.f32 %v4175_v35, %v18757_v11  ;;  %13908 = vmatprep.mubr.f32.mxu0 %v4527_v17  ;;  %v19957_v16 = vld [vmem:[#allocation31_spill] sm:$0xff] }
 0x44d   :  { %v4389_v2 = vmul.f32 %v4347_v46, %v19955_v44  ;;  %v4307_v50 = vadd.f32 %v16486_v26, %v18818_v51  ;;  %13909 = vmatmul.mubr.f32.gmra.mrb[152].mxu0 %v4528_v49  ;;  %v19958_v46 = vld [vmem:[#allocation30_spill] sm:$0xff] }
 0x44e   :  { %v4388_v33 = vmul.f32 %v4346_v38, %v19956_v40  ;;  %v4306_v22 = vadd.f32 %v16487_v24, %v18818_v51  ;;  %v13827_v43 = vpop.f32.mrb[14].mxu1 }
 0x44f   :  { %4431 = vst [vmem:[#allocation3 + $0x118] sm:$0xff] %v4389_v2  ;;  %v4349_v60 = vmax.f32 %v4307_v50, 0.0  ;;  %v16488_v31 = vadd.f32 %v13827_v43, %v18759_v30  ;;  %v4185_v42 = vpop.f32.mrb[15].mxu1  ;;  %v4529_v58 = vld [vmem:[#allocation3 + $0xee] sm:$0xff]  ;;  %v4530_v6 = vld [vmem:[#allocation3 + $0xf6] sm:$0xff] }
 0x450   :  { %4430 = vst [vmem:[#allocation3 + $0x110] sm:$0xff] %v4388_v33  ;;  %v4348_v11 = vmax.f32 %v4306_v22, 0.0  ;;  %v16489_v0 = vadd.f32 %v4185_v42, %v18761_v25  ;;  %13911 = vmatprep.mubr.f32.mxu0 %v4529_v58  ;;  %v19959_v33 = vld [vmem:[#allocation33_spill] sm:$0xff] }
 0x451   :  { %v4391_v62 = vmul.f32 %v4349_v60, %v19957_v16  ;;  %v4309_v54 = vadd.f32 %v16488_v31, %v18818_v51  ;;  %13912 = vmatmul.mubr.f32.gmra.mrb[154].mxu0 %v4530_v6  ;;  %v19960_v60 = vld [vmem:[#allocation32_spill] sm:$0xff] }
 0x452   :  { %v4390_v26 = vmul.f32 %v4348_v11, %v19958_v46  ;;  %v4308_v35 = vadd.f32 %v16489_v0, %v18818_v51  ;;  %v13830_v17 = vpop.f32.mrb[16].mxu1 }
 0x453   :  { %4433 = vst [vmem:[#allocation3 + $0x128] sm:$0xff] %v4391_v62  ;;  %v4351_v30 = vmax.f32 %v4309_v54, 0.0  ;;  %v16490_v49 = vadd.f32 %v13830_v17, %v18763_v55  ;;  %v4195_v38 = vpop.f32.mrb[17].mxu1  ;;  %v4531_v24 = vld [vmem:[#allocation3 + $0xfe] sm:$0xff]  ;;  %v4532_v2 = vld [vmem:[#allocation3 + $0x106] sm:$0xff] }
 0x454   :  { %4432 = vst [vmem:[#allocation3 + $0x120] sm:$0xff] %v4390_v26  ;;  %v4350_v25 = vmax.f32 %v4308_v35, 0.0  ;;  %v16491_v50 = vadd.f32 %v4195_v38, %v18765_v48  ;;  %13914 = vmatprep.mubr.f32.mxu0 %v4531_v24  ;;  %v19961_v26 = vld [vmem:[#allocation35_spill] sm:$0xff]  ;;  %v19041_v46 = vld [vmem:[#allocation3 + $0x107] sm:$0xff] }
 0x455   :  { %v4393_v22 = vmul.f32 %v4351_v30, %v19959_v33  ;;  %v4311_v43 = vadd.f32 %v16490_v49, %v18818_v51  ;;  %13915 = vmatmul.mubr.f32.gmra.mrb[156].mxu0 %v4532_v2  ;;  %v19962_v30 = vld [vmem:[#allocation34_spill] sm:$0xff]  ;;  %v19038_v33 = vld [vmem:[#allocation3 + $0xff] sm:$0xff] }
 0x456   :  { %v4392_v31 = vmul.f32 %v4350_v25, %v19960_v60  ;;  %v4310_v42 = vadd.f32 %v16491_v50, %v18818_v51  ;;  %v13833_v58 = vpop.f32.mrb[18].mxu1  ;;  %v19035_v60 = vld [vmem:[#allocation3 + $0xf7] sm:$0xff] }
 0x457   :  { %4435 = vst [vmem:[#allocation3 + $0x138] sm:$0xff] %v4393_v22  ;;  %v4353_v55 = vmax.f32 %v4311_v43, 0.0  ;;  %v16492_v6 = vadd.f32 %v13833_v58, %v18767_v1  ;;  %v4205_v11 = vpop.f32.mrb[19].mxu1  ;;  %v4533_v0 = vld [vmem:[#allocation3 + $0x10e] sm:$0xff]  ;;  %v4534_v62 = vld [vmem:[#allocation3 + $0x116] sm:$0xff] }
 0x458   :  { %4434 = vst [vmem:[#allocation3 + $0x130] sm:$0xff] %v4392_v31  ;;  %v4352_v48 = vmax.f32 %v4310_v42, 0.0  ;;  %v16493_v54 = vadd.f32 %v4205_v11, %v18769_v61  ;;  %13917 = vmatprep.mubr.f32.mxu0 %v4533_v0  ;;  %v19963_v31 = vld [vmem:[#allocation37_spill] sm:$0xff]  ;;  %v19047_v40 = vld [vmem:[#allocation3 + $0x117] sm:$0xff] }
 0x459   :  { %v4395_v35 = vmul.f32 %v4353_v55, %v19961_v26  ;;  %v4313_v17 = vadd.f32 %v16492_v6, %v18818_v51  ;;  %13918 = vmatmul.mubr.f32.gmra.mrb[158].mxu0 %v4534_v62  ;;  %v19964_v55 = vld [vmem:[#allocation36_spill] sm:$0xff]  ;;  %v19032_v26 = vld [vmem:[#allocation3 + $0xef] sm:$0xff] }
 0x45a   :  { %v4394_v49 = vmul.f32 %v4352_v48, %v19962_v30  ;;  %v4312_v38 = vadd.f32 %v16493_v54, %v18818_v51  ;;  %v13836_v24 = vpop.f32.mrb[20].mxu1  ;;  %v19965_v54 = vld [vmem:[#allocation39_spill] sm:$0xff]  ;;  %v19029_v30 = vld [vmem:[#allocation3 + $0xe7] sm:$0xff]  ;;  %v19044_v16 = vld [vmem:[#allocation3 + $0x10f] sm:$0xff] }
 0x45b   :  { %4437 = vst [vmem:[#allocation3 + $0x148] sm:$0xff] %v4395_v35  ;;  %v4355_v1 = vmax.f32 %v4313_v17, 0.0  ;;  %v16494_v2 = vadd.f32 %v13836_v24, %v18771_v36  ;;  %v4215_v25 = vpop.f32.mrb[21].mxu1  ;;  %v4535_v50 = vld [vmem:[#allocation3 + $0x11e] sm:$0xff]  ;;  %v4536_v22 = vld [vmem:[#allocation3 + $0x126] sm:$0xff] }
 0x45c   :  { %4436 = vst [vmem:[#allocation3 + $0x140] sm:$0xff] %v4394_v49  ;;  %v4354_v61 = vmax.f32 %v4312_v38, 0.0  ;;  %v16495_v43 = vadd.f32 %v4215_v25, %v18773_v4  ;;  %13920 = vmatprep.mubr.f32.mxu0 %v4535_v50  ;;  %v19966_v4 = vld [vmem:[#allocation38_spill] sm:$0xff]  ;;  %v5156_v25 = vld [vmem:[#allocation9 + $0x598] sm:$0xff]  ;;  %v19053_v20 = vld [vmem:[#allocation3 + $0x127] sm:$0xff] }
 0x45d   :  { %v4397_v42 = vmul.f32 %v4355_v1, %v19963_v31  ;;  %v4315_v58 = vadd.f32 %v16494_v2, %v18818_v51  ;;  %13921 = vmatmul.mubr.f32.gmra.mrb[160].mxu0 %v4536_v22  ;;  %v4442_v1 = vld [vmem:[#allocation3 + $0xd] sm:$0xff]  ;;  %v4443_v50 = vld [vmem:[#allocation3 + $0x15] sm:$0xff]  ;;  %v19026_v31 = vld [vmem:[#allocation3 + $0xdf] sm:$0xff] }
 0x45e   :  { %v4396_v6 = vmul.f32 %v4354_v61, %v19964_v55  ;;  %v4314_v11 = vadd.f32 %v16495_v43, %v18818_v51  ;;  %v5155_v2 = vld [vmem:[#allocation9 + $0x590] sm:$0xff]  ;;  %v5157_v61 = vld [vmem:[#allocation9 + $0x5a0] sm:$0xff]  ;;  %v5158_v43 = vld [vmem:[#allocation9 + $0x5a8] sm:$0xff] }
 0x45f   :  { %4439 = vst [vmem:[#allocation3 + $0x158] sm:$0xff] %v4397_v42  ;;  %v4357_v0 = vmax.f32 %v4315_v58, 0.0  ;;  %v4537_v36 = vld [vmem:[#allocation3 + $0x12e] sm:$0xff]  ;;  %v4538_v62 = vld [vmem:[#allocation3 + $0x136] sm:$0xff]  ;;  %v15930_v22 = vpack.c.bf16 %v5156_v25, %v5155_v2  ;;  %v15934_v58 = vpack.c.bf16 %v5158_v43, %v5157_v61  ;;  %v19050_v44 = vld [vmem:[#allocation3 + $0x11f] sm:$0xff] }
 0x460   :  { %4438 = vst [vmem:[#allocation3 + $0x150] sm:$0xff] %v4396_v6  ;;  %v4356_v48 = vmax.f32 %v4314_v11, 0.0  ;;  %13923 = vmatprep.mubr.f32.mxu0 %v4537_v36  ;;  %v4444_v42 = vld [vmem:[#allocation3 + $0x1d] sm:$0xff]  ;;  %v4445_v6 = vld [vmem:[#allocation3 + $0x25] sm:$0xff]  ;;  %v5159_v11 = vld [vmem:[#allocation9 + $0x5b0] sm:$0xff] }
 0x461   :  { %v4399_v35 = vmul.f32 %v4357_v0, %v19965_v54  ;;  %13924 = vmatmul.mubr.f32.gmra.mrb[162].mxu0 %v4538_v62  ;;  %v5160_v0 = vld [vmem:[#allocation9 + $0x5b8] sm:$0xff]  ;;  %v4446_v36 = vld [vmem:[#allocation3 + $0x2d] sm:$0xff] }
 0x462   :  { %v4398_v17 = vmul.f32 %v4356_v48, %v19966_v4  ;;  %v15938_v62 = vpack.c.bf16 %v5160_v0, %v5159_v11  ;;  %v4447_v48 = vld [vmem:[#allocation3 + $0x35] sm:$0xff]  ;;  %v4452_v61 = vld [vmem:[#allocation3 + $0x5d] sm:$0xff]  ;;  %v4454_v11 = vld [vmem:[#allocation3 + $0x6d] sm:$0xff] }
 0x463   :  { %4441 = vst [vmem:[#allocation3 + $0x168] sm:$0xff] %v4399_v35  ;;  %v4539_v49 = vld [vmem:[#allocation3 + $0x13e] sm:$0xff]  ;;  %v4540_v38 = vld [vmem:[#allocation3 + $0x146] sm:$0xff]  ;;  %v4451_v25 = vld [vmem:[#allocation3 + $0x55] sm:$0xff] }
 0x464   :  { %4440 = vst [vmem:[#allocation3 + $0x160] sm:$0xff] %v4398_v17  ;;  %13926 = vmatprep.mubr.f32.mxu0 %v4539_v49  ;;  %v5161_v35 = vld [vmem:[#allocation9 + $0x5c0] sm:$0xff]  ;;  %v5162_v17 = vld [vmem:[#allocation9 + $0x5c8] sm:$0xff]  ;;  %v19023_v55 = vld [vmem:[#allocation3 + $0xd7] sm:$0xff] }
 0x465   :  { %13927 = vmatmul.mubr.f32.gmra.mrb[164].mxu0 %v4540_v38  ;;  %v4448_v49 = vld [vmem:[#allocation3 + $0x3d] sm:$0xff]  ;;  %v4449_v38 = vld [vmem:[#allocation3 + $0x45] sm:$0xff]  ;;  %v19020_v54 = vld [vmem:[#allocation3 + $0xcf] sm:$0xff] }
 0x466   :  { %v19017_v4 = vld [vmem:[#allocation3 + $0xc7] sm:$0xff]  ;;  %v19056_v37 = vld [vmem:[#allocation3 + $0x12f] sm:$0xff]  ;;  %v19059_v19 = vld [vmem:[#allocation3 + $0x137] sm:$0xff] }
 0x467   :  { %v4541_v24 = vld [vmem:[#allocation3 + $0x14e] sm:$0xff]  ;;  %v4542_v51 = vld [vmem:[#allocation3 + $0x156] sm:$0xff]  ;;  %v19062_v41 = vld [vmem:[#allocation3 + $0x13f] sm:$0xff] }
 0x468   :  { %13929 = vmatprep.mubr.f32.mxu0 %v4541_v24  ;;  %v5163_v24 = vld [vmem:[#allocation9 + $0x5d0] sm:$0xff]  ;;  %v19065_v28 = vld [vmem:[#allocation3 + $0x147] sm:$0xff] }
 0x469   :  { %13930 = vmatmul.mubr.f32.gmra.mrb[166].mxu0 %v4542_v51  ;;  %v5164_v51 = vld [vmem:[#allocation9 + $0x5d8] sm:$0xff]  ;;  %v19068_v14 = vld [vmem:[#allocation3 + $0x14f] sm:$0xff] }
 0x46a   :  { %13964 = vmatprep.mubr.f32.mxu0 %v4442_v1  ;;  %v4450_v1 = vld [vmem:[#allocation3 + $0x4d] sm:$0xff]  ;;  %v15946_v2 = vpack.c.bf16 %v5164_v51, %v5163_v24  ;;  %v4460_v24 = vld [vmem:[#allocation3 + $0x9d] sm:$0xff]  ;;  %v4461_v51 = vld [vmem:[#allocation3 + $0xa5] sm:$0xff] }
 0x46b   :  { %v19071_v52 = vld [vmem:[#allocation3 + $0x157] sm:$0xff] }
 0x46d   :  { %13965 = vmatmul.mubr.f32.vlgmr.msra.gmra.mrb[126].mxu0 %v4443_v50  ;;  %v5165_v50 = vld [vmem:[#allocation9 + $0x5e0] sm:$0xff] }
 0x46e   :  { %15929 = vmatpush3.bf16.msra.mxu0 %v18815_v53  ;;  %13967 = vmatprep.mubr.f32.mxu0 %v4444_v42  ;;  %v15942_v53 = vpack.c.bf16 %v5162_v17, %v5161_v35  ;;  %v4453_v42 = vld [vmem:[#allocation3 + $0x65] sm:$0xff]  ;;  %v4456_v35 = vld [vmem:[#allocation3 + $0x7d] sm:$0xff] }
 0x46f   :  { %15931 = vmatprep.subr.bf16.mxu0 %v15930_v22 }
 0x471   :  { %13968 = vmatmul.mubr.f32.gmra.mrb[128].mxu0 %v4445_v6  ;;  %v5168_v6 = vld [vmem:[#allocation9 + $0x5f8] sm:$0xff] }
 0x472   :  { %13970 = vmatprep.mubr.f32.mxu0 %v4446_v36  ;;  %15933 = vmatpush3.bf16.msra.mxu0 %v15930_v22  ;;  %v5166_v22 = vld [vmem:[#allocation9 + $0x5e8] sm:$0xff]  ;;  %v4455_v36 = vld [vmem:[#allocation3 + $0x75] sm:$0xff] }
 0x473   :  { %15935 = vmatprep.subr.bf16.mxu0 %v15934_v58  ;;  %v15950_v43 = vpack.c.bf16 %v5166_v22, %v5165_v50  ;;  %v4465_v50 = vld [vmem:[#allocation3 + $0xc5] sm:$0xff]  ;;  %v4466_v22 = vld [vmem:[#allocation3 + $0xcd] sm:$0xff] }
 0x475   :  { %13971 = vmatmul.mubr.f32.gmra.mrb[130].mxu0 %v4447_v48  ;;  %v5530_v48 = vld [vmem:[#allocation9 + $0x608] sm:$0xff] }
 0x476   :  { %13973 = vmatprep.mubr.f32.mxu0 %v4448_v49  ;;  %15937 = vmatpush3.bf16.msra.mxu0 %v15934_v58  ;;  %v5167_v58 = vld [vmem:[#allocation9 + $0x5f0] sm:$0xff]  ;;  %v4457_v49 = vld [vmem:[#allocation3 + $0x85] sm:$0xff] }
 0x477   :  { %15939 = vmatprep.subr.bf16.mxu0 %v15938_v62  ;;  %v15954_v0 = vpack.c.bf16 %v5168_v6, %v5167_v58  ;;  %v4470_v58 = vld [vmem:[#allocation3 + $0xed] sm:$0xff]  ;;  %v4471_v6 = vld [vmem:[#allocation3 + $0xf5] sm:$0xff] }
 0x479   :  { %13974 = vmatmul.mubr.f32.gmra.mrb[132].mxu0 %v4449_v38  ;;  %v4459_v38 = vld [vmem:[#allocation3 + $0x95] sm:$0xff] }
 0x47a   :  { %13976 = vmatprep.mubr.f32.mxu0 %v4450_v1  ;;  %15941 = vmatpush3.bf16.msra.mxu0 %v15938_v62  ;;  %v5529_v62 = vld [vmem:[#allocation9 + $0x600] sm:$0xff]  ;;  %v4462_v1 = vld [vmem:[#allocation3 + $0xad] sm:$0xff] }
 0x47b   :  { %15943 = vmatprep.subr.bf16.mxu0 %v15942_v53  ;;  %v18947_v17 = vpack.c.bf16 %v5530_v48, %v5529_v62  ;;  %v4475_v62 = vld [vmem:[#allocation3 + $0x115] sm:$0xff]  ;;  %v4476_v48 = vld [vmem:[#allocation3 + $0x11d] sm:$0xff] }
 0x47d   :  { %13977 = vmatmul.mubr.f32.gmra.mrb[134].mxu0 %v4451_v25  ;;  %v4464_v25 = vld [vmem:[#allocation3 + $0xbd] sm:$0xff] }
 0x47e   :  { %13979 = vmatprep.mubr.f32.mxu0 %v4452_v61  ;;  %15945 = vmatpush3.bf16.msra.mxu0 %v15942_v53  ;;  %v4458_v53 = vld [vmem:[#allocation3 + $0x8d] sm:$0xff]  ;;  %v4467_v61 = vld [vmem:[#allocation3 + $0xd5] sm:$0xff] }
 0x47f   :  { %15947 = vmatprep.subr.bf16.mxu0 %v15946_v2 }
 0x481   :  { %13980 = vmatmul.mubr.f32.gmra.mrb[136].mxu0 %v4453_v42  ;;  %v4469_v42 = vld [vmem:[#allocation3 + $0xe5] sm:$0xff] }
 0x482   :  { %13982 = vmatprep.mubr.f32.mxu0 %v4454_v11  ;;  %15949 = vmatpush3.bf16.msra.mxu0 %v15946_v2  ;;  %v4463_v2 = vld [vmem:[#allocation3 + $0xb5] sm:$0xff]  ;;  %v4472_v11 = vld [vmem:[#allocation3 + $0xfd] sm:$0xff] }
 0x483   :  { %15951 = vmatprep.subr.bf16.mxu0 %v15950_v43 }
 0x485   :  { %13983 = vmatmul.mubr.f32.gmra.mrb[138].mxu0 %v4455_v36  ;;  %v4474_v36 = vld [vmem:[#allocation3 + $0x10d] sm:$0xff] }
 0x486   :  { %13985 = vmatprep.mubr.f32.mxu0 %v4456_v35  ;;  %15953 = vmatpush3.bf16.msra.mxu0 %v15950_v43  ;;  %v4468_v43 = vld [vmem:[#allocation3 + $0xdd] sm:$0xff]  ;;  %v4477_v35 = vld [vmem:[#allocation3 + $0x125] sm:$0xff] }
 0x487   :  { %15955 = vmatprep.subr.bf16.mxu0 %v15954_v0 }
 0x489   :  { %13986 = vmatmul.mubr.f32.gmra.mrb[140].mxu0 %v4457_v49  ;;  %v4478_v49 = vld [vmem:[#allocation3 + $0x12d] sm:$0xff] }
 0x48a   :  { %13988 = vmatprep.mubr.f32.mxu0 %v4458_v53  ;;  %15957 = vmatpush3.bf16.msra.mxu0 %v15954_v0  ;;  %v4473_v0 = vld [vmem:[#allocation3 + $0x105] sm:$0xff]  ;;  %v4479_v53 = vld [vmem:[#allocation3 + $0x135] sm:$0xff] }
 0x48b   :  { %15959 = vmatprep.subr.bf16.mxu0 %v18947_v17 }
 0x48d   :  { %13989 = vmatmul.mubr.f32.gmra.mrb[142].mxu0 %v4459_v38  ;;  %v4480_v38 = vld [vmem:[#allocation3 + $0x13d] sm:$0xff] }
 0x48e   :  { %13991 = vmatprep.mubr.f32.mxu0 %v4460_v24  ;;  %v4481_v24 = vld [vmem:[#allocation3 + $0x145] sm:$0xff] }
 0x491   :  { %13992 = vmatmul.mubr.f32.gmra.mrb[144].mxu0 %v4461_v51  ;;  %v4482_v51 = vld [vmem:[#allocation3 + $0x14d] sm:$0xff] }
 0x492   :  { %13994 = vmatprep.mubr.f32.mxu0 %v4462_v1  ;;  %v5110_v1 = vld [vmem:[#allocation3 + $0xf] sm:$0xff] }
 0x495   :  { %13995 = vmatmul.mubr.f32.gmra.mrb[146].mxu0 %v4463_v2  ;;  %v4483_v2 = vld [vmem:[#allocation3 + $0x155] sm:$0xff] }
 0x496   :  { %13997 = vmatprep.mubr.f32.mxu0 %v4464_v25  ;;  %v5531_v25 = vld [vmem:[#allocation9 + $0x610] sm:$0xff] }
 0x499   :  { %13998 = vmatmul.mubr.f32.gmra.mrb[148].mxu0 %v4465_v50  ;;  %v5532_v50 = vld [vmem:[#allocation9 + $0x618] sm:$0xff] }
 0x49a   :  { %14000 = vmatprep.mubr.f32.mxu0 %v4466_v22  ;;  %v5111_v22 = vld [vmem:[#allocation3 + $0x17] sm:$0xff] }
 0x49d   :  { %14001 = vmatmul.mubr.f32.gmra.mrb[150].mxu0 %v4467_v61  ;;  %v15962_v61 = vpack.c.bf16 %v5532_v50, %v5531_v25  ;;  %v18972_v50 = vld [vmem:[#allocation3 + $0x57] sm:$0xff] }
 0x49e   :  { %14003 = vmatprep.mubr.f32.mxu0 %v4468_v43  ;;  %v5533_v43 = vld [vmem:[#allocation9 + $0x620] sm:$0xff] }
 0x4a1   :  { %14004 = vmatmul.mubr.f32.gmra.mrb[152].mxu0 %v4469_v42  ;;  %v5534_v42 = vld [vmem:[#allocation9 + $0x628] sm:$0xff] }
 0x4a2   :  { %14006 = vmatprep.mubr.f32.mxu0 %v4470_v58  ;;  %v18950_v58 = vld [vmem:[#allocation3 + $0x1f] sm:$0xff] }
 0x4a5   :  { %14007 = vmatmul.mubr.f32.gmra.mrb[154].mxu0 %v4471_v6  ;;  %v15966_v6 = vpack.c.bf16 %v5534_v42, %v5533_v43  ;;  %v18975_v43 = vld [vmem:[#allocation3 + $0x5f] sm:$0xff] }
 0x4a6   :  { %14009 = vmatprep.mubr.f32.mxu0 %v4472_v11  ;;  %v18954_v11 = vld [vmem:[#allocation3 + $0x27] sm:$0xff] }
 0x4a9   :  { %14010 = vmatmul.mubr.f32.gmra.mrb[156].mxu0 %v4473_v0  ;;  %v5535_v0 = vld [vmem:[#allocation9 + $0x630] sm:$0xff] }
 0x4aa   :  { %14012 = vmatprep.mubr.f32.mxu0 %v4474_v36  ;;  %v5536_v36 = vld [vmem:[#allocation9 + $0x638] sm:$0xff] }
 0x4ad   :  { %14013 = vmatmul.mubr.f32.gmra.mrb[158].mxu0 %v4475_v62  ;;  %v18957_v62 = vld [vmem:[#allocation3 + $0x2f] sm:$0xff] }
 0x4ae   :  { %14015 = vmatprep.mubr.f32.mxu0 %v4476_v48  ;;  %v15970_v48 = vpack.c.bf16 %v5536_v36, %v5535_v0  ;;  %v5543_v0 = vld [vmem:[#allocation9 + $0x670] sm:$0xff]  ;;  %v5544_v36 = vld [vmem:[#allocation9 + $0x678] sm:$0xff] }
 0x4b1   :  { %14016 = vmatmul.mubr.f32.gmra.mrb[160].mxu0 %v4477_v35  ;;  %v18960_v35 = vld [vmem:[#allocation3 + $0x37] sm:$0xff] }
 0x4b2   :  { %14018 = vmatprep.mubr.f32.mxu0 %v4478_v49  ;;  %v5538_v49 = vld [vmem:[#allocation9 + $0x648] sm:$0xff] }
 0x4b5   :  { %14019 = vmatmul.mubr.f32.gmra.mrb[162].mxu0 %v4479_v53  ;;  %v18963_v53 = vld [vmem:[#allocation3 + $0x3f] sm:$0xff] }
 0x4b6   :  { %14021 = vmatprep.mubr.f32.mxu0 %v4480_v38 }
 0x4b9   :  { %14022 = vmatmul.mubr.f32.gmra.mrb[164].mxu0 %v4481_v24  ;;  %v18966_v24 = vld [vmem:[#allocation3 + $0x47] sm:$0xff] }
 0x4ba   :  { %14024 = vmatprep.mubr.f32.mxu0 %v4482_v51  ;;  %v5539_v51 = vld [vmem:[#allocation9 + $0x650] sm:$0xff] }
 0x4bd   :  { %14025 = vmatmul.mubr.f32.gmra.mrb[166].mxu0 %v4483_v2  ;;  %v18969_v2 = vld [vmem:[#allocation3 + $0x4f] sm:$0xff] }
 0x4be   :  { %14059 = vmatprep.mubr.f32.mxu0 %v5110_v1  ;;  %v5540_v1 = vld [vmem:[#allocation9 + $0x658] sm:$0xff] }
 0x4bf   :  { %v15978_v25 = vpack.c.bf16 %v5540_v1, %v5539_v51  ;;  %v5905_v51 = vld [vmem:[#allocation9 + $0x680] sm:$0xff]  ;;  %v5906_v1 = vld [vmem:[#allocation9 + $0x688] sm:$0xff] }
 0x4c1   :  { %14060 = vmatmul.mubr.f32.vlgmr.msra.gmra.mrb[126].mxu0 %v5111_v22  ;;  %v5541_v22 = vld [vmem:[#allocation9 + $0x660] sm:$0xff] }
 0x4c2   :  { %15961 = vmatpush3.bf16.msra.mxu0 %v18947_v17  ;;  %14062 = vmatprep.mubr.f32.mxu0 %v18950_v58  ;;  %v5537_v17 = vld [vmem:[#allocation9 + $0x640] sm:$0xff] }
 0x4c3   :  { %15963 = vmatprep.subr.bf16.mxu0 %v15962_v61  ;;  %v15974_v38 = vpack.c.bf16 %v5538_v49, %v5537_v17  ;;  %v15986_v17 = vpack.c.bf16 %v5544_v36, %v5543_v0  ;;  %v18984_v49 = vld [vmem:[#allocation3 + $0x77] sm:$0xff]  ;;  %v19002_v36 = vld [vmem:[#allocation3 + $0x9f] sm:$0xff] }
 0x4c4   :  { %v18999_v0 = vld [vmem:[#allocation3 + $0x97] sm:$0xff] }
 0x4c5   :  { %14063 = vmatmul.mubr.f32.gmra.mrb[128].mxu0 %v18954_v11 }
 0x4c6   :  { %14065 = vmatprep.mubr.f32.mxu0 %v18957_v62  ;;  %15965 = vmatpush3.bf16.msra.mxu0 %v15962_v61  ;;  %v5542_v61 = vld [vmem:[#allocation9 + $0x668] sm:$0xff] }
 0x4c7   :  { %15967 = vmatprep.subr.bf16.mxu0 %v15966_v6  ;;  %v15982_v42 = vpack.c.bf16 %v5542_v61, %v5541_v22  ;;  %v18990_v22 = vpack.c.bf16 %v5906_v1, %v5905_v51  ;;  %v18992_v61 = vld [vmem:[#allocation3 + $0x87] sm:$0xff]  ;;  %v19008_v51 = vld [vmem:[#allocation3 + $0xaf] sm:$0xff]  ;;  %v19011_v1 = vld [vmem:[#allocation3 + $0xb7] sm:$0xff] }
 0x4c9   :  { %14066 = vmatmul.mubr.f32.gmra.mrb[130].mxu0 %v18960_v35 }
 0x4ca   :  { %14068 = vmatprep.mubr.f32.mxu0 %v18963_v53  ;;  %15969 = vmatpush3.bf16.msra.mxu0 %v15966_v6  ;;  %v18978_v6 = vld [vmem:[#allocation3 + $0x67] sm:$0xff] }
 0x4cb   :  { %15971 = vmatprep.subr.bf16.mxu0 %v15970_v48 }
 0x4cd   :  { %14069 = vmatmul.mubr.f32.gmra.mrb[132].mxu0 %v18966_v24 }
 0x4ce   :  { %14071 = vmatprep.mubr.f32.mxu0 %v18969_v2  ;;  %15973 = vmatpush3.bf16.msra.mxu0 %v15970_v48  ;;  %v18981_v48 = vld [vmem:[#allocation3 + $0x6f] sm:$0xff] }
 0x4cf   :  { %15975 = vmatprep.subr.bf16.mxu0 %v15974_v38 }
 0x4d1   :  { %14072 = vmatmul.mubr.f32.gmra.mrb[134].mxu0 %v18972_v50 }
 0x4d2   :  { %14074 = vmatprep.mubr.f32.mxu0 %v18975_v43  ;;  %15977 = vmatpush3.bf16.msra.mxu0 %v15974_v38  ;;  %v18987_v38 = vld [vmem:[#allocation3 + $0x7f] sm:$0xff] }
 0x4d3   :  { %15979 = vmatprep.subr.bf16.mxu0 %v15978_v25 }
 0x4d5   :  { %14075 = vmatmul.mubr.f32.gmra.mrb[136].mxu0 %v18978_v6 }
 0x4d6   :  { %14077 = vmatprep.mubr.f32.mxu0 %v18981_v48  ;;  %15981 = vmatpush3.bf16.msra.mxu0 %v15978_v25  ;;  %v18995_v25 = vld [vmem:[#allocation3 + $0x8f] sm:$0xff] }
 0x4d7   :  { %15983 = vmatprep.subr.bf16.mxu0 %v15982_v42 }
 0x4d9   :  { %14078 = vmatmul.mubr.f32.gmra.mrb[138].mxu0 %v18984_v49 }
 0x4da   :  { %14080 = vmatprep.mubr.f32.mxu0 %v18987_v38  ;;  %15985 = vmatpush3.bf16.msra.mxu0 %v15982_v42  ;;  %v19005_v42 = vld [vmem:[#allocation3 + $0xa7] sm:$0xff] }
 0x4db   :  { %15987 = vmatprep.subr.bf16.mxu0 %v15986_v17 }
 0x4dd   :  { %14081 = vmatmul.mubr.f32.gmra.mrb[140].mxu0 %v18992_v61 }
 0x4de   :  { %14083 = vmatprep.mubr.f32.mxu0 %v18995_v25  ;;  %15989 = vmatpush3.bf16.msra.mxu0 %v15986_v17  ;;  %v19014_v17 = vld [vmem:[#allocation3 + $0xbf] sm:$0xff] }
 0x4df   :  { %15991 = vmatprep.subr.bf16.mxu0 %v18990_v22 }
 0x4e1   :  { %14084 = vmatmul.mubr.f32.gmra.mrb[142].mxu0 %v18999_v0 }
 0x4e2   :  { %14086 = vmatprep.mubr.f32.mxu0 %v19002_v36 }
 0x4e5   :  { %14087 = vmatmul.mubr.f32.gmra.mrb[144].mxu0 %v19005_v42 }
 0x4e6   :  { %14089 = vmatprep.mubr.f32.mxu0 %v19008_v51 }
 0x4e9   :  { %14090 = vmatmul.mubr.f32.gmra.mrb[146].mxu0 %v19011_v1 }
 0x4ea   :  { %14092 = vmatprep.mubr.f32.mxu0 %v19014_v17 }
 0x4ed   :  { %14093 = vmatmul.mubr.f32.gmra.mrb[148].mxu0 %v19017_v4 }
 0x4ee   :  { %14095 = vmatprep.mubr.f32.mxu0 %v19020_v54 }
 0x4f1   :  { %14096 = vmatmul.mubr.f32.gmra.mrb[150].mxu0 %v19023_v55 }
 0x4f2   :  { %14098 = vmatprep.mubr.f32.mxu0 %v19026_v31 }
 0x4f5   :  { %14099 = vmatmul.mubr.f32.gmra.mrb[152].mxu0 %v19029_v30 }
 0x4f6   :  { %14101 = vmatprep.mubr.f32.mxu0 %v19032_v26 }
 0x4f9   :  { %14102 = vmatmul.mubr.f32.gmra.mrb[154].mxu0 %v19035_v60 }
 0x4fa   :  { %14104 = vmatprep.mubr.f32.mxu0 %v19038_v33 }
 0x4fd   :  { %14105 = vmatmul.mubr.f32.gmra.mrb[156].mxu0 %v19041_v46 }
 0x4fe   :  { %14107 = vmatprep.mubr.f32.mxu0 %v19044_v16 }
 0x501   :  { %14108 = vmatmul.mubr.f32.gmra.mrb[158].mxu0 %v19047_v40 }
 0x502   :  { %14110 = vmatprep.mubr.f32.mxu0 %v19050_v44 }
 0x505   :  { %14111 = vmatmul.mubr.f32.gmra.mrb[160].mxu0 %v19053_v20 }
 0x506   :  { %14113 = vmatprep.mubr.f32.mxu0 %v19056_v37 }
 0x509   :  { %14114 = vmatmul.mubr.f32.gmra.mrb[162].mxu0 %v19059_v19 }
 0x50a   :  { %14116 = vmatprep.mubr.f32.mxu0 %v19062_v41 }
 0x50d   :  { %14117 = vmatmul.mubr.f32.gmra.mrb[164].mxu0 %v19065_v28 }
 0x50e   :  { %14119 = vmatprep.mubr.f32.mxu0 %v19068_v14 }
 0x511   :  { %14120 = vmatmul.mubr.f32.gmra.mrb[166].mxu0 %v19071_v52 }
 0x512   :  { %14154 = vmatprep.mubr.f32.mxu0 %v18950_v58  ;;  %v16002_v58 = vpack.c.bf16 %v5912_v47, %v5911_v3  ;;  %v5918_v47 = vld [vmem:[#allocation9 + $0x6e8] sm:$0xff] }
 0x515   :  { %14155 = vmatmul.mubr.f32.vlgmr.msra.gmra.mrb[126].mxu0 %v18954_v11  ;;  %v16006_v11 = vpack.c.bf16 %v5914_v10, %v5913_v5  ;;  %v5874_v5 = vld [vmem:[#allocation3 + $0x80] sm:$0xff] }
 0x516   :  { %15993 = vmatpush3.bf16.msra.mxu0 %v18990_v22  ;;  %14157 = vmatprep.mubr.f32.mxu0 %v18957_v62  ;;  %v5915_v62 = vld [vmem:[#allocation9 + $0x6d0] sm:$0xff]  ;;  %v5870_v22 = vld [vmem:[#allocation3 + $0x60] sm:$0xff] }
 0x517   :  { %15995 = vmatprep.subr.bf16.mxu0 %v15994_v13  ;;  %v16010_v56 = vpack.c.bf16 %v5916_v39, %v5915_v62  ;;  %v6657_v62 = vld [vmem:[#allocation9 + $0x780] sm:$0xff]  ;;  %v6658_v39 = vld [vmem:[#allocation9 + $0x788] sm:$0xff] }
 0x519   :  { %14158 = vmatmul.mubr.f32.gmra.mrb[128].mxu0 %v18960_v35  ;;  %v5920_v35 = vld [vmem:[#allocation9 + $0x6f8] sm:$0xff] }
 0x51a   :  { %14160 = vmatprep.mubr.f32.mxu0 %v18963_v53  ;;  %15997 = vmatpush3.bf16.msra.mxu0 %v15994_v13  ;;  %v5917_v13 = vld [vmem:[#allocation9 + $0x6e0] sm:$0xff] }
 0x51b   :  { %15999 = vmatprep.subr.bf16.mxu0 %v15998_v12  ;;  %v16014_v3 = vpack.c.bf16 %v5918_v47, %v5917_v13  ;;  %v19115_v13 = vpack.c.bf16 %v6658_v39, %v6657_v62  ;;  %v5877_v47 = vld [vmem:[#allocation3 + $0x98] sm:$0xff] }
 0x51c   :  { %v19134_v39 = vld [vmem:[#allocation3 + $0x59] sm:$0xff] }
 0x51d   :  { %14161 = vmatmul.mubr.f32.gmra.mrb[130].mxu0 %v18966_v24  ;;  %v6281_v24 = vld [vmem:[#allocation9 + $0x700] sm:$0xff] }
 0x51e   :  { %14163 = vmatprep.mubr.f32.mxu0 %v18969_v2  ;;  %16001 = vmatpush3.bf16.msra.mxu0 %v15998_v12  ;;  %v5919_v12 = vld [vmem:[#allocation9 + $0x6f0] sm:$0xff]  ;;  %v6282_v2 = vld [vmem:[#allocation9 + $0x708] sm:$0xff] }
 0x51f   :  { %16003 = vmatprep.subr.bf16.mxu0 %v16002_v58  ;;  %v16018_v53 = vpack.c.bf16 %v5920_v35, %v5919_v12  ;;  %v5879_v12 = vld [vmem:[#allocation3 + $0xa8] sm:$0xff]  ;;  %v5880_v35 = vld [vmem:[#allocation3 + $0xb0] sm:$0xff] }
 0x521   :  { %14164 = vmatmul.mubr.f32.gmra.mrb[132].mxu0 %v18972_v50  ;;  %v16022_v50 = vpack.c.bf16 %v6282_v2, %v6281_v24  ;;  %v5882_v24 = vld [vmem:[#allocation3 + $0xc0] sm:$0xff]  ;;  %v5883_v2 = vld [vmem:[#allocation3 + $0xc8] sm:$0xff] }
 0x522   :  { %14166 = vmatprep.mubr.f32.mxu0 %v18975_v43  ;;  %16005 = vmatpush3.bf16.msra.mxu0 %v16002_v58  ;;  %v5868_v43 = vld [vmem:[#allocation3 + $0x50] sm:$0xff]  ;;  %v6296_v58 = vld [vmem:[#allocation9 + $0x778] sm:$0xff] }
 0x523   :  { %16007 = vmatprep.subr.bf16.mxu0 %v16006_v11 }
 0x525   :  { %14167 = vmatmul.mubr.f32.gmra.mrb[134].mxu0 %v18978_v6 }
 0x526   :  { %14169 = vmatprep.mubr.f32.mxu0 %v18981_v48  ;;  %16009 = vmatpush3.bf16.msra.mxu0 %v16006_v11  ;;  %v5869_v48 = vld [vmem:[#allocation3 + $0x58] sm:$0xff]  ;;  %v5875_v11 = vld [vmem:[#allocation3 + $0x88] sm:$0xff] }
 0x527   :  { %16011 = vmatprep.subr.bf16.mxu0 %v16010_v56 }
 0x529   :  { %14170 = vmatmul.mubr.f32.gmra.mrb[136].mxu0 %v18984_v49  ;;  %v6291_v49 = vld [vmem:[#allocation9 + $0x750] sm:$0xff] }
 0x52a   :  { %14172 = vmatprep.mubr.f32.mxu0 %v18987_v38  ;;  %16013 = vmatpush3.bf16.msra.mxu0 %v16010_v56  ;;  %v6292_v38 = vld [vmem:[#allocation9 + $0x758] sm:$0xff]  ;;  %v5876_v56 = vld [vmem:[#allocation3 + $0x90] sm:$0xff] }
 0x52b   :  { %16015 = vmatprep.subr.bf16.mxu0 %v16014_v3 }
 0x52d   :  { %14173 = vmatmul.mubr.f32.gmra.mrb[138].mxu0 %v18992_v61  ;;  %v16042_v61 = vpack.c.bf16 %v6292_v38, %v6291_v49  ;;  %v6239_v38 = vld [vmem:[#allocation3 + $0x29] sm:$0xff] }
 0x52e   :  { %14175 = vmatprep.mubr.f32.mxu0 %v18995_v25  ;;  %16017 = vmatpush3.bf16.msra.mxu0 %v16014_v3  ;;  %v5871_v25 = vld [vmem:[#allocation3 + $0x68] sm:$0xff]  ;;  %v5878_v3 = vld [vmem:[#allocation3 + $0xa0] sm:$0xff] }
 0x52f   :  { %16019 = vmatprep.subr.bf16.mxu0 %v16018_v53 }
 0x531   :  { %14176 = vmatmul.mubr.f32.gmra.mrb[140].mxu0 %v18999_v0  ;;  %v6293_v0 = vld [vmem:[#allocation9 + $0x760] sm:$0xff] }
 0x532   :  { %14178 = vmatprep.mubr.f32.mxu0 %v19002_v36  ;;  %16021 = vmatpush3.bf16.msra.mxu0 %v16018_v53  ;;  %v6294_v36 = vld [vmem:[#allocation9 + $0x768] sm:$0xff]  ;;  %v5881_v53 = vld [vmem:[#allocation3 + $0xb8] sm:$0xff] }
 0x533   :  { %16023 = vmatprep.subr.bf16.mxu0 %v16022_v50 }
 0x535   :  { %14179 = vmatmul.mubr.f32.gmra.mrb[142].mxu0 %v19005_v42  ;;  %v5872_v42 = vld [vmem:[#allocation3 + $0x70] sm:$0xff] }
 0x536   :  { %14181 = vmatprep.mubr.f32.mxu0 %v19008_v51  ;;  %v16046_v51 = vpack.c.bf16 %v6294_v36, %v6293_v0  ;;  %v19122_v36 = vld [vmem:[#allocation3 + $0x39] sm:$0xff] }
 0x539   :  { %14182 = vmatmul.mubr.f32.gmra.mrb[144].mxu0 %v19011_v1  ;;  %v5873_v1 = vld [vmem:[#allocation3 + $0x78] sm:$0xff] }
 0x53a   :  { %14184 = vmatprep.mubr.f32.mxu0 %v19014_v17  ;;  %v6295_v17 = vld [vmem:[#allocation9 + $0x770] sm:$0xff] }
 0x53b   :  { %v16050_v10 = vpack.c.bf16 %v6296_v58, %v6295_v17  ;;  %v19128_v58 = vld [vmem:[#allocation3 + $0x49] sm:$0xff] }
 0x53d   :  { %14185 = vmatmul.mubr.f32.gmra.mrb[146].mxu0 %v19017_v4  ;;  %v6290_v4 = vld [vmem:[#allocation9 + $0x748] sm:$0xff] }
 0x53e   :  { %14187 = vmatprep.mubr.f32.mxu0 %v19020_v54  ;;  %v6289_v54 = vld [vmem:[#allocation9 + $0x740] sm:$0xff] }
 0x53f   :  { %v16038_v6 = vpack.c.bf16 %v6290_v4, %v6289_v54  ;;  %v5902_v54 = vld [vmem:[#allocation3 + $0x160] sm:$0xff]  ;;  %v5903_v4 = vld [vmem:[#allocation3 + $0x168] sm:$0xff] }
 0x541   :  { %14188 = vmatmul.mubr.f32.gmra.mrb[148].mxu0 %v19023_v55  ;;  %v5867_v55 = vld [vmem:[#allocation3 + $0x48] sm:$0xff] }
 0x542   :  { %14190 = vmatprep.mubr.f32.mxu0 %v19026_v31 }
 0x545   :  { %14191 = vmatmul.mubr.f32.gmra.mrb[150].mxu0 %v19029_v30  ;;  %v5866_v30 = vld [vmem:[#allocation3 + $0x40] sm:$0xff] }
 0x546   :  { %14193 = vmatprep.mubr.f32.mxu0 %v19032_v26  ;;  %v6288_v26 = vld [vmem:[#allocation9 + $0x738] sm:$0xff] }
 0x549   :  { %14194 = vmatmul.mubr.f32.gmra.mrb[152].mxu0 %v19035_v60  ;;  %v6285_v60 = vld [vmem:[#allocation9 + $0x720] sm:$0xff] }
 0x54a   :  { %14196 = vmatprep.mubr.f32.mxu0 %v19038_v33  ;;  %v6284_v33 = vld [vmem:[#allocation9 + $0x718] sm:$0xff] }
 0x54d   :  { %14197 = vmatmul.mubr.f32.gmra.mrb[154].mxu0 %v19041_v46  ;;  %v5526_v46 = vld [vmem:[#allocation3 + $0x15f] sm:$0xff] }
 0x54e   :  { %14199 = vmatprep.mubr.f32.mxu0 %v19044_v16  ;;  %v5527_v16 = vld [vmem:[#allocation3 + $0x167] sm:$0xff] }
 0x551   :  { %14200 = vmatmul.mubr.f32.gmra.mrb[156].mxu0 %v19047_v40  ;;  %v6283_v40 = vld [vmem:[#allocation9 + $0x710] sm:$0xff] }
 0x552   :  { %14202 = vmatprep.mubr.f32.mxu0 %v19050_v44  ;;  %v5862_v44 = vld [vmem:[#allocation3 + $0x20] sm:$0xff] }
 0x555   :  { %14203 = vmatmul.mubr.f32.gmra.mrb[158].mxu0 %v19053_v20  ;;  %v16026_v20 = vpack.c.bf16 %v6284_v33, %v6283_v40  ;;  %v5887_v40 = vld [vmem:[#allocation3 + $0xe8] sm:$0xff]  ;;  %v5888_v33 = vld [vmem:[#allocation3 + $0xf0] sm:$0xff] }
 0x556   :  { %14205 = vmatprep.mubr.f32.mxu0 %v19056_v37  ;;  %v5863_v37 = vld [vmem:[#allocation3 + $0x28] sm:$0xff] }
 0x559   :  { %14206 = vmatmul.mubr.f32.gmra.mrb[160].mxu0 %v19059_v19  ;;  %v6286_v19 = vld [vmem:[#allocation9 + $0x728] sm:$0xff] }
 0x55a   :  { %14208 = vmatprep.mubr.f32.mxu0 %v19062_v41  ;;  %v5864_v41 = vld [vmem:[#allocation3 + $0x30] sm:$0xff] }
 0x55d   :  { %14209 = vmatmul.mubr.f32.gmra.mrb[162].mxu0 %v19065_v28  ;;  %v5865_v28 = vld [vmem:[#allocation3 + $0x38] sm:$0xff] }
 0x55e   :  { %14211 = vmatprep.mubr.f32.mxu0 %v19068_v14  ;;  %v16030_v14 = vpack.c.bf16 %v6286_v19, %v6285_v60  ;;  %v5892_v60 = vld [vmem:[#allocation3 + $0x110] sm:$0xff]  ;;  %v5893_v19 = vld [vmem:[#allocation3 + $0x118] sm:$0xff] }
 0x561   :  { %14212 = vmatmul.mubr.f32.gmra.mrb[164].mxu0 %v19071_v52  ;;  %v6287_v52 = vld [vmem:[#allocation9 + $0x730] sm:$0xff] }
 0x562   :  { %14214 = vmatprep.mubr.f32.mxu0 %v5526_v46  ;;  %v16034_v31 = vpack.c.bf16 %v6288_v26, %v6287_v52  ;;  %v5885_v46 = vld [vmem:[#allocation3 + $0xd8] sm:$0xff]  ;;  %v5898_v26 = vld [vmem:[#allocation3 + $0x140] sm:$0xff] }
 0x563   :  { %v5897_v52 = vld [vmem:[#allocation3 + $0x138] sm:$0xff] }
 0x565   :  { %14215 = vmatmul.mubr.f32.gmra.mrb[166].mxu0 %v5527_v16  ;;  %v5886_v16 = vld [vmem:[#allocation3 + $0xe0] sm:$0xff] }
 0x566   :  { %14249 = vmatprep.mubr.f32.mxu0 %v5862_v44  ;;  %v5889_v44 = vld [vmem:[#allocation3 + $0xf8] sm:$0xff] }
 0x569   :  { %14250 = vmatmul.mubr.f32.vlgmr.msra.gmra.mrb[126].mxu0 %v5863_v37  ;;  %v5891_v37 = vld [vmem:[#allocation3 + $0x108] sm:$0xff] }
 0x56a   :  { %16025 = vmatpush3.bf16.msra.mxu0 %v16022_v50  ;;  %14252 = vmatprep.mubr.f32.mxu0 %v5864_v41  ;;  %v5884_v50 = vld [vmem:[#allocation3 + $0xd0] sm:$0xff]  ;;  %v5894_v41 = vld [vmem:[#allocation3 + $0x120] sm:$0xff] }
 0x56b   :  { %16027 = vmatprep.subr.bf16.mxu0 %v16026_v20 }
 0x56d   :  { %14253 = vmatmul.mubr.f32.gmra.mrb[128].mxu0 %v5865_v28  ;;  %v5896_v28 = vld [vmem:[#allocation3 + $0x130] sm:$0xff] }
 0x56e   :  { %14255 = vmatprep.mubr.f32.mxu0 %v5866_v30  ;;  %16029 = vmatpush3.bf16.msra.mxu0 %v16026_v20  ;;  %v5890_v20 = vld [vmem:[#allocation3 + $0x100] sm:$0xff]  ;;  %v5899_v30 = vld [vmem:[#allocation3 + $0x148] sm:$0xff] }
 0x56f   :  { %16031 = vmatprep.subr.bf16.mxu0 %v16030_v14 }
 0x571   :  { %14256 = vmatmul.mubr.f32.gmra.mrb[130].mxu0 %v5867_v55  ;;  %v5901_v55 = vld [vmem:[#allocation3 + $0x158] sm:$0xff] }
 0x572   :  { %14258 = vmatprep.mubr.f32.mxu0 %v5868_v43  ;;  %16033 = vmatpush3.bf16.msra.mxu0 %v16030_v14  ;;  %v5895_v14 = vld [vmem:[#allocation3 + $0x128] sm:$0xff]  ;;  %v6659_v43 = vld [vmem:[#allocation9 + $0x790] sm:$0xff] }
 0x573   :  { %16035 = vmatprep.subr.bf16.mxu0 %v16034_v31 }
 0x575   :  { %14259 = vmatmul.mubr.f32.gmra.mrb[132].mxu0 %v5869_v48  ;;  %v6238_v48 = vld [vmem:[#allocation3 + $0x21] sm:$0xff] }
 0x576   :  { %14261 = vmatprep.mubr.f32.mxu0 %v5870_v22  ;;  %16037 = vmatpush3.bf16.msra.mxu0 %v16034_v31  ;;  %v5900_v31 = vld [vmem:[#allocation3 + $0x150] sm:$0xff]  ;;  %v6661_v22 = vld [vmem:[#allocation9 + $0x7a0] sm:$0xff] }
 0x577   :  { %16039 = vmatprep.subr.bf16.mxu0 %v16038_v6 }
 0x579   :  { %14262 = vmatmul.mubr.f32.gmra.mrb[134].mxu0 %v5871_v25  ;;  %v19118_v25 = vld [vmem:[#allocation3 + $0x31] sm:$0xff] }
 0x57a   :  { %14264 = vmatprep.mubr.f32.mxu0 %v5872_v42  ;;  %16041 = vmatpush3.bf16.msra.mxu0 %v16038_v6  ;;  %v6660_v6 = vld [vmem:[#allocation9 + $0x798] sm:$0xff]  ;;  %v6663_v42 = vld [vmem:[#allocation9 + $0x7b0] sm:$0xff] }
 0x57b   :  { %16043 = vmatprep.subr.bf16.mxu0 %v16042_v61  ;;  %v16058_v49 = vpack.c.bf16 %v6660_v6, %v6659_v43  ;;  %v19191_v43 = vld [vmem:[#allocation3 + $0xe9] sm:$0xff]  ;;  %v19194_v6 = vld [vmem:[#allocation3 + $0xf1] sm:$0xff] }
 0x57d   :  { %14265 = vmatmul.mubr.f32.gmra.mrb[136].mxu0 %v5873_v1  ;;  %v19125_v1 = vld [vmem:[#allocation3 + $0x41] sm:$0xff] }
 0x57e   :  { %14267 = vmatprep.mubr.f32.mxu0 %v5874_v5  ;;  %16045 = vmatpush3.bf16.msra.mxu0 %v16042_v61  ;;  %v6662_v61 = vld [vmem:[#allocation9 + $0x7a8] sm:$0xff]  ;;  %v6665_v5 = vld [vmem:[#allocation9 + $0x7c0] sm:$0xff] }
 0x57f   :  { %16047 = vmatprep.subr.bf16.mxu0 %v16046_v51  ;;  %v16062_v0 = vpack.c.bf16 %v6662_v61, %v6661_v22  ;;  %v19206_v22 = vld [vmem:[#allocation3 + $0x111] sm:$0xff]  ;;  %v19209_v61 = vld [vmem:[#allocation3 + $0x119] sm:$0xff] }
 0x581   :  { %14268 = vmatmul.mubr.f32.gmra.mrb[138].mxu0 %v5875_v11  ;;  %v19131_v11 = vld [vmem:[#allocation3 + $0x51] sm:$0xff] }
 0x582   :  { %14270 = vmatprep.mubr.f32.mxu0 %v5876_v56  ;;  %16049 = vmatpush3.bf16.msra.mxu0 %v16046_v51  ;;  %v6664_v51 = vld [vmem:[#allocation9 + $0x7b8] sm:$0xff]  ;;  %v6667_v56 = vld [vmem:[#allocation9 + $0x7d0] sm:$0xff] }
 0x583   :  { %16051 = vmatprep.subr.bf16.mxu0 %v16050_v10  ;;  %v16066_v17 = vpack.c.bf16 %v6664_v51, %v6663_v42  ;;  %v19215_v42 = vld [vmem:[#allocation3 + $0x129] sm:$0xff]  ;;  %v19218_v51 = vld [vmem:[#allocation3 + $0x131] sm:$0xff] }
 0x585   :  { %14271 = vmatmul.mubr.f32.gmra.mrb[140].mxu0 %v5877_v47  ;;  %v19137_v47 = vld [vmem:[#allocation3 + $0x61] sm:$0xff] }
 0x586   :  { %14273 = vmatprep.mubr.f32.mxu0 %v5878_v3  ;;  %16053 = vmatpush3.bf16.msra.mxu0 %v16050_v10  ;;  %v6666_v10 = vld [vmem:[#allocation9 + $0x7c8] sm:$0xff] }
 0x587   :  { %16055 = vmatprep.subr.bf16.mxu0 %v19115_v13  ;;  %v16070_v62 = vpack.c.bf16 %v6666_v10, %v6665_v5  ;;  %v19224_v5 = vld [vmem:[#allocation3 + $0x141] sm:$0xff]  ;;  %v19227_v10 = vld [vmem:[#allocation3 + $0x149] sm:$0xff] }
 0x589   :  { %14274 = vmatmul.mubr.f32.gmra.mrb[142].mxu0 %v5879_v12  ;;  %v19140_v12 = vld [vmem:[#allocation3 + $0x69] sm:$0xff] }
 0x58a   :  { %14276 = vmatprep.mubr.f32.mxu0 %v5880_v35  ;;  %v6669_v35 = vld [vmem:[#allocation9 + $0x7e0] sm:$0xff] }
 0x58d   :  { %14277 = vmatmul.mubr.f32.gmra.mrb[144].mxu0 %v5881_v53  ;;  %v6670_v53 = vld [vmem:[#allocation9 + $0x7e8] sm:$0xff] }
 0x58e   :  { %14279 = vmatprep.mubr.f32.mxu0 %v5882_v24  ;;  %v19143_v24 = vld [vmem:[#allocation3 + $0x71] sm:$0xff] }
 0x591   :  { %14280 = vmatmul.mubr.f32.gmra.mrb[146].mxu0 %v5883_v2  ;;  %v16078_v2 = vpack.c.bf16 %v6670_v53, %v6669_v35  ;;  %v7035_v35 = vld [vmem:[#allocation9 + $0x810] sm:$0xff]  ;;  %v7036_v53 = vld [vmem:[#allocation9 + $0x818] sm:$0xff] }
 0x592   :  { %14282 = vmatprep.mubr.f32.mxu0 %v5884_v50  ;;  %v19146_v50 = vld [vmem:[#allocation3 + $0x79] sm:$0xff] }
 0x595   :  { %14283 = vmatmul.mubr.f32.gmra.mrb[148].mxu0 %v5885_v46  ;;  %v6671_v46 = vld [vmem:[#allocation9 + $0x7f0] sm:$0xff] }
 0x596   :  { %14285 = vmatprep.mubr.f32.mxu0 %v5886_v16  ;;  %v6672_v16 = vld [vmem:[#allocation9 + $0x7f8] sm:$0xff] }
 0x599   :  { %14286 = vmatmul.mubr.f32.gmra.mrb[150].mxu0 %v5887_v40  ;;  %v19149_v40 = vld [vmem:[#allocation3 + $0x81] sm:$0xff] }
 0x59a   :  { %14288 = vmatprep.mubr.f32.mxu0 %v5888_v33  ;;  %v16082_v33 = vpack.c.bf16 %v6672_v16, %v6671_v46  ;;  %v7037_v46 = vld [vmem:[#allocation9 + $0x820] sm:$0xff]  ;;  %v7038_v16 = vld [vmem:[#allocation9 + $0x828] sm:$0xff] }
 0x59d   :  { %14289 = vmatmul.mubr.f32.gmra.mrb[152].mxu0 %v5889_v44  ;;  %v19152_v44 = vld [vmem:[#allocation3 + $0x89] sm:$0xff] }
 0x59e   :  { %14291 = vmatprep.mubr.f32.mxu0 %v5890_v20  ;;  %v7033_v20 = vld [vmem:[#allocation9 + $0x800] sm:$0xff] }
 0x5a1   :  { %14292 = vmatmul.mubr.f32.gmra.mrb[154].mxu0 %v5891_v37  ;;  %v7034_v37 = vld [vmem:[#allocation9 + $0x808] sm:$0xff] }
 0x5a2   :  { %14294 = vmatprep.mubr.f32.mxu0 %v5892_v60  ;;  %v19155_v60 = vld [vmem:[#allocation3 + $0x91] sm:$0xff] }
 0x5a5   :  { %14295 = vmatmul.mubr.f32.gmra.mrb[156].mxu0 %v5893_v19  ;;  %v19158_v19 = vpack.c.bf16 %v7034_v37, %v7033_v20  ;;  %v7039_v20 = vld [vmem:[#allocation9 + $0x830] sm:$0xff]  ;;  %v7040_v37 = vld [vmem:[#allocation9 + $0x838] sm:$0xff] }
 0x5a6   :  { %14297 = vmatprep.mubr.f32.mxu0 %v5894_v41  ;;  %v19160_v41 = vld [vmem:[#allocation3 + $0x99] sm:$0xff] }
 0x5a9   :  { %14298 = vmatmul.mubr.f32.gmra.mrb[158].mxu0 %v5895_v14  ;;  %v19163_v14 = vld [vmem:[#allocation3 + $0xa1] sm:$0xff] }
 0x5aa   :  { %14300 = vmatprep.mubr.f32.mxu0 %v5896_v28  ;;  %v19167_v28 = vld [vmem:[#allocation3 + $0xa9] sm:$0xff] }
 0x5ad   :  { %14301 = vmatmul.mubr.f32.gmra.mrb[160].mxu0 %v5897_v52  ;;  %v19170_v52 = vld [vmem:[#allocation3 + $0xb1] sm:$0xff] }
 0x5ae   :  { %14303 = vmatprep.mubr.f32.mxu0 %v5898_v26  ;;  %v19173_v26 = vld [vmem:[#allocation3 + $0xb9] sm:$0xff] }
 0x5b1   :  { %14304 = vmatmul.mubr.f32.gmra.mrb[162].mxu0 %v5899_v30  ;;  %v19176_v30 = vld [vmem:[#allocation3 + $0xc1] sm:$0xff] }
 0x5b2   :  { %14306 = vmatprep.mubr.f32.mxu0 %v5900_v31  ;;  %v19179_v31 = vld [vmem:[#allocation3 + $0xc9] sm:$0xff] }
 0x5b5   :  { %14307 = vmatmul.mubr.f32.gmra.mrb[164].mxu0 %v5901_v55  ;;  %v19182_v55 = vld [vmem:[#allocation3 + $0xd1] sm:$0xff] }
 0x5b6   :  { %14309 = vmatprep.mubr.f32.mxu0 %v5902_v54  ;;  %v19185_v54 = vld [vmem:[#allocation3 + $0xd9] sm:$0xff] }
 0x5b9   :  { %14310 = vmatmul.mubr.f32.gmra.mrb[166].mxu0 %v5903_v4  ;;  %v19188_v4 = vld [vmem:[#allocation3 + $0xe1] sm:$0xff] }
 0x5ba   :  { %14344 = vmatprep.mubr.f32.mxu0 %v6238_v48  ;;  %v19197_v48 = vld [vmem:[#allocation3 + $0xf9] sm:$0xff] }
 0x5bd   :  { %14345 = vmatmul.mubr.f32.vlgmr.msra.gmra.mrb[126].mxu0 %v6239_v38  ;;  %v19203_v38 = vld [vmem:[#allocation3 + $0x109] sm:$0xff] }
 0x5be   :  { %16057 = vmatpush3.bf16.msra.mxu0 %v19115_v13  ;;  %14347 = vmatprep.mubr.f32.mxu0 %v19118_v25  ;;  %v6668_v13 = vld [vmem:[#allocation9 + $0x7d8] sm:$0xff] }
 0x5bf   :  { %16059 = vmatprep.subr.bf16.mxu0 %v16058_v49  ;;  %v16074_v3 = vpack.c.bf16 %v6668_v13, %v6667_v56  ;;  %v19233_v56 = vld [vmem:[#allocation3 + $0x159] sm:$0xff]  ;;  %v19236_v13 = vld [vmem:[#allocation3 + $0x161] sm:$0xff] }
 0x5c1   :  { %14348 = vmatmul.mubr.f32.gmra.mrb[128].mxu0 %v19122_v36 }
 0x5c2   :  { %14350 = vmatprep.mubr.f32.mxu0 %v19125_v1  ;;  %16061 = vmatpush3.bf16.msra.mxu0 %v16058_v49  ;;  %v19200_v49 = vld [vmem:[#allocation3 + $0x101] sm:$0xff] }
 0x5c3   :  { %16063 = vmatprep.subr.bf16.mxu0 %v16062_v0 }
 0x5c5   :  { %14351 = vmatmul.mubr.f32.gmra.mrb[130].mxu0 %v19128_v58 }
 0x5c6   :  { %14353 = vmatprep.mubr.f32.mxu0 %v19131_v11  ;;  %16065 = vmatpush3.bf16.msra.mxu0 %v16062_v0  ;;  %v19212_v0 = vld [vmem:[#allocation3 + $0x121] sm:$0xff] }
 0x5c7   :  { %16067 = vmatprep.subr.bf16.mxu0 %v16066_v17 }
 0x5c9   :  { %14354 = vmatmul.mubr.f32.gmra.mrb[132].mxu0 %v19134_v39 }
 0x5ca   :  { %14356 = vmatprep.mubr.f32.mxu0 %v19137_v47  ;;  %16069 = vmatpush3.bf16.msra.mxu0 %v16066_v17  ;;  %v19221_v17 = vld [vmem:[#allocation3 + $0x139] sm:$0xff] }
 0x5cb   :  { %16071 = vmatprep.subr.bf16.mxu0 %v16070_v62 }
 0x5cd   :  { %14357 = vmatmul.mubr.f32.gmra.mrb[134].mxu0 %v19140_v12 }
 0x5ce   :  { %14359 = vmatprep.mubr.f32.mxu0 %v19143_v24  ;;  %16073 = vmatpush3.bf16.msra.mxu0 %v16070_v62  ;;  %v19230_v62 = vld [vmem:[#allocation3 + $0x151] sm:$0xff] }
 0x5cf   :  { %16075 = vmatprep.subr.bf16.mxu0 %v16074_v3 }
 0x5d1   :  { %14360 = vmatmul.mubr.f32.gmra.mrb[136].mxu0 %v19146_v50 }
 0x5d2   :  { %14362 = vmatprep.mubr.f32.mxu0 %v19149_v40  ;;  %16077 = vmatpush3.bf16.msra.mxu0 %v16074_v3  ;;  %v19239_v3 = vld [vmem:[#allocation3 + $0x169] sm:$0xff] }
 0x5d3   :  { %16079 = vmatprep.subr.bf16.mxu0 %v16078_v2 }
 0x5d5   :  { %14363 = vmatmul.mubr.f32.gmra.mrb[138].mxu0 %v19152_v44 }
 0x5d6   :  { %14365 = vmatprep.mubr.f32.mxu0 %v19155_v60  ;;  %16081 = vmatpush3.bf16.msra.mxu0 %v16078_v2  ;;  %v16090_v2 = vpack.c.bf16 %v7036_v53, %v7035_v35  ;;  %v7041_v35 = vld [vmem:[#allocation9 + $0x840] sm:$0xff]  ;;  %v7042_v53 = vld [vmem:[#allocation9 + $0x848] sm:$0xff] }
 0x5d7   :  { %16083 = vmatprep.subr.bf16.mxu0 %v16082_v33 }
 0x5d9   :  { %14366 = vmatmul.mubr.f32.gmra.mrb[140].mxu0 %v19160_v41 }
 0x5da   :  { %14368 = vmatprep.mubr.f32.mxu0 %v19163_v14  ;;  %16085 = vmatpush3.bf16.msra.mxu0 %v16082_v33  ;;  %v16094_v33 = vpack.c.bf16 %v7038_v16, %v7037_v46  ;;  %v7048_v46 = vld [vmem:[#allocation9 + $0x878] sm:$0xff]  ;;  %v7410_v16 = vld [vmem:[#allocation9 + $0x888] sm:$0xff] }
 0x5db   :  { %16087 = vmatprep.subr.bf16.mxu0 %v19158_v19 }
 0x5dd   :  { %14369 = vmatmul.mubr.f32.gmra.mrb[142].mxu0 %v19167_v28 }
 0x5de   :  { %14371 = vmatprep.mubr.f32.mxu0 %v19170_v52 }
 0x5e1   :  { %14372 = vmatmul.mubr.f32.gmra.mrb[144].mxu0 %v19173_v26 }
 0x5e2   :  { %14374 = vmatprep.mubr.f32.mxu0 %v19176_v30 }
 0x5e5   :  { %14375 = vmatmul.mubr.f32.gmra.mrb[146].mxu0 %v19179_v31 }
 0x5e6   :  { %14377 = vmatprep.mubr.f32.mxu0 %v19182_v55 }
 0x5e9   :  { %14378 = vmatmul.mubr.f32.gmra.mrb[148].mxu0 %v19185_v54 }
 0x5ea   :  { %14380 = vmatprep.mubr.f32.mxu0 %v19188_v4 }
 0x5ed   :  { %14381 = vmatmul.mubr.f32.gmra.mrb[150].mxu0 %v19191_v43 }
 0x5ee   :  { %14383 = vmatprep.mubr.f32.mxu0 %v19194_v6 }
 0x5f1   :  { %14384 = vmatmul.mubr.f32.gmra.mrb[152].mxu0 %v19197_v48 }
 0x5f2   :  { %14386 = vmatprep.mubr.f32.mxu0 %v19200_v49 }
 0x5f5   :  { %14387 = vmatmul.mubr.f32.gmra.mrb[154].mxu0 %v19203_v38 }
 0x5f6   :  { %14389 = vmatprep.mubr.f32.mxu0 %v19206_v22 }
 0x5f9   :  { %14390 = vmatmul.mubr.f32.gmra.mrb[156].mxu0 %v19209_v61 }
 0x5fa   :  { %14392 = vmatprep.mubr.f32.mxu0 %v19212_v0 }
 0x5fd   :  { %14393 = vmatmul.mubr.f32.gmra.mrb[158].mxu0 %v19215_v42 }
 0x5fe   :  { %14395 = vmatprep.mubr.f32.mxu0 %v19218_v51 }
 0x601   :  { %14396 = vmatmul.mubr.f32.gmra.mrb[160].mxu0 %v19221_v17 }
 0x602   :  { %14398 = vmatprep.mubr.f32.mxu0 %v19224_v5 }
 0x605   :  { %14399 = vmatmul.mubr.f32.gmra.mrb[162].mxu0 %v19227_v10 }
 0x606   :  { %14401 = vmatprep.mubr.f32.mxu0 %v19230_v62 }
 0x609   :  { %14402 = vmatmul.mubr.f32.gmra.mrb[164].mxu0 %v19233_v56 }
 0x60a   :  { %14404 = vmatprep.mubr.f32.mxu0 %v19236_v13 }
 0x60d   :  { %14405 = vmatmul.mubr.f32.gmra.mrb[166].mxu0 %v19239_v3 }
 0x60e   :  { %14439 = vmatprep.mubr.f32.mxu0 %v19118_v25  ;;  %v16098_v25 = vpack.c.bf16 %v7040_v37, %v7039_v20  ;;  %v7001_v20 = vld [vmem:[#allocation3 + $0x8a] sm:$0xff]  ;;  %v7423_v37 = vld [vmem:[#allocation9 + $0x8f0] sm:$0xff] }
 0x611   :  { %14440 = vmatmul.mubr.f32.vlgmr.msra.gmra.mrb[126].mxu0 %v19122_v36  ;;  %v16102_v36 = vpack.c.bf16 %v7042_v53, %v7041_v35  ;;  %v7002_v35 = vld [vmem:[#allocation3 + $0x92] sm:$0xff] }
 0x612   :  { %16089 = vmatpush3.bf16.msra.mxu0 %v19158_v19  ;;  %14442 = vmatprep.mubr.f32.mxu0 %v19125_v1  ;;  %v7043_v1 = vld [vmem:[#allocation9 + $0x850] sm:$0xff]  ;;  %v7044_v19 = vld [vmem:[#allocation9 + $0x858] sm:$0xff] }
 0x613   :  { %16091 = vmatprep.subr.bf16.mxu0 %v16090_v2 }
 0x615   :  { %14443 = vmatmul.mubr.f32.gmra.mrb[128].mxu0 %v19128_v58  ;;  %v16106_v58 = vpack.c.bf16 %v7044_v19, %v7043_v1  ;;  %v7004_v1 = vld [vmem:[#allocation3 + $0xa2] sm:$0xff]  ;;  %v7005_v19 = vld [vmem:[#allocation3 + $0xaa] sm:$0xff] }
 0x616   :  { %14445 = vmatprep.mubr.f32.mxu0 %v19131_v11  ;;  %16093 = vmatpush3.bf16.msra.mxu0 %v16090_v2  ;;  %v7045_v11 = vld [vmem:[#allocation9 + $0x860] sm:$0xff]  ;;  %v7046_v2 = vld [vmem:[#allocation9 + $0x868] sm:$0xff] }
 0x617   :  { %16095 = vmatprep.subr.bf16.mxu0 %v16094_v33 }
 0x619   :  { %14446 = vmatmul.mubr.f32.gmra.mrb[130].mxu0 %v19134_v39  ;;  %v16110_v39 = vpack.c.bf16 %v7046_v2, %v7045_v11  ;;  %v7007_v11 = vld [vmem:[#allocation3 + $0xba] sm:$0xff]  ;;  %v7008_v2 = vld [vmem:[#allocation3 + $0xc2] sm:$0xff] }
 0x61a   :  { %14448 = vmatprep.mubr.f32.mxu0 %v19137_v47  ;;  %16097 = vmatpush3.bf16.msra.mxu0 %v16094_v33  ;;  %v7047_v47 = vld [vmem:[#allocation9 + $0x870] sm:$0xff] }
 0x61b   :  { %16099 = vmatprep.subr.bf16.mxu0 %v16098_v25 }
 0x61d   :  { %14449 = vmatmul.mubr.f32.gmra.mrb[132].mxu0 %v19140_v12  ;;  %v16114_v12 = vpack.c.bf16 %v7048_v46, %v7047_v47  ;;  %v7010_v47 = vld [vmem:[#allocation3 + $0xd2] sm:$0xff]  ;;  %v8020_v46 = vld [vmem:[#allocation9 + $0x980] sm:$0xff] }
 0x61e   :  { %14451 = vmatprep.mubr.f32.mxu0 %v19143_v24  ;;  %16101 = vmatpush3.bf16.msra.mxu0 %v16098_v25  ;;  %v7409_v24 = vld [vmem:[#allocation9 + $0x880] sm:$0xff]  ;;  %v7424_v25 = vld [vmem:[#allocation9 + $0x8f8] sm:$0xff] }
 0x61f   :  { %16103 = vmatprep.subr.bf16.mxu0 %v16102_v36  ;;  %v16146_v53 = vpack.c.bf16 %v7424_v25, %v7423_v37  ;;  %v7027_v37 = vld [vmem:[#allocation3 + $0x15a] sm:$0xff]  ;;  %v7028_v25 = vld [vmem:[#allocation3 + $0x162] sm:$0xff] }
 0x621   :  { %14452 = vmatmul.mubr.f32.gmra.mrb[134].mxu0 %v19146_v50  ;;  %v16118_v50 = vpack.c.bf16 %v7410_v16, %v7409_v24  ;;  %v8022_v24 = vld [vmem:[#allocation9 + $0x990] sm:$0xff] }
 0x622   :  { %14454 = vmatprep.mubr.f32.mxu0 %v19149_v40  ;;  %16105 = vmatpush3.bf16.msra.mxu0 %v16102_v36  ;;  %v6654_v40 = vld [vmem:[#allocation3 + $0x171] sm:$0xff]  ;;  %v7003_v36 = vld [vmem:[#allocation3 + $0x9a] sm:$0xff] }
 0x623   :  { %16107 = vmatprep.subr.bf16.mxu0 %v16106_v58 }
 0x625   :  { %14455 = vmatmul.mubr.f32.gmra.mrb[136].mxu0 %v19152_v44  ;;  %v6655_v44 = vld [vmem:[#allocation3 + $0x179] sm:$0xff] }
 0x626   :  { %14457 = vmatprep.mubr.f32.mxu0 %v19155_v60  ;;  %16109 = vmatpush3.bf16.msra.mxu0 %v16106_v58  ;;  %v7411_v60 = vld [vmem:[#allocation9 + $0x890] sm:$0xff] }
 0x627   :  { %16111 = vmatprep.subr.bf16.mxu0 %v16110_v39  ;;  %v7006_v58 = vld [vmem:[#allocation3 + $0xb2] sm:$0xff] }
 0x629   :  { %14458 = vmatmul.mubr.f32.gmra.mrb[138].mxu0 %v19160_v41  ;;  %v7412_v41 = vld [vmem:[#allocation9 + $0x898] sm:$0xff] }
 0x62a   :  { %14460 = vmatprep.mubr.f32.mxu0 %v19163_v14  ;;  %16113 = vmatpush3.bf16.msra.mxu0 %v16110_v39  ;;  %v6990_v14 = vld [vmem:[#allocation3 + $0x32] sm:$0xff]  ;;  %v7009_v39 = vld [vmem:[#allocation3 + $0xca] sm:$0xff] }
 0x62b   :  { %16115 = vmatprep.subr.bf16.mxu0 %v16114_v12 }
 0x62d   :  { %14461 = vmatmul.mubr.f32.gmra.mrb[140].mxu0 %v19167_v28  ;;  %v16122_v28 = vpack.c.bf16 %v7412_v41, %v7411_v60  ;;  %v8025_v60 = vld [vmem:[#allocation9 + $0x9a8] sm:$0xff]  ;;  %v7011_v41 = vld [vmem:[#allocation3 + $0xda] sm:$0xff] }
 0x62e   :  { %14463 = vmatprep.mubr.f32.mxu0 %v19170_v52  ;;  %16117 = vmatpush3.bf16.msra.mxu0 %v16114_v12  ;;  %v6991_v52 = vld [vmem:[#allocation3 + $0x3a] sm:$0xff]  ;;  %v8021_v12 = vld [vmem:[#allocation9 + $0x988] sm:$0xff] }
 0x62f   :  { %16119 = vmatprep.subr.bf16.mxu0 %v16118_v50  ;;  %v16150_v16 = vpack.c.bf16 %v8021_v12, %v8020_v46  ;;  %v7373_v46 = vld [vmem:[#allocation3 + $0x6b] sm:$0xff]  ;;  %v7374_v12 = vld [vmem:[#allocation3 + $0x73] sm:$0xff] }
 0x631   :  { %14464 = vmatmul.mubr.f32.gmra.mrb[142].mxu0 %v19173_v26  ;;  %v7413_v26 = vld [vmem:[#allocation9 + $0x8a0] sm:$0xff]  ;;  %16151 = vmatprep.subr.bf16.mxu1 %v16150_v16 }
 0x632   :  { %14466 = vmatprep.mubr.f32.mxu0 %v19176_v30  ;;  %v7414_v30 = vld [vmem:[#allocation9 + $0x8a8] sm:$0xff]  ;;  %16153 = vmatpush3.bf16.msra.mxu1 %v16150_v16  ;;  %v7376_v16 = vld [vmem:[#allocation3 + $0x83] sm:$0xff] }
 0x635   :  { %14467 = vmatmul.mubr.f32.gmra.mrb[144].mxu0 %v19179_v31  ;;  %v6992_v31 = vld [vmem:[#allocation3 + $0x42] sm:$0xff] }
 0x636   :  { %14469 = vmatprep.mubr.f32.mxu0 %v19182_v55  ;;  %v16126_v55 = vpack.c.bf16 %v7414_v30, %v7413_v26  ;;  %v8027_v26 = vld [vmem:[#allocation9 + $0x9b8] sm:$0xff]  ;;  %v7013_v30 = vld [vmem:[#allocation3 + $0xea] sm:$0xff] }
 0x639   :  { %14470 = vmatmul.mubr.f32.gmra.mrb[146].mxu0 %v19185_v54  ;;  %v6993_v54 = vld [vmem:[#allocation3 + $0x4a] sm:$0xff] }
 0x63a   :  { %14472 = vmatprep.mubr.f32.mxu0 %v19188_v4  ;;  %v7415_v4 = vld [vmem:[#allocation9 + $0x8b0] sm:$0xff] }
 0x63d   :  { %14473 = vmatmul.mubr.f32.gmra.mrb[148].mxu0 %v19191_v43  ;;  %v7416_v43 = vld [vmem:[#allocation9 + $0x8b8] sm:$0xff] }
 0x63e   :  { %14475 = vmatprep.mubr.f32.mxu0 %v19194_v6  ;;  %v6994_v6 = vld [vmem:[#allocation3 + $0x52] sm:$0xff] }
 0x641   :  { %14476 = vmatmul.mubr.f32.gmra.mrb[150].mxu0 %v19197_v48  ;;  %v16130_v48 = vpack.c.bf16 %v7416_v43, %v7415_v4  ;;  %v8029_v4 = vld [vmem:[#allocation9 + $0x9c8] sm:$0xff]  ;;  %v7015_v43 = vld [vmem:[#allocation3 + $0xfa] sm:$0xff] }
 0x642   :  { %14478 = vmatprep.mubr.f32.mxu0 %v19200_v49  ;;  %v6995_v49 = vld [vmem:[#allocation3 + $0x5a] sm:$0xff] }
 0x645   :  { %14479 = vmatmul.mubr.f32.gmra.mrb[152].mxu0 %v19203_v38  ;;  %v7417_v38 = vld [vmem:[#allocation9 + $0x8c0] sm:$0xff] }
 0x646   :  { %14481 = vmatprep.mubr.f32.mxu0 %v19206_v22  ;;  %v7418_v22 = vld [vmem:[#allocation9 + $0x8c8] sm:$0xff] }
 0x649   :  { %14482 = vmatmul.mubr.f32.gmra.mrb[154].mxu0 %v19209_v61  ;;  %v6996_v61 = vld [vmem:[#allocation3 + $0x62] sm:$0xff] }
 0x64a   :  { %14484 = vmatprep.mubr.f32.mxu0 %v19212_v0  ;;  %v16134_v0 = vpack.c.bf16 %v7418_v22, %v7417_v38  ;;  %v8031_v38 = vld [vmem:[#allocation9 + $0x9d8] sm:$0xff]  ;;  %v7017_v22 = vld [vmem:[#allocation3 + $0x10a] sm:$0xff] }
 0x64d   :  { %14485 = vmatmul.mubr.f32.gmra.mrb[156].mxu0 %v19215_v42  ;;  %v6997_v42 = vld [vmem:[#allocation3 + $0x6a] sm:$0xff] }
 0x64e   :  { %14487 = vmatprep.mubr.f32.mxu0 %v19218_v51  ;;  %v7419_v51 = vld [vmem:[#allocation9 + $0x8d0] sm:$0xff] }
 0x651   :  { %14488 = vmatmul.mubr.f32.gmra.mrb[158].mxu0 %v19221_v17  ;;  %v7420_v17 = vld [vmem:[#allocation9 + $0x8d8] sm:$0xff] }
 0x652   :  { %14490 = vmatprep.mubr.f32.mxu0 %v19224_v5  ;;  %v6998_v5 = vld [vmem:[#allocation3 + $0x72] sm:$0xff] }
 0x655   :  { %14491 = vmatmul.mubr.f32.gmra.mrb[160].mxu0 %v19227_v10  ;;  %v16138_v10 = vpack.c.bf16 %v7420_v17, %v7419_v51  ;;  %v8033_v51 = vld [vmem:[#allocation9 + $0x9e8] sm:$0xff]  ;;  %v7019_v17 = vld [vmem:[#allocation3 + $0x11a] sm:$0xff] }
 0x656   :  { %14493 = vmatprep.mubr.f32.mxu0 %v19230_v62  ;;  %v6999_v62 = vld [vmem:[#allocation3 + $0x7a] sm:$0xff] }
 0x659   :  { %14494 = vmatmul.mubr.f32.gmra.mrb[162].mxu0 %v19233_v56  ;;  %v7421_v56 = vld [vmem:[#allocation9 + $0x8e0] sm:$0xff] }
 0x65a   :  { %14496 = vmatprep.mubr.f32.mxu0 %v19236_v13  ;;  %v7422_v13 = vld [vmem:[#allocation9 + $0x8e8] sm:$0xff] }
 0x65b   :  { %v16142_v33 = vpack.c.bf16 %v7422_v13, %v7421_v56  ;;  %v7022_v56 = vld [vmem:[#allocation3 + $0x132] sm:$0xff]  ;;  %v7023_v13 = vld [vmem:[#allocation3 + $0x13a] sm:$0xff] }
 0x65d   :  { %14497 = vmatmul.mubr.f32.gmra.mrb[164].mxu0 %v19239_v3  ;;  %v7000_v3 = vld [vmem:[#allocation3 + $0x82] sm:$0xff] }
 0x65e   :  { %14499 = vmatprep.mubr.f32.mxu0 %v6654_v40 }
 0x661   :  { %14500 = vmatmul.mubr.f32.gmra.mrb[166].mxu0 %v6655_v44  ;;  %v8024_v44 = vld [vmem:[#allocation9 + $0x9a0] sm:$0xff] }
 0x662   :  { %14534 = vmatprep.mubr.f32.mxu0 %v6990_v14  ;;  %v7012_v14 = vld [vmem:[#allocation3 + $0xe2] sm:$0xff] }
 0x665   :  { %14535 = vmatmul.mubr.f32.vlgmr.msra.gmra.mrb[126].mxu0 %v6991_v52  ;;  %v8026_v52 = vld [vmem:[#allocation9 + $0x9b0] sm:$0xff] }
 0x666   :  { %16121 = vmatpush3.bf16.msra.mxu0 %v16118_v50  ;;  %14537 = vmatprep.mubr.f32.mxu0 %v6992_v31  ;;  %v8023_v50 = vld [vmem:[#allocation9 + $0x998] sm:$0xff]  ;;  %v7014_v31 = vld [vmem:[#allocation3 + $0xf2] sm:$0xff] }
 0x667   :  { %16123 = vmatprep.subr.bf16.mxu0 %v16122_v28  ;;  %v16154_v40 = vpack.c.bf16 %v8023_v50, %v8022_v24  ;;  %v7375_v24 = vld [vmem:[#allocation3 + $0x7b] sm:$0xff]  ;;  %v7377_v50 = vld [vmem:[#allocation3 + $0x8b] sm:$0xff] }
 0x669   :  { %14538 = vmatmul.mubr.f32.gmra.mrb[128].mxu0 %v6993_v54  ;;  %16155 = vmatprep.subr.bf16.mxu1 %v16154_v40  ;;  %v8028_v54 = vld [vmem:[#allocation9 + $0x9c0] sm:$0xff] }
 0x66a   :  { %14540 = vmatprep.mubr.f32.mxu0 %v6994_v6  ;;  %16125 = vmatpush3.bf16.msra.mxu0 %v16122_v28  ;;  %v16158_v28 = vpack.c.bf16 %v8025_v60, %v8024_v44  ;;  %v7016_v6 = vld [vmem:[#allocation3 + $0x102] sm:$0xff] }
 0x66b   :  { %16127 = vmatprep.subr.bf16.mxu0 %v16126_v55  ;;  %16157 = vmatpush3.bf16.msra.mxu1 %v16154_v40  ;;  %v7378_v40 = vld [vmem:[#allocation3 + $0x93] sm:$0xff]  ;;  %v7379_v44 = vld [vmem:[#allocation3 + $0x9b] sm:$0xff]  ;;  %v7380_v60 = vld [vmem:[#allocation3 + $0xa3] sm:$0xff] }
 0x66c   :  { %16159 = vmatprep.subr.bf16.mxu1 %v16158_v28 }
 0x66d   :  { %14541 = vmatmul.mubr.f32.gmra.mrb[130].mxu0 %v6995_v49  ;;  %v8030_v49 = vld [vmem:[#allocation9 + $0x9d0] sm:$0xff] }
 0x66e   :  { %14543 = vmatprep.mubr.f32.mxu0 %v6996_v61  ;;  %16129 = vmatpush3.bf16.msra.mxu0 %v16126_v55  ;;  %v16162_v55 = vpack.c.bf16 %v8027_v26, %v8026_v52  ;;  %v7018_v61 = vld [vmem:[#allocation3 + $0x112] sm:$0xff]  ;;  %v7384_v52 = vld [vmem:[#allocation3 + $0xc3] sm:$0xff] }
 0x66f   :  { %16131 = vmatprep.subr.bf16.mxu0 %v16130_v48  ;;  %16161 = vmatpush3.bf16.msra.mxu1 %v16158_v28  ;;  %v7383_v28 = vld [vmem:[#allocation3 + $0xbb] sm:$0xff]  ;;  %v7385_v26 = vld [vmem:[#allocation3 + $0xcb] sm:$0xff] }
 0x670   :  { %16163 = vmatprep.subr.bf16.mxu1 %v16162_v55 }
 0x671   :  { %14544 = vmatmul.mubr.f32.gmra.mrb[132].mxu0 %v6997_v42  ;;  %v8032_v42 = vld [vmem:[#allocation9 + $0x9e0] sm:$0xff] }
 0x672   :  { %14546 = vmatprep.mubr.f32.mxu0 %v6998_v5  ;;  %16133 = vmatpush3.bf16.msra.mxu0 %v16130_v48  ;;  %v16166_v48 = vpack.c.bf16 %v8029_v4, %v8028_v54  ;;  %v7020_v5 = vld [vmem:[#allocation3 + $0x122] sm:$0xff]  ;;  %v7389_v54 = vld [vmem:[#allocation3 + $0xeb] sm:$0xff]  ;;  %v7390_v4 = vld [vmem:[#allocation3 + $0xf3] sm:$0xff] }
 0x673   :  { %16135 = vmatprep.subr.bf16.mxu0 %v16134_v0  ;;  %16165 = vmatpush3.bf16.msra.mxu1 %v16162_v55  ;;  %v7388_v55 = vld [vmem:[#allocation3 + $0xe3] sm:$0xff] }
 0x674   :  { %16167 = vmatprep.subr.bf16.mxu1 %v16166_v48 }
 0x675   :  { %14547 = vmatmul.mubr.f32.gmra.mrb[134].mxu0 %v6999_v62  ;;  %v7021_v62 = vld [vmem:[#allocation3 + $0x12a] sm:$0xff] }
 0x676   :  { %14549 = vmatprep.mubr.f32.mxu0 %v7000_v3  ;;  %16137 = vmatpush3.bf16.msra.mxu0 %v16134_v0  ;;  %v16170_v0 = vpack.c.bf16 %v8031_v38, %v8030_v49  ;;  %v7024_v3 = vld [vmem:[#allocation3 + $0x142] sm:$0xff]  ;;  %v7394_v49 = vld [vmem:[#allocation3 + $0x113] sm:$0xff] }
 0x677   :  { %16139 = vmatprep.subr.bf16.mxu0 %v16138_v10  ;;  %16169 = vmatpush3.bf16.msra.mxu1 %v16166_v48  ;;  %v7393_v48 = vld [vmem:[#allocation3 + $0x10b] sm:$0xff]  ;;  %v7395_v38 = vld [vmem:[#allocation3 + $0x11b] sm:$0xff] }
 0x678   :  { %16171 = vmatprep.subr.bf16.mxu1 %v16170_v0 }
 0x679   :  { %14550 = vmatmul.mubr.f32.gmra.mrb[136].mxu0 %v7001_v20  ;;  %v7026_v20 = vld [vmem:[#allocation3 + $0x152] sm:$0xff] }
 0x67a   :  { %14552 = vmatprep.mubr.f32.mxu0 %v7002_v35  ;;  %16141 = vmatpush3.bf16.msra.mxu0 %v16138_v10  ;;  %v16174_v10 = vpack.c.bf16 %v8033_v51, %v8032_v42  ;;  %v7030_v35 = vld [vmem:[#allocation3 + $0x172] sm:$0xff]  ;;  %v7399_v42 = vld [vmem:[#allocation3 + $0x13b] sm:$0xff]  ;;  %v7400_v51 = vld [vmem:[#allocation3 + $0x143] sm:$0xff] }
 0x67b   :  { %16143 = vmatprep.subr.bf16.mxu0 %v16142_v33  ;;  %16173 = vmatpush3.bf16.msra.mxu1 %v16170_v0  ;;  %v7398_v0 = vld [vmem:[#allocation3 + $0x133] sm:$0xff] }
 0x67c   :  { %16175 = vmatprep.subr.bf16.mxu1 %v16174_v10 }
 0x67d   :  { %14553 = vmatmul.mubr.f32.gmra.mrb[138].mxu0 %v7003_v36  ;;  %v7031_v36 = vld [vmem:[#allocation3 + $0x17a] sm:$0xff] }
 0x67e   :  { %14555 = vmatprep.mubr.f32.mxu0 %v7004_v1  ;;  %16145 = vmatpush3.bf16.msra.mxu0 %v16142_v33  ;;  %v7025_v33 = vld [vmem:[#allocation3 + $0x14a] sm:$0xff]  ;;  %v7366_v1 = vld [vmem:[#allocation3 + $0x33] sm:$0xff] }
 0x67f   :  { %16147 = vmatprep.subr.bf16.mxu0 %v16146_v53  ;;  %16177 = vmatpush3.bf16.msra.mxu1 %v16174_v10  ;;  %v7403_v10 = vld [vmem:[#allocation3 + $0x15b] sm:$0xff] }
 0x681   :  { %14556 = vmatmul.mubr.f32.gmra.mrb[140].mxu0 %v7005_v19  ;;  %v7367_v19 = vld [vmem:[#allocation3 + $0x3b] sm:$0xff] }
 0x682   :  { %14558 = vmatprep.mubr.f32.mxu0 %v7006_v58  ;;  %16149 = vmatpush3.bf16.msra.mxu0 %v16146_v53  ;;  %v7029_v53 = vld [vmem:[#allocation3 + $0x16a] sm:$0xff] }
 0x683   :  { %v7368_v58 = vld [vmem:[#allocation3 + $0x43] sm:$0xff] }
 0x685   :  { %14559 = vmatmul.mubr.f32.gmra.mrb[142].mxu0 %v7007_v11  ;;  %v7369_v11 = vld [vmem:[#allocation3 + $0x4b] sm:$0xff] }
 0x686   :  { %14561 = vmatprep.mubr.f32.mxu0 %v7008_v2  ;;  %v7370_v2 = vld [vmem:[#allocation3 + $0x53] sm:$0xff] }
 0x689   :  { %14562 = vmatmul.mubr.f32.gmra.mrb[144].mxu0 %v7009_v39  ;;  %v7371_v39 = vld [vmem:[#allocation3 + $0x5b] sm:$0xff] }
 0x68a   :  { %14564 = vmatprep.mubr.f32.mxu0 %v7010_v47  ;;  %v7372_v47 = vld [vmem:[#allocation3 + $0x63] sm:$0xff] }
 0x68d   :  { %14565 = vmatmul.mubr.f32.gmra.mrb[146].mxu0 %v7011_v41  ;;  %v7381_v41 = vld [vmem:[#allocation3 + $0xab] sm:$0xff] }
 0x68e   :  { %14567 = vmatprep.mubr.f32.mxu0 %v7012_v14  ;;  %v7382_v14 = vld [vmem:[#allocation3 + $0xb3] sm:$0xff] }
 0x691   :  { %14568 = vmatmul.mubr.f32.gmra.mrb[148].mxu0 %v7013_v30  ;;  %v7386_v30 = vld [vmem:[#allocation3 + $0xd3] sm:$0xff] }
 0x692   :  { %14570 = vmatprep.mubr.f32.mxu0 %v7014_v31  ;;  %v7387_v31 = vld [vmem:[#allocation3 + $0xdb] sm:$0xff] }
 0x695   :  { %14571 = vmatmul.mubr.f32.gmra.mrb[150].mxu0 %v7015_v43  ;;  %v7391_v43 = vld [vmem:[#allocation3 + $0xfb] sm:$0xff] }
 0x696   :  { %14573 = vmatprep.mubr.f32.mxu0 %v7016_v6  ;;  %v7392_v6 = vld [vmem:[#allocation3 + $0x103] sm:$0xff] }
 0x699   :  { %14574 = vmatmul.mubr.f32.gmra.mrb[152].mxu0 %v7017_v22  ;;  %v7396_v22 = vld [vmem:[#allocation3 + $0x123] sm:$0xff] }
 0x69a   :  { %14576 = vmatprep.mubr.f32.mxu0 %v7018_v61  ;;  %v7397_v61 = vld [vmem:[#allocation3 + $0x12b] sm:$0xff] }
 0x69d   :  { %14577 = vmatmul.mubr.f32.gmra.mrb[154].mxu0 %v7019_v17  ;;  %v7401_v17 = vld [vmem:[#allocation3 + $0x14b] sm:$0xff] }
 0x69e   :  { %14579 = vmatprep.mubr.f32.mxu0 %v7020_v5  ;;  %v7402_v5 = vld [vmem:[#allocation3 + $0x153] sm:$0xff] }
 0x6a1   :  { %14580 = vmatmul.mubr.f32.gmra.mrb[156].mxu0 %v7021_v62  ;;  %v7404_v62 = vld [vmem:[#allocation3 + $0x163] sm:$0xff] }
 0x6a2   :  { %14582 = vmatprep.mubr.f32.mxu0 %v7022_v56  ;;  %v7406_v56 = vld [vmem:[#allocation3 + $0x173] sm:$0xff] }
 0x6a5   :  { %14583 = vmatmul.mubr.f32.gmra.mrb[158].mxu0 %v7023_v13  ;;  %v7405_v13 = vld [vmem:[#allocation3 + $0x16b] sm:$0xff] }
 0x6a6   :  { %14585 = vmatprep.mubr.f32.mxu0 %v7024_v3  ;;  %v7407_v3 = vld [vmem:[#allocation3 + $0x17b] sm:$0xff] }
 0x6a9   :  { %14586 = vmatmul.mubr.f32.gmra.mrb[160].mxu0 %v7025_v33  ;;  %v8034_v33 = vld [vmem:[#allocation9 + $0x9f0] sm:$0xff] }
 0x6aa   :  { %14588 = vmatprep.mubr.f32.mxu0 %v7026_v20  ;;  %v8035_v20 = vld [vmem:[#allocation9 + $0x9f8] sm:$0xff] }
 0x6ad   :  { %14589 = vmatmul.mubr.f32.gmra.mrb[162].mxu0 %v7027_v37  ;;  %v16178_v37 = vpack.c.bf16 %v8035_v20, %v8034_v33 }
 0x6ae   :  { %14591 = vmatprep.mubr.f32.mxu0 %v7028_v25  ;;  %v7977_v25 = vld [vmem:[#allocation2 + $0xe] sm:$0xff] }
 0x6af   :  { %16179 = vmatprep.subr.bf16.mxu1 %v16178_v37  ;;  %14724 = vmatprep.mubr.f32.mxu1 %v7977_v25 }
 0x6b0   :  { %16181 = vmatpush3.bf16.msra.mxu1 %v16178_v37 }
 0x6b1   :  { %14592 = vmatmul.mubr.f32.gmra.mrb[164].mxu0 %v7029_v53  ;;  %v7962_v53 = vld [vmem:[#allocation9 + $0x908] sm:$0xff] }
 0x6b2   :  { %14594 = vmatprep.mubr.f32.mxu0 %v7030_v35  ;;  %v7961_v35 = vld [vmem:[#allocation9 + $0x900] sm:$0xff] }
 0x6b5   :  { %14595 = vmatmul.mubr.f32.gmra.mrb[166].mxu0 %v7031_v36  ;;  %v16182_v36 = vpack.c.bf16 %v7962_v53, %v7961_v35 }
 0x6b6   :  { %14629 = vmatprep.mubr.f32.mxu0 %v7366_v1  ;;  %v7978_v1 = vld [vmem:[#allocation2 + $0x16] sm:$0xff] }
 0x6b7   :  { %14725 = vmatmul.mubr.f32.vlgmr.msra.gmra.mrb[42].mxu1 %v7978_v1  ;;  %16183 = vmatprep.subr.bf16.mxu1 %v16182_v36 }
 0x6b8   :  { %16185 = vmatpush3.bf16.msra.mxu1 %v16182_v36 }
 0x6b9   :  { %14630 = vmatmul.mubr.f32.vlgmr.msra.gmra.mrb[126].mxu0 %v7367_v19  ;;  %v7963_v19 = vld [vmem:[#allocation9 + $0x910] sm:$0xff] }
 0x6ba   :  { %14632 = vmatprep.mubr.f32.mxu0 %v7368_v58  ;;  %v7964_v58 = vld [vmem:[#allocation9 + $0x918] sm:$0xff] }
 0x6bd   :  { %14633 = vmatmul.mubr.f32.gmra.mrb[128].mxu0 %v7369_v11  ;;  %v16186_v11 = vpack.c.bf16 %v7964_v58, %v7963_v19 }
 0x6be   :  { %14635 = vmatprep.mubr.f32.mxu0 %v7370_v2  ;;  %v7965_v2 = vld [vmem:[#allocation9 + $0x920] sm:$0xff] }
 0x6bf   :  { %16187 = vmatprep.subr.bf16.mxu1 %v16186_v11 }
 0x6c0   :  { %16189 = vmatpush3.bf16.msra.mxu1 %v16186_v11 }
 0x6c1   :  { %14636 = vmatmul.mubr.f32.gmra.mrb[130].mxu0 %v7371_v39  ;;  %v7966_v39 = vld [vmem:[#allocation9 + $0x928] sm:$0xff] }
 0x6c2   :  { %14638 = vmatprep.mubr.f32.mxu0 %v7372_v47  ;;  %v16190_v47 = vpack.c.bf16 %v7966_v39, %v7965_v2 }
 0x6c4   :  { %16191 = vmatprep.subr.bf16.mxu1 %v16190_v47 }
 0x6c5   :  { %14639 = vmatmul.mubr.f32.gmra.mrb[132].mxu0 %v7373_v46  ;;  %16193 = vmatpush3.bf16.msra.mxu1 %v16190_v47  ;;  %v7967_v46 = vld [vmem:[#allocation9 + $0x930] sm:$0xff] }
 0x6c6   :  { %14641 = vmatprep.mubr.f32.mxu0 %v7374_v12  ;;  %v7968_v12 = vld [vmem:[#allocation9 + $0x938] sm:$0xff] }
 0x6c9   :  { %14642 = vmatmul.mubr.f32.gmra.mrb[134].mxu0 %v7375_v24  ;;  %v16194_v24 = vpack.c.bf16 %v7968_v12, %v7967_v46 }
 0x6ca   :  { %14644 = vmatprep.mubr.f32.mxu0 %v7376_v16  ;;  %v7969_v16 = vld [vmem:[#allocation9 + $0x940] sm:$0xff] }
 0x6cb   :  { %16195 = vmatprep.subr.bf16.mxu1 %v16194_v24 }
 0x6cc   :  { %16197 = vmatpush3.bf16.msra.mxu1 %v16194_v24 }
 0x6cd   :  { %14645 = vmatmul.mubr.f32.gmra.mrb[136].mxu0 %v7377_v50  ;;  %v7970_v50 = vld [vmem:[#allocation9 + $0x948] sm:$0xff] }
 0x6ce   :  { %14647 = vmatprep.mubr.f32.mxu0 %v7378_v40  ;;  %v16198_v40 = vpack.c.bf16 %v7970_v50, %v7969_v16 }
 0x6d0   :  { %16199 = vmatprep.subr.bf16.mxu1 %v16198_v40 }
 0x6d1   :  { %14648 = vmatmul.mubr.f32.gmra.mrb[138].mxu0 %v7379_v44  ;;  %16201 = vmatpush3.bf16.msra.mxu1 %v16198_v40  ;;  %v7971_v44 = vld [vmem:[#allocation9 + $0x950] sm:$0xff] }
 0x6d2   :  { %14650 = vmatprep.mubr.f32.mxu0 %v7380_v60  ;;  %v7972_v60 = vld [vmem:[#allocation9 + $0x958] sm:$0xff] }
 0x6d5   :  { %14651 = vmatmul.mubr.f32.gmra.mrb[140].mxu0 %v7381_v41  ;;  %v16202_v41 = vpack.c.bf16 %v7972_v60, %v7971_v44 }
 0x6d6   :  { %14653 = vmatprep.mubr.f32.mxu0 %v7382_v14  ;;  %v7973_v14 = vld [vmem:[#allocation9 + $0x960] sm:$0xff] }
 0x6d7   :  { %16203 = vmatprep.subr.bf16.mxu1 %v16202_v41 }
 0x6d8   :  { %16205 = vmatpush3.bf16.msra.mxu1 %v16202_v41 }
 0x6d9   :  { %14654 = vmatmul.mubr.f32.gmra.mrb[142].mxu0 %v7383_v28  ;;  %v7974_v28 = vld [vmem:[#allocation9 + $0x968] sm:$0xff] }
 0x6da   :  { %14656 = vmatprep.mubr.f32.mxu0 %v7384_v52  ;;  %v16206_v52 = vpack.c.bf16 %v7974_v28, %v7973_v14 }
 0x6dc   :  { %16207 = vmatprep.subr.bf16.mxu1 %v16206_v52 }
 0x6dd   :  { %14657 = vmatmul.mubr.f32.gmra.mrb[144].mxu0 %v7385_v26  ;;  %16209 = vmatpush3.bf16.msra.mxu1 %v16206_v52  ;;  %v7975_v26 = vld [vmem:[#allocation9 + $0x970] sm:$0xff] }
 0x6de   :  { %14659 = vmatprep.mubr.f32.mxu0 %v7386_v30  ;;  %v7976_v30 = vld [vmem:[#allocation9 + $0x978] sm:$0xff] }
 0x6e1   :  { %14660 = vmatmul.mubr.f32.gmra.mrb[146].mxu0 %v7387_v31  ;;  %v16210_v31 = vpack.c.bf16 %v7976_v30, %v7975_v26 }
 0x6e2   :  { %14662 = vmatprep.mubr.f32.mxu0 %v7388_v55  ;;  %v8629_v55 = vld [vmem:[#allocation9 + $0xa00] sm:$0xff] }
 0x6e3   :  { %16211 = vmatprep.subr.bf16.mxu1 %v16210_v31 }
 0x6e4   :  { %16213 = vmatpush3.bf16.msra.mxu1 %v16210_v31 }
 0x6e5   :  { %14663 = vmatmul.mubr.f32.gmra.mrb[148].mxu0 %v7389_v54  ;;  %v8630_v54 = vld [vmem:[#allocation9 + $0xa08] sm:$0xff] }
 0x6e6   :  { %14665 = vmatprep.mubr.f32.mxu0 %v7390_v4  ;;  %v19283_v4 = vpack.c.bf16 %v8630_v54, %v8629_v55 }
 0x6e8   :  { %16215 = vmatprep.subr.bf16.mxu1 %v19283_v4 }
 0x6e9   :  { %14666 = vmatmul.mubr.f32.gmra.mrb[150].mxu0 %v7391_v43  ;;  %v19286_v43 = vld [vmem:[#allocation7 + $0x2] ss:$0 sm:$0xff] }
 0x6ea   :  { %14668 = vmatprep.mubr.f32.mxu0 %v7392_v6 }
 0x6ed   :  { %14669 = vmatmul.mubr.f32.gmra.mrb[152].mxu0 %v7393_v48 }
 0x6ee   :  { %14671 = vmatprep.mubr.f32.mxu0 %v7394_v49 }
 0x6f1   :  { %14672 = vmatmul.mubr.f32.gmra.mrb[154].mxu0 %v7395_v38 }
 0x6f2   :  { %14674 = vmatprep.mubr.f32.mxu0 %v7396_v22 }
 0x6f5   :  { %14675 = vmatmul.mubr.f32.gmra.mrb[156].mxu0 %v7397_v61 }
 0x6f6   :  { %14677 = vmatprep.mubr.f32.mxu0 %v7398_v0 }
 0x6f9   :  { %14678 = vmatmul.mubr.f32.gmra.mrb[158].mxu0 %v7399_v42 }
 0x6fa   :  { %14680 = vmatprep.mubr.f32.mxu0 %v7400_v51 }
 0x6fd   :  { %14681 = vmatmul.mubr.f32.gmra.mrb[160].mxu0 %v7401_v17 }
 0x6fe   :  { %14683 = vmatprep.mubr.f32.mxu0 %v7402_v5 }
 0x701   :  { %14684 = vmatmul.mubr.f32.gmra.mrb[162].mxu0 %v7403_v10 }
 0x702   :  { %14686 = vmatprep.mubr.f32.mxu0 %v7404_v62 }
 0x705   :  { %14687 = vmatmul.mubr.f32.gmra.mrb[164].mxu0 %v7405_v13 }
 0x706   :  { %14689 = vmatprep.mubr.f32.mxu0 %v7406_v56 }
 0x709   :  { %14690 = vmatmul.mubr.f32.gmra.mrb[166].mxu0 %v7407_v3 }
 0x78c   :  { %v14631_v6 = vpop.f32.mrb[126].mxu0 }
 0x78d   :  { %v7751_v48 = vadd.f32 %v14631_v6, %v19286_v43  ;;  %v7491_v49 = vpop.f32.mrb[127].mxu0 }
 0x78e   :  { %v7750_v38 = vadd.f32 %v19286_v43, %v7491_v49 }
 0x78f   :  { %v7793_v22 = vmax.f32 %v7751_v48, 0.0 }
 0x790   :  { %v7792_v61 = vmax.f32 %v7750_v38, 0.0  ;;  %v14634_v0 = vpop.f32.mrb[128].mxu0 }
 0x791   :  { %v7835_v42 = vmul.f32 %v7793_v22, %v19925_v57  ;;  %v7753_v51 = vadd.f32 %v14634_v0, %v19286_v43  ;;  %v7501_v17 = vpop.f32.mrb[129].mxu0 }
 0x792   :  { %v7834_v5 = vmul.f32 %v7792_v61, %v19926_v34  ;;  %v7752_v10 = vadd.f32 %v19286_v43, %v7501_v17 }
 0x793   :  { %7877 = vst [vmem:[#allocation2 + $0x28] sm:$0xff] %v7835_v42  ;;  %v7795_v62 = vmax.f32 %v7753_v51, 0.0 }
 0x794   :  { %7876 = vst [vmem:[#allocation2 + $0x20] sm:$0xff] %v7834_v5  ;;  %v7794_v56 = vmax.f32 %v7752_v10, 0.0  ;;  %v14637_v13 = vpop.f32.mrb[130].mxu0 }
 0x795   :  { %v7837_v3 = vmul.f32 %v7795_v62, %v19927_v27  ;;  %v7755_v33 = vadd.f32 %v14637_v13, %v19286_v43  ;;  %v7511_v20 = vpop.f32.mrb[131].mxu0 }
 0x796   :  { %v7836_v37 = vmul.f32 %v7794_v56, %v19928_v21  ;;  %v7754_v57 = vadd.f32 %v19286_v43, %v7511_v20 }
 0x797   :  { %7879 = vst [vmem:[#allocation2 + $0x38] sm:$0xff] %v7837_v3  ;;  %v7797_v25 = vmax.f32 %v7755_v33, 0.0  ;;  %v19967_v33 = vld [vmem:[#allocation54_spill] sm:$0xff] }
 0x798   :  { %7878 = vst [vmem:[#allocation2 + $0x30] sm:$0xff] %v7836_v37  ;;  %v7796_v34 = vmax.f32 %v7754_v57, 0.0  ;;  %v14640_v35 = vpop.f32.mrb[132].mxu0 }
 0x799   :  { %v7839_v53 = vmul.f32 %v7797_v25, %v19929_v9  ;;  %v7757_v36 = vadd.f32 %v14640_v35, %v19286_v43  ;;  %v7521_v1 = vpop.f32.mrb[133].mxu0 }
 0x79a   :  { %v7838_v19 = vmul.f32 %v7796_v34, %v19930_v15  ;;  %v7756_v27 = vadd.f32 %v19286_v43, %v7521_v1 }
 0x79b   :  { %7881 = vst [vmem:[#allocation2 + $0x48] sm:$0xff] %v7839_v53  ;;  %v7799_v58 = vmax.f32 %v7757_v36, 0.0  ;;  %v7979_v11 = vld [vmem:[#allocation2 + $0x1e] sm:$0xff]  ;;  %v7980_v21 = vld [vmem:[#allocation2 + $0x26] sm:$0xff] }
 0x79c   :  { %7880 = vst [vmem:[#allocation2 + $0x40] sm:$0xff] %v7838_v19  ;;  %v7798_v2 = vmax.f32 %v7756_v27, 0.0  ;;  %v14643_v39 = vpop.f32.mrb[134].mxu0  ;;  %14727 = vmatprep.mubr.f32.mxu1 %v7979_v11  ;;  %v19968_v53 = vld [vmem:[#allocation57_spill] sm:$0xff]  ;;  %v19969_v19 = vld [vmem:[#allocation56_spill] sm:$0xff] }
 0x79d   :  { %v7841_v47 = vmul.f32 %v7799_v58, %v19931_v63  ;;  %v7759_v46 = vadd.f32 %v14643_v39, %v19286_v43  ;;  %v7531_v9 = vpop.f32.mrb[135].mxu0  ;;  %14728 = vmatmul.mubr.f32.gmra.mrb[44].mxu1 %v7980_v21 }
 0x79e   :  { %v7840_v12 = vmul.f32 %v7798_v2, %v19932_v32  ;;  %v7758_v15 = vadd.f32 %v19286_v43, %v7531_v9 }
 0x79f   :  { %7883 = vst [vmem:[#allocation2 + $0x58] sm:$0xff] %v7841_v47  ;;  %v7801_v24 = vmax.f32 %v7759_v46, 0.0  ;;  %v7981_v16 = vld [vmem:[#allocation2 + $0x2e] sm:$0xff]  ;;  %v7982_v50 = vld [vmem:[#allocation2 + $0x36] sm:$0xff]  ;;  %v19970_v46 = vld [vmem:[#allocation14_spill] sm:$0xff] }
 0x7a0   :  { %7882 = vst [vmem:[#allocation2 + $0x50] sm:$0xff] %v7840_v12  ;;  %v7800_v40 = vmax.f32 %v7758_v15, 0.0  ;;  %v14646_v44 = vpop.f32.mrb[136].mxu0  ;;  %14730 = vmatprep.mubr.f32.mxu1 %v7981_v16 }
 0x7a1   :  { %v7843_v60 = vmul.f32 %v7801_v24, %v19933_v29  ;;  %v7761_v63 = vadd.f32 %v14646_v44, %v19286_v43  ;;  %v7541_v41 = vpop.f32.mrb[137].mxu0  ;;  %14731 = vmatmul.mubr.f32.gmra.mrb[46].mxu1 %v7982_v50  ;;  %v19971_v24 = vld [vmem:[#allocation58_spill] sm:$0xff] }
 0x7a2   :  { %v7842_v14 = vmul.f32 %v7800_v40, %v19934_v59  ;;  %v7760_v32 = vadd.f32 %v19286_v43, %v7541_v41 }
 0x7a3   :  { %7885 = vst [vmem:[#allocation2 + $0x68] sm:$0xff] %v7843_v60  ;;  %v7803_v28 = vmax.f32 %v7761_v63, 0.0  ;;  %v7983_v52 = vld [vmem:[#allocation2 + $0x3e] sm:$0xff]  ;;  %v7984_v26 = vld [vmem:[#allocation2 + $0x46] sm:$0xff] }
 0x7a4   :  { %7884 = vst [vmem:[#allocation2 + $0x60] sm:$0xff] %v7842_v14  ;;  %v7802_v30 = vmax.f32 %v7760_v32, 0.0  ;;  %v14649_v31 = vpop.f32.mrb[138].mxu0  ;;  %14733 = vmatprep.mubr.f32.mxu1 %v7983_v52  ;;  %v19972_v14 = vld [vmem:[#allocation15_spill] sm:$0xff] }
 0x7a5   :  { %v7845_v55 = vmul.f32 %v7803_v28, %v19935_v8  ;;  %v7763_v29 = vadd.f32 %v14649_v31, %v19286_v43  ;;  %v7551_v54 = vpop.f32.mrb[139].mxu0  ;;  %14734 = vmatmul.mubr.f32.gmra.mrb[48].mxu1 %v7984_v26  ;;  %v19973_v26 = vld [vmem:[#allocation16_spill] sm:$0xff] }
 0x7a6   :  { %v7844_v6 = vmul.f32 %v7802_v30, %v19936_v7  ;;  %v7762_v59 = vadd.f32 %v19286_v43, %v7551_v54 }
 0x7a7   :  { %7887 = vst [vmem:[#allocation2 + $0x78] sm:$0xff] %v7845_v55  ;;  %v7805_v48 = vmax.f32 %v7763_v29, 0.0  ;;  %v7985_v49 = vld [vmem:[#allocation2 + $0x4e] sm:$0xff]  ;;  %v7986_v38 = vld [vmem:[#allocation2 + $0x56] sm:$0xff] }
 0x7a8   :  { %7886 = vst [vmem:[#allocation2 + $0x70] sm:$0xff] %v7844_v6  ;;  %v7804_v22 = vmax.f32 %v7762_v59, 0.0  ;;  %v14652_v61 = vpop.f32.mrb[140].mxu0  ;;  %14736 = vmatprep.mubr.f32.mxu1 %v7985_v49 }
 0x7a9   :  { %v7847_v0 = vmul.f32 %v7805_v48, %v19937_v18  ;;  %v7765_v8 = vadd.f32 %v14652_v61, %v19286_v43  ;;  %v7561_v42 = vpop.f32.mrb[141].mxu0  ;;  %14737 = vmatmul.mubr.f32.gmra.mrb[50].mxu1 %v7986_v38  ;;  %v19974_v48 = vld [vmem:[#allocation18_spill] sm:$0xff]  ;;  %v19975_v61 = vld [vmem:[#allocation17_spill] sm:$0xff] }
 0x7aa   :  { %v7846_v51 = vmul.f32 %v7804_v22, %v19938_v23  ;;  %v7764_v7 = vadd.f32 %v19286_v43, %v7561_v42 }
 0x7ab   :  { %7889 = vst [vmem:[#allocation2 + $0x88] sm:$0xff] %v7847_v0  ;;  %v7807_v17 = vmax.f32 %v7765_v8, 0.0  ;;  %v7987_v5 = vld [vmem:[#allocation2 + $0x5e] sm:$0xff]  ;;  %v7988_v10 = vld [vmem:[#allocation2 + $0x66] sm:$0xff] }
 0x7ac   :  { %7888 = vst [vmem:[#allocation2 + $0x80] sm:$0xff] %v7846_v51  ;;  %v7806_v62 = vmax.f32 %v7764_v7, 0.0  ;;  %v14655_v56 = vpop.f32.mrb[142].mxu0  ;;  %14739 = vmatprep.mubr.f32.mxu1 %v7987_v5 }
 0x7ad   :  { %v7849_v13 = vmul.f32 %v7807_v17, %v19939_v45  ;;  %v7767_v18 = vadd.f32 %v14655_v56, %v19286_v43  ;;  %v7571_v3 = vpop.f32.mrb[143].mxu0  ;;  %14740 = vmatmul.mubr.f32.gmra.mrb[52].mxu1 %v7988_v10  ;;  %v19976_v10 = vld [vmem:[#allocation20_spill] sm:$0xff] }
 0x7ae   :  { %v7848_v20 = vmul.f32 %v7806_v62, %v19967_v33  ;;  %v7766_v23 = vadd.f32 %v19286_v43, %v7571_v3 }
 0x7af   :  { %7891 = vst [vmem:[#allocation2 + $0x98] sm:$0xff] %v7849_v13  ;;  %v7809_v37 = vmax.f32 %v7767_v18, 0.0  ;;  %v7989_v57 = vld [vmem:[#allocation2 + $0x6e] sm:$0xff]  ;;  %v7990_v25 = vld [vmem:[#allocation2 + $0x76] sm:$0xff] }
 0x7b0   :  { %7890 = vst [vmem:[#allocation2 + $0x90] sm:$0xff] %v7848_v20  ;;  %v7808_v34 = vmax.f32 %v7766_v23, 0.0  ;;  %v14658_v35 = vpop.f32.mrb[144].mxu0  ;;  %14742 = vmatprep.mubr.f32.mxu1 %v7989_v57  ;;  %v19977_v18 = vld [vmem:[#allocation19_spill] sm:$0xff] }
 0x7b1   :  { %v7851_v36 = vmul.f32 %v7809_v37, %v19968_v53  ;;  %v7769_v45 = vadd.f32 %v14658_v35, %v19286_v43  ;;  %v7581_v1 = vpop.f32.mrb[145].mxu0  ;;  %14743 = vmatmul.mubr.f32.gmra.mrb[54].mxu1 %v7990_v25 }
 0x7b2   :  { %v7850_v27 = vmul.f32 %v7808_v34, %v19969_v19  ;;  %v7768_v58 = vadd.f32 %v19286_v43, %v7581_v1  ;;  %v19978_v34 = vld [vmem:[#allocation23_spill] sm:$0xff] }
 0x7b3   :  { %7893 = vst [vmem:[#allocation2 + $0xa8] sm:$0xff] %v7851_v36  ;;  %v7811_v11 = vmax.f32 %v7769_v45, 0.0  ;;  %v7991_v21 = vld [vmem:[#allocation2 + $0x7e] sm:$0xff]  ;;  %v7992_v2 = vld [vmem:[#allocation2 + $0x86] sm:$0xff] }
 0x7b4   :  { %7892 = vst [vmem:[#allocation2 + $0xa0] sm:$0xff] %v7850_v27  ;;  %v7810_v39 = vmax.f32 %v7768_v58, 0.0  ;;  %v14661_v47 = vpop.f32.mrb[146].mxu0  ;;  %14745 = vmatprep.mubr.f32.mxu1 %v7991_v21  ;;  %v19979_v45 = vld [vmem:[#allocation21_spill] sm:$0xff] }
 0x7b5   :  { %v7853_v9 = vmul.f32 %v7811_v11, %v19970_v46  ;;  %v7771_v12 = vadd.f32 %v14661_v47, %v19286_v43  ;;  %v7591_v15 = vpop.f32.mrb[147].mxu0  ;;  %14746 = vmatmul.mubr.f32.gmra.mrb[56].mxu1 %v7992_v2 }
 0x7b6   :  { %v7852_v16 = vmul.f32 %v7810_v39, %v19971_v24  ;;  %v7770_v50 = vadd.f32 %v19286_v43, %v7591_v15  ;;  %v19980_v39 = vld [vmem:[#allocation26_spill] sm:$0xff] }
 0x7b7   :  { %7895 = vst [vmem:[#allocation2 + $0xb8] sm:$0xff] %v7853_v9  ;;  %v7813_v40 = vmax.f32 %v7771_v12, 0.0  ;;  %v7993_v44 = vld [vmem:[#allocation2 + $0x8e] sm:$0xff]  ;;  %v7994_v60 = vld [vmem:[#allocation2 + $0x96] sm:$0xff] }
 0x7b8   :  { %7894 = vst [vmem:[#allocation2 + $0xb0] sm:$0xff] %v7852_v16  ;;  %v7812_v63 = vmax.f32 %v7770_v50, 0.0  ;;  %v14664_v41 = vpop.f32.mrb[148].mxu0  ;;  %14748 = vmatprep.mubr.f32.mxu1 %v7993_v44  ;;  %v19981_v12 = vld [vmem:[#allocation24_spill] sm:$0xff] }
 0x7b9   :  { %v7855_v32 = vmul.f32 %v7813_v40, %v19972_v14  ;;  %v7773_v28 = vadd.f32 %v14664_v41, %v19286_v43  ;;  %v7601_v52 = vpop.f32.mrb[149].mxu0  ;;  %14749 = vmatmul.mubr.f32.gmra.mrb[58].mxu1 %v7994_v60 }
 0x7ba   :  { %v7854_v30 = vmul.f32 %v7812_v63, %v19973_v26  ;;  %v7772_v31 = vadd.f32 %v19286_v43, %v7601_v52  ;;  %v19982_v63 = vld [vmem:[#allocation29_spill] sm:$0xff] }
 0x7bb   :  { %7897 = vst [vmem:[#allocation2 + $0xc8] sm:$0xff] %v7855_v32  ;;  %v7815_v55 = vmax.f32 %v7773_v28, 0.0  ;;  %v7995_v29 = vld [vmem:[#allocation2 + $0x9e] sm:$0xff]  ;;  %v7996_v54 = vld [vmem:[#allocation2 + $0xa6] sm:$0xff]  ;;  %v19983_v28 = vld [vmem:[#allocation28_spill] sm:$0xff] }
 0x7bc   :  { %7896 = vst [vmem:[#allocation2 + $0xc0] sm:$0xff] %v7854_v30  ;;  %v7814_v6 = vmax.f32 %v7772_v31, 0.0  ;;  %v14667_v59 = vpop.f32.mrb[150].mxu0  ;;  %14751 = vmatprep.mubr.f32.mxu1 %v7995_v29 }
 0x7bd   :  { %v7857_v49 = vmul.f32 %v7815_v55, %v19974_v48  ;;  %v7775_v38 = vadd.f32 %v14667_v59, %v19286_v43  ;;  %v7611_v22 = vpop.f32.mrb[151].mxu0  ;;  %14752 = vmatmul.mubr.f32.gmra.mrb[60].mxu1 %v7996_v54 }
 0x7be   :  { %v7856_v0 = vmul.f32 %v7814_v6, %v19975_v61  ;;  %v7774_v8 = vadd.f32 %v19286_v43, %v7611_v22  ;;  %v19984_v6 = vld [vmem:[#allocation31_spill] sm:$0xff] }
 0x7bf   :  { %7899 = vst [vmem:[#allocation2 + $0xd8] sm:$0xff] %v7857_v49  ;;  %v7817_v42 = vmax.f32 %v7775_v38, 0.0  ;;  %v7997_v51 = vld [vmem:[#allocation2 + $0xae] sm:$0xff]  ;;  %v7998_v7 = vld [vmem:[#allocation2 + $0xb6] sm:$0xff]  ;;  %v19985_v38 = vld [vmem:[#allocation30_spill] sm:$0xff] }
 0x7c0   :  { %7898 = vst [vmem:[#allocation2 + $0xd0] sm:$0xff] %v7856_v0  ;;  %v7816_v17 = vmax.f32 %v7774_v8, 0.0  ;;  %v14670_v5 = vpop.f32.mrb[152].mxu0  ;;  %14754 = vmatprep.mubr.f32.mxu1 %v7997_v51 }
 0x7c1   :  { %v7859_v62 = vmul.f32 %v7817_v42, %v19976_v10  ;;  %v7777_v56 = vadd.f32 %v14670_v5, %v19286_v43  ;;  %v7621_v13 = vpop.f32.mrb[153].mxu0  ;;  %14755 = vmatmul.mubr.f32.gmra.mrb[62].mxu1 %v7998_v7 }
 0x7c2   :  { %v7858_v3 = vmul.f32 %v7816_v17, %v19977_v18  ;;  %v7776_v33 = vadd.f32 %v19286_v43, %v7621_v13  ;;  %v19986_v17 = vld [vmem:[#allocation33_spill] sm:$0xff] }
 0x7c3   :  { %7901 = vst [vmem:[#allocation2 + $0xe8] sm:$0xff] %v7859_v62  ;;  %v7819_v20 = vmax.f32 %v7777_v56, 0.0  ;;  %v7999_v23 = vld [vmem:[#allocation2 + $0xbe] sm:$0xff]  ;;  %v8000_v37 = vld [vmem:[#allocation2 + $0xc6] sm:$0xff]  ;;  %v19987_v56 = vld [vmem:[#allocation32_spill] sm:$0xff] }
 0x7c4   :  { %7900 = vst [vmem:[#allocation2 + $0xe0] sm:$0xff] %v7858_v3  ;;  %v7818_v57 = vmax.f32 %v7776_v33, 0.0  ;;  %v14673_v25 = vpop.f32.mrb[154].mxu0  ;;  %14757 = vmatprep.mubr.f32.mxu1 %v7999_v23 }
 0x7c5   :  { %v7861_v35 = vmul.f32 %v7819_v20, %v19978_v34  ;;  %v7779_v53 = vadd.f32 %v14673_v25, %v19286_v43  ;;  %v7631_v36 = vpop.f32.mrb[155].mxu0  ;;  %14758 = vmatmul.mubr.f32.gmra.mrb[64].mxu1 %v8000_v37 }
 0x7c6   :  { %v7860_v1 = vmul.f32 %v7818_v57, %v19979_v45  ;;  %v7778_v19 = vadd.f32 %v19286_v43, %v7631_v36  ;;  %v19988_v57 = vld [vmem:[#allocation35_spill] sm:$0xff] }
 0x7c7   :  { %7903 = vst [vmem:[#allocation2 + $0xf8] sm:$0xff] %v7861_v35  ;;  %v7821_v27 = vmax.f32 %v7779_v53, 0.0  ;;  %v8001_v58 = vld [vmem:[#allocation2 + $0xce] sm:$0xff]  ;;  %v8002_v11 = vld [vmem:[#allocation2 + $0xd6] sm:$0xff]  ;;  %v19989_v53 = vld [vmem:[#allocation34_spill] sm:$0xff] }
 0x7c8   :  { %7902 = vst [vmem:[#allocation2 + $0xf0] sm:$0xff] %v7860_v1  ;;  %v7820_v21 = vmax.f32 %v7778_v19, 0.0  ;;  %v14676_v2 = vpop.f32.mrb[156].mxu0  ;;  %14760 = vmatprep.mubr.f32.mxu1 %v8001_v58 }
 0x7c9   :  { %v7863_v47 = vmul.f32 %v7821_v27, %v19980_v39  ;;  %v7781_v46 = vadd.f32 %v14676_v2, %v19286_v43  ;;  %v7641_v9 = vpop.f32.mrb[157].mxu0  ;;  %14761 = vmatmul.mubr.f32.gmra.mrb[66].mxu1 %v8002_v11 }
 0x7ca   :  { %v7862_v15 = vmul.f32 %v7820_v21, %v19981_v12  ;;  %v7780_v24 = vadd.f32 %v19286_v43, %v7641_v9  ;;  %v19990_v21 = vld [vmem:[#allocation37_spill] sm:$0xff] }
 0x7cb   :  { %7905 = vst [vmem:[#allocation2 + $0x108] sm:$0xff] %v7863_v47  ;;  %v7823_v16 = vmax.f32 %v7781_v46, 0.0  ;;  %v8003_v50 = vld [vmem:[#allocation2 + $0xde] sm:$0xff]  ;;  %v8004_v40 = vld [vmem:[#allocation2 + $0xe6] sm:$0xff]  ;;  %v19991_v46 = vld [vmem:[#allocation36_spill] sm:$0xff] }
 0x7cc   :  { %7904 = vst [vmem:[#allocation2 + $0x100] sm:$0xff] %v7862_v15  ;;  %v7822_v44 = vmax.f32 %v7780_v24, 0.0  ;;  %v14679_v60 = vpop.f32.mrb[158].mxu0  ;;  %14763 = vmatprep.mubr.f32.mxu1 %v8003_v50 }
 0x7cd   :  { %v7865_v41 = vmul.f32 %v7823_v16, %v19982_v63  ;;  %v7783_v14 = vadd.f32 %v14679_v60, %v19286_v43  ;;  %v7651_v32 = vpop.f32.mrb[159].mxu0  ;;  %14764 = vmatmul.mubr.f32.gmra.mrb[68].mxu1 %v8004_v40  ;;  %v19992_v40 = vld [vmem:[#allocation39_spill] sm:$0xff]  ;;  %v19993_v60 = vld [vmem:[#allocation38_spill] sm:$0xff] }
 0x7ce   :  { %v7864_v52 = vmul.f32 %v7822_v44, %v19983_v28  ;;  %v7782_v26 = vadd.f32 %v19286_v43, %v7651_v32  ;;  %v7918_v28 = vld [vmem:[#allocation2 + $0xd] sm:$0xff] }
 0x7cf   :  { %7907 = vst [vmem:[#allocation2 + $0x118] sm:$0xff] %v7865_v41  ;;  %v7825_v30 = vmax.f32 %v7783_v14, 0.0  ;;  %v8005_v31 = vld [vmem:[#allocation2 + $0xee] sm:$0xff]  ;;  %v8006_v55 = vld [vmem:[#allocation2 + $0xf6] sm:$0xff] }
 0x7d0   :  { %7906 = vst [vmem:[#allocation2 + $0x110] sm:$0xff] %v7864_v52  ;;  %v7824_v29 = vmax.f32 %v7782_v26, 0.0  ;;  %v14682_v54 = vpop.f32.mrb[160].mxu0  ;;  %14766 = vmatprep.mubr.f32.mxu1 %v8005_v31  ;;  %v8631_v52 = vld [vmem:[#allocation9 + $0xa10] sm:$0xff]  ;;  %v8632_v26 = vld [vmem:[#allocation9 + $0xa18] sm:$0xff] }
 0x7d1   :  { %v7867_v59 = vmul.f32 %v7825_v30, %v19984_v6  ;;  %v7785_v48 = vadd.f32 %v14682_v54, %v19286_v43  ;;  %v7661_v49 = vpop.f32.mrb[161].mxu0  ;;  %14767 = vmatmul.mubr.f32.gmra.mrb[70].mxu1 %v8006_v55  ;;  %v7919_v30 = vld [vmem:[#allocation2 + $0x15] sm:$0xff]  ;;  %v16218_v31 = vpack.c.bf16 %v8632_v26, %v8631_v52  ;;  %v7920_v54 = vld [vmem:[#allocation2 + $0x1d] sm:$0xff] }
 0x7d2   :  { %v7866_v22 = vmul.f32 %v7824_v29, %v19985_v38  ;;  %v7784_v61 = vadd.f32 %v19286_v43, %v7661_v49  ;;  %v8633_v55 = vld [vmem:[#allocation9 + $0xa20] sm:$0xff]  ;;  %v8634_v29 = vld [vmem:[#allocation9 + $0xa28] sm:$0xff]  ;;  %v8636_v49 = vld [vmem:[#allocation9 + $0xa38] sm:$0xff] }
 0x7d3   :  { %7909 = vst [vmem:[#allocation2 + $0x128] sm:$0xff] %v7867_v59  ;;  %v7827_v0 = vmax.f32 %v7785_v48, 0.0  ;;  %v8007_v8 = vld [vmem:[#allocation2 + $0xfe] sm:$0xff]  ;;  %v8008_v42 = vld [vmem:[#allocation2 + $0x106] sm:$0xff]  ;;  %v16222_v6 = vpack.c.bf16 %v8634_v29, %v8633_v55  ;;  %v8586_v26 = vld [vmem:[#allocation2 + $0xf] sm:$0xff] }
 0x7d4   :  { %7908 = vst [vmem:[#allocation2 + $0x120] sm:$0xff] %v7866_v22  ;;  %v7826_v51 = vmax.f32 %v7784_v61, 0.0  ;;  %v14685_v7 = vpop.f32.mrb[162].mxu0  ;;  %14769 = vmatprep.mubr.f32.mxu1 %v8007_v8  ;;  %v7921_v59 = vld [vmem:[#allocation2 + $0x25] sm:$0xff]  ;;  %v7922_v38 = vld [vmem:[#allocation2 + $0x2d] sm:$0xff]  ;;  %v7923_v61 = vld [vmem:[#allocation2 + $0x35] sm:$0xff] }
 0x7d5   :  { %v7869_v5 = vmul.f32 %v7827_v0, %v19986_v17  ;;  %v7787_v10 = vadd.f32 %v14685_v7, %v19286_v43  ;;  %v7671_v62 = vpop.f32.mrb[163].mxu0  ;;  %14770 = vmatmul.mubr.f32.gmra.mrb[72].mxu1 %v8008_v42  ;;  %v8635_v48 = vld [vmem:[#allocation9 + $0xa30] sm:$0xff]  ;;  %v8637_v0 = vld [vmem:[#allocation9 + $0xa40] sm:$0xff]  ;;  %v8638_v8 = vld [vmem:[#allocation9 + $0xa48] sm:$0xff] }
 0x7d6   :  { %v7868_v13 = vmul.f32 %v7826_v51, %v19987_v56  ;;  %v7786_v18 = vadd.f32 %v19286_v43, %v7671_v62  ;;  %v16226_v22 = vpack.c.bf16 %v8636_v49, %v8635_v48  ;;  %v7924_v42 = vld [vmem:[#allocation2 + $0x3d] sm:$0xff]  ;;  %v7925_v51 = vld [vmem:[#allocation2 + $0x45] sm:$0xff]  ;;  %v7927_v62 = vld [vmem:[#allocation2 + $0x55] sm:$0xff] }
 0x7d7   :  { %7911 = vst [vmem:[#allocation2 + $0x138] sm:$0xff] %v7869_v5  ;;  %v7829_v3 = vmax.f32 %v7787_v10, 0.0  ;;  %v8009_v33 = vld [vmem:[#allocation2 + $0x10e] sm:$0xff]  ;;  %v8010_v20 = vld [vmem:[#allocation2 + $0x116] sm:$0xff]  ;;  %v8639_v7 = vld [vmem:[#allocation9 + $0xa50] sm:$0xff] }
 0x7d8   :  { %7910 = vst [vmem:[#allocation2 + $0x130] sm:$0xff] %v7868_v13  ;;  %v7828_v23 = vmax.f32 %v7786_v18, 0.0  ;;  %v14688_v37 = vpop.f32.mrb[164].mxu0  ;;  %14772 = vmatprep.mubr.f32.mxu1 %v8009_v33  ;;  %v8640_v17 = vld [vmem:[#allocation9 + $0xa58] sm:$0xff]  ;;  %v8641_v56 = vld [vmem:[#allocation9 + $0xa60] sm:$0xff]  ;;  %v8642_v13 = vld [vmem:[#allocation9 + $0xa68] sm:$0xff] }
 0x7d9   :  { %v7871_v25 = vmul.f32 %v7829_v3, %v19988_v57  ;;  %v7789_v34 = vadd.f32 %v14688_v37, %v19286_v43  ;;  %v7681_v35 = vpop.f32.mrb[165].mxu0  ;;  %14773 = vmatmul.mubr.f32.gmra.mrb[74].mxu1 %v8010_v20  ;;  %v7926_v5 = vld [vmem:[#allocation2 + $0x4d] sm:$0xff]  ;;  %v16234_v10 = vpack.c.bf16 %v8640_v17, %v8639_v7  ;;  %v7928_v18 = vld [vmem:[#allocation2 + $0x5d] sm:$0xff]  ;;  %v16238_v3 = vpack.c.bf16 %v8642_v13, %v8641_v56  ;;  %v7929_v33 = vld [vmem:[#allocation2 + $0x65] sm:$0xff] }
 0x7da   :  { %v7870_v36 = vmul.f32 %v7828_v23, %v19989_v53  ;;  %v7788_v45 = vadd.f32 %v19286_v43, %v7681_v35  ;;  %v8643_v20 = vld [vmem:[#allocation9 + $0xa70] sm:$0xff]  ;;  %v8644_v23 = vld [vmem:[#allocation9 + $0xa78] sm:$0xff]  ;;  %v9006_v35 = vld [vmem:[#allocation9 + $0xa88] sm:$0xff] }
 0x7db   :  { %7913 = vst [vmem:[#allocation2 + $0x148] sm:$0xff] %v7871_v25  ;;  %v7831_v1 = vmax.f32 %v7789_v34, 0.0  ;;  %v8011_v19 = vld [vmem:[#allocation2 + $0x11e] sm:$0xff]  ;;  %v8012_v27 = vld [vmem:[#allocation2 + $0x126] sm:$0xff]  ;;  %v16242_v57 = vpack.c.bf16 %v8644_v23, %v8643_v20  ;;  %v7931_v25 = vld [vmem:[#allocation2 + $0x75] sm:$0xff] }
 0x7dc   :  { %7912 = vst [vmem:[#allocation2 + $0x140] sm:$0xff] %v7870_v36  ;;  %v7830_v58 = vmax.f32 %v7788_v45, 0.0  ;;  %v14691_v11 = vpop.f32.mrb[166].mxu0  ;;  %14775 = vmatprep.mubr.f32.mxu1 %v8011_v19  ;;  %v7930_v37 = vld [vmem:[#allocation2 + $0x6d] sm:$0xff]  ;;  %v7932_v53 = vld [vmem:[#allocation2 + $0x7d] sm:$0xff]  ;;  %v7933_v45 = vld [vmem:[#allocation2 + $0x85] sm:$0xff] }
 0x7dd   :  { %v7873_v2 = vmul.f32 %v7831_v1, %v19990_v21  ;;  %v7791_v39 = vadd.f32 %v14691_v11, %v19286_v43  ;;  %v7691_v47 = vpop.f32.mrb[167].mxu0  ;;  %14776 = vmatmul.mubr.f32.gmra.mrb[76].mxu1 %v8012_v27  ;;  %v9005_v34 = vld [vmem:[#allocation9 + $0xa80] sm:$0xff]  ;;  %v7936_v27 = vld [vmem:[#allocation2 + $0x9d] sm:$0xff]  ;;  %v9008_v55 = vld [vmem:[#allocation9 + $0xa98] sm:$0xff] }
 0x7de   :  { %v7872_v9 = vmul.f32 %v7830_v58, %v19991_v46  ;;  %v7790_v12 = vadd.f32 %v19286_v43, %v7691_v47  ;;  %v19376_v36 = vpack.c.bf16 %v9006_v35, %v9005_v34  ;;  %v7934_v1 = vld [vmem:[#allocation2 + $0x8d] sm:$0xff]  ;;  %v7935_v19 = vld [vmem:[#allocation2 + $0x95] sm:$0xff]  ;;  %v7937_v58 = vld [vmem:[#allocation2 + $0xa5] sm:$0xff] }
 0x7df   :  { %7915 = vst [vmem:[#allocation2 + $0x158] sm:$0xff] %v7873_v2  ;;  %v7833_v15 = vmax.f32 %v7791_v39, 0.0  ;;  %v8013_v24 = vld [vmem:[#allocation2 + $0x12e] sm:$0xff]  ;;  %v8014_v16 = vld [vmem:[#allocation2 + $0x136] sm:$0xff]  ;;  %v7941_v39 = vld [vmem:[#allocation2 + $0xc5] sm:$0xff] }
 0x7e0   :  { %7914 = vst [vmem:[#allocation2 + $0x150] sm:$0xff] %v7872_v9  ;;  %v7832_v50 = vmax.f32 %v7790_v12, 0.0  ;;  %14778 = vmatprep.mubr.f32.mxu1 %v8013_v24  ;;  %v7938_v11 = vld [vmem:[#allocation2 + $0xad] sm:$0xff]  ;;  %v7939_v21 = vld [vmem:[#allocation2 + $0xb5] sm:$0xff]  ;;  %v7940_v2 = vld [vmem:[#allocation2 + $0xbd] sm:$0xff] }
 0x7e1   :  { %v7875_v44 = vmul.f32 %v7833_v15, %v19992_v40  ;;  %14779 = vmatmul.mubr.f32.gmra.mrb[78].mxu1 %v8014_v16  ;;  %v7942_v47 = vld [vmem:[#allocation2 + $0xcd] sm:$0xff]  ;;  %v7943_v46 = vld [vmem:[#allocation2 + $0xd5] sm:$0xff]  ;;  %v7944_v9 = vld [vmem:[#allocation2 + $0xdd] sm:$0xff] }
 0x7e2   :  { %v19372_v63 = vmul.f32 %v7832_v50, %v19993_v60  ;;  %v7945_v12 = vld [vmem:[#allocation2 + $0xe5] sm:$0xff]  ;;  %v7946_v15 = vld [vmem:[#allocation2 + $0xed] sm:$0xff]  ;;  %v7947_v24 = vld [vmem:[#allocation2 + $0xf5] sm:$0xff] }
 0x7e3   :  { %7917 = vst [vmem:[#allocation2 + $0x168] sm:$0xff] %v7875_v44  ;;  %v8015_v41 = vld [vmem:[#allocation2 + $0x13e] sm:$0xff]  ;;  %v8016_v14 = vld [vmem:[#allocation2 + $0x146] sm:$0xff]  ;;  %v7951_v44 = vld [vmem:[#allocation2 + $0x115] sm:$0xff] }
 0x7e4   :  { %7916 = vst [vmem:[#allocation2 + $0x160] sm:$0xff] %v19372_v63  ;;  %14781 = vmatprep.mubr.f32.mxu1 %v8015_v41  ;;  %v7948_v16 = vld [vmem:[#allocation2 + $0xfd] sm:$0xff]  ;;  %v7949_v50 = vld [vmem:[#allocation2 + $0x105] sm:$0xff]  ;;  %v7950_v40 = vld [vmem:[#allocation2 + $0x10d] sm:$0xff] }
 0x7e5   :  { %14782 = vmatmul.mubr.f32.gmra.mrb[80].mxu1 %v8016_v14  ;;  %v7952_v60 = vld [vmem:[#allocation2 + $0x11d] sm:$0xff]  ;;  %v7953_v41 = vld [vmem:[#allocation2 + $0x125] sm:$0xff]  ;;  %v7954_v14 = vld [vmem:[#allocation2 + $0x12d] sm:$0xff] }
 0x7e6   :  { %v8587_v29 = vld [vmem:[#allocation2 + $0x17] sm:$0xff]  ;;  %v19379_v48 = vld [vmem:[#allocation2 + $0x1f] sm:$0xff]  ;;  %v19398_v56 = vld [vmem:[#allocation2 + $0x4f] sm:$0xff] }
 0x7e7   :  { %v8017_v43 = vld [vmem:[#allocation2 + $0x14e] sm:$0xff]  ;;  %v8018_v32 = vld [vmem:[#allocation2 + $0x156] sm:$0xff]  ;;  %v19392_v7 = vld [vmem:[#allocation2 + $0x3f] sm:$0xff] }
 0x7e8   :  { %14784 = vmatprep.mubr.f32.mxu1 %v8017_v43  ;;  %v7955_v43 = vld [vmem:[#allocation2 + $0x135] sm:$0xff]  ;;  %v7958_v52 = vld [vmem:[#allocation2 + $0x14d] sm:$0xff]  ;;  %v19404_v20 = vld [vmem:[#allocation2 + $0x5f] sm:$0xff] }
 0x7e9   :  { %14785 = vmatmul.mubr.f32.gmra.mrb[82].mxu1 %v8018_v32  ;;  %v7956_v32 = vld [vmem:[#allocation2 + $0x13d] sm:$0xff]  ;;  %v19410_v34 = vld [vmem:[#allocation2 + $0x6f] sm:$0xff] }
 0x7ea   :  { %14819 = vmatprep.mubr.f32.mxu1 %v7918_v28  ;;  %v7957_v28 = vld [vmem:[#allocation2 + $0x145] sm:$0xff] }
 0x7ed   :  { %14820 = vmatmul.mubr.f32.vlgmr.msra.gmra.mrb[42].mxu1 %v7919_v30  ;;  %v7959_v30 = vld [vmem:[#allocation2 + $0x155] sm:$0xff] }
 0x7ee   :  { %16217 = vmatpush3.bf16.msra.mxu1 %v19283_v4  ;;  %14822 = vmatprep.mubr.f32.mxu1 %v7920_v54  ;;  %v16230_v4 = vpack.c.bf16 %v8638_v8, %v8637_v0  ;;  %v19386_v0 = vld [vmem:[#allocation2 + $0x2f] sm:$0xff] }
 0x7ef   :  { %16219 = vmatprep.subr.bf16.mxu1 %v16218_v31 }
 0x7f1   :  { %14823 = vmatmul.mubr.f32.gmra.mrb[44].mxu1 %v7921_v59  ;;  %v9010_v59 = vld [vmem:[#allocation9 + $0xaa8] sm:$0xff] }
 0x7f2   :  { %14825 = vmatprep.mubr.f32.mxu1 %v7922_v38  ;;  %16221 = vmatpush3.bf16.msra.mxu1 %v16218_v31  ;;  %v9007_v31 = vld [vmem:[#allocation9 + $0xa90] sm:$0xff] }
 0x7f3   :  { %16223 = vmatprep.subr.bf16.mxu1 %v16222_v6  ;;  %v16250_v54 = vpack.c.bf16 %v9008_v55, %v9007_v31  ;;  %v19383_v38 = vld [vmem:[#allocation2 + $0x27] sm:$0xff]  ;;  %v19497_v31 = vld [vmem:[#allocation2 + $0x14f] sm:$0xff]  ;;  %v19500_v55 = vld [vmem:[#allocation2 + $0x157] sm:$0xff] }
 0x7f5   :  { %14826 = vmatmul.mubr.f32.gmra.mrb[46].mxu1 %v7923_v61  ;;  %v9012_v61 = vld [vmem:[#allocation9 + $0xab8] sm:$0xff] }
 0x7f6   :  { %14828 = vmatprep.mubr.f32.mxu1 %v7924_v42  ;;  %16225 = vmatpush3.bf16.msra.mxu1 %v16222_v6  ;;  %v9009_v6 = vld [vmem:[#allocation9 + $0xaa0] sm:$0xff] }
 0x7f7   :  { %16227 = vmatprep.subr.bf16.mxu1 %v16226_v22  ;;  %v16254_v49 = vpack.c.bf16 %v9010_v59, %v9009_v6  ;;  %v19389_v42 = vld [vmem:[#allocation2 + $0x37] sm:$0xff] }
 0x7f8   :  { %v9385_v59 = vld [vmem:[#allocation9 + $0xb20] sm:$0xff] }
 0x7f9   :  { %14829 = vmatmul.mubr.f32.gmra.mrb[48].mxu1 %v7925_v51  ;;  %v9014_v51 = vld [vmem:[#allocation9 + $0xac8] sm:$0xff] }
 0x7fa   :  { %14831 = vmatprep.mubr.f32.mxu1 %v7926_v5  ;;  %16229 = vmatpush3.bf16.msra.mxu1 %v16226_v22  ;;  %v9011_v22 = vld [vmem:[#allocation9 + $0xab0] sm:$0xff] }
 0x7fb   :  { %16231 = vmatprep.subr.bf16.mxu1 %v16230_v4  ;;  %v16258_v8 = vpack.c.bf16 %v9012_v61, %v9011_v22  ;;  %v19395_v5 = vld [vmem:[#allocation2 + $0x47] sm:$0xff] }
 0x7fc   :  { %v9387_v61 = vld [vmem:[#allocation9 + $0xb30] sm:$0xff] }
 0x7fd   :  { %14832 = vmatmul.mubr.f32.gmra.mrb[50].mxu1 %v7927_v62  ;;  %v9016_v62 = vld [vmem:[#allocation9 + $0xad8] sm:$0xff] }
 0x7fe   :  { %14834 = vmatprep.mubr.f32.mxu1 %v7928_v18  ;;  %16233 = vmatpush3.bf16.msra.mxu1 %v16230_v4  ;;  %v9013_v4 = vld [vmem:[#allocation9 + $0xac0] sm:$0xff] }
 0x7ff   :  { %16235 = vmatprep.subr.bf16.mxu1 %v16234_v10  ;;  %v16262_v17 = vpack.c.bf16 %v9014_v51, %v9013_v4  ;;  %v19401_v18 = vld [vmem:[#allocation2 + $0x57] sm:$0xff] }
 0x800   :  { %v9389_v4 = vld [vmem:[#allocation9 + $0xb40] sm:$0xff]  ;;  %v9390_v51 = vld [vmem:[#allocation9 + $0xb48] sm:$0xff] }
 0x801   :  { %14835 = vmatmul.mubr.f32.gmra.mrb[52].mxu1 %v7929_v33  ;;  %v9018_v33 = vld [vmem:[#allocation9 + $0xae8] sm:$0xff] }
 0x802   :  { %14837 = vmatprep.mubr.f32.mxu1 %v7930_v37  ;;  %16237 = vmatpush3.bf16.msra.mxu1 %v16234_v10  ;;  %v9015_v10 = vld [vmem:[#allocation9 + $0xad0] sm:$0xff] }
 0x803   :  { %16239 = vmatprep.subr.bf16.mxu1 %v16238_v3  ;;  %v16266_v13 = vpack.c.bf16 %v9016_v62, %v9015_v10  ;;  %v19407_v37 = vld [vmem:[#allocation2 + $0x67] sm:$0xff]  ;;  %v9394_v10 = vld [vmem:[#allocation9 + $0xb68] sm:$0xff] }
 0x804   :  { %v9395_v62 = vld [vmem:[#allocation9 + $0xb70] sm:$0xff] }
 0x805   :  { %14838 = vmatmul.mubr.f32.gmra.mrb[54].mxu1 %v7931_v25  ;;  %v9020_v25 = vld [vmem:[#allocation9 + $0xaf8] sm:$0xff] }
 0x806   :  { %14840 = vmatprep.mubr.f32.mxu1 %v7932_v53  ;;  %16241 = vmatpush3.bf16.msra.mxu1 %v16238_v3  ;;  %v9017_v3 = vld [vmem:[#allocation9 + $0xae0] sm:$0xff] }
 0x807   :  { %16243 = vmatprep.subr.bf16.mxu1 %v16242_v57  ;;  %v16270_v23 = vpack.c.bf16 %v9018_v33, %v9017_v3  ;;  %v19413_v53 = vld [vmem:[#allocation2 + $0x77] sm:$0xff] }
 0x808   :  { %v9758_v3 = vld [vmem:[#allocation9 + $0xb88] sm:$0xff] }
 0x809   :  { %14841 = vmatmul.mubr.f32.gmra.mrb[56].mxu1 %v7933_v45  ;;  %v9382_v45 = vld [vmem:[#allocation9 + $0xb08] sm:$0xff] }
 0x80a   :  { %14843 = vmatprep.mubr.f32.mxu1 %v7934_v1  ;;  %16245 = vmatpush3.bf16.msra.mxu1 %v16242_v57  ;;  %v9019_v57 = vld [vmem:[#allocation9 + $0xaf0] sm:$0xff] }
 0x80b   :  { %16247 = vmatprep.subr.bf16.mxu1 %v19376_v36  ;;  %v16274_v35 = vpack.c.bf16 %v9020_v25, %v9019_v57  ;;  %v19416_v1 = vld [vmem:[#allocation2 + $0x7f] sm:$0xff]  ;;  %v9760_v57 = vld [vmem:[#allocation9 + $0xb98] sm:$0xff] }
 0x80c   :  { %v9338_v25 = vld [vmem:[#allocation2 + $0x20] sm:$0xff] }
 0x80d   :  { %14844 = vmatmul.mubr.f32.gmra.mrb[58].mxu1 %v7935_v19 }
 0x80e   :  { %14846 = vmatprep.mubr.f32.mxu1 %v7936_v27  ;;  %v19421_v27 = vld [vmem:[#allocation2 + $0x87] sm:$0xff] }
 0x811   :  { %14847 = vmatmul.mubr.f32.gmra.mrb[60].mxu1 %v7937_v58  ;;  %v19424_v58 = vld [vmem:[#allocation2 + $0x8f] sm:$0xff] }
 0x812   :  { %14849 = vmatprep.mubr.f32.mxu1 %v7938_v11  ;;  %v19428_v11 = vld [vmem:[#allocation2 + $0x97] sm:$0xff] }
 0x815   :  { %14850 = vmatmul.mubr.f32.gmra.mrb[62].mxu1 %v7939_v21  ;;  %v19431_v21 = vld [vmem:[#allocation2 + $0x9f] sm:$0xff] }
 0x816   :  { %14852 = vmatprep.mubr.f32.mxu1 %v7940_v2  ;;  %v19434_v2 = vld [vmem:[#allocation2 + $0xa7] sm:$0xff] }
 0x819   :  { %14853 = vmatmul.mubr.f32.gmra.mrb[64].mxu1 %v7941_v39  ;;  %v19437_v39 = vld [vmem:[#allocation2 + $0xaf] sm:$0xff] }
 0x81a   :  { %14855 = vmatprep.mubr.f32.mxu1 %v7942_v47  ;;  %v19440_v47 = vld [vmem:[#allocation2 + $0xb7] sm:$0xff] }
 0x81d   :  { %14856 = vmatmul.mubr.f32.gmra.mrb[66].mxu1 %v7943_v46  ;;  %v19443_v46 = vld [vmem:[#allocation2 + $0xbf] sm:$0xff] }
 0x81e   :  { %14858 = vmatprep.mubr.f32.mxu1 %v7944_v9  ;;  %v19446_v9 = vld [vmem:[#allocation2 + $0xc7] sm:$0xff] }
 0x821   :  { %14859 = vmatmul.mubr.f32.gmra.mrb[68].mxu1 %v7945_v12  ;;  %v19449_v12 = vld [vmem:[#allocation2 + $0xcf] sm:$0xff] }
 0x822   :  { %14861 = vmatprep.mubr.f32.mxu1 %v7946_v15  ;;  %v19452_v15 = vld [vmem:[#allocation2 + $0xd7] sm:$0xff] }
 0x825   :  { %14862 = vmatmul.mubr.f32.gmra.mrb[70].mxu1 %v7947_v24  ;;  %v19455_v24 = vld [vmem:[#allocation2 + $0xdf] sm:$0xff] }
 0x826   :  { %14864 = vmatprep.mubr.f32.mxu1 %v7948_v16  ;;  %v19458_v16 = vld [vmem:[#allocation2 + $0xe7] sm:$0xff] }
 0x829   :  { %14865 = vmatmul.mubr.f32.gmra.mrb[72].mxu1 %v7949_v50  ;;  %v19461_v50 = vld [vmem:[#allocation2 + $0xef] sm:$0xff] }
 0x82a   :  { %14867 = vmatprep.mubr.f32.mxu1 %v7950_v40  ;;  %v19464_v40 = vld [vmem:[#allocation2 + $0xf7] sm:$0xff] }
 0x82d   :  { %14868 = vmatmul.mubr.f32.gmra.mrb[74].mxu1 %v7951_v44  ;;  %v19467_v44 = vld [vmem:[#allocation2 + $0xff] sm:$0xff] }
 0x82e   :  { %14870 = vmatprep.mubr.f32.mxu1 %v7952_v60  ;;  %v19470_v60 = vld [vmem:[#allocation2 + $0x107] sm:$0xff] }
 0x831   :  { %14871 = vmatmul.mubr.f32.gmra.mrb[76].mxu1 %v7953_v41  ;;  %v19473_v41 = vld [vmem:[#allocation2 + $0x10f] sm:$0xff] }
 0x832   :  { %14873 = vmatprep.mubr.f32.mxu1 %v7954_v14  ;;  %v19476_v14 = vld [vmem:[#allocation2 + $0x117] sm:$0xff] }
 0x835   :  { %14874 = vmatmul.mubr.f32.gmra.mrb[78].mxu1 %v7955_v43  ;;  %v19479_v43 = vld [vmem:[#allocation2 + $0x11f] sm:$0xff] }
 0x836   :  { %14876 = vmatprep.mubr.f32.mxu1 %v7956_v32  ;;  %v19482_v32 = vld [vmem:[#allocation2 + $0x127] sm:$0xff] }
 0x839   :  { %14877 = vmatmul.mubr.f32.gmra.mrb[80].mxu1 %v7957_v28  ;;  %v19485_v28 = vld [vmem:[#allocation2 + $0x12f] sm:$0xff] }
 0x83a   :  { %14879 = vmatprep.mubr.f32.mxu1 %v7958_v52  ;;  %v19488_v52 = vld [vmem:[#allocation2 + $0x137] sm:$0xff] }
 0x83d   :  { %14880 = vmatmul.mubr.f32.gmra.mrb[82].mxu1 %v7959_v30  ;;  %v19494_v30 = vld [vmem:[#allocation2 + $0x147] sm:$0xff] }
 0x83e   :  { %14914 = vmatprep.mubr.f32.mxu1 %v8586_v26  ;;  %v19491_v26 = vld [vmem:[#allocation2 + $0x13f] sm:$0xff] }
 0x841   :  { %14915 = vmatmul.mubr.f32.vlgmr.msra.gmra.mrb[42].mxu1 %v8587_v29  ;;  %v9383_v29 = vld [vmem:[#allocation9 + $0xb10] sm:$0xff] }
 0x842   :  { %16249 = vmatpush3.bf16.msra.mxu1 %v19376_v36  ;;  %14917 = vmatprep.mubr.f32.mxu1 %v19379_v48  ;;  %v9381_v36 = vld [vmem:[#allocation9 + $0xb00] sm:$0xff] }
 0x843   :  { %16251 = vmatprep.subr.bf16.mxu1 %v16250_v54  ;;  %v19419_v19 = vpack.c.bf16 %v9382_v45, %v9381_v36  ;;  %v9762_v36 = vld [vmem:[#allocation9 + $0xba8] sm:$0xff]  ;;  %v9340_v45 = vld [vmem:[#allocation2 + $0x30] sm:$0xff] }
 0x845   :  { %14918 = vmatmul.mubr.f32.gmra.mrb[44].mxu1 %v19383_v38 }
 0x846   :  { %14920 = vmatprep.mubr.f32.mxu1 %v19386_v0  ;;  %16253 = vmatpush3.bf16.msra.mxu1 %v16250_v54  ;;  %v9384_v54 = vld [vmem:[#allocation9 + $0xb18] sm:$0xff] }
 0x847   :  { %16255 = vmatprep.subr.bf16.mxu1 %v16254_v49  ;;  %v16282_v6 = vpack.c.bf16 %v9384_v54, %v9383_v29  ;;  %v9352_v29 = vld [vmem:[#allocation2 + $0x90] sm:$0xff] }
 0x849   :  { %14921 = vmatmul.mubr.f32.gmra.mrb[46].mxu1 %v19389_v42 }
 0x84a   :  { %14923 = vmatprep.mubr.f32.mxu1 %v19392_v7  ;;  %16257 = vmatpush3.bf16.msra.mxu1 %v16254_v49  ;;  %v9386_v49 = vld [vmem:[#allocation9 + $0xb28] sm:$0xff] }
 0x84b   :  { %16259 = vmatprep.subr.bf16.mxu1 %v16258_v8  ;;  %v16286_v22 = vpack.c.bf16 %v9386_v49, %v9385_v59  ;;  %v9354_v59 = vld [vmem:[#allocation2 + $0xa0] sm:$0xff]  ;;  %v9355_v49 = vld [vmem:[#allocation2 + $0xa8] sm:$0xff] }
 0x84d   :  { %14924 = vmatmul.mubr.f32.gmra.mrb[48].mxu1 %v19395_v5 }
 0x84e   :  { %14926 = vmatprep.mubr.f32.mxu1 %v19398_v56  ;;  %16261 = vmatpush3.bf16.msra.mxu1 %v16258_v8  ;;  %v9388_v8 = vld [vmem:[#allocation9 + $0xb38] sm:$0xff] }
 0x84f   :  { %16263 = vmatprep.subr.bf16.mxu1 %v16262_v17 }
 0x851   :  { %14927 = vmatmul.mubr.f32.gmra.mrb[50].mxu1 %v19401_v18 }
 0x852   :  { %14929 = vmatprep.mubr.f32.mxu1 %v19404_v20  ;;  %16265 = vmatpush3.bf16.msra.mxu1 %v16262_v17  ;;  %v9392_v17 = vld [vmem:[#allocation9 + $0xb58] sm:$0xff] }
 0x853   :  { %16267 = vmatprep.subr.bf16.mxu1 %v16266_v13 }
 0x855   :  { %14930 = vmatmul.mubr.f32.gmra.mrb[52].mxu1 %v19407_v37 }
 0x856   :  { %14932 = vmatprep.mubr.f32.mxu1 %v19410_v34  ;;  %16269 = vmatpush3.bf16.msra.mxu1 %v16266_v13 }
 0x857   :  { %16271 = vmatprep.subr.bf16.mxu1 %v16270_v23 }
 0x859   :  { %14933 = vmatmul.mubr.f32.gmra.mrb[54].mxu1 %v19413_v53 }
 0x85a   :  { %14935 = vmatprep.mubr.f32.mxu1 %v19416_v1  ;;  %16273 = vmatpush3.bf16.msra.mxu1 %v16270_v23  ;;  %v9003_v23 = vld [vmem:[#allocation2 + $0x167] sm:$0xff] }
 0x85b   :  { %16275 = vmatprep.subr.bf16.mxu1 %v16274_v35 }
 0x85d   :  { %14936 = vmatmul.mubr.f32.gmra.mrb[56].mxu1 %v19421_v27 }
 0x85e   :  { %14938 = vmatprep.mubr.f32.mxu1 %v19424_v58  ;;  %16277 = vmatpush3.bf16.msra.mxu1 %v16274_v35  ;;  %v9339_v35 = vld [vmem:[#allocation2 + $0x28] sm:$0xff] }
 0x85f   :  { %16279 = vmatprep.subr.bf16.mxu1 %v19419_v19 }
 0x861   :  { %14939 = vmatmul.mubr.f32.gmra.mrb[58].mxu1 %v19428_v11 }
 0x862   :  { %14941 = vmatprep.mubr.f32.mxu1 %v19431_v21 }
 0x865   :  { %14942 = vmatmul.mubr.f32.gmra.mrb[60].mxu1 %v19434_v2 }
 0x866   :  { %14944 = vmatprep.mubr.f32.mxu1 %v19437_v39 }
 0x869   :  { %14945 = vmatmul.mubr.f32.gmra.mrb[62].mxu1 %v19440_v47 }
 0x86a   :  { %14947 = vmatprep.mubr.f32.mxu1 %v19443_v46 }
 0x86d   :  { %14948 = vmatmul.mubr.f32.gmra.mrb[64].mxu1 %v19446_v9 }
 0x86e   :  { %14950 = vmatprep.mubr.f32.mxu1 %v19449_v12 }
 0x871   :  { %14951 = vmatmul.mubr.f32.gmra.mrb[66].mxu1 %v19452_v15 }
 0x872   :  { %14953 = vmatprep.mubr.f32.mxu1 %v19455_v24 }
 0x875   :  { %14954 = vmatmul.mubr.f32.gmra.mrb[68].mxu1 %v19458_v16 }
 0x876   :  { %14956 = vmatprep.mubr.f32.mxu1 %v19461_v50 }
 0x879   :  { %14957 = vmatmul.mubr.f32.gmra.mrb[70].mxu1 %v19464_v40 }
 0x87a   :  { %14959 = vmatprep.mubr.f32.mxu1 %v19467_v44 }
 0x87d   :  { %14960 = vmatmul.mubr.f32.gmra.mrb[72].mxu1 %v19470_v60 }
 0x87e   :  { %14962 = vmatprep.mubr.f32.mxu1 %v19473_v41 }
 0x881   :  { %14963 = vmatmul.mubr.f32.gmra.mrb[74].mxu1 %v19476_v14 }
 0x882   :  { %14965 = vmatprep.mubr.f32.mxu1 %v19479_v43 }
 0x885   :  { %14966 = vmatmul.mubr.f32.gmra.mrb[76].mxu1 %v19482_v32 }
 0x886   :  { %14968 = vmatprep.mubr.f32.mxu1 %v19485_v28 }
 0x889   :  { %14969 = vmatmul.mubr.f32.gmra.mrb[78].mxu1 %v19488_v52 }
 0x88a   :  { %14971 = vmatprep.mubr.f32.mxu1 %v19491_v26 }
 0x88d   :  { %14972 = vmatmul.mubr.f32.gmra.mrb[80].mxu1 %v19494_v30 }
 0x88e   :  { %14974 = vmatprep.mubr.f32.mxu1 %v19497_v31 }
 0x891   :  { %14975 = vmatmul.mubr.f32.gmra.mrb[82].mxu1 %v19500_v55 }
 0x892   :  { %15009 = vmatprep.mubr.f32.mxu1 %v19379_v48  ;;  %v16290_v48 = vpack.c.bf16 %v9388_v8, %v9387_v61  ;;  %v9357_v61 = vld [vmem:[#allocation2 + $0xb8] sm:$0xff]  ;;  %v9358_v8 = vld [vmem:[#allocation2 + $0xc0] sm:$0xff] }
 0x895   :  { %15010 = vmatmul.mubr.f32.vlgmr.msra.gmra.mrb[42].mxu1 %v19383_v38  ;;  %v16294_v38 = vpack.c.bf16 %v9390_v51, %v9389_v4  ;;  %v9360_v4 = vld [vmem:[#allocation2 + $0xd0] sm:$0xff]  ;;  %v9361_v51 = vld [vmem:[#allocation2 + $0xd8] sm:$0xff] }
 0x896   :  { %16281 = vmatpush3.bf16.msra.mxu1 %v19419_v19  ;;  %15012 = vmatprep.mubr.f32.mxu1 %v19386_v0  ;;  %v9391_v0 = vld [vmem:[#allocation9 + $0xb50] sm:$0xff]  ;;  %v9341_v19 = vld [vmem:[#allocation2 + $0x38] sm:$0xff] }
 0x897   :  { %16283 = vmatprep.subr.bf16.mxu1 %v16282_v6 }
 0x899   :  { %15013 = vmatmul.mubr.f32.gmra.mrb[44].mxu1 %v19389_v42  ;;  %v16298_v42 = vpack.c.bf16 %v9392_v17, %v9391_v0  ;;  %v9363_v0 = vld [vmem:[#allocation2 + $0xe8] sm:$0xff]  ;;  %v9364_v17 = vld [vmem:[#allocation2 + $0xf0] sm:$0xff] }
 0x89a   :  { %15015 = vmatprep.mubr.f32.mxu1 %v19392_v7  ;;  %16285 = vmatpush3.bf16.msra.mxu1 %v16282_v6  ;;  %v9393_v7 = vld [vmem:[#allocation9 + $0xb60] sm:$0xff] }
 0x89b   :  { %16287 = vmatprep.subr.bf16.mxu1 %v16286_v22  ;;  %v9353_v6 = vld [vmem:[#allocation2 + $0x98] sm:$0xff] }
 0x89d   :  { %15016 = vmatmul.mubr.f32.gmra.mrb[46].mxu1 %v19395_v5  ;;  %v16302_v5 = vpack.c.bf16 %v9394_v10, %v9393_v7  ;;  %v9366_v7 = vld [vmem:[#allocation2 + $0x100] sm:$0xff]  ;;  %v9367_v10 = vld [vmem:[#allocation2 + $0x108] sm:$0xff] }
 0x89e   :  { %15018 = vmatprep.mubr.f32.mxu1 %v19398_v56  ;;  %16289 = vmatpush3.bf16.msra.mxu1 %v16286_v22  ;;  %v9396_v56 = vld [vmem:[#allocation9 + $0xb78] sm:$0xff] }
 0x89f   :  { %16291 = vmatprep.subr.bf16.mxu1 %v16290_v48  ;;  %v16306_v13 = vpack.c.bf16 %v9396_v56, %v9395_v62  ;;  %v9356_v22 = vld [vmem:[#allocation2 + $0xb0] sm:$0xff]  ;;  %v9369_v62 = vld [vmem:[#allocation2 + $0x118] sm:$0xff]  ;;  %v9370_v56 = vld [vmem:[#allocation2 + $0x120] sm:$0xff] }
 0x8a1   :  { %15019 = vmatmul.mubr.f32.gmra.mrb[48].mxu1 %v19401_v18  ;;  %v9757_v18 = vld [vmem:[#allocation9 + $0xb80] sm:$0xff] }
 0x8a2   :  { %15021 = vmatprep.mubr.f32.mxu1 %v19404_v20  ;;  %16293 = vmatpush3.bf16.msra.mxu1 %v16290_v48  ;;  %v16310_v33 = vpack.c.bf16 %v9758_v3, %v9757_v18  ;;  %v9002_v20 = vld [vmem:[#allocation2 + $0x15f] sm:$0xff]  ;;  %v9359_v48 = vld [vmem:[#allocation2 + $0xc8] sm:$0xff]  ;;  %v9372_v18 = vld [vmem:[#allocation2 + $0x130] sm:$0xff] }
 0x8a3   :  { %16295 = vmatprep.subr.bf16.mxu1 %v16294_v38  ;;  %v9373_v3 = vld [vmem:[#allocation2 + $0x138] sm:$0xff] }
 0x8a5   :  { %15022 = vmatmul.mubr.f32.gmra.mrb[50].mxu1 %v19407_v37  ;;  %v9759_v37 = vld [vmem:[#allocation9 + $0xb90] sm:$0xff] }
 0x8a6   :  { %15024 = vmatprep.mubr.f32.mxu1 %v19410_v34  ;;  %16297 = vmatpush3.bf16.msra.mxu1 %v16294_v38  ;;  %v16314_v34 = vpack.c.bf16 %v9760_v57, %v9759_v37  ;;  %v9362_v38 = vld [vmem:[#allocation2 + $0xe0] sm:$0xff]  ;;  %v9377_v37 = vld [vmem:[#allocation2 + $0x158] sm:$0xff]  ;;  %v9379_v57 = vld [vmem:[#allocation2 + $0x168] sm:$0xff] }
 0x8a7   :  { %16299 = vmatprep.subr.bf16.mxu1 %v16298_v42 }
 0x8a9   :  { %15025 = vmatmul.mubr.f32.gmra.mrb[52].mxu1 %v19413_v53  ;;  %v9761_v53 = vld [vmem:[#allocation9 + $0xba0] sm:$0xff] }
 0x8aa   :  { %15027 = vmatprep.mubr.f32.mxu1 %v19416_v1  ;;  %16301 = vmatpush3.bf16.msra.mxu1 %v16298_v42  ;;  %v16318_v1 = vpack.c.bf16 %v9762_v36, %v9761_v53  ;;  %v9365_v42 = vld [vmem:[#allocation2 + $0xf8] sm:$0xff]  ;;  %v9715_v36 = vld [vmem:[#allocation2 + $0x29] sm:$0xff] }
 0x8ab   :  { %16303 = vmatprep.subr.bf16.mxu1 %v16302_v5 }
 0x8ad   :  { %15028 = vmatmul.mubr.f32.gmra.mrb[54].mxu1 %v19421_v27  ;;  %v9763_v27 = vld [vmem:[#allocation9 + $0xbb0] sm:$0xff] }
 0x8ae   :  { %15030 = vmatprep.mubr.f32.mxu1 %v19424_v58  ;;  %16305 = vmatpush3.bf16.msra.mxu1 %v16302_v5  ;;  %v9764_v58 = vld [vmem:[#allocation9 + $0xbb8] sm:$0xff] }
 0x8af   :  { %16307 = vmatprep.subr.bf16.mxu1 %v16306_v13  ;;  %v9368_v5 = vld [vmem:[#allocation2 + $0x110] sm:$0xff] }
 0x8b1   :  { %15031 = vmatmul.mubr.f32.gmra.mrb[56].mxu1 %v19428_v11  ;;  %v9342_v11 = vld [vmem:[#allocation2 + $0x40] sm:$0xff] }
 0x8b2   :  { %15033 = vmatprep.mubr.f32.mxu1 %v19431_v21  ;;  %16309 = vmatpush3.bf16.msra.mxu1 %v16306_v13  ;;  %v16322_v21 = vpack.c.bf16 %v9764_v58, %v9763_v27  ;;  %v9371_v13 = vld [vmem:[#allocation2 + $0x128] sm:$0xff] }
 0x8b3   :  { %16311 = vmatprep.subr.bf16.mxu1 %v16310_v33  ;;  %v10139_v58 = vld [vmem:[#allocation9 + $0xc30] sm:$0xff] }
 0x8b5   :  { %15034 = vmatmul.mubr.f32.gmra.mrb[58].mxu1 %v19434_v2  ;;  %v9343_v2 = vld [vmem:[#allocation2 + $0x48] sm:$0xff] }
 0x8b6   :  { %15036 = vmatprep.mubr.f32.mxu1 %v19437_v39  ;;  %v9765_v39 = vld [vmem:[#allocation9 + $0xbc0] sm:$0xff] }
 0x8b9   :  { %15037 = vmatmul.mubr.f32.gmra.mrb[60].mxu1 %v19440_v47  ;;  %v9766_v47 = vld [vmem:[#allocation9 + $0xbc8] sm:$0xff] }
 0x8ba   :  { %15039 = vmatprep.mubr.f32.mxu1 %v19443_v46  ;;  %v9344_v46 = vld [vmem:[#allocation2 + $0x50] sm:$0xff] }
 0x8bd   :  { %15040 = vmatmul.mubr.f32.gmra.mrb[62].mxu1 %v19446_v9  ;;  %v16326_v9 = vpack.c.bf16 %v9766_v47, %v9765_v39  ;;  %v19558_v39 = vld [vmem:[#allocation2 + $0x49] sm:$0xff]  ;;  %v10141_v47 = vld [vmem:[#allocation9 + $0xc40] sm:$0xff] }
 0x8be   :  { %15042 = vmatprep.mubr.f32.mxu1 %v19449_v12  ;;  %v9345_v12 = vld [vmem:[#allocation2 + $0x58] sm:$0xff] }
 0x8c1   :  { %15043 = vmatmul.mubr.f32.gmra.mrb[64].mxu1 %v19452_v15  ;;  %v9767_v15 = vld [vmem:[#allocation9 + $0xbd0] sm:$0xff] }
 0x8c2   :  { %15045 = vmatprep.mubr.f32.mxu1 %v19455_v24  ;;  %v9768_v24 = vld [vmem:[#allocation9 + $0xbd8] sm:$0xff] }
 0x8c5   :  { %15046 = vmatmul.mubr.f32.gmra.mrb[66].mxu1 %v19458_v16  ;;  %v9346_v16 = vld [vmem:[#allocation2 + $0x60] sm:$0xff] }
 0x8c6   :  { %15048 = vmatprep.mubr.f32.mxu1 %v19461_v50  ;;  %v16330_v50 = vpack.c.bf16 %v9768_v24, %v9767_v15  ;;  %v19564_v15 = vld [vmem:[#allocation2 + $0x59] sm:$0xff]  ;;  %v10143_v24 = vld [vmem:[#allocation9 + $0xc50] sm:$0xff] }
 0x8c9   :  { %15049 = vmatmul.mubr.f32.gmra.mrb[68].mxu1 %v19464_v40  ;;  %v9347_v40 = vld [vmem:[#allocation2 + $0x68] sm:$0xff] }
 0x8ca   :  { %15051 = vmatprep.mubr.f32.mxu1 %v19467_v44  ;;  %v9769_v44 = vld [vmem:[#allocation9 + $0xbe0] sm:$0xff] }
 0x8cd   :  { %15052 = vmatmul.mubr.f32.gmra.mrb[70].mxu1 %v19470_v60  ;;  %v9770_v60 = vld [vmem:[#allocation9 + $0xbe8] sm:$0xff] }
 0x8ce   :  { %15054 = vmatprep.mubr.f32.mxu1 %v19473_v41  ;;  %v9348_v41 = vld [vmem:[#allocation2 + $0x70] sm:$0xff] }
 0x8d1   :  { %15055 = vmatmul.mubr.f32.gmra.mrb[72].mxu1 %v19476_v14  ;;  %v16334_v14 = vpack.c.bf16 %v9770_v60, %v9769_v44  ;;  %v19570_v44 = vld [vmem:[#allocation2 + $0x69] sm:$0xff]  ;;  %v10145_v60 = vld [vmem:[#allocation9 + $0xc60] sm:$0xff] }
 0x8d2   :  { %15057 = vmatprep.mubr.f32.mxu1 %v19479_v43  ;;  %v9349_v43 = vld [vmem:[#allocation2 + $0x78] sm:$0xff] }
 0x8d5   :  { %15058 = vmatmul.mubr.f32.gmra.mrb[74].mxu1 %v19482_v32  ;;  %v9771_v32 = vld [vmem:[#allocation9 + $0xbf0] sm:$0xff] }
 0x8d6   :  { %15060 = vmatprep.mubr.f32.mxu1 %v19485_v28  ;;  %v9772_v28 = vld [vmem:[#allocation9 + $0xbf8] sm:$0xff] }
 0x8d9   :  { %15061 = vmatmul.mubr.f32.gmra.mrb[76].mxu1 %v19488_v52  ;;  %v9350_v52 = vld [vmem:[#allocation2 + $0x80] sm:$0xff] }
 0x8da   :  { %15063 = vmatprep.mubr.f32.mxu1 %v19491_v26  ;;  %v16338_v26 = vpack.c.bf16 %v9772_v28, %v9771_v32  ;;  %v19576_v32 = vld [vmem:[#allocation2 + $0x79] sm:$0xff]  ;;  %v10147_v28 = vld [vmem:[#allocation9 + $0xc70] sm:$0xff] }
 0x8dd   :  { %15064 = vmatmul.mubr.f32.gmra.mrb[78].mxu1 %v19494_v30  ;;  %v9351_v30 = vld [vmem:[#allocation2 + $0x88] sm:$0xff] }
 0x8de   :  { %15066 = vmatprep.mubr.f32.mxu1 %v19497_v31  ;;  %v10133_v31 = vld [vmem:[#allocation9 + $0xc00] sm:$0xff] }
 0x8e1   :  { %15067 = vmatmul.mubr.f32.gmra.mrb[80].mxu1 %v19500_v55  ;;  %v10134_v55 = vld [vmem:[#allocation9 + $0xc08] sm:$0xff] }
 0x8e2   :  { %15069 = vmatprep.mubr.f32.mxu1 %v9002_v20  ;;  %v19544_v54 = vpack.c.bf16 %v10134_v55, %v10133_v31  ;;  %v9375_v20 = vld [vmem:[#allocation2 + $0x148] sm:$0xff]  ;;  %v10509_v55 = vld [vmem:[#allocation9 + $0xc80] sm:$0xff] }
 0x8e3   :  { %v19582_v31 = vld [vmem:[#allocation2 + $0x89] sm:$0xff] }
 0x8e5   :  { %15070 = vmatmul.mubr.f32.gmra.mrb[82].mxu1 %v9003_v23  ;;  %v9376_v23 = vld [vmem:[#allocation2 + $0x150] sm:$0xff] }
 0x8e6   :  { %15104 = vmatprep.mubr.f32.mxu1 %v9338_v25  ;;  %v10135_v25 = vld [vmem:[#allocation9 + $0xc10] sm:$0xff] }
 0x8e9   :  { %15105 = vmatmul.mubr.f32.vlgmr.msra.gmra.mrb[42].mxu1 %v9339_v35  ;;  %v9714_v35 = vld [vmem:[#allocation2 + $0x21] sm:$0xff] }
 0x8ea   :  { %16313 = vmatpush3.bf16.msra.mxu1 %v16310_v33  ;;  %15107 = vmatprep.mubr.f32.mxu1 %v9340_v45  ;;  %v9374_v33 = vld [vmem:[#allocation2 + $0x140] sm:$0xff]  ;;  %v10137_v45 = vld [vmem:[#allocation9 + $0xc20] sm:$0xff] }
 0x8eb   :  { %16315 = vmatprep.subr.bf16.mxu1 %v16314_v34 }
 0x8ed   :  { %15108 = vmatmul.mubr.f32.gmra.mrb[44].mxu1 %v9341_v19  ;;  %v19548_v19 = vld [vmem:[#allocation2 + $0x31] sm:$0xff] }
 0x8ee   :  { %15110 = vmatprep.mubr.f32.mxu1 %v9342_v11  ;;  %16317 = vmatpush3.bf16.msra.mxu1 %v16314_v34  ;;  %v10136_v34 = vld [vmem:[#allocation9 + $0xc18] sm:$0xff] }
 0x8ef   :  { %16319 = vmatprep.subr.bf16.mxu1 %v16318_v1  ;;  %v16346_v53 = vpack.c.bf16 %v10136_v34, %v10135_v25  ;;  %v10140_v11 = vld [vmem:[#allocation9 + $0xc38] sm:$0xff]  ;;  %v19666_v25 = vld [vmem:[#allocation2 + $0x161] sm:$0xff] }
 0x8f0   :  { %v19669_v34 = vld [vmem:[#allocation2 + $0x169] sm:$0xff] }
 0x8f1   :  { %15111 = vmatmul.mubr.f32.gmra.mrb[46].mxu1 %v9343_v2  ;;  %v16354_v2 = vpack.c.bf16 %v10140_v11, %v10139_v58  ;;  %v10515_v58 = vld [vmem:[#allocation9 + $0xcb0] sm:$0xff]  ;;  %v10516_v11 = vld [vmem:[#allocation9 + $0xcb8] sm:$0xff] }
 0x8f2   :  { %15113 = vmatprep.mubr.f32.mxu1 %v9344_v46  ;;  %16321 = vmatpush3.bf16.msra.mxu1 %v16318_v1  ;;  %v10138_v1 = vld [vmem:[#allocation9 + $0xc28] sm:$0xff] }
 0x8f3   :  { %16323 = vmatprep.subr.bf16.mxu1 %v16322_v21  ;;  %v16350_v27 = vpack.c.bf16 %v10138_v1, %v10137_v45  ;;  %v10142_v46 = vld [vmem:[#allocation9 + $0xc48] sm:$0xff]  ;;  %v10513_v45 = vld [vmem:[#allocation9 + $0xca0] sm:$0xff] }
 0x8f4   :  { %v10514_v1 = vld [vmem:[#allocation9 + $0xca8] sm:$0xff] }
 0x8f5   :  { %15114 = vmatmul.mubr.f32.gmra.mrb[48].mxu1 %v9345_v12  ;;  %v16358_v12 = vpack.c.bf16 %v10142_v46, %v10141_v47  ;;  %v10518_v47 = vld [vmem:[#allocation9 + $0xcc8] sm:$0xff]  ;;  %v10520_v46 = vld [vmem:[#allocation9 + $0xcd8] sm:$0xff] }
 0x8f6   :  { %15116 = vmatprep.mubr.f32.mxu1 %v9346_v16  ;;  %16325 = vmatpush3.bf16.msra.mxu1 %v16322_v21  ;;  %v19555_v21 = vld [vmem:[#allocation2 + $0x41] sm:$0xff]  ;;  %v10144_v16 = vld [vmem:[#allocation9 + $0xc58] sm:$0xff] }
 0x8f7   :  { %16327 = vmatprep.subr.bf16.mxu1 %v16326_v9 }
 0x8f9   :  { %15117 = vmatmul.mubr.f32.gmra.mrb[50].mxu1 %v9347_v40  ;;  %v16362_v40 = vpack.c.bf16 %v10144_v16, %v10143_v24  ;;  %v10523_v24 = vld [vmem:[#allocation9 + $0xcf0] sm:$0xff]  ;;  %v10524_v16 = vld [vmem:[#allocation9 + $0xcf8] sm:$0xff] }
 0x8fa   :  { %15119 = vmatprep.mubr.f32.mxu1 %v9348_v41  ;;  %16329 = vmatpush3.bf16.msra.mxu1 %v16326_v9  ;;  %v19561_v9 = vld [vmem:[#allocation2 + $0x51] sm:$0xff]  ;;  %v10146_v41 = vld [vmem:[#allocation9 + $0xc68] sm:$0xff] }
 0x8fb   :  { %16331 = vmatprep.subr.bf16.mxu1 %v16330_v50 }
 0x8fd   :  { %15120 = vmatmul.mubr.f32.gmra.mrb[52].mxu1 %v9349_v43  ;;  %v16366_v43 = vpack.c.bf16 %v10146_v41, %v10145_v60  ;;  %v10130_v41 = vld [vmem:[#allocation2 + $0x171] sm:$0xff] }
 0x8fe   :  { %15122 = vmatprep.mubr.f32.mxu1 %v9350_v52  ;;  %16333 = vmatpush3.bf16.msra.mxu1 %v16330_v50  ;;  %v19567_v50 = vld [vmem:[#allocation2 + $0x61] sm:$0xff]  ;;  %v10148_v52 = vld [vmem:[#allocation9 + $0xc78] sm:$0xff] }
 0x8ff   :  { %16335 = vmatprep.subr.bf16.mxu1 %v16334_v14 }
 0x901   :  { %15123 = vmatmul.mubr.f32.gmra.mrb[54].mxu1 %v9351_v30  ;;  %v16370_v30 = vpack.c.bf16 %v10148_v52, %v10147_v28  ;;  %v10466_v28 = vld [vmem:[#allocation2 + $0x32] sm:$0xff] }
 0x902   :  { %15125 = vmatprep.mubr.f32.mxu1 %v9352_v29  ;;  %16337 = vmatpush3.bf16.msra.mxu1 %v16334_v14  ;;  %v19573_v14 = vld [vmem:[#allocation2 + $0x71] sm:$0xff]  ;;  %v10510_v29 = vld [vmem:[#allocation9 + $0xc88] sm:$0xff] }
 0x903   :  { %16339 = vmatprep.subr.bf16.mxu1 %v16338_v26 }
 0x905   :  { %15126 = vmatmul.mubr.f32.gmra.mrb[56].mxu1 %v9353_v6  ;;  %v19588_v6 = vpack.c.bf16 %v10510_v29, %v10509_v55  ;;  %v10468_v55 = vld [vmem:[#allocation2 + $0x42] sm:$0xff] }
 0x906   :  { %15128 = vmatprep.mubr.f32.mxu1 %v9354_v59  ;;  %16341 = vmatpush3.bf16.msra.mxu1 %v16338_v26  ;;  %v19579_v26 = vld [vmem:[#allocation2 + $0x81] sm:$0xff]  ;;  %v19590_v59 = vld [vmem:[#allocation2 + $0x99] sm:$0xff] }
 0x907   :  { %16343 = vmatprep.subr.bf16.mxu1 %v19544_v54 }
 0x909   :  { %15129 = vmatmul.mubr.f32.gmra.mrb[58].mxu1 %v9355_v49  ;;  %v19593_v49 = vld [vmem:[#allocation2 + $0xa1] sm:$0xff] }
 0x90a   :  { %15131 = vmatprep.mubr.f32.mxu1 %v9356_v22  ;;  %v19597_v22 = vld [vmem:[#allocation2 + $0xa9] sm:$0xff] }
 0x90d   :  { %15132 = vmatmul.mubr.f32.gmra.mrb[60].mxu1 %v9357_v61  ;;  %v19600_v61 = vld [vmem:[#allocation2 + $0xb1] sm:$0xff] }
 0x90e   :  { %15134 = vmatprep.mubr.f32.mxu1 %v9358_v8  ;;  %v19603_v8 = vld [vmem:[#allocation2 + $0xb9] sm:$0xff] }
 0x911   :  { %15135 = vmatmul.mubr.f32.gmra.mrb[62].mxu1 %v9359_v48  ;;  %v19606_v48 = vld [vmem:[#allocation2 + $0xc1] sm:$0xff] }
 0x912   :  { %15137 = vmatprep.mubr.f32.mxu1 %v9360_v4  ;;  %v19609_v4 = vld [vmem:[#allocation2 + $0xc9] sm:$0xff] }
 0x915   :  { %15138 = vmatmul.mubr.f32.gmra.mrb[64].mxu1 %v9361_v51  ;;  %v19612_v51 = vld [vmem:[#allocation2 + $0xd1] sm:$0xff] }
 0x916   :  { %15140 = vmatprep.mubr.f32.mxu1 %v9362_v38  ;;  %v19615_v38 = vld [vmem:[#allocation2 + $0xd9] sm:$0xff] }
 0x919   :  { %15141 = vmatmul.mubr.f32.gmra.mrb[66].mxu1 %v9363_v0  ;;  %v19618_v0 = vld [vmem:[#allocation2 + $0xe1] sm:$0xff] }
 0x91a   :  { %15143 = vmatprep.mubr.f32.mxu1 %v9364_v17  ;;  %v19621_v17 = vld [vmem:[#allocation2 + $0xe9] sm:$0xff] }
 0x91d   :  { %15144 = vmatmul.mubr.f32.gmra.mrb[68].mxu1 %v9365_v42  ;;  %v19624_v42 = vld [vmem:[#allocation2 + $0xf1] sm:$0xff] }
 0x91e   :  { %15146 = vmatprep.mubr.f32.mxu1 %v9366_v7  ;;  %v19627_v7 = vld [vmem:[#allocation2 + $0xf9] sm:$0xff] }
 0x921   :  { %15147 = vmatmul.mubr.f32.gmra.mrb[70].mxu1 %v9367_v10  ;;  %v19630_v10 = vld [vmem:[#allocation2 + $0x101] sm:$0xff] }
 0x922   :  { %15149 = vmatprep.mubr.f32.mxu1 %v9368_v5  ;;  %v19633_v5 = vld [vmem:[#allocation2 + $0x109] sm:$0xff] }
 0x925   :  { %15150 = vmatmul.mubr.f32.gmra.mrb[72].mxu1 %v9369_v62  ;;  %v19636_v62 = vld [vmem:[#allocation2 + $0x111] sm:$0xff] }
 0x926   :  { %15152 = vmatprep.mubr.f32.mxu1 %v9370_v56  ;;  %v19639_v56 = vld [vmem:[#allocation2 + $0x119] sm:$0xff] }
 0x929   :  { %15153 = vmatmul.mubr.f32.gmra.mrb[74].mxu1 %v9371_v13  ;;  %v19642_v13 = vld [vmem:[#allocation2 + $0x121] sm:$0xff] }
 0x92a   :  { %15155 = vmatprep.mubr.f32.mxu1 %v9372_v18  ;;  %v19645_v18 = vld [vmem:[#allocation2 + $0x129] sm:$0xff] }
 0x92d   :  { %15156 = vmatmul.mubr.f32.gmra.mrb[76].mxu1 %v9373_v3  ;;  %v19648_v3 = vld [vmem:[#allocation2 + $0x131] sm:$0xff] }
 0x92e   :  { %15158 = vmatprep.mubr.f32.mxu1 %v9374_v33  ;;  %v19651_v33 = vld [vmem:[#allocation2 + $0x139] sm:$0xff] }
 0x931   :  { %15159 = vmatmul.mubr.f32.gmra.mrb[78].mxu1 %v9375_v20  ;;  %v19654_v20 = vld [vmem:[#allocation2 + $0x141] sm:$0xff] }
 0x932   :  { %15161 = vmatprep.mubr.f32.mxu1 %v9376_v23  ;;  %v19657_v23 = vld [vmem:[#allocation2 + $0x149] sm:$0xff] }
 0x935   :  { %15162 = vmatmul.mubr.f32.gmra.mrb[80].mxu1 %v9377_v37  ;;  %v19660_v37 = vld [vmem:[#allocation2 + $0x151] sm:$0xff] }
 0x936   :  { %15164 = vmatprep.mubr.f32.mxu1 %v19372_v63  ;;  %v19552_v63 = vld [vmem:[#allocation2 + $0x39] sm:$0xff] }
 0x939   :  { %15165 = vmatmul.mubr.f32.gmra.mrb[82].mxu1 %v9379_v57  ;;  %v19663_v57 = vld [vmem:[#allocation2 + $0x159] sm:$0xff] }
 0x93a   :  { %15199 = vmatprep.mubr.f32.mxu1 %v9714_v35  ;;  %v10511_v35 = vld [vmem:[#allocation9 + $0xc90] sm:$0xff] }
 0x93d   :  { %15200 = vmatmul.mubr.f32.vlgmr.msra.gmra.mrb[42].mxu1 %v9715_v36 }
 0x93e   :  { %16345 = vmatpush3.bf16.msra.mxu1 %v19544_v54  ;;  %15202 = vmatprep.mubr.f32.mxu1 %v19548_v19  ;;  %v19585_v54 = vld [vmem:[#allocation2 + $0x91] sm:$0xff] }
 0x93f   :  { %16347 = vmatprep.subr.bf16.mxu1 %v16346_v53 }
 0x941   :  { %15203 = vmatmul.mubr.f32.gmra.mrb[44].mxu1 %v19552_v63 }
 0x942   :  { %15205 = vmatprep.mubr.f32.mxu1 %v19555_v21  ;;  %16349 = vmatpush3.bf16.msra.mxu1 %v16346_v53  ;;  %v10512_v53 = vld [vmem:[#allocation9 + $0xc98] sm:$0xff] }
 0x943   :  { %16351 = vmatprep.subr.bf16.mxu1 %v16350_v27  ;;  %v16378_v36 = vpack.c.bf16 %v10512_v53, %v10511_v35  ;;  %v10483_v35 = vld [vmem:[#allocation2 + $0xba] sm:$0xff]  ;;  %v10484_v53 = vld [vmem:[#allocation2 + $0xc2] sm:$0xff] }
 0x945   :  { %15206 = vmatmul.mubr.f32.gmra.mrb[46].mxu1 %v19558_v39 }
 0x946   :  { %15208 = vmatprep.mubr.f32.mxu1 %v19561_v9  ;;  %16353 = vmatpush3.bf16.msra.mxu1 %v16350_v27  ;;  %v16382_v27 = vpack.c.bf16 %v10514_v1, %v10513_v45  ;;  %v10486_v45 = vld [vmem:[#allocation2 + $0xd2] sm:$0xff]  ;;  %v10487_v1 = vld [vmem:[#allocation2 + $0xda] sm:$0xff] }
 0x947   :  { %16355 = vmatprep.subr.bf16.mxu1 %v16354_v2 }
 0x949   :  { %15209 = vmatmul.mubr.f32.gmra.mrb[48].mxu1 %v19564_v15 }
 0x94a   :  { %15211 = vmatprep.mubr.f32.mxu1 %v19567_v50  ;;  %16357 = vmatpush3.bf16.msra.mxu1 %v16354_v2  ;;  %v10517_v2 = vld [vmem:[#allocation9 + $0xcc0] sm:$0xff] }
 0x94b   :  { %16359 = vmatprep.subr.bf16.mxu1 %v16358_v12 }
 0x94d   :  { %15212 = vmatmul.mubr.f32.gmra.mrb[50].mxu1 %v19570_v44 }
 0x94e   :  { %15214 = vmatprep.mubr.f32.mxu1 %v19573_v14  ;;  %16361 = vmatpush3.bf16.msra.mxu1 %v16358_v12  ;;  %v10522_v12 = vld [vmem:[#allocation9 + $0xce8] sm:$0xff] }
 0x94f   :  { %16363 = vmatprep.subr.bf16.mxu1 %v16362_v40 }
 0x951   :  { %15215 = vmatmul.mubr.f32.gmra.mrb[52].mxu1 %v19576_v32 }
 0x952   :  { %15217 = vmatprep.mubr.f32.mxu1 %v19579_v26  ;;  %16365 = vmatpush3.bf16.msra.mxu1 %v16362_v40  ;;  %v10885_v40 = vld [vmem:[#allocation9 + $0xd00] sm:$0xff] }
 0x953   :  { %16367 = vmatprep.subr.bf16.mxu1 %v16366_v43 }
 0x955   :  { %15218 = vmatmul.mubr.f32.gmra.mrb[54].mxu1 %v19582_v31 }
 0x956   :  { %15220 = vmatprep.mubr.f32.mxu1 %v19585_v54  ;;  %16369 = vmatpush3.bf16.msra.mxu1 %v16366_v43  ;;  %v10887_v43 = vld [vmem:[#allocation9 + $0xd10] sm:$0xff] }
 0x957   :  { %16371 = vmatprep.subr.bf16.mxu1 %v16370_v30 }
 0x959   :  { %15221 = vmatmul.mubr.f32.gmra.mrb[56].mxu1 %v19590_v59 }
 0x95a   :  { %15223 = vmatprep.mubr.f32.mxu1 %v19593_v49  ;;  %16373 = vmatpush3.bf16.msra.mxu1 %v16370_v30  ;;  %v10889_v30 = vld [vmem:[#allocation9 + $0xd20] sm:$0xff] }
 0x95b   :  { %16375 = vmatprep.subr.bf16.mxu1 %v19588_v6 }
 0x95d   :  { %15224 = vmatmul.mubr.f32.gmra.mrb[58].mxu1 %v19597_v22 }
 0x95e   :  { %15226 = vmatprep.mubr.f32.mxu1 %v19600_v61 }
 0x961   :  { %15227 = vmatmul.mubr.f32.gmra.mrb[60].mxu1 %v19603_v8 }
 0x962   :  { %15229 = vmatprep.mubr.f32.mxu1 %v19606_v48 }
 0x965   :  { %15230 = vmatmul.mubr.f32.gmra.mrb[62].mxu1 %v19609_v4 }
 0x966   :  { %15232 = vmatprep.mubr.f32.mxu1 %v19612_v51 }
 0x969   :  { %15233 = vmatmul.mubr.f32.gmra.mrb[64].mxu1 %v19615_v38 }
 0x96a   :  { %15235 = vmatprep.mubr.f32.mxu1 %v19618_v0 }
 0x96d   :  { %15236 = vmatmul.mubr.f32.gmra.mrb[66].mxu1 %v19621_v17 }
 0x96e   :  { %15238 = vmatprep.mubr.f32.mxu1 %v19624_v42 }
 0x971   :  { %15239 = vmatmul.mubr.f32.gmra.mrb[68].mxu1 %v19627_v7 }
 0x972   :  { %15241 = vmatprep.mubr.f32.mxu1 %v19630_v10 }
 0x975   :  { %15242 = vmatmul.mubr.f32.gmra.mrb[70].mxu1 %v19633_v5 }
 0x976   :  { %15244 = vmatprep.mubr.f32.mxu1 %v19636_v62 }
 0x979   :  { %15245 = vmatmul.mubr.f32.gmra.mrb[72].mxu1 %v19639_v56 }
 0x97a   :  { %15247 = vmatprep.mubr.f32.mxu1 %v19642_v13 }
 0x97d   :  { %15248 = vmatmul.mubr.f32.gmra.mrb[74].mxu1 %v19645_v18 }
 0x97e   :  { %15250 = vmatprep.mubr.f32.mxu1 %v19648_v3 }
 0x981   :  { %15251 = vmatmul.mubr.f32.gmra.mrb[76].mxu1 %v19651_v33 }
 0x982   :  { %15253 = vmatprep.mubr.f32.mxu1 %v19654_v20 }
 0x985   :  { %15254 = vmatmul.mubr.f32.gmra.mrb[78].mxu1 %v19657_v23 }
 0x986   :  { %15256 = vmatprep.mubr.f32.mxu1 %v19660_v37 }
 0x989   :  { %15257 = vmatmul.mubr.f32.gmra.mrb[80].mxu1 %v19663_v57 }
 0x98a   :  { %15259 = vmatprep.mubr.f32.mxu1 %v19666_v25 }
 0x98d   :  { %15260 = vmatmul.mubr.f32.gmra.mrb[82].mxu1 %v19669_v34 }
 0x98e   :  { %15294 = vmatprep.mubr.f32.mxu1 %v19548_v19  ;;  %v16386_v19 = vpack.c.bf16 %v10516_v11, %v10515_v58  ;;  %v10489_v58 = vld [vmem:[#allocation2 + $0xea] sm:$0xff]  ;;  %v10490_v11 = vld [vmem:[#allocation2 + $0xf2] sm:$0xff] }
 0x991   :  { %15295 = vmatmul.mubr.f32.vlgmr.msra.gmra.mrb[42].mxu1 %v19552_v63  ;;  %v16390_v63 = vpack.c.bf16 %v10518_v47, %v10517_v2  ;;  %v10492_v2 = vld [vmem:[#allocation2 + $0x102] sm:$0xff]  ;;  %v10493_v47 = vld [vmem:[#allocation2 + $0x10a] sm:$0xff] }
 0x992   :  { %16377 = vmatpush3.bf16.msra.mxu1 %v19588_v6  ;;  %15297 = vmatprep.mubr.f32.mxu1 %v19555_v21  ;;  %v10519_v21 = vld [vmem:[#allocation9 + $0xcd0] sm:$0xff] }
 0x993   :  { %16379 = vmatprep.subr.bf16.mxu1 %v16378_v36  ;;  %v10891_v6 = vld [vmem:[#allocation9 + $0xd30] sm:$0xff] }
 0x995   :  { %15298 = vmatmul.mubr.f32.gmra.mrb[44].mxu1 %v19558_v39  ;;  %v16394_v39 = vpack.c.bf16 %v10520_v46, %v10519_v21  ;;  %v10495_v21 = vld [vmem:[#allocation2 + $0x11a] sm:$0xff]  ;;  %v10496_v46 = vld [vmem:[#allocation2 + $0x122] sm:$0xff] }
 0x996   :  { %15300 = vmatprep.mubr.f32.mxu1 %v19561_v9  ;;  %16381 = vmatpush3.bf16.msra.mxu1 %v16378_v36  ;;  %v10521_v9 = vld [vmem:[#allocation9 + $0xce0] sm:$0xff]  ;;  %v10485_v36 = vld [vmem:[#allocation2 + $0xca] sm:$0xff] }
 0x997   :  { %16383 = vmatprep.subr.bf16.mxu1 %v16382_v27 }
 0x999   :  { %15301 = vmatmul.mubr.f32.gmra.mrb[46].mxu1 %v19564_v15  ;;  %v16398_v15 = vpack.c.bf16 %v10522_v12, %v10521_v9  ;;  %v10498_v9 = vld [vmem:[#allocation2 + $0x132] sm:$0xff]  ;;  %v10499_v12 = vld [vmem:[#allocation2 + $0x13a] sm:$0xff] }
 0x99a   :  { %15303 = vmatprep.mubr.f32.mxu1 %v19567_v50  ;;  %16385 = vmatpush3.bf16.msra.mxu1 %v16382_v27  ;;  %v16402_v50 = vpack.c.bf16 %v10524_v16, %v10523_v24  ;;  %v10488_v27 = vld [vmem:[#allocation2 + $0xe2] sm:$0xff]  ;;  %v10501_v24 = vld [vmem:[#allocation2 + $0x14a] sm:$0xff]  ;;  %v10502_v16 = vld [vmem:[#allocation2 + $0x152] sm:$0xff] }
 0x99b   :  { %16387 = vmatprep.subr.bf16.mxu1 %v16386_v19 }
 0x99d   :  { %15304 = vmatmul.mubr.f32.gmra.mrb[48].mxu1 %v19570_v44  ;;  %v10886_v44 = vld [vmem:[#allocation9 + $0xd08] sm:$0xff] }
 0x99e   :  { %15306 = vmatprep.mubr.f32.mxu1 %v19573_v14  ;;  %16389 = vmatpush3.bf16.msra.mxu1 %v16386_v19  ;;  %v16406_v60 = vpack.c.bf16 %v10886_v44, %v10885_v40  ;;  %v10131_v14 = vld [vmem:[#allocation2 + $0x179] sm:$0xff]  ;;  %v10504_v40 = vld [vmem:[#allocation2 + $0x162] sm:$0xff] }
 0x99f   :  { %16391 = vmatprep.subr.bf16.mxu1 %v16390_v63  ;;  %v10491_v19 = vld [vmem:[#allocation2 + $0xfa] sm:$0xff]  ;;  %v10506_v44 = vld [vmem:[#allocation2 + $0x172] sm:$0xff] }
 0x9a1   :  { %15307 = vmatmul.mubr.f32.gmra.mrb[50].mxu1 %v19576_v32  ;;  %v10888_v32 = vld [vmem:[#allocation9 + $0xd18] sm:$0xff] }
 0x9a2   :  { %15309 = vmatprep.mubr.f32.mxu1 %v19579_v26  ;;  %16393 = vmatpush3.bf16.msra.mxu1 %v16390_v63  ;;  %v16410_v52 = vpack.c.bf16 %v10888_v32, %v10887_v43  ;;  %v10467_v26 = vld [vmem:[#allocation2 + $0x3a] sm:$0xff]  ;;  %v10494_v63 = vld [vmem:[#allocation2 + $0x112] sm:$0xff]  ;;  %v10844_v32 = vld [vmem:[#allocation2 + $0x43] sm:$0xff] }
 0x9a3   :  { %16395 = vmatprep.subr.bf16.mxu1 %v16394_v39  ;;  %v10843_v43 = vld [vmem:[#allocation2 + $0x3b] sm:$0xff] }
 0x9a5   :  { %15310 = vmatmul.mubr.f32.gmra.mrb[52].mxu1 %v19582_v31  ;;  %v10890_v31 = vld [vmem:[#allocation9 + $0xd28] sm:$0xff] }
 0x9a6   :  { %15312 = vmatprep.mubr.f32.mxu1 %v19585_v54  ;;  %16397 = vmatpush3.bf16.msra.mxu1 %v16394_v39  ;;  %v16414_v29 = vpack.c.bf16 %v10890_v31, %v10889_v30  ;;  %v10469_v54 = vld [vmem:[#allocation2 + $0x4a] sm:$0xff] }
 0x9a7   :  { %16399 = vmatprep.subr.bf16.mxu1 %v16398_v15  ;;  %v10497_v39 = vld [vmem:[#allocation2 + $0x12a] sm:$0xff] }
 0x9a8   :  { %v10848_v30 = vld [vmem:[#allocation2 + $0x63] sm:$0xff]  ;;  %v10849_v31 = vld [vmem:[#allocation2 + $0x6b] sm:$0xff] }
 0x9a9   :  { %15313 = vmatmul.mubr.f32.gmra.mrb[54].mxu1 %v19590_v59  ;;  %v10892_v59 = vld [vmem:[#allocation9 + $0xd38] sm:$0xff] }
 0x9aa   :  { %15315 = vmatprep.mubr.f32.mxu1 %v19593_v49  ;;  %16401 = vmatpush3.bf16.msra.mxu1 %v16398_v15  ;;  %v10470_v49 = vld [vmem:[#allocation2 + $0x52] sm:$0xff]  ;;  %v10500_v15 = vld [vmem:[#allocation2 + $0x142] sm:$0xff] }
 0x9ab   :  { %16403 = vmatprep.subr.bf16.mxu1 %v16402_v50 }
 0x9ad   :  { %15316 = vmatmul.mubr.f32.gmra.mrb[56].mxu1 %v19597_v22  ;;  %v16418_v22 = vpack.c.bf16 %v10892_v59, %v10891_v6  ;;  %v10853_v6 = vld [vmem:[#allocation2 + $0x8b] sm:$0xff]  ;;  %v10854_v59 = vld [vmem:[#allocation2 + $0x93] sm:$0xff] }
 0x9ae   :  { %15318 = vmatprep.mubr.f32.mxu1 %v19600_v61  ;;  %16405 = vmatpush3.bf16.msra.mxu1 %v16402_v50  ;;  %v10471_v61 = vld [vmem:[#allocation2 + $0x5a] sm:$0xff] }
 0x9af   :  { %16407 = vmatprep.subr.bf16.mxu1 %v16406_v60  ;;  %v10503_v50 = vld [vmem:[#allocation2 + $0x15a] sm:$0xff] }
 0x9b1   :  { %15319 = vmatmul.mubr.f32.gmra.mrb[58].mxu1 %v19603_v8  ;;  %v10893_v8 = vld [vmem:[#allocation9 + $0xd40] sm:$0xff] }
 0x9b2   :  { %15321 = vmatprep.mubr.f32.mxu1 %v19606_v48  ;;  %v10894_v48 = vld [vmem:[#allocation9 + $0xd48] sm:$0xff] }
 0x9b5   :  { %15322 = vmatmul.mubr.f32.gmra.mrb[60].mxu1 %v19609_v4  ;;  %v10472_v4 = vld [vmem:[#allocation2 + $0x62] sm:$0xff] }
 0x9b6   :  { %15324 = vmatprep.mubr.f32.mxu1 %v19612_v51  ;;  %v16422_v51 = vpack.c.bf16 %v10894_v48, %v10893_v8  ;;  %v10858_v8 = vld [vmem:[#allocation2 + $0xb3] sm:$0xff]  ;;  %v10859_v48 = vld [vmem:[#allocation2 + $0xbb] sm:$0xff] }
 0x9b9   :  { %15325 = vmatmul.mubr.f32.gmra.mrb[62].mxu1 %v19615_v38  ;;  %v10473_v38 = vld [vmem:[#allocation2 + $0x6a] sm:$0xff] }
 0x9ba   :  { %15327 = vmatprep.mubr.f32.mxu1 %v19618_v0  ;;  %v10895_v0 = vld [vmem:[#allocation9 + $0xd50] sm:$0xff] }
 0x9bd   :  { %15328 = vmatmul.mubr.f32.gmra.mrb[64].mxu1 %v19621_v17  ;;  %v10896_v17 = vld [vmem:[#allocation9 + $0xd58] sm:$0xff] }
 0x9be   :  { %15330 = vmatprep.mubr.f32.mxu1 %v19624_v42  ;;  %v10474_v42 = vld [vmem:[#allocation2 + $0x72] sm:$0xff] }
 0x9c1   :  { %15331 = vmatmul.mubr.f32.gmra.mrb[66].mxu1 %v19627_v7  ;;  %v16426_v7 = vpack.c.bf16 %v10896_v17, %v10895_v0  ;;  %v10863_v0 = vld [vmem:[#allocation2 + $0xdb] sm:$0xff]  ;;  %v10864_v17 = vld [vmem:[#allocation2 + $0xe3] sm:$0xff] }
 0x9c2   :  { %15333 = vmatprep.mubr.f32.mxu1 %v19630_v10  ;;  %v10475_v10 = vld [vmem:[#allocation2 + $0x7a] sm:$0xff] }
 0x9c5   :  { %15334 = vmatmul.mubr.f32.gmra.mrb[68].mxu1 %v19633_v5  ;;  %v10897_v5 = vld [vmem:[#allocation9 + $0xd60] sm:$0xff] }
 0x9c6   :  { %15336 = vmatprep.mubr.f32.mxu1 %v19636_v62  ;;  %v10898_v62 = vld [vmem:[#allocation9 + $0xd68] sm:$0xff] }
 0x9c9   :  { %15337 = vmatmul.mubr.f32.gmra.mrb[70].mxu1 %v19639_v56  ;;  %v10476_v56 = vld [vmem:[#allocation2 + $0x82] sm:$0xff] }
 0x9ca   :  { %15339 = vmatprep.mubr.f32.mxu1 %v19642_v13  ;;  %v16430_v13 = vpack.c.bf16 %v10898_v62, %v10897_v5  ;;  %v10868_v5 = vld [vmem:[#allocation2 + $0x103] sm:$0xff]  ;;  %v10869_v62 = vld [vmem:[#allocation2 + $0x10b] sm:$0xff] }
 0x9cd   :  { %15340 = vmatmul.mubr.f32.gmra.mrb[72].mxu1 %v19645_v18  ;;  %v10477_v18 = vld [vmem:[#allocation2 + $0x8a] sm:$0xff] }
 0x9ce   :  { %15342 = vmatprep.mubr.f32.mxu1 %v19648_v3  ;;  %v10899_v3 = vld [vmem:[#allocation9 + $0xd70] sm:$0xff] }
 0x9d1   :  { %15343 = vmatmul.mubr.f32.gmra.mrb[74].mxu1 %v19651_v33  ;;  %v10900_v33 = vld [vmem:[#allocation9 + $0xd78] sm:$0xff] }
 0x9d2   :  { %15345 = vmatprep.mubr.f32.mxu1 %v19654_v20  ;;  %v10478_v20 = vld [vmem:[#allocation2 + $0x92] sm:$0xff] }
 0x9d5   :  { %15346 = vmatmul.mubr.f32.gmra.mrb[76].mxu1 %v19657_v23  ;;  %v16434_v23 = vpack.c.bf16 %v10900_v33, %v10899_v3  ;;  %v10873_v3 = vld [vmem:[#allocation2 + $0x12b] sm:$0xff]  ;;  %v10874_v33 = vld [vmem:[#allocation2 + $0x133] sm:$0xff] }
 0x9d6   :  { %15348 = vmatprep.mubr.f32.mxu1 %v19660_v37  ;;  %v10479_v37 = vld [vmem:[#allocation2 + $0x9a] sm:$0xff] }
 0x9d9   :  { %15349 = vmatmul.mubr.f32.gmra.mrb[78].mxu1 %v19663_v57  ;;  %v10480_v57 = vld [vmem:[#allocation2 + $0xa2] sm:$0xff] }
 0x9da   :  { %15351 = vmatprep.mubr.f32.mxu1 %v19666_v25  ;;  %v10481_v25 = vld [vmem:[#allocation2 + $0xaa] sm:$0xff] }
 0x9dd   :  { %15352 = vmatmul.mubr.f32.gmra.mrb[80].mxu1 %v19669_v34  ;;  %v10482_v34 = vld [vmem:[#allocation2 + $0xb2] sm:$0xff] }
 0x9de   :  { %15354 = vmatprep.mubr.f32.mxu1 %v10130_v41  ;;  %v10507_v41 = vld [vmem:[#allocation2 + $0x17a] sm:$0xff] }
 0x9e1   :  { %15355 = vmatmul.mubr.f32.gmra.mrb[82].mxu1 %v10131_v14  ;;  %v10842_v14 = vld [vmem:[#allocation2 + $0x33] sm:$0xff] }
 0x9e2   :  { %15389 = vmatprep.mubr.f32.mxu1 %v10466_v28  ;;  %v10845_v28 = vld [vmem:[#allocation2 + $0x4b] sm:$0xff] }
 0x9e5   :  { %15390 = vmatmul.mubr.f32.vlgmr.msra.gmra.mrb[42].mxu1 %v10467_v26  ;;  %v10847_v26 = vld [vmem:[#allocation2 + $0x5b] sm:$0xff] }
 0x9e6   :  { %16409 = vmatpush3.bf16.msra.mxu1 %v16406_v60  ;;  %15392 = vmatprep.mubr.f32.mxu1 %v10468_v55  ;;  %v10505_v60 = vld [vmem:[#allocation2 + $0x16a] sm:$0xff]  ;;  %v10850_v55 = vld [vmem:[#allocation2 + $0x73] sm:$0xff] }
 0x9e7   :  { %16411 = vmatprep.subr.bf16.mxu1 %v16410_v52 }
 0x9e9   :  { %15393 = vmatmul.mubr.f32.gmra.mrb[44].mxu1 %v10469_v54  ;;  %v10852_v54 = vld [vmem:[#allocation2 + $0x83] sm:$0xff] }
 0x9ea   :  { %15395 = vmatprep.mubr.f32.mxu1 %v10470_v49  ;;  %16413 = vmatpush3.bf16.msra.mxu1 %v16410_v52  ;;  %v10846_v52 = vld [vmem:[#allocation2 + $0x53] sm:$0xff]  ;;  %v10855_v49 = vld [vmem:[#allocation2 + $0x9b] sm:$0xff] }
 0x9eb   :  { %16415 = vmatprep.subr.bf16.mxu1 %v16414_v29 }
 0x9ed   :  { %15396 = vmatmul.mubr.f32.gmra.mrb[46].mxu1 %v10471_v61  ;;  %v10857_v61 = vld [vmem:[#allocation2 + $0xab] sm:$0xff] }
 0x9ee   :  { %15398 = vmatprep.mubr.f32.mxu1 %v10472_v4  ;;  %16417 = vmatpush3.bf16.msra.mxu1 %v16414_v29  ;;  %v10851_v29 = vld [vmem:[#allocation2 + $0x7b] sm:$0xff]  ;;  %v10860_v4 = vld [vmem:[#allocation2 + $0xc3] sm:$0xff] }
 0x9ef   :  { %16419 = vmatprep.subr.bf16.mxu1 %v16418_v22 }
 0x9f1   :  { %15399 = vmatmul.mubr.f32.gmra.mrb[48].mxu1 %v10473_v38  ;;  %v10862_v38 = vld [vmem:[#allocation2 + $0xd3] sm:$0xff] }
 0x9f2   :  { %15401 = vmatprep.mubr.f32.mxu1 %v10474_v42  ;;  %16421 = vmatpush3.bf16.msra.mxu1 %v16418_v22  ;;  %v10856_v22 = vld [vmem:[#allocation2 + $0xa3] sm:$0xff]  ;;  %v10865_v42 = vld [vmem:[#allocation2 + $0xeb] sm:$0xff] }
 0x9f3   :  { %16423 = vmatprep.subr.bf16.mxu1 %v16422_v51 }
 0x9f5   :  { %15402 = vmatmul.mubr.f32.gmra.mrb[50].mxu1 %v10475_v10  ;;  %v10867_v10 = vld [vmem:[#allocation2 + $0xfb] sm:$0xff] }
 0x9f6   :  { %15404 = vmatprep.mubr.f32.mxu1 %v10476_v56  ;;  %16425 = vmatpush3.bf16.msra.mxu1 %v16422_v51  ;;  %v10861_v51 = vld [vmem:[#allocation2 + $0xcb] sm:$0xff]  ;;  %v10870_v56 = vld [vmem:[#allocation2 + $0x113] sm:$0xff] }
 0x9f7   :  { %16427 = vmatprep.subr.bf16.mxu1 %v16426_v7 }
 0x9f9   :  { %15405 = vmatmul.mubr.f32.gmra.mrb[52].mxu1 %v10477_v18  ;;  %v10872_v18 = vld [vmem:[#allocation2 + $0x123] sm:$0xff] }
 0x9fa   :  { %15407 = vmatprep.mubr.f32.mxu1 %v10478_v20  ;;  %16429 = vmatpush3.bf16.msra.mxu1 %v16426_v7  ;;  %v10866_v7 = vld [vmem:[#allocation2 + $0xf3] sm:$0xff]  ;;  %v10875_v20 = vld [vmem:[#allocation2 + $0x13b] sm:$0xff] }
 0x9fb   :  { %16431 = vmatprep.subr.bf16.mxu1 %v16430_v13 }
 0x9fd   :  { %15408 = vmatmul.mubr.f32.gmra.mrb[54].mxu1 %v10479_v37  ;;  %v10877_v37 = vld [vmem:[#allocation2 + $0x14b] sm:$0xff] }
 0x9fe   :  { %15410 = vmatprep.mubr.f32.mxu1 %v10480_v57  ;;  %16433 = vmatpush3.bf16.msra.mxu1 %v16430_v13  ;;  %v10871_v13 = vld [vmem:[#allocation2 + $0x11b] sm:$0xff]  ;;  %v10878_v57 = vld [vmem:[#allocation2 + $0x153] sm:$0xff] }
 0x9ff   :  { %16435 = vmatprep.subr.bf16.mxu1 %v16434_v23 }
 0xa01   :  { %15411 = vmatmul.mubr.f32.gmra.mrb[56].mxu1 %v10481_v25  ;;  %v10879_v25 = vld [vmem:[#allocation2 + $0x15b] sm:$0xff] }
 0xa02   :  { %15413 = vmatprep.mubr.f32.mxu1 %v10482_v34  ;;  %16437 = vmatpush3.bf16.msra.mxu1 %v16434_v23  ;;  %v10876_v23 = vld [vmem:[#allocation2 + $0x143] sm:$0xff] }
 0xa03   :  { %v10880_v34 = vld [vmem:[#allocation2 + $0x163] sm:$0xff] }
 0xa05   :  { %15414 = vmatmul.mubr.f32.gmra.mrb[58].mxu1 %v10483_v35  ;;  %v10882_v35 = vld [vmem:[#allocation2 + $0x173] sm:$0xff] }
 0xa06   :  { %15416 = vmatprep.mubr.f32.mxu1 %v10484_v53  ;;  %v10881_v53 = vld [vmem:[#allocation2 + $0x16b] sm:$0xff] }
 0xa09   :  { %15417 = vmatmul.mubr.f32.gmra.mrb[60].mxu1 %v10485_v36  ;;  %v10883_v36 = vld [vmem:[#allocation2 + $0x17b] sm:$0xff] }
 0xa0a   :  { %15419 = vmatprep.mubr.f32.mxu1 %v10486_v45  ;;  %v19713_v45 = vld [vmem:[#allocation7 + $0x3] ss:$0 sm:$0xff] }
 0xa0d   :  { %15420 = vmatmul.mubr.f32.gmra.mrb[62].mxu1 %v10487_v1 }
 0xa0e   :  { %15422 = vmatprep.mubr.f32.mxu1 %v10488_v27 }
 0xa11   :  { %15423 = vmatmul.mubr.f32.gmra.mrb[64].mxu1 %v10489_v58 }
 0xa12   :  { %15425 = vmatprep.mubr.f32.mxu1 %v10490_v11 }
 0xa15   :  { %15426 = vmatmul.mubr.f32.gmra.mrb[66].mxu1 %v10491_v19 }
 0xa16   :  { %15428 = vmatprep.mubr.f32.mxu1 %v10492_v2 }
 0xa19   :  { %15429 = vmatmul.mubr.f32.gmra.mrb[68].mxu1 %v10493_v47 }
 0xa1a   :  { %15431 = vmatprep.mubr.f32.mxu1 %v10494_v63 }
 0xa1d   :  { %15432 = vmatmul.mubr.f32.gmra.mrb[70].mxu1 %v10495_v21 }
 0xa1e   :  { %15434 = vmatprep.mubr.f32.mxu1 %v10496_v46 }
 0xa21   :  { %15435 = vmatmul.mubr.f32.gmra.mrb[72].mxu1 %v10497_v39 }
 0xa22   :  { %15437 = vmatprep.mubr.f32.mxu1 %v10498_v9 }
 0xa25   :  { %15438 = vmatmul.mubr.f32.gmra.mrb[74].mxu1 %v10499_v12 }
 0xa26   :  { %15440 = vmatprep.mubr.f32.mxu1 %v10500_v15 }
 0xa29   :  { %15441 = vmatmul.mubr.f32.gmra.mrb[76].mxu1 %v10501_v24 }
 0xa2a   :  { %15443 = vmatprep.mubr.f32.mxu1 %v10502_v16 }
 0xa2d   :  { %15444 = vmatmul.mubr.f32.gmra.mrb[78].mxu1 %v10503_v50 }
 0xa2e   :  { %15446 = vmatprep.mubr.f32.mxu1 %v10504_v40 }
 0xa31   :  { %15447 = vmatmul.mubr.f32.gmra.mrb[80].mxu1 %v10505_v60 }
 0xa32   :  { %15449 = vmatprep.mubr.f32.mxu1 %v10506_v44 }
 0xa35   :  { %15450 = vmatmul.mubr.f32.gmra.mrb[82].mxu1 %v10507_v41 }
 0xa36   :  { %15484 = vmatprep.mubr.f32.mxu1 %v10842_v14 }
 0xa39   :  { %15485 = vmatmul.mubr.f32.vlgmr.msra.gmra.mrb[42].mxu1 %v10843_v43 }
 0xa3a   :  { %15487 = vmatprep.mubr.f32.mxu1 %v10844_v32 }
 0xa3d   :  { %15488 = vmatmul.mubr.f32.gmra.mrb[44].mxu1 %v10845_v28 }
 0xa3e   :  { %15490 = vmatprep.mubr.f32.mxu1 %v10846_v52 }
 0xa41   :  { %15491 = vmatmul.mubr.f32.gmra.mrb[46].mxu1 %v10847_v26 }
 0xa42   :  { %15493 = vmatprep.mubr.f32.mxu1 %v10848_v30 }
 0xa45   :  { %15494 = vmatmul.mubr.f32.gmra.mrb[48].mxu1 %v10849_v31 }
 0xa46   :  { %15496 = vmatprep.mubr.f32.mxu1 %v10850_v55 }
 0xa49   :  { %15497 = vmatmul.mubr.f32.gmra.mrb[50].mxu1 %v10851_v29 }
 0xa4a   :  { %15499 = vmatprep.mubr.f32.mxu1 %v10852_v54 }
 0xa4d   :  { %15500 = vmatmul.mubr.f32.gmra.mrb[52].mxu1 %v10853_v6 }
 0xa4e   :  { %15502 = vmatprep.mubr.f32.mxu1 %v10854_v59 }
 0xa51   :  { %15503 = vmatmul.mubr.f32.gmra.mrb[54].mxu1 %v10855_v49 }
 0xa52   :  { %15505 = vmatprep.mubr.f32.mxu1 %v10856_v22 }
 0xa55   :  { %15506 = vmatmul.mubr.f32.gmra.mrb[56].mxu1 %v10857_v61 }
 0xa56   :  { %15508 = vmatprep.mubr.f32.mxu1 %v10858_v8 }
 0xa59   :  { %15509 = vmatmul.mubr.f32.gmra.mrb[58].mxu1 %v10859_v48 }
 0xa5a   :  { %15511 = vmatprep.mubr.f32.mxu1 %v10860_v4 }
 0xa5d   :  { %15512 = vmatmul.mubr.f32.gmra.mrb[60].mxu1 %v10861_v51 }
 0xa5e   :  { %15514 = vmatprep.mubr.f32.mxu1 %v10862_v38 }
 0xa61   :  { %15515 = vmatmul.mubr.f32.gmra.mrb[62].mxu1 %v10863_v0 }
 0xa62   :  { %15517 = vmatprep.mubr.f32.mxu1 %v10864_v17 }
 0xa65   :  { %15518 = vmatmul.mubr.f32.gmra.mrb[64].mxu1 %v10865_v42 }
 0xa66   :  { %15520 = vmatprep.mubr.f32.mxu1 %v10866_v7 }
 0xa69   :  { %15521 = vmatmul.mubr.f32.gmra.mrb[66].mxu1 %v10867_v10 }
 0xa6a   :  { %15523 = vmatprep.mubr.f32.mxu1 %v10868_v5 }
 0xa6d   :  { %15524 = vmatmul.mubr.f32.gmra.mrb[68].mxu1 %v10869_v62 }
 0xa6e   :  { %15526 = vmatprep.mubr.f32.mxu1 %v10870_v56 }
 0xa71   :  { %15527 = vmatmul.mubr.f32.gmra.mrb[70].mxu1 %v10871_v13 }
 0xa72   :  { %15529 = vmatprep.mubr.f32.mxu1 %v10872_v18 }
 0xa75   :  { %15530 = vmatmul.mubr.f32.gmra.mrb[72].mxu1 %v10873_v3 }
 0xa76   :  { %15532 = vmatprep.mubr.f32.mxu1 %v10874_v33 }
 0xa79   :  { %15533 = vmatmul.mubr.f32.gmra.mrb[74].mxu1 %v10875_v20 }
 0xa7a   :  { %15535 = vmatprep.mubr.f32.mxu1 %v10876_v23 }
 0xa7d   :  { %15536 = vmatmul.mubr.f32.gmra.mrb[76].mxu1 %v10877_v37 }
 0xa7e   :  { %15538 = vmatprep.mubr.f32.mxu1 %v10878_v57 }
 0xa81   :  { %15539 = vmatmul.mubr.f32.gmra.mrb[78].mxu1 %v10879_v25 }
 0xa82   :  { %15541 = vmatprep.mubr.f32.mxu1 %v10880_v34 }
 0xa85   :  { %15542 = vmatmul.mubr.f32.gmra.mrb[80].mxu1 %v10881_v53 }
 0xa86   :  { %15544 = vmatprep.mubr.f32.mxu1 %v10882_v35 }
 0xa89   :  { %15545 = vmatmul.mubr.f32.gmra.mrb[82].mxu1 %v10883_v36 }
 0xb0c   :  { %v15486_v1 = vpop.f32.mrb[42].mxu1 }
 0xb0d   :  { %v11227_v27 = vadd.f32 %v15486_v1, %v19713_v45  ;;  %v10967_v58 = vpop.f32.mrb[43].mxu1 }
 0xb0e   :  { %v11226_v11 = vadd.f32 %v19713_v45, %v10967_v58 }
 0xb0f   :  { %v11269_v19 = vmax.f32 %v11227_v27, 0.0 }
 0xb10   :  { %v11268_v2 = vmax.f32 %v11226_v11, 0.0  ;;  %v15489_v47 = vpop.f32.mrb[44].mxu1 }
 0xb11   :  { %11311 = vst [vmem:[#allocation10 + $0x8] sm:$0xff] %v11269_v19  ;;  %v11229_v63 = vadd.f32 %v15489_v47, %v19713_v45  ;;  %v10977_v21 = vpop.f32.mrb[45].mxu1 }
 0xb12   :  { %11310 = vst [vmem:[#allocation10] sm:$0xff] %v11268_v2  ;;  %v11228_v46 = vadd.f32 %v19713_v45, %v10977_v21 }
 0xb13   :  { %v11271_v39 = vmax.f32 %v11229_v63, 0.0 }
 0xb14   :  { %v11270_v9 = vmax.f32 %v11228_v46, 0.0  ;;  %v15492_v12 = vpop.f32.mrb[46].mxu1 }
 0xb15   :  { %11313 = vst [vmem:[#allocation10 + $0x18] sm:$0xff] %v11271_v39  ;;  %v11231_v15 = vadd.f32 %v15492_v12, %v19713_v45  ;;  %v10987_v24 = vpop.f32.mrb[47].mxu1 }
 0xb16   :  { %11312 = vst [vmem:[#allocation10 + $0x10] sm:$0xff] %v11270_v9  ;;  %v11230_v16 = vadd.f32 %v19713_v45, %v10987_v24 }
 0xb17   :  { %v11273_v50 = vmax.f32 %v11231_v15, 0.0 }
 0xb18   :  { %v11272_v40 = vmax.f32 %v11230_v16, 0.0  ;;  %v15495_v44 = vpop.f32.mrb[48].mxu1 }
 0xb19   :  { %11315 = vst [vmem:[#allocation10 + $0x28] sm:$0xff] %v11273_v50  ;;  %v11233_v60 = vadd.f32 %v15495_v44, %v19713_v45  ;;  %v10997_v41 = vpop.f32.mrb[49].mxu1 }
 0xb1a   :  { %11314 = vst [vmem:[#allocation10 + $0x20] sm:$0xff] %v11272_v40  ;;  %v11232_v14 = vadd.f32 %v19713_v45, %v10997_v41 }
 0xb1b   :  { %v11275_v43 = vmax.f32 %v11233_v60, 0.0 }
 0xb1c   :  { %v11274_v32 = vmax.f32 %v11232_v14, 0.0  ;;  %v15498_v28 = vpop.f32.mrb[50].mxu1 }
 0xb1d   :  { %11317 = vst [vmem:[#allocation10 + $0x38] sm:$0xff] %v11275_v43  ;;  %v11235_v52 = vadd.f32 %v15498_v28, %v19713_v45  ;;  %v11007_v26 = vpop.f32.mrb[51].mxu1 }
 0xb1e   :  { %11316 = vst [vmem:[#allocation10 + $0x30] sm:$0xff] %v11274_v32  ;;  %v11234_v30 = vadd.f32 %v19713_v45, %v11007_v26 }
 0xb1f   :  { %v11277_v31 = vmax.f32 %v11235_v52, 0.0 }
 0xb20   :  { %v11276_v55 = vmax.f32 %v11234_v30, 0.0  ;;  %v15501_v29 = vpop.f32.mrb[52].mxu1 }
 0xb21   :  { %11319 = vst [vmem:[#allocation10 + $0x48] sm:$0xff] %v11277_v31  ;;  %v11237_v54 = vadd.f32 %v15501_v29, %v19713_v45  ;;  %v11017_v6 = vpop.f32.mrb[53].mxu1 }
 0xb22   :  { %11318 = vst [vmem:[#allocation10 + $0x40] sm:$0xff] %v11276_v55  ;;  %v11236_v59 = vadd.f32 %v19713_v45, %v11017_v6 }
 0xb23   :  { %v11279_v49 = vmax.f32 %v11237_v54, 0.0 }
 0xb24   :  { %v11278_v22 = vmax.f32 %v11236_v59, 0.0  ;;  %v15504_v61 = vpop.f32.mrb[54].mxu1 }
 0xb25   :  { %11321 = vst [vmem:[#allocation10 + $0x58] sm:$0xff] %v11279_v49  ;;  %v11239_v8 = vadd.f32 %v15504_v61, %v19713_v45  ;;  %v11027_v48 = vpop.f32.mrb[55].mxu1 }
 0xb26   :  { %11320 = vst [vmem:[#allocation10 + $0x50] sm:$0xff] %v11278_v22  ;;  %v11238_v4 = vadd.f32 %v19713_v45, %v11027_v48 }
 0xb27   :  { %v11281_v51 = vmax.f32 %v11239_v8, 0.0 }
 0xb28   :  { %v11280_v38 = vmax.f32 %v11238_v4, 0.0  ;;  %v15507_v0 = vpop.f32.mrb[56].mxu1 }
 0xb29   :  { %11323 = vst [vmem:[#allocation10 + $0x68] sm:$0xff] %v11281_v51  ;;  %v11241_v17 = vadd.f32 %v15507_v0, %v19713_v45  ;;  %v11037_v42 = vpop.f32.mrb[57].mxu1 }
 0xb2a   :  { %11322 = vst [vmem:[#allocation10 + $0x60] sm:$0xff] %v11280_v38  ;;  %v11240_v7 = vadd.f32 %v19713_v45, %v11037_v42 }
 0xb2b   :  { %v11283_v10 = vmax.f32 %v11241_v17, 0.0 }
 0xb2c   :  { %v11282_v5 = vmax.f32 %v11240_v7, 0.0  ;;  %v15510_v62 = vpop.f32.mrb[58].mxu1 }
 0xb2d   :  { %11325 = vst [vmem:[#allocation10 + $0x78] sm:$0xff] %v11283_v10  ;;  %v11243_v56 = vadd.f32 %v15510_v62, %v19713_v45  ;;  %v11047_v13 = vpop.f32.mrb[59].mxu1 }
 0xb2e   :  { %11324 = vst [vmem:[#allocation10 + $0x70] sm:$0xff] %v11282_v5  ;;  %v11242_v18 = vadd.f32 %v19713_v45, %v11047_v13 }
 0xb2f   :  { %v11285_v3 = vmax.f32 %v11243_v56, 0.0 }
 0xb30   :  { %v11284_v33 = vmax.f32 %v11242_v18, 0.0  ;;  %v15513_v20 = vpop.f32.mrb[60].mxu1 }
 0xb31   :  { %11327 = vst [vmem:[#allocation10 + $0x88] sm:$0xff] %v11285_v3  ;;  %v11245_v23 = vadd.f32 %v15513_v20, %v19713_v45  ;;  %v11057_v37 = vpop.f32.mrb[61].mxu1 }
 0xb32   :  { %11326 = vst [vmem:[#allocation10 + $0x80] sm:$0xff] %v11284_v33  ;;  %v11244_v57 = vadd.f32 %v19713_v45, %v11057_v37 }
 0xb33   :  { %v11287_v25 = vmax.f32 %v11245_v23, 0.0 }
 0xb34   :  { %v11286_v34 = vmax.f32 %v11244_v57, 0.0  ;;  %v15516_v35 = vpop.f32.mrb[62].mxu1 }
 0xb35   :  { %11329 = vst [vmem:[#allocation10 + $0x98] sm:$0xff] %v11287_v25  ;;  %v11247_v53 = vadd.f32 %v15516_v35, %v19713_v45  ;;  %v11067_v36 = vpop.f32.mrb[63].mxu1 }
 0xb36   :  { %11328 = vst [vmem:[#allocation10 + $0x90] sm:$0xff] %v11286_v34  ;;  %v11246_v1 = vadd.f32 %v19713_v45, %v11067_v36 }
 0xb37   :  { %v11289_v27 = vmax.f32 %v11247_v53, 0.0 }
 0xb38   :  { %v11288_v58 = vmax.f32 %v11246_v1, 0.0  ;;  %v15519_v11 = vpop.f32.mrb[64].mxu1 }
 0xb39   :  { %11331 = vst [vmem:[#allocation10 + $0xa8] sm:$0xff] %v11289_v27  ;;  %v11249_v19 = vadd.f32 %v15519_v11, %v19713_v45  ;;  %v11077_v2 = vpop.f32.mrb[65].mxu1 }
 0xb3a   :  { %11330 = vst [vmem:[#allocation10 + $0xa0] sm:$0xff] %v11288_v58  ;;  %v11248_v47 = vadd.f32 %v19713_v45, %v11077_v2 }
 0xb3b   :  { %v11291_v63 = vmax.f32 %v11249_v19, 0.0 }
 0xb3c   :  { %v11290_v21 = vmax.f32 %v11248_v47, 0.0  ;;  %v15522_v46 = vpop.f32.mrb[66].mxu1 }
 0xb3d   :  { %11333 = vst [vmem:[#allocation10 + $0xb8] sm:$0xff] %v11291_v63  ;;  %v11251_v39 = vadd.f32 %v15522_v46, %v19713_v45  ;;  %v11087_v9 = vpop.f32.mrb[67].mxu1 }
 0xb3e   :  { %11332 = vst [vmem:[#allocation10 + $0xb0] sm:$0xff] %v11290_v21  ;;  %v11250_v12 = vadd.f32 %v19713_v45, %v11087_v9 }
 0xb3f   :  { %v11293_v15 = vmax.f32 %v11251_v39, 0.0 }
 0xb40   :  { %v11292_v24 = vmax.f32 %v11250_v12, 0.0  ;;  %v15525_v16 = vpop.f32.mrb[68].mxu1 }
 0xb41   :  { %11335 = vst [vmem:[#allocation10 + $0xc8] sm:$0xff] %v11293_v15  ;;  %v11253_v50 = vadd.f32 %v15525_v16, %v19713_v45  ;;  %v11097_v40 = vpop.f32.mrb[69].mxu1 }
 0xb42   :  { %11334 = vst [vmem:[#allocation10 + $0xc0] sm:$0xff] %v11292_v24  ;;  %v11252_v44 = vadd.f32 %v19713_v45, %v11097_v40 }
 0xb43   :  { %v11295_v60 = vmax.f32 %v11253_v50, 0.0 }
 0xb44   :  { %v11294_v41 = vmax.f32 %v11252_v44, 0.0  ;;  %v15528_v14 = vpop.f32.mrb[70].mxu1 }
 0xb45   :  { %11337 = vst [vmem:[#allocation10 + $0xd8] sm:$0xff] %v11295_v60  ;;  %v11255_v43 = vadd.f32 %v15528_v14, %v19713_v45  ;;  %v11107_v32 = vpop.f32.mrb[71].mxu1 }
 0xb46   :  { %11336 = vst [vmem:[#allocation10 + $0xd0] sm:$0xff] %v11294_v41  ;;  %v11254_v28 = vadd.f32 %v19713_v45, %v11107_v32 }
 0xb47   :  { %v11297_v52 = vmax.f32 %v11255_v43, 0.0 }
 0xb48   :  { %v11296_v26 = vmax.f32 %v11254_v28, 0.0  ;;  %v15531_v30 = vpop.f32.mrb[72].mxu1 }
 0xb49   :  { %11339 = vst [vmem:[#allocation10 + $0xe8] sm:$0xff] %v11297_v52  ;;  %v11257_v31 = vadd.f32 %v15531_v30, %v19713_v45  ;;  %v11117_v55 = vpop.f32.mrb[73].mxu1 }
 0xb4a   :  { %11338 = vst [vmem:[#allocation10 + $0xe0] sm:$0xff] %v11296_v26  ;;  %v11256_v29 = vadd.f32 %v19713_v45, %v11117_v55 }
 0xb4b   :  { %v11299_v54 = vmax.f32 %v11257_v31, 0.0 }
 0xb4c   :  { %v11298_v6 = vmax.f32 %v11256_v29, 0.0  ;;  %v15534_v59 = vpop.f32.mrb[74].mxu1 }
 0xb4d   :  { %11341 = vst [vmem:[#allocation10 + $0xf8] sm:$0xff] %v11299_v54  ;;  %v11259_v49 = vadd.f32 %v15534_v59, %v19713_v45  ;;  %v11127_v22 = vpop.f32.mrb[75].mxu1 }
 0xb4e   :  { %11340 = vst [vmem:[#allocation10 + $0xf0] sm:$0xff] %v11298_v6  ;;  %v11258_v61 = vadd.f32 %v19713_v45, %v11127_v22 }
 0xb4f   :  { %v11301_v8 = vmax.f32 %v11259_v49, 0.0 }
 0xb50   :  { %v11300_v48 = vmax.f32 %v11258_v61, 0.0  ;;  %v15537_v4 = vpop.f32.mrb[76].mxu1 }
 0xb51   :  { %11343 = vst [vmem:[#allocation10 + $0x108] sm:$0xff] %v11301_v8  ;;  %v11261_v51 = vadd.f32 %v15537_v4, %v19713_v45  ;;  %v11137_v38 = vpop.f32.mrb[77].mxu1 }
 0xb52   :  { %11342 = vst [vmem:[#allocation10 + $0x100] sm:$0xff] %v11300_v48  ;;  %v11260_v0 = vadd.f32 %v19713_v45, %v11137_v38 }
 0xb53   :  { %v11303_v17 = vmax.f32 %v11261_v51, 0.0 }
 0xb54   :  { %v11302_v42 = vmax.f32 %v11260_v0, 0.0  ;;  %v15540_v7 = vpop.f32.mrb[78].mxu1 }
 0xb55   :  { %11345 = vst [vmem:[#allocation10 + $0x118] sm:$0xff] %v11303_v17  ;;  %v11263_v10 = vadd.f32 %v15540_v7, %v19713_v45  ;;  %v11147_v5 = vpop.f32.mrb[79].mxu1 }
 0xb56   :  { %11344 = vst [vmem:[#allocation10 + $0x110] sm:$0xff] %v11302_v42  ;;  %v11262_v62 = vadd.f32 %v19713_v45, %v11147_v5 }
 0xb57   :  { %v11305_v56 = vmax.f32 %v11263_v10, 0.0 }
 0xb58   :  { %v11304_v13 = vmax.f32 %v11262_v62, 0.0  ;;  %v15543_v18 = vpop.f32.mrb[80].mxu1 }
 0xb59   :  { %11347 = vst [vmem:[#allocation10 + $0x128] sm:$0xff] %v11305_v56  ;;  %v11265_v3 = vadd.f32 %v15543_v18, %v19713_v45  ;;  %v11157_v33 = vpop.f32.mrb[81].mxu1 }
 0xb5a   :  { %11346 = vst [vmem:[#allocation10 + $0x120] sm:$0xff] %v11304_v13  ;;  %v11264_v20 = vadd.f32 %v19713_v45, %v11157_v33 }
 0xb5b   :  { %v11307_v23 = vmax.f32 %v11265_v3, 0.0 }
 0xb5c   :  { %v11306_v37 = vmax.f32 %v11264_v20, 0.0  ;;  %v15546_v57 = vpop.f32.mrb[82].mxu1 }
 0xb5d   :  { %11349 = vst [vmem:[#allocation10 + $0x138] sm:$0xff] %v11307_v23  ;;  %v11267_v25 = vadd.f32 %v15546_v57, %v19713_v45  ;;  %v11167_v34 = vpop.f32.mrb[83].mxu1 }
 0xb5e   :  { %11348 = vst [vmem:[#allocation10 + $0x130] sm:$0xff] %v11306_v37  ;;  %v11266_v35 = vadd.f32 %v19713_v45, %v11167_v34 }
 0xb5f   :  { %v11309_v53 = vmax.f32 %v11267_v25, 0.0 }
 0xb60   :  { %v11308_v36 = vmax.f32 %v11266_v35, 0.0 }
 0xb61   :  { %11351 = vst [vmem:[#allocation10 + $0x148] sm:$0xff] %v11309_v53 }
 0xb62   :  { %11350 = vst [vmem:[#allocation10 + $0x140] sm:$0xff] %v11308_v36 }
 0xb63   :  { %17552 = shalt.err (!%p17549_p0)
}
 0xb64   :  { %s17553_s24 = scalar_lea.hbm %s19777_s5, 5376 }
 0xb65   :  { %p17554_p1 = scmp.ne.s32.totalorder %s19777_s5, %s17553_s24  ;;  %p17557_p2 = scmp.lt.u32.totalorder %s17553_s24, %s19777_s5 }
 0xb67   :  { %p17559_p3 = pnand %p17557_p2, %p17554_p1 }
 0xb69   :  { %17562 = shalt.err (!%p17559_p3)
}
 0xb6a   :  { %11363 = dma.vmem_to_hbm [thread:$0]  %s11358_s20, 5376, %s19777_s5, [#allocation6], %s17573_s3, %s17573_s3, %s17574_s17  }
 0xb6b   :  { %17567 = dma.done.wait [#allocation6], 5376  }
 0xb6c   :  { %17568 = vsyncadd [#allocation6], 4294961920 }
 0xb6d   :  { %11367 = vsyncpa [#allocation5], 1 }
 0xb6e   :  { %11368 = vsyncpa [#allocation8], 1 }
 0xb6f   :  { %11369 = vsyncpa [#allocation6], 1 }

</bundles_post_ra>
